<compile_context>
chip_gen: v6e
topology: v6e:2x2x1
jax: 0.10.0
libtpu: 0.0.40
codegen_flags: <defaults>
</compile_context>

<pallas_src>
import functools

import jax
import jax.numpy as jnp
import numpy as np
from jax.experimental import pallas as pl
from jax.experimental.pallas import tpu as pltpu


def _resblock_kernel(x_ref, w1_ref, b1_ref, w2_ref, b2_ref, o_ref,
                     pad_ref, im2col_ref, *, H, W, C, K, res_scale):
    # x_ref     : (1, H, W, C)      f32   input block (residual source)
    # w1/w2_ref : (K*K*C, C)        bf16  im2col-folded conv weights
    # b1/b2_ref : (1, C)            f32   biases
    # o_ref     : (1, H, W, C)      f32   output block
    # pad_ref   : (H+2p, W+2p, C)   bf16  padded conv input (reused by conv1+2)
    # im2col_ref: (H*W, K*K*C)      bf16  im2col patch matrix (reused)
    HW = H * W
    p = K // 2
    Hp, Wp = H + 2 * p, W + 2 * p
    cdt = pad_ref.dtype

    # Zero only the halo border; the interior is fully overwritten below.
    pad_ref[0:p, :, :] = jnp.zeros((p, Wp, C), cdt)           # top rows
    pad_ref[p + H:Hp, :, :] = jnp.zeros((p, Wp, C), cdt)      # bottom rows
    pad_ref[p:p + H, 0:p, :] = jnp.zeros((H, p, C), cdt)      # left cols
    pad_ref[p:p + H, p + W:Wp, :] = jnp.zeros((H, p, C), cdt) # right cols

    def conv(w_ref, b_ref):
        # im2col: pack the K*K shifted (HW, C) tiles along the contraction
        # axis, then ONE (HW, K*K*C) @ (K*K*C, C) bf16 MXU matmul, f32 accum.
        for dh in range(K):
            for dw in range(K):
                t = dh * K + dw
                im2col_ref[:, t * C:(t + 1) * C] = (
                    pad_ref[dh:dh + H, dw:dw + W, :].reshape(HW, C))
        return jnp.dot(im2col_ref[...], w_ref[...],
                       preferred_element_type=jnp.float32) + b_ref[...]

    x = x_ref[0]                                              # (H, W, C) f32

    # ---- conv1 + ReLU -------------------------------------------------------
    pad_ref[p:p + H, p:p + W, :] = x.astype(cdt)
    act = jnp.maximum(conv(w1_ref, b1_ref), 0.0)              # (HW, C) f32

    # ---- conv2 (reuse the same padded scratch; border is still zero) --------
    pad_ref[p:p + H, p:p + W, :] = act.reshape(H, W, C).astype(cdt)
    res = conv(w2_ref, b2_ref)                                # (HW, C) f32

    # ---- residual add with res_scale (f32) ----------------------------------
    o_ref[0] = (x + res_scale * res.reshape(H, W, C)).astype(o_ref.dtype)


def residual_block_pallas(x_nhwc, w1_hwio, b1, w2_hwio, b2, *,
                          res_scale, kernel_size):
    """x_nhwc: (N,H,W,C) f32; w*_hwio: (K,K,C,C) f32; b*: (C,) f32."""
    N, H, W, C = x_nhwc.shape
    K = kernel_size
    p = K // 2
    Hp, Wp = H + 2 * p, W + 2 * p
    HW = H * W

    # Fold (dh, dw, cin) into the contraction dimension; bf16 MXU operands.
    w1_mat = w1_hwio.reshape(K * K * C, C).astype(jnp.bfloat16)
    w2_mat = w2_hwio.reshape(K * K * C, C).astype(jnp.bfloat16)
    b1r = b1.reshape(1, C).astype(jnp.float32)
    b2r = b2.reshape(1, C).astype(jnp.float32)

    kernel = functools.partial(_resblock_kernel, H=H, W=W, C=C, K=K,
                               res_scale=res_scale)

    return pl.pallas_call(
        kernel,
        out_shape=jax.ShapeDtypeStruct((N, H, W, C), x_nhwc.dtype),
        grid_spec=pltpu.PrefetchScalarGridSpec(
            num_scalar_prefetch=0,
            grid=(N,),
            in_specs=[
                pl.BlockSpec((1, H, W, C), lambda b: (b, 0, 0, 0)),   # x
                pl.BlockSpec((K * K * C, C), lambda b: (0, 0)),       # w1
                pl.BlockSpec((1, C), lambda b: (0, 0)),               # b1
                pl.BlockSpec((K * K * C, C), lambda b: (0, 0)),       # w2
                pl.BlockSpec((1, C), lambda b: (0, 0)),               # b2
            ],
            out_specs=pl.BlockSpec((1, H, W, C), lambda b: (b, 0, 0, 0)),
            scratch_shapes=[
                pltpu.VMEM((Hp, Wp, C), jnp.bfloat16),       # padded conv input
                pltpu.VMEM((HW, K * K * C), jnp.bfloat16),   # im2col patches
            ],
        ),
        compiler_params=pltpu.CompilerParams(
            dimension_semantics=("parallel",)),
    )(x_nhwc, w1_mat, b1r, w2_mat, b2r)


def reference_nhwc(x, w1, b1, w2, b2, *, res_scale):
    """Mirrors the kernel's mixed precision: bf16 conv operands, f32 accum."""
    dn = ("NHWC", "HWIO", "NHWC")
    r = jax.lax.conv_general_dilated(
        x.astype(jnp.bfloat16), w1.astype(jnp.bfloat16), (1, 1), "SAME",
        dimension_numbers=dn, preferred_element_type=jnp.float32) + b1
    r = jnp.maximum(r, 0.0).astype(jnp.bfloat16)
    r = jax.lax.conv_general_dilated(
        r, w2.astype(jnp.bfloat16), (1, 1), "SAME",
        dimension_numbers=dn, preferred_element_type=jnp.float32) + b2
    return x + res_scale * r


if __name__ == "__main__":
    # Module hyper-parameters (act = ReLU, as used in EDSR).
    n_feats = 32
    kernel_size = 3
    res_scale = 0.1
    width_mult = 1.0
    width = int(n_feats * width_mult)

    # Deterministic parameter init (synthetic; nn.Conv2d shapes: OIHW + bias).
    key = jax.random.PRNGKey(0)
    k_x, k_w1, k_b1, k_w2, k_b2 = jax.random.split(key, 5)
    w1_oihw = 0.05 * jax.random.normal(
        k_w1, (n_feats, n_feats, kernel_size, kernel_size), jnp.float32)
    b1_full = 0.05 * jax.random.normal(k_b1, (n_feats,), jnp.float32)
    w2_oihw = 0.05 * jax.random.normal(
        k_w2, (n_feats, n_feats, kernel_size, kernel_size), jnp.float32)
    b2_full = 0.05 * jax.random.normal(k_b2, (n_feats,), jnp.float32)

    # width_mult slicing (same as the PyTorch forward), then OIHW -> HWIO.
    w1 = jnp.transpose(w1_oihw[:width, :width], (2, 3, 1, 0))
    w2 = jnp.transpose(w2_oihw[:width, :width], (2, 3, 1, 0))
    b1 = b1_full[:width]
    b2 = b2_full[:width]

    # Input in PyTorch NCHW convention, then to NHWC for the kernel.
    N, H, W = 2, 16, 16
    x_nchw = jax.random.normal(k_x, (N, width, H, W), jnp.float32)
    x_nhwc = jnp.transpose(x_nchw, (0, 2, 3, 1))

    out_nhwc = residual_block_pallas(x_nhwc, w1, b1, w2, b2,
                                     res_scale=res_scale,
                                     kernel_size=kernel_size)
    out_nhwc = jax.block_until_ready(out_nhwc)

    ref = reference_nhwc(x_nhwc, w1, b1, w2, b2, res_scale=res_scale)
    np.testing.assert_allclose(np.asarray(out_nhwc), np.asarray(ref),
                               rtol=5e-3, atol=5e-3)

    # Back to NCHW to match the PyTorch output convention.
    out_nchw = jnp.transpose(out_nhwc, (0, 3, 1, 2))
    assert out_nchw.shape == x_nchw.shape

    print("KERNEL_OK")
</pallas_src>

<mosaic_0001>
module attributes {stable_mosaic.version = 11 : i64} {
  func.func @_resblock_kernel(%arg0: i32, %arg1: memref<1x16x16x32xf32, #tpu.memory_space<vmem>>, %arg2: memref<288x32xbf16, #tpu.memory_space<vmem>>, %arg3: memref<1x32xf32, #tpu.memory_space<vmem>>, %arg4: memref<288x32xbf16, #tpu.memory_space<vmem>>, %arg5: memref<1x32xf32, #tpu.memory_space<vmem>>, %arg6: memref<1x16x16x32xf32, #tpu.memory_space<vmem>>, %arg7: memref<18x18x32xbf16, #tpu.memory_space<vmem>>, %arg8: memref<256x288xbf16, #tpu.memory_space<vmem>>) attributes {dimension_semantics = [#tpu.dimension_semantics<parallel>], iteration_bounds = array<i64: 2>, scalar_prefetch = 0 : i64, scratch_operands = 2 : i64, tpu.core_type = #tpu.core_type<tc>, window_params = [{transform_indices = @transform_0, window_bounds = array<i64: 1, 16, 16, 32>}, {pipeline_mode = #tpu.pipeline_mode<synchronous>, transform_indices = @transform_1, window_bounds = array<i64: 288, 32>}, {pipeline_mode = #tpu.pipeline_mode<synchronous>, transform_indices = @transform_2, window_bounds = array<i64: 1, 32>}, {pipeline_mode = #tpu.pipeline_mode<synchronous>, transform_indices = @transform_3, window_bounds = array<i64: 288, 32>}, {pipeline_mode = #tpu.pipeline_mode<synchronous>, transform_indices = @transform_4, window_bounds = array<i64: 1, 32>}, {transform_indices = @transform_5, window_bounds = array<i64: 1, 16, 16, 32>}]} {
    %cst = arith.constant 0.000000e+00 : bf16
    %0 = vector.broadcast %cst : bf16 to vector<1x18x32xbf16>
    %c0 = arith.constant 0 : index
    %c0_0 = arith.constant 0 : index
    %c0_1 = arith.constant 0 : index
    %1 = vector.load %arg7[%c0, %c0_0, %c0_1] : memref<18x18x32xbf16, #tpu.memory_space<vmem>>, vector<1x18x32xbf16>
    tpu.vector_store %arg7[%c0, %c0_0, %c0_1], %0 {strides = array<i32>} : memref<18x18x32xbf16, #tpu.memory_space<vmem>>, vector<1x18x32xbf16>,
    %cst_2 = arith.constant 0.000000e+00 : bf16
    %2 = vector.broadcast %cst_2 : bf16 to vector<1x18x32xbf16>
    %c17 = arith.constant 17 : index
    %c0_3 = arith.constant 0 : index
    %c0_4 = arith.constant 0 : index
    %3 = vector.load %arg7[%c17, %c0_3, %c0_4] : memref<18x18x32xbf16, #tpu.memory_space<vmem>>, vector<1x18x32xbf16>
    tpu.vector_store %arg7[%c17, %c0_3, %c0_4], %2 {strides = array<i32>} : memref<18x18x32xbf16, #tpu.memory_space<vmem>>, vector<1x18x32xbf16>,
    %cst_5 = arith.constant 0.000000e+00 : bf16
    %4 = vector.broadcast %cst_5 : bf16 to vector<16x1x32xbf16>
    %c1 = arith.constant 1 : index
    %c0_6 = arith.constant 0 : index
    %c0_7 = arith.constant 0 : index
    %5 = vector.load %arg7[%c1, %c0_6, %c0_7] : memref<18x18x32xbf16, #tpu.memory_space<vmem>>, vector<16x1x32xbf16>
    tpu.vector_store %arg7[%c1, %c0_6, %c0_7], %4 {strides = array<i32>} : memref<18x18x32xbf16, #tpu.memory_space<vmem>>, vector<16x1x32xbf16>,
    %cst_8 = arith.constant 0.000000e+00 : bf16
    %6 = vector.broadcast %cst_8 : bf16 to vector<16x1x32xbf16>
    %c1_9 = arith.constant 1 : index
    %c17_10 = arith.constant 17 : index
    %c0_11 = arith.constant 0 : index
    %7 = vector.load %arg7[%c1_9, %c17_10, %c0_11] : memref<18x18x32xbf16, #tpu.memory_space<vmem>>, vector<16x1x32xbf16>
    tpu.vector_store %arg7[%c1_9, %c17_10, %c0_11], %6 {strides = array<i32>} : memref<18x18x32xbf16, #tpu.memory_space<vmem>>, vector<16x1x32xbf16>,
    %c0_12 = arith.constant 0 : index
    %c0_13 = arith.constant 0 : index
    %c0_14 = arith.constant 0 : index
    %c0_15 = arith.constant 0 : index
    %8 = vector.load %arg1[%c0_12, %c0_13, %c0_14, %c0_15] : memref<1x16x16x32xf32, #tpu.memory_space<vmem>>, vector<1x16x16x32xf32>
    %9 = vector.shape_cast %8 : vector<1x16x16x32xf32> to vector<16x16x32xf32>
    %10 = arith.truncf %9 : vector<16x16x32xf32> to vector<16x16x32xbf16>
    %c1_16 = arith.constant 1 : index
    %c1_17 = arith.constant 1 : index
    %c0_18 = arith.constant 0 : index
    %11 = vector.load %arg7[%c1_16, %c1_17, %c0_18] : memref<18x18x32xbf16, #tpu.memory_space<vmem>>, vector<16x16x32xbf16>
    tpu.vector_store %arg7[%c1_16, %c1_17, %c0_18], %10 {strides = array<i32>} : memref<18x18x32xbf16, #tpu.memory_space<vmem>>, vector<16x16x32xbf16>,
    %c0_19 = arith.constant 0 : index
    %c0_20 = arith.constant 0 : index
    %c0_21 = arith.constant 0 : index
    %12 = vector.load %arg7[%c0_19, %c0_20, %c0_21] : memref<18x18x32xbf16, #tpu.memory_space<vmem>>, vector<16x16x32xbf16>
    %13 = vector.shape_cast %12 : vector<16x16x32xbf16> to vector<256x32xbf16>
    %c0_22 = arith.constant 0 : index
    %c0_23 = arith.constant 0 : index
    %14 = vector.load %arg8[%c0_22, %c0_23] : memref<256x288xbf16, #tpu.memory_space<vmem>>, vector<256x32xbf16>
    tpu.vector_store %arg8[%c0_22, %c0_23], %13 {strides = array<i32>} : memref<256x288xbf16, #tpu.memory_space<vmem>>, vector<256x32xbf16>,
    %c0_24 = arith.constant 0 : index
    %c1_25 = arith.constant 1 : index
    %c0_26 = arith.constant 0 : index
    %15 = vector.load %arg7[%c0_24, %c1_25, %c0_26] : memref<18x18x32xbf16, #tpu.memory_space<vmem>>, vector<16x16x32xbf16>
    %16 = vector.shape_cast %15 : vector<16x16x32xbf16> to vector<256x32xbf16>
    %c0_27 = arith.constant 0 : index
    %c32 = arith.constant 32 : index
    %17 = vector.load %arg8[%c0_27, %c32] : memref<256x288xbf16, #tpu.memory_space<vmem>>, vector<256x32xbf16>
    tpu.vector_store %arg8[%c0_27, %c32], %16 {strides = array<i32>} : memref<256x288xbf16, #tpu.memory_space<vmem>>, vector<256x32xbf16>,
    %c0_28 = arith.constant 0 : index
    %c2 = arith.constant 2 : index
    %c0_29 = arith.constant 0 : index
    %18 = vector.load %arg7[%c0_28, %c2, %c0_29] : memref<18x18x32xbf16, #tpu.memory_space<vmem>>, vector<16x16x32xbf16>
    %19 = vector.shape_cast %18 : vector<16x16x32xbf16> to vector<256x32xbf16>
    %c0_30 = arith.constant 0 : index
    %c64 = arith.constant 64 : index
    %20 = vector.load %arg8[%c0_30, %c64] : memref<256x288xbf16, #tpu.memory_space<vmem>>, vector<256x32xbf16>
    tpu.vector_store %arg8[%c0_30, %c64], %19 {strides = array<i32>} : memref<256x288xbf16, #tpu.memory_space<vmem>>, vector<256x32xbf16>,
    %c1_31 = arith.constant 1 : index
    %c0_32 = arith.constant 0 : index
    %c0_33 = arith.constant 0 : index
    %21 = vector.load %arg7[%c1_31, %c0_32, %c0_33] : memref<18x18x32xbf16, #tpu.memory_space<vmem>>, vector<16x16x32xbf16>
    %22 = vector.shape_cast %21 : vector<16x16x32xbf16> to vector<256x32xbf16>
    %c0_34 = arith.constant 0 : index
    %c96 = arith.constant 96 : index
    %23 = vector.load %arg8[%c0_34, %c96] : memref<256x288xbf16, #tpu.memory_space<vmem>>, vector<256x32xbf16>
    tpu.vector_store %arg8[%c0_34, %c96], %22 {strides = array<i32>} : memref<256x288xbf16, #tpu.memory_space<vmem>>, vector<256x32xbf16>,
    %c1_35 = arith.constant 1 : index
    %c1_36 = arith.constant 1 : index
    %c0_37 = arith.constant 0 : index
    %24 = vector.load %arg7[%c1_35, %c1_36, %c0_37] : memref<18x18x32xbf16, #tpu.memory_space<vmem>>, vector<16x16x32xbf16>
    %25 = vector.shape_cast %24 : vector<16x16x32xbf16> to vector<256x32xbf16>
    %c0_38 = arith.constant 0 : index
    %c128 = arith.constant 128 : index
    %26 = vector.load %arg8[%c0_38, %c128] : memref<256x288xbf16, #tpu.memory_space<vmem>>, vector<256x32xbf16>
    tpu.vector_store %arg8[%c0_38, %c128], %25 {strides = array<i32>} : memref<256x288xbf16, #tpu.memory_space<vmem>>, vector<256x32xbf16>,
    %c1_39 = arith.constant 1 : index
    %c2_40 = arith.constant 2 : index
    %c0_41 = arith.constant 0 : index
    %27 = vector.load %arg7[%c1_39, %c2_40, %c0_41] : memref<18x18x32xbf16, #tpu.memory_space<vmem>>, vector<16x16x32xbf16>
    %28 = vector.shape_cast %27 : vector<16x16x32xbf16> to vector<256x32xbf16>
    %c0_42 = arith.constant 0 : index
    %c160 = arith.constant 160 : index
    %29 = vector.load %arg8[%c0_42, %c160] : memref<256x288xbf16, #tpu.memory_space<vmem>>, vector<256x32xbf16>
    tpu.vector_store %arg8[%c0_42, %c160], %28 {strides = array<i32>} : memref<256x288xbf16, #tpu.memory_space<vmem>>, vector<256x32xbf16>,
    %c2_43 = arith.constant 2 : index
    %c0_44 = arith.constant 0 : index
    %c0_45 = arith.constant 0 : index
    %30 = vector.load %arg7[%c2_43, %c0_44, %c0_45] : memref<18x18x32xbf16, #tpu.memory_space<vmem>>, vector<16x16x32xbf16>
    %31 = vector.shape_cast %30 : vector<16x16x32xbf16> to vector<256x32xbf16>
    %c0_46 = arith.constant 0 : index
    %c192 = arith.constant 192 : index
    %32 = vector.load %arg8[%c0_46, %c192] : memref<256x288xbf16, #tpu.memory_space<vmem>>, vector<256x32xbf16>
    tpu.vector_store %arg8[%c0_46, %c192], %31 {strides = array<i32>} : memref<256x288xbf16, #tpu.memory_space<vmem>>, vector<256x32xbf16>,
    %c2_47 = arith.constant 2 : index
    %c1_48 = arith.constant 1 : index
    %c0_49 = arith.constant 0 : index
    %33 = vector.load %arg7[%c2_47, %c1_48, %c0_49] : memref<18x18x32xbf16, #tpu.memory_space<vmem>>, vector<16x16x32xbf16>
    %34 = vector.shape_cast %33 : vector<16x16x32xbf16> to vector<256x32xbf16>
    %c0_50 = arith.constant 0 : index
    %c224 = arith.constant 224 : index
    %35 = vector.load %arg8[%c0_50, %c224] : memref<256x288xbf16, #tpu.memory_space<vmem>>, vector<256x32xbf16>
    tpu.vector_store %arg8[%c0_50, %c224], %34 {strides = array<i32>} : memref<256x288xbf16, #tpu.memory_space<vmem>>, vector<256x32xbf16>,
    %c2_51 = arith.constant 2 : index
    %c2_52 = arith.constant 2 : index
    %c0_53 = arith.constant 0 : index
    %36 = vector.load %arg7[%c2_51, %c2_52, %c0_53] : memref<18x18x32xbf16, #tpu.memory_space<vmem>>, vector<16x16x32xbf16>
    %37 = vector.shape_cast %36 : vector<16x16x32xbf16> to vector<256x32xbf16>
    %c0_54 = arith.constant 0 : index
    %c256 = arith.constant 256 : index
    %38 = vector.load %arg8[%c0_54, %c256] : memref<256x288xbf16, #tpu.memory_space<vmem>>, vector<256x32xbf16>
    tpu.vector_store %arg8[%c0_54, %c256], %37 {strides = array<i32>} : memref<256x288xbf16, #tpu.memory_space<vmem>>, vector<256x32xbf16>,
    %c0_55 = arith.constant 0 : index
    %c0_56 = arith.constant 0 : index
    %39 = vector.load %arg8[%c0_55, %c0_56] : memref<256x288xbf16, #tpu.memory_space<vmem>>, vector<256x288xbf16>
    %c0_57 = arith.constant 0 : index
    %c0_58 = arith.constant 0 : index
    %40 = vector.load %arg2[%c0_57, %c0_58] : memref<288x32xbf16, #tpu.memory_space<vmem>>, vector<288x32xbf16>
    %cst_59 = arith.constant dense<0.000000e+00> : vector<256x32xf32>
    %41 = tpu.matmul %39, %40, %cst_59 {dimension_numbers = #tpu.dot_dimension_numbers<[1], [0], [0], [1], [0, 0, 1, 1], [], []>} : vector<256x288xbf16>, vector<288x32xbf16>, vector<256x32xf32> -> vector<256x32xf32>
    %c0_60 = arith.constant 0 : index
    %c0_61 = arith.constant 0 : index
    %42 = vector.load %arg3[%c0_60, %c0_61] : memref<1x32xf32, #tpu.memory_space<vmem>>, vector<1x32xf32>
    %43 = vector.broadcast %42 : vector<1x32xf32> to vector<256x32xf32>
    %44 = arith.addf %41, %43 : vector<256x32xf32>
    %cst_62 = arith.constant 0.000000e+00 : f32
    %45 = vector.broadcast %cst_62 : f32 to vector<256x32xf32>
    %46 = arith.maximumf %44, %45 : vector<256x32xf32>
    %47 = vector.shape_cast %46 : vector<256x32xf32> to vector<16x16x32xf32>
    %48 = arith.truncf %47 : vector<16x16x32xf32> to vector<16x16x32xbf16>
    %c1_63 = arith.constant 1 : index
    %c1_64 = arith.constant 1 : index
    %c0_65 = arith.constant 0 : index
    %49 = vector.load %arg7[%c1_63, %c1_64, %c0_65] : memref<18x18x32xbf16, #tpu.memory_space<vmem>>, vector<16x16x32xbf16>
    tpu.vector_store %arg7[%c1_63, %c1_64, %c0_65], %48 {strides = array<i32>} : memref<18x18x32xbf16, #tpu.memory_space<vmem>>, vector<16x16x32xbf16>,
    %c0_66 = arith.constant 0 : index
    %c0_67 = arith.constant 0 : index
    %c0_68 = arith.constant 0 : index
    %50 = vector.load %arg7[%c0_66, %c0_67, %c0_68] : memref<18x18x32xbf16, #tpu.memory_space<vmem>>, vector<16x16x32xbf16>
    %51 = vector.shape_cast %50 : vector<16x16x32xbf16> to vector<256x32xbf16>
    %c0_69 = arith.constant 0 : index
    %c0_70 = arith.constant 0 : index
    %52 = vector.load %arg8[%c0_69, %c0_70] : memref<256x288xbf16, #tpu.memory_space<vmem>>, vector<256x32xbf16>
    tpu.vector_store %arg8[%c0_69, %c0_70], %51 {strides = array<i32>} : memref<256x288xbf16, #tpu.memory_space<vmem>>, vector<256x32xbf16>,
    %c0_71 = arith.constant 0 : index
    %c1_72 = arith.constant 1 : index
    %c0_73 = arith.constant 0 : index
    %53 = vector.load %arg7[%c0_71, %c1_72, %c0_73] : memref<18x18x32xbf16, #tpu.memory_space<vmem>>, vector<16x16x32xbf16>
    %54 = vector.shape_cast %53 : vector<16x16x32xbf16> to vector<256x32xbf16>
    %c0_74 = arith.constant 0 : index
    %c32_75 = arith.constant 32 : index
    %55 = vector.load %arg8[%c0_74, %c32_75] : memref<256x288xbf16, #tpu.memory_space<vmem>>, vector<256x32xbf16>
    tpu.vector_store %arg8[%c0_74, %c32_75], %54 {strides = array<i32>} : memref<256x288xbf16, #tpu.memory_space<vmem>>, vector<256x32xbf16>,
    %c0_76 = arith.constant 0 : index
    %c2_77 = arith.constant 2 : index
    %c0_78 = arith.constant 0 : index
    %56 = vector.load %arg7[%c0_76, %c2_77, %c0_78] : memref<18x18x32xbf16, #tpu.memory_space<vmem>>, vector<16x16x32xbf16>
    %57 = vector.shape_cast %56 : vector<16x16x32xbf16> to vector<256x32xbf16>
    %c0_79 = arith.constant 0 : index
    %c64_80 = arith.constant 64 : index
    %58 = vector.load %arg8[%c0_79, %c64_80] : memref<256x288xbf16, #tpu.memory_space<vmem>>, vector<256x32xbf16>
    tpu.vector_store %arg8[%c0_79, %c64_80], %57 {strides = array<i32>} : memref<256x288xbf16, #tpu.memory_space<vmem>>, vector<256x32xbf16>,
    %c1_81 = arith.constant 1 : index
    %c0_82 = arith.constant 0 : index
    %c0_83 = arith.constant 0 : index
    %59 = vector.load %arg7[%c1_81, %c0_82, %c0_83] : memref<18x18x32xbf16, #tpu.memory_space<vmem>>, vector<16x16x32xbf16>
    %60 = vector.shape_cast %59 : vector<16x16x32xbf16> to vector<256x32xbf16>
    %c0_84 = arith.constant 0 : index
    %c96_85 = arith.constant 96 : index
    %61 = vector.load %arg8[%c0_84, %c96_85] : memref<256x288xbf16, #tpu.memory_space<vmem>>, vector<256x32xbf16>
    tpu.vector_store %arg8[%c0_84, %c96_85], %60 {strides = array<i32>} : memref<256x288xbf16, #tpu.memory_space<vmem>>, vector<256x32xbf16>,
    %c1_86 = arith.constant 1 : index
    %c1_87 = arith.constant 1 : index
    %c0_88 = arith.constant 0 : index
    %62 = vector.load %arg7[%c1_86, %c1_87, %c0_88] : memref<18x18x32xbf16, #tpu.memory_space<vmem>>, vector<16x16x32xbf16>
    %63 = vector.shape_cast %62 : vector<16x16x32xbf16> to vector<256x32xbf16>
    %c0_89 = arith.constant 0 : index
    %c128_90 = arith.constant 128 : index
    %64 = vector.load %arg8[%c0_89, %c128_90] : memref<256x288xbf16, #tpu.memory_space<vmem>>, vector<256x32xbf16>
    tpu.vector_store %arg8[%c0_89, %c128_90], %63 {strides = array<i32>} : memref<256x288xbf16, #tpu.memory_space<vmem>>, vector<256x32xbf16>,
    %c1_91 = arith.constant 1 : index
    %c2_92 = arith.constant 2 : index
    %c0_93 = arith.constant 0 : index
    %65 = vector.load %arg7[%c1_91, %c2_92, %c0_93] : memref<18x18x32xbf16, #tpu.memory_space<vmem>>, vector<16x16x32xbf16>
    %66 = vector.shape_cast %65 : vector<16x16x32xbf16> to vector<256x32xbf16>
    %c0_94 = arith.constant 0 : index
    %c160_95 = arith.constant 160 : index
    %67 = vector.load %arg8[%c0_94, %c160_95] : memref<256x288xbf16, #tpu.memory_space<vmem>>, vector<256x32xbf16>
    tpu.vector_store %arg8[%c0_94, %c160_95], %66 {strides = array<i32>} : memref<256x288xbf16, #tpu.memory_space<vmem>>, vector<256x32xbf16>,
    %c2_96 = arith.constant 2 : index
    %c0_97 = arith.constant 0 : index
    %c0_98 = arith.constant 0 : index
    %68 = vector.load %arg7[%c2_96, %c0_97, %c0_98] : memref<18x18x32xbf16, #tpu.memory_space<vmem>>, vector<16x16x32xbf16>
    %69 = vector.shape_cast %68 : vector<16x16x32xbf16> to vector<256x32xbf16>
    %c0_99 = arith.constant 0 : index
    %c192_100 = arith.constant 192 : index
    %70 = vector.load %arg8[%c0_99, %c192_100] : memref<256x288xbf16, #tpu.memory_space<vmem>>, vector<256x32xbf16>
    tpu.vector_store %arg8[%c0_99, %c192_100], %69 {strides = array<i32>} : memref<256x288xbf16, #tpu.memory_space<vmem>>, vector<256x32xbf16>,
    %c2_101 = arith.constant 2 : index
    %c1_102 = arith.constant 1 : index
    %c0_103 = arith.constant 0 : index
    %71 = vector.load %arg7[%c2_101, %c1_102, %c0_103] : memref<18x18x32xbf16, #tpu.memory_space<vmem>>, vector<16x16x32xbf16>
    %72 = vector.shape_cast %71 : vector<16x16x32xbf16> to vector<256x32xbf16>
    %c0_104 = arith.constant 0 : index
    %c224_105 = arith.constant 224 : index
    %73 = vector.load %arg8[%c0_104, %c224_105] : memref<256x288xbf16, #tpu.memory_space<vmem>>, vector<256x32xbf16>
    tpu.vector_store %arg8[%c0_104, %c224_105], %72 {strides = array<i32>} : memref<256x288xbf16, #tpu.memory_space<vmem>>, vector<256x32xbf16>,
    %c2_106 = arith.constant 2 : index
    %c2_107 = arith.constant 2 : index
    %c0_108 = arith.constant 0 : index
    %74 = vector.load %arg7[%c2_106, %c2_107, %c0_108] : memref<18x18x32xbf16, #tpu.memory_space<vmem>>, vector<16x16x32xbf16>
    %75 = vector.shape_cast %74 : vector<16x16x32xbf16> to vector<256x32xbf16>
    %c0_109 = arith.constant 0 : index
    %c256_110 = arith.constant 256 : index
    %76 = vector.load %arg8[%c0_109, %c256_110] : memref<256x288xbf16, #tpu.memory_space<vmem>>, vector<256x32xbf16>
    tpu.vector_store %arg8[%c0_109, %c256_110], %75 {strides = array<i32>} : memref<256x288xbf16, #tpu.memory_space<vmem>>, vector<256x32xbf16>,
    %c0_111 = arith.constant 0 : index
    %c0_112 = arith.constant 0 : index
    %77 = vector.load %arg8[%c0_111, %c0_112] : memref<256x288xbf16, #tpu.memory_space<vmem>>, vector<256x288xbf16>
    %c0_113 = arith.constant 0 : index
    %c0_114 = arith.constant 0 : index
    %78 = vector.load %arg4[%c0_113, %c0_114] : memref<288x32xbf16, #tpu.memory_space<vmem>>, vector<288x32xbf16>
    %cst_115 = arith.constant dense<0.000000e+00> : vector<256x32xf32>
    %79 = tpu.matmul %77, %78, %cst_115 {dimension_numbers = #tpu.dot_dimension_numbers<[1], [0], [0], [1], [0, 0, 1, 1], [], []>} : vector<256x288xbf16>, vector<288x32xbf16>, vector<256x32xf32> -> vector<256x32xf32>
    %c0_116 = arith.constant 0 : index
    %c0_117 = arith.constant 0 : index
    %80 = vector.load %arg5[%c0_116, %c0_117] : memref<1x32xf32, #tpu.memory_space<vmem>>, vector<1x32xf32>
    %81 = vector.broadcast %80 : vector<1x32xf32> to vector<256x32xf32>
    %82 = arith.addf %79, %81 : vector<256x32xf32>
    %83 = vector.shape_cast %82 : vector<256x32xf32> to vector<16x16x32xf32>
    %cst_118 = arith.constant 1.000000e-01 : f32
    %84 = vector.broadcast %cst_118 : f32 to vector<16x16x32xf32>
    %85 = arith.mulf %84, %83 : vector<16x16x32xf32>
    %86 = arith.addf %9, %85 : vector<16x16x32xf32>
    %c0_119 = arith.constant 0 : index
    %c0_120 = arith.constant 0 : index
    %c0_121 = arith.constant 0 : index
    %c0_122 = arith.constant 0 : index
    %87 = vector.load %arg6[%c0_119, %c0_120, %c0_121, %c0_122] : memref<1x16x16x32xf32, #tpu.memory_space<vmem>>, vector<1x16x16x32xf32>
    %88 = vector.shape_cast %87 : vector<1x16x16x32xf32> to vector<16x16x32xf32>
    %89 = vector.shape_cast %86 : vector<16x16x32xf32> to vector<1x16x16x32xf32>
    tpu.vector_store %arg6[%c0_119, %c0_120, %c0_121, %c0_122], %89 {strides = array<i32>} : memref<1x16x16x32xf32, #tpu.memory_space<vmem>>, vector<1x16x16x32xf32>,
    return
  }
  func.func @transform_0(%arg0: i32) -> (i32, i32, i32, i32) {
    %c0_i32 = arith.constant 0 : i32
    %c0_i32_0 = arith.constant 0 : i32
    %c0_i32_1 = arith.constant 0 : i32
    %c0_i32_2 = arith.constant 0 : i32
    return %arg0, %c0_i32, %c0_i32_0, %c0_i32_1 : i32, i32, i32, i32
  }
  func.func @transform_1(%arg0: i32) -> (i32, i32) {
    %c0_i32 = arith.constant 0 : i32
    %c0_i32_0 = arith.constant 0 : i32
    %c0_i32_1 = arith.constant 0 : i32
    return %c0_i32, %c0_i32_0 : i32, i32
  }
  func.func @transform_2(%arg0: i32) -> (i32, i32) {
    %c0_i32 = arith.constant 0 : i32
    %c0_i32_0 = arith.constant 0 : i32
    %c0_i32_1 = arith.constant 0 : i32
    return %c0_i32, %c0_i32_0 : i32, i32
  }
  func.func @transform_3(%arg0: i32) -> (i32, i32) {
    %c0_i32 = arith.constant 0 : i32
    %c0_i32_0 = arith.constant 0 : i32
    %c0_i32_1 = arith.constant 0 : i32
    return %c0_i32, %c0_i32_0 : i32, i32
  }
  func.func @transform_4(%arg0: i32) -> (i32, i32) {
    %c0_i32 = arith.constant 0 : i32
    %c0_i32_0 = arith.constant 0 : i32
    %c0_i32_1 = arith.constant 0 : i32
    return %c0_i32, %c0_i32_0 : i32, i32
  }
  func.func @transform_5(%arg0: i32) -> (i32, i32, i32, i32) {
    %c0_i32 = arith.constant 0 : i32
    %c0_i32_0 = arith.constant 0 : i32
    %c0_i32_1 = arith.constant 0 : i32
    %c0_i32_2 = arith.constant 0 : i32
    return %arg0, %c0_i32, %c0_i32_0, %c0_i32_1 : i32, i32, i32, i32
  }
}

</mosaic_0001>

<bundles_post_ra>
// kernel: tpu_custom_call.1
= control target key start
LH: loop header
LB: loop body
LE: loop exit
PB: predicated region body
PF: predicated region fallthrough
CT: control target
= control target key end

     0   :  { %10 = vsyncpa [#allocation5], 0  ;;  %s14435_s0 = inlined_call_operand.hbm [shape: f32[2,16,16,32], index: 0, kind: input, shape index: {}]   ;;  %s14436_s1 = inlined_call_operand.vmem [shape: bf16[288,32], index: 1, kind: input, shape index: {}]   ;;  %s14437_s2 = inlined_call_operand.vmem [shape: f32[1,32], index: 2, kind: input, shape index: {}]   ;;  %s14438_s3 = inlined_call_operand.vmem [shape: bf16[288,32], index: 3, kind: input, shape index: {}]   ;;  %s14439_s4 = inlined_call_operand.vmem [shape: f32[1,32], index: 4, kind: input, shape index: {}]   ;;  %s14440_s5 = inlined_call_operand.hbm [shape: f32[2,16,16,32], index: 5, kind: output, shape index: {}]  }
   0x1   :  { %12 = vsyncpa [#allocation5 + $0x1], 0 }
   0x2   :  { %13 = vsyncpa [#allocation6], 0 }
   0x3   :  { %15 = vsyncpa [#allocation6 + $0x1], 0  ;;  %s10450_s18 = smov 0   ;;  %s10452_s19 = smov 0  }
   0x4   :  { %s10454_s20 = smov 0   ;;  %s10456_s21 = smov 0  }
   0x5 LB: > { %s10471_s22 = sadd.s32 4294967295, %s10408_s21   ;;  %s9339_s23 = sadd.s32 4294967294, %s10408_s21   ;;  %s10408_s21 = sphi %s10456_s21, %s14467_s21   ;;  %s10404_s20 = sphi %s10454_s20, %s14466_s20   ;;  %s10400_s19 = sphi %s10452_s19, %s14465_s19   ;;  %s10396_s18 = sphi %s10450_s18, %s14464_s18  }
   0x6   : > { %s10475_s24 = sadd.s32 1, %s10408_s21   ;;  %s28_s25 = sadd.s32 1, %s10404_s20 }
   0x7   : > { %s25_s26 = ssub.s32 %s10408_s21, %s10475_s24  ;;  %p35_p0 = scmp.ne.s32.totalorder %s10404_s20, %s10400_s19 }
   0x8   : > { %p26_p1 = scmp.eq.s32.totalorder %s25_s26, 0  ;;  %p36_p2 = scmp.eq.s32.totalorder %s10408_s21, 0 }
   0x9   : > { %p41_p3 = scmp.ne.s32.totalorder %s10400_s19, %s10396_s18  ;;  %p42_p4 = scmp.eq.s32.totalorder %s10471_s22, 0 }
   0xa   : > { %s10487_s27 = scalar_select %p26_p1, %s10404_s20, %s28_s25  }
   0xb   : > { %p10489_p5 = por %p36_p2, %p35_p0  ;;  %p10493_p6 = por %p42_p4, %p41_p3 }
   0xc   : > { %p149_p7 = scmp.eq.s32.totalorder %s10471_s22, 1  ;;  %p155_p8 = scmp.eq.s32.totalorder %s9339_s23, 1 }
   0xd   : > { %s14444_s29 = scalar_select %p10493_p6, 1, 0 }
   0xe   : > { %p10093_p10 = scmp.lt.s32.totalorder %s10408_s21, 2  ;;  %p10500_p11 = por %p149_p7, %p35_p0 }
   0xf   : > { %p10504_p12 = por %p155_p8, %p41_p3  ;;  %s187_s7 = sand.u32 1, %s10404_s20  }
  0x10   : > { %s14445_s30 = scalar_select %p10500_p11, 1, 0 }
  0x11   : > { %s14446_s6 = scalar_select %p10504_p12, 1, 0 }
  0x12   : > { %s9679_s8 = sshll.u32 %s10408_s21, 12  ;;  %s9342_s9 = sshll.u32 %s187_s7, 8 }
  0x13   : > { %s10513_s12 = scalar_lea.hbm %s14435_s0, %s9679_s8  ;;  %s191_s13 = scalar_lea.vmem [#allocation4], %s9342_s9 }
  0x14   : > { %s198_s14 = sshll.u32 %s191_s13, 4  ;;  %p10517_p13 = pnand %p10093_p10, %p10489_p5  ;;  %s10521_s14 = int_to_ptr.vmem [resolvable:$true] %s198_s14 }
  0x15   : > { %s10523_s16 = scalar_lea.sflag [#allocation5], %s187_s7  ;;  %s10316_s17 = scalar_lea.hbm %s10513_s12, 4096 }
  0x16   : > { %p10317_p0 = scmp.ne.s32.totalorder %s10513_s12, %s10316_s17  ;;  %p10318_p1 = pneg %p10517_p13 }
  0x17   : > { %s10321_s26 = scalar_lea.hbm %s14435_s0, 8192  ;;  %p10322_p4 = scmp.lt.s32.totalorder %s10513_s12, %s14435_s0 }
  0x18   : > { %p10319_p2 = pnand %p10318_p1, %p10317_p0  ;;  %p10323_p5 = scmp.lt.s32.totalorder %s10321_s26, %s10316_s17 }
  0x1a   : > { %p10320_p3 = pneg %p10319_p2  ;;  %p10324_p7 = por %p10323_p5, %p10322_p4 }
  0x1c   : > { %p10325_p8 = pnand %p10324_p7, %p10320_p3 }
  0x1e   : > { %10328 = shalt.err (!%p10325_p8)
}
  0x1f   : > { %s10329_s7 = scalar_lea.vmem %s10521_s14, 4096  ;;  %s10410_s9 = smov [#allocation4]  }
  0x20   : > { %p10330_p10 = scmp.ne.s32.totalorder %s10521_s14, %s10329_s7  ;;  %s10334_s10 = sshll.u32 %s10410_s9, 4  ;;  %s10335_s10 = int_to_ptr.vmem [resolvable:$false] %s10334_s10 }
  0x21   : > { %s10336_s11 = scalar_lea.vmem %s10335_s10, 8192  ;;  %p10337_p2 = scmp.lt.s32.totalorder %s10521_s14, %s10335_s10 }
  0x22   : > { %p10332_p9 = pnand %p10330_p10, %p10318_p1  ;;  %p10338_p12 = scmp.lt.s32.totalorder %s10336_s11, %s10329_s7 }
  0x24   : > { %p10333_p0 = pneg %p10332_p9  ;;  %p10339_p11 = por %p10338_p12, %p10337_p2 }
  0x26   : > { %p10340_p6 = pnand %p10339_p11, %p10333_p0 }
  0x28   : > { %10343 = shalt.err (!%p10340_p6)
}
  0x29   : > { %s10411_s13 = smov 128   ;;  %s10412_s17 = smov 8  }
  0x2a   : > { %10088 = dma.hbm_to_vmem [thread:$0]  (!%p10517_p13), %s10513_s12, 4096, %s10521_s14, %s10523_s16, %s10411_s13, %s10411_s13, %s10412_s17  }
  0x2b   : > { %p9345_p9 = scmp.ge.s32.totalorder %s10408_s21, 1  ;;  %p206_p1 = scmp.lt.s32.totalorder %s10408_s21, 3 }
  0x2d   : > { %p207_p3 = pnand %p9345_p9, %p206_p1 }
  0x2e   : > { %s10547_s23 = sand.u32 (!%p207_p3), 1, %s10400_s19   ;;  %p14448_p6 = scmp.ne.s32.totalorder (!%p207_p3), %s14444_s29, 0 }
  0x2f   : > { %210 = sbr.rel (%p207_p3) target bundleno = 1332 (0x534), region = 40  ;;  %s9346_s25 = sshll.u32 (!%p207_p3), %s10547_s23, 8 }
  0x30   : > { %s213_s26 = scalar_lea.sflag (!%p207_p3), [#allocation5], %s10547_s23  ;;  %s10553_s28 = scalar_lea.vmem (!%p207_p3), [#allocation4], %s9346_s25 }
  0x34   : > { %10387 = dma.done.wait (%p14448_p6), %s213_s26, 4096  }
  0x35   : > { %10389 = vsyncadd (%p14448_p6), %s213_s26, 4294963200  ;;  %vm244_vm0 = vcmask 257024   ;;  %v10413_v0 = vmov 0   ;;  %vm247_vm1 = vcmask 253952   ;;  %vm305_vm2 = vsmask.f32 7938 }
  0x36   : > { %245 = vst.msk [vmem:[#allocation2] sm:$0xf] %vm244_vm0, %v10413_v0  ;;  %246 = vst.msk [vmem:[#allocation2 + $0x4] sm:$0xf] %vm244_vm0, %v10413_v0  ;;  %vm1031_vm4 = vsmask.f32 3328 }
  0x37   : > { %250 = vst.msk [vmem:[#allocation2 + $0xcc] sm:$0xf] %vm244_vm0, %v10413_v0  ;;  %251 = vst.msk [vmem:[#allocation2 + $0xd0] sm:$0xf] %vm244_vm0, %v10413_v0  ;;  %vm1032_vm5 = vsmask.f32 7440 }
  0x38   : > { %248 = vst.msk [vmem:[#allocation2 + $0x8] sm:$0x1] %vm247_vm1, %v10413_v0  ;;  %252 = vst.msk [vmem:[#allocation2 + $0xd4] sm:$0x1] %vm247_vm1, %v10413_v0  ;;  %vm255_vm6 = vsmask.f32 256 }
  0x39   : > { %vm10567_vm3 = vmand %vm247_vm1, %vm305_vm2  ;;  %v307_v2 = vld [vmem:[#allocation2 + $0x14] sm:$0x1]  ;;  %v355_v3 = vld [vmem:[%s10553_s28] sm:$0xff]  ;;  %vm483_vm7 = vsmask.f32 4368  ;;  %s10414_s29 = smov 32  }
  0x3a   : > { %v356_v4 = vld [vmem:[%s10553_s28 + $0x8] sm:$0xff]  ;;  %v308_v7 = vsel %vm10567_vm3, 0, %v307_v2  ;;  %v9680_v8 = vpack.c.bf16 %v355_v3, %v355_v3  ;;  %v357_v10 = vld [vmem:[%s10553_s28 + $0x10] sm:$0xff]  ;;  %vm10578_vm8 = vmand %vm247_vm1, %vm255_vm6  ;;  %vm1643_vm12 = vcmask 1042432   ;;  %vm1644_vm13 = vcmask 1046532   ;;  %s10415_s11 = smov 64  }
  0x3b   : > { %v9681_v9 = vpack.c.bf16 %v356_v4, %v356_v4  ;;  %309 = vst [vmem:[#allocation2 + $0x14] sm:$0x1] %v308_v7  ;;  %v260_v21 = vld [vmem:[#allocation2 + $0x18] sm:$0x1]  ;;  %v358_v30 = vld [vmem:[%s10553_s28 + $0x18] sm:$0xff]  ;;  %vm10587_vm9 = vmor %vm255_vm6, %vm483_vm7  ;;  %v9682_v35 = vpack.c.bf16 %v357_v10, %v357_v10  ;;  %vm1514_vm15 = vcmask 519424  }
  0x3c   : > { %v486_v18 = vshrl.u32 %v9680_v8, 16  ;;  %v489_v19 = vshll.u32 %v9680_v8, 16  ;;  %v261_v34 = vsel %vm10578_vm8, 0, %v260_v21  ;;  %v310_v36 = vld [vmem:[#allocation2 + $0x20] sm:$0x1]  ;;  %vm10595_vm10 = vmor %vm1031_vm4, %vm1032_vm5  ;;  %v359_v43 = vld [vmem:[%s10553_s28 + $0x20] sm:$0xff]  ;;  %v9683_v47 = vpack.c.bf16 %v358_v30, %v358_v30 }
  0x3d   : > { %v983_v5 = vld [vmem:[#allocation2] sm:$0xf]  ;;  %v984_v6 = vld [vmem:[#allocation2 + $0x4] sm:$0xf]  ;;  %v494_v20 = vshrl.u32 %v9681_v9, 16  ;;  %v497_v29 = vshll.u32 %v9681_v9, 16  ;;  %v9684_v62 = vpack.c.bf16 %v359_v43, %v359_v43  ;;  %vm10622_vm11 = vmand %vm244_vm0, %vm305_vm2 }
  0x3e   : > { %v1035_v11 = vshrl.u32 %v983_v5, 16  ;;  %v1038_v12 = vshll.u32 %v983_v5, 16  ;;  %v1044_v13 = vshll.u32 %v984_v6, 16  ;;  %v1048_v14 = vshrl.u32 %v984_v6, 16  ;;  %v263_v37 = vld [vmem:[#allocation2 + $0x24] sm:$0x1]  ;;  %vm10933_vm14 = vmor %vm1643_vm12, %vm1644_vm13 }
  0x3f   : > { %v985_v15 = vld [vmem:[#allocation2 + $0x8] sm:$0x1]  ;;  %v488_v27 = vrot.slane %v486_v18, 7  ;;  %v496_v28 = vrot.slane %v494_v20, 7  ;;  %262 = vst [vmem:[#allocation2 + $0x18] sm:$0x1] %v261_v34 }
  0x40   : > { %v1054_v17 = vshll.u32 %v985_v15, 16  ;;  %v1037_v22 = vrot.slane %v1035_v11, 4  ;;  %v1040_v23 = vrot.slane %v1038_v12, 5  ;;  %v1046_v24 = vrot.slane %v1044_v13, 5  ;;  %v313_v44 = vld [vmem:[#allocation2 + $0x2c] sm:$0x1] }
  0x41   : > { %v1050_v25 = vrot.slane %v1048_v14, 4  ;;  %v10599_v39 = vor.u32 %v489_v19, %v488_v27  ;;  %v492_v40 = vrot.slane %v488_v27, 4  ;;  %v499_v41 = vor.u32 %v497_v29, %v496_v28  ;;  %v360_v49 = vld [vmem:[%s10553_s28 + $0x28] sm:$0xff]  ;;  %v266_v50 = vld [vmem:[#allocation2 + $0x30] sm:$0x1]  ;;  %v361_v0 = vld [vmem:[%s10553_s28 + $0x30] sm:$0xff] }
  0x42   : > { %v10582_v26 = vrot.slane %v1054_v17, 5  ;;  %v1041_v31 = vor.u32 %v1040_v23, %v1037_v22  ;;  %v501_v42 = vrot.slane %v496_v28, 4  ;;  %v503_v48 = vshrl.u32 %v9682_v35, 16  ;;  %v811_v52 = vld [vmem:[#allocation2 + $0x14] sm:$0x1]  ;;  %s10416_s16 = smov 96  }
  0x43   : > { %v1051_v32 = vor.u32 %v1050_v25, %v1046_v24  ;;  %v500_v51 = vsel %vm10587_vm9, %v492_v40, %v499_v41  ;;  %v506_v53 = vshll.u32 %v9682_v35, 16  ;;  %v311_v54 = vsel %vm10567_vm3, 0, %v310_v36  ;;  %v362_v2 = vld [vmem:[%s10553_s28 + $0x38] sm:$0xff]  ;;  %v316_v3 = vld [vmem:[#allocation2 + $0x38] sm:$0x1]  ;;  %s14131_s9 = scalar_lea.vmem [#allocation7], %s9346_s25 }
  0x44   : > { %v1042_v45 = vrot.slane %v1041_v31, 4  ;;  %v264_v55 = vsel %vm10578_vm8, 0, %v263_v37  ;;  %810 = vst.msk [vmem:[#allocation2 + $0x10] sm:$0xf] %vm244_vm0, %v500_v51  ;;  %v812_v58 = vsel %vm10578_vm8, %v501_v42, %v811_v52  ;;  %v505_v59 = vrot.slane %v503_v48, 7  ;;  %p14461_p12 = scmp.ne.s32.totalorder %s14445_s30, 0 }
  0x45   : > { %v1052_v46 = vrot.slane %v1051_v32, 4  ;;  %312 = vst [vmem:[#allocation2 + $0x20] sm:$0x1] %v311_v54  ;;  %265 = vst [vmem:[#allocation2 + $0x24] sm:$0x1] %v264_v55  ;;  %v511_v60 = vshrl.u32 %v9683_v47, 16  ;;  %v9685_v63 = vpack.c.bf16 %v360_v49, %v360_v49  ;;  %v9686_v15 = vpack.c.bf16 %v361_v0, %v361_v0 }
  0x46   : > { %v1047_v56 = vsel %vm10595_vm10, %v1042_v45, %v1046_v24  ;;  %813 = vst [vmem:[#allocation2 + $0x14] sm:$0x1] %v812_v58  ;;  %v514_v61 = vshll.u32 %v9683_v47, 16  ;;  %v508_v5 = vor.u32 %v506_v53, %v505_v59  ;;  %v509_v6 = vrot.slane %v505_v59, 4  ;;  %v814_v13 = vld [vmem:[#allocation2 + $0x18] sm:$0xf] }
  0x47   : > { %v1057_v57 = vsel %vm10595_vm10, %v1052_v46, %v10582_v26  ;;  %1418 = vrot.lane.b32.xlu0 %v1047_v56, %s10414_s29  ;;  %v314_v7 = vsel %vm10567_vm3, 0, %v313_v44  ;;  %v267_v8 = vsel %vm10578_vm8, 0, %v266_v50  ;;  %v513_v9 = vrot.slane %v511_v60, 7  ;;  %v269_v34 = vld [vmem:[#allocation2 + $0x3c] sm:$0x1]  ;;  %v364_v54 = vld [vmem:[%s10553_s28 + $0x48] sm:$0xff] }
  0x48   : > { %v520_v10 = vshrl.u32 %v9684_v62, 16  ;;  %v523_v11 = vshll.u32 %v9684_v62, 16  ;;  %v528_v12 = vshrl.u32 %v9685_v63, 16  ;;  %315 = vst [vmem:[#allocation2 + $0x2c] sm:$0x1] %v314_v7  ;;  %v531_v14 = vshll.u32 %v9685_v63, 16 }
  0x49   : > { %268 = vst [vmem:[#allocation2 + $0x30] sm:$0x1] %v267_v8  ;;  %v9687_v17 = vpack.c.bf16 %v362_v2, %v362_v2  ;;  %v317_v18 = vsel %vm10567_vm3, 0, %v316_v3  ;;  %v516_v19 = vor.u32 %v514_v61, %v513_v9  ;;  %v815_v20 = vsel %vm10622_vm11, %v508_v5, %v814_v13  ;;  %v363_v47 = vld [vmem:[%s10553_s28 + $0x40] sm:$0xff]  ;;  %v319_v48 = vld [vmem:[#allocation2 + $0x44] sm:$0x1] }
  0x4a   : > { %v518_v21 = vrot.slane %v513_v9, 4  ;;  %v522_v22 = vrot.slane %v520_v10, 7  ;;  %318 = vst [vmem:[#allocation2 + $0x38] sm:$0x1] %v317_v18  ;;  %816 = vst [vmem:[#allocation2 + $0x18] sm:$0xf] %v815_v20  ;;  %v9688_v5 = vpack.c.bf16 %v363_v47, %v363_v47 }
  0x4b   : > { %1420 = vrot.lane.b32.xlu0 %v1057_v57, %s10414_s29  ;;  %v530_v23 = vrot.slane %v528_v12, 7  ;;  %v537_v24 = vshrl.u32 %v9686_v15, 16  ;;  %v540_v25 = vshll.u32 %v9686_v15, 16  ;;  %v545_v26 = vshrl.u32 %v9687_v17, 16  ;;  %v987_v27 = vld [vmem:[#allocation2 + $0x10] sm:$0xf] }
  0x4c   : > { %v517_v28 = vsel %vm10587_vm9, %v509_v6, %v516_v19  ;;  %v818_v29 = vld [vmem:[#allocation2 + $0x20] sm:$0x1]  ;;  %v525_v30 = vor.u32 %v523_v11, %v522_v22  ;;  %v526_v31 = vrot.slane %v522_v22, 4  ;;  %v548_v32 = vshll.u32 %v9687_v17, 16  ;;  %v821_v42 = vld [vmem:[#allocation2 + $0x24] sm:$0xf] }
  0x4d   : > { %v988_v35 = vld [vmem:[#allocation2 + $0x14] sm:$0x1]  ;;  %v1068_v36 = vshll.u32 %v987_v27, 16  ;;  %v1072_v37 = vshrl.u32 %v987_v27, 16  ;;  %817 = vst.msk [vmem:[#allocation2 + $0x1c] sm:$0xf] %vm244_vm0, %v517_v28  ;;  %v819_v40 = vsel %vm10578_vm8, %v518_v21, %v818_v29  ;;  %v533_v41 = vor.u32 %v531_v14, %v530_v23 }
  0x4e   : > { %v1078_v43 = vshll.u32 %v988_v35, 16  ;;  %820 = vst [vmem:[#allocation2 + $0x20] sm:$0x1] %v819_v40  ;;  %v822_v44 = vsel %vm10622_vm11, %v525_v30, %v821_v42  ;;  %v535_v45 = vrot.slane %v530_v23, 4  ;;  %v539_v46 = vrot.slane %v537_v24, 7  ;;  %s10417_s12 = smov [#allocation7]  }
  0x4f   : > { %v10643_v49 = vrot.slane %v1068_v36, 5  ;;  %v1074_v50 = vrot.slane %v1072_v37, 4  ;;  %v534_v51 = vsel %vm10587_vm9, %v526_v31, %v533_v41  ;;  %823 = vst [vmem:[#allocation2 + $0x24] sm:$0xf] %v822_v44  ;;  %v825_v52 = vld [vmem:[#allocation2 + $0x2c] sm:$0x1]  ;;  %v10656_v6 = vpack.c.bf16 %v364_v54, %v364_v54 }
  0x50   : > { %v547_v53 = vrot.slane %v545_v26, 7  ;;  %v1080_v55 = vrot.slane %v1078_v43, 5  ;;  %824 = vst.msk [vmem:[#allocation2 + $0x28] sm:$0xf] %vm244_vm0, %v534_v51  ;;  %v826_v56 = vsel %vm10578_vm8, %v535_v45, %v825_v52  ;;  %v542_v57 = vor.u32 %v540_v25, %v539_v46  ;;  %v828_v59 = vld [vmem:[#allocation2 + $0x30] sm:$0xf] }
  0x51   : > { %v543_v58 = vrot.slane %v539_v46, 4  ;;  %v1075_v60 = vor.u32 %v1074_v50, %v10643_v49  ;;  %827 = vst [vmem:[#allocation2 + $0x2c] sm:$0x1] %v826_v56  ;;  %v832_v63 = vld [vmem:[#allocation2 + $0x38] sm:$0x1]  ;;  %v270_v0 = vsel %vm10578_vm8, 0, %v269_v34 }
  0x52   : > { %v550_v61 = vor.u32 %v548_v32, %v547_v53  ;;  %v552_v62 = vrot.slane %v547_v53, 4  ;;  %v989_v2 = vld [vmem:[#allocation2 + $0x18] sm:$0xf]  ;;  %v829_v3 = vsel %vm10622_vm11, %v542_v57, %v828_v59  ;;  %271 = vst [vmem:[#allocation2 + $0x3c] sm:$0x1] %v270_v0  ;;  %v320_v7 = vsel %vm10567_vm3, 0, %v319_v48 }
  0x53   : > { %v1076_v8 = vrot.slane %v1075_v60, 4  ;;  %v1083_v9 = vshrl.u32 %v989_v2, 16  ;;  %v1086_v10 = vshll.u32 %v989_v2, 16  ;;  %830 = vst [vmem:[#allocation2 + $0x30] sm:$0xf] %v829_v3  ;;  %v554_v14 = vshrl.u32 %v9688_v5, 16 }
  0x54   : > { %v551_v11 = vsel %vm10587_vm9, %v543_v58, %v550_v61  ;;  %321 = vst [vmem:[#allocation2 + $0x44] sm:$0x1] %v320_v7  ;;  %v990_v12 = vld [vmem:[#allocation2 + $0x1c] sm:$0xf]  ;;  %v833_v13 = vsel %vm10578_vm8, %v552_v62, %v832_v63  ;;  %v557_v15 = vshll.u32 %v9688_v5, 16  ;;  %v562_v17 = vshrl.u32 %v10656_v6, 16 }
  0x55   : > { %831 = vst.msk [vmem:[#allocation2 + $0x34] sm:$0xf] %vm244_vm0, %v551_v11  ;;  %v1081_v18 = vsel %vm10595_vm10, %v1076_v8, %v1080_v55  ;;  %v1085_v19 = vrot.slane %v1083_v9, 4  ;;  %v1088_v20 = vrot.slane %v1086_v10, 5  ;;  %v1092_v21 = vshll.u32 %v990_v12, 16  ;;  %v365_v10 = vld [vmem:[%s10553_s28 + $0x50] sm:$0xff] }
  0x56   : > { %v991_v22 = vld [vmem:[#allocation2 + $0x20] sm:$0x1]  ;;  %834 = vst [vmem:[#allocation2 + $0x38] sm:$0x1] %v833_v13  ;;  %1424 = vrot.lane.b32.xlu1 %v1081_v18, %s10414_s29  ;;  %v1096_v23 = vshrl.u32 %v990_v12, 16  ;;  %v10669_v26 = vrot.slane %v554_v14, 7 }
  0x57   : > { %v1102_v24 = vshll.u32 %v991_v22, 16  ;;  %v992_v25 = vld [vmem:[#allocation2 + $0x24] sm:$0xf]  ;;  %v10671_v27 = vrot.slane %v562_v17, 7  ;;  %v1089_v28 = vor.u32 %v1088_v20, %v1085_v19  ;;  %v1094_v29 = vrot.slane %v1092_v21, 5  ;;  %s10348_s14 = sshll.u32 %s10417_s12, 4  ;;  %s10349_s14 = int_to_ptr.vmem [resolvable:$false] %s10348_s14 }
  0x58   : > { %v993_v30 = vld [vmem:[#allocation2 + $0x28] sm:$0xf]  ;;  %v1107_v31 = vshrl.u32 %v992_v25, 16  ;;  %v1110_v32 = vshll.u32 %v992_v25, 16  ;;  %v1098_v34 = vrot.slane %v1096_v23, 4  ;;  %v559_v50 = vor.u32 %v557_v15, %v10669_v26  ;;  %v366_v15 = vld [vmem:[%s10553_s28 + $0x58] sm:$0xff] }
  0x59   : > { %v1104_v35 = vrot.slane %v1102_v24, 5  ;;  %v1116_v36 = vshll.u32 %v993_v30, 16  ;;  %v994_v37 = vld [vmem:[#allocation2 + $0x2c] sm:$0x1]  ;;  %v1120_v40 = vshrl.u32 %v993_v30, 16  ;;  %v1090_v41 = vrot.slane %v1089_v28, 4 }
  0x5a   : > { %v1109_v42 = vrot.slane %v1107_v31, 4  ;;  %v1112_v43 = vrot.slane %v1110_v32, 5  ;;  %v1126_v44 = vshll.u32 %v994_v37, 16  ;;  %v1099_v45 = vor.u32 %v1098_v34, %v1094_v29  ;;  %v995_v48 = vld [vmem:[#allocation2 + $0x30] sm:$0xf]  ;;  %v367_v28 = vld [vmem:[%s10553_s28 + $0x60] sm:$0xff] }
  0x5b   : > { %v1118_v46 = vrot.slane %v1116_v36, 5  ;;  %v1122_v47 = vrot.slane %v1120_v40, 4  ;;  %v1095_v51 = vsel %vm10595_vm10, %v1090_v41, %v1094_v29  ;;  %v1131_v55 = vshrl.u32 %v995_v48, 16  ;;  %v835_v2 = vld [vmem:[#allocation2 + $0x3c] sm:$0xf]  ;;  %v368_v41 = vld [vmem:[%s10553_s28 + $0x68] sm:$0xff] }
  0x5c   : > { %v1113_v52 = vor.u32 %v1112_v43, %v1109_v42  ;;  %v1128_v53 = vrot.slane %v1126_v44, 5  ;;  %v996_v54 = vld [vmem:[#allocation2 + $0x34] sm:$0xf]  ;;  %1426 = vrot.lane.b32.xlu0 %v1095_v51, %s10414_s29  ;;  %v1100_v56 = vrot.slane %v1099_v45, 4  ;;  %v1134_v58 = vshll.u32 %v995_v48, 16  ;;  %s10350_s15 = scalar_lea.vmem %s10349_s14, 8192 }
  0x5d   : > { %v1123_v57 = vor.u32 %v1122_v47, %v1118_v46  ;;  %v1140_v59 = vshll.u32 %v996_v54, 16  ;;  %v997_v60 = vld [vmem:[#allocation2 + $0x38] sm:$0x1]  ;;  %v1133_v62 = vrot.slane %v1131_v55, 4  ;;  %v1144_v63 = vshrl.u32 %v996_v54, 16  ;;  %v369_v55 = vld [vmem:[%s10553_s28 + $0x70] sm:$0xff] }
  0x5e   : > { %v1114_v61 = vrot.slane %v1113_v52, 4  ;;  %v1150_v0 = vshll.u32 %v997_v60, 16  ;;  %v1105_v3 = vsel %vm10595_vm10, %v1100_v56, %v1104_v35  ;;  %v1136_v7 = vrot.slane %v1134_v58, 5  ;;  %v272_v9 = vld [vmem:[#allocation2 + $0x48] sm:$0x1]  ;;  %v370_v60 = vld [vmem:[%s10553_s28 + $0x78] sm:$0xff] }
  0x5f   : > { %v1124_v5 = vrot.slane %v1123_v57, 4  ;;  %v1142_v8 = vrot.slane %v1140_v59, 5  ;;  %1428 = vrot.lane.b32.xlu1 %v1105_v3, %s10414_s29  ;;  %v1146_v12 = vrot.slane %v1144_v63, 4  ;;  %v560_v14 = vrot.slane %v10669_v26, 4  ;;  %v322_v17 = vld [vmem:[#allocation2 + $0x50] sm:$0x1] }
  0x60   : > { %v1119_v11 = vsel %vm10595_vm10, %v1114_v61, %v1118_v46  ;;  %v1152_v13 = vrot.slane %v1150_v0, 5  ;;  %v1137_v19 = vor.u32 %v1136_v7, %v1133_v62  ;;  %v565_v20 = vshll.u32 %v10656_v6, 16  ;;  %v839_v22 = vld [vmem:[#allocation2 + $0x44] sm:$0x1]  ;;  %v275_v32 = vld [vmem:[#allocation2 + $0x54] sm:$0x1] }
  0x61   : > { %1430 = vrot.lane.b32.xlu0 %v1119_v11, %s10414_s29  ;;  %v1129_v18 = vsel %vm10595_vm10, %v1124_v5, %v1128_v53  ;;  %v836_v21 = vsel %vm10622_vm11, %v559_v50, %v835_v2  ;;  %v1147_v23 = vor.u32 %v1146_v12, %v1142_v8  ;;  %v569_v24 = vrot.slane %v10671_v27, 4  ;;  %v325_v34 = vld [vmem:[#allocation2 + $0x5c] sm:$0x1]  ;;  %v278_v42 = vld [vmem:[#allocation2 + $0x60] sm:$0x1] }
  0x62   : > { %837 = vst [vmem:[#allocation2 + $0x3c] sm:$0xf] %v836_v21  ;;  %v273_v25 = vsel %vm10578_vm8, 0, %v272_v9  ;;  %v9690_v26 = vpack.c.bf16 %v365_v10, %v365_v10  ;;  %v1138_v29 = vrot.slane %v1137_v19, 4  ;;  %v567_v30 = vor.u32 %v565_v20, %v10671_v27  ;;  %v328_v21 = vld [vmem:[#allocation2 + $0x68] sm:$0x1] }
  0x63   : > { %274 = vst [vmem:[#allocation2 + $0x48] sm:$0x1] %v273_v25  ;;  %v9691_v31 = vpack.c.bf16 %v366_v15, %v366_v15  ;;  %v323_v6 = vsel %vm10567_vm3, 0, %v322_v17  ;;  %1432 = vrot.lane.b32.xlu1 %v1129_v18, %s10414_s29  ;;  %v1148_v35 = vrot.slane %v1147_v23, 4  ;;  %v840_v36 = vsel %vm10578_vm8, %v569_v24, %v839_v22 }
  0x64   : > { %v571_v37 = vshrl.u32 %v9690_v26, 16  ;;  %v574_v40 = vshll.u32 %v9690_v26, 16  ;;  %324 = vst [vmem:[#allocation2 + $0x50] sm:$0x1] %v323_v6  ;;  %v1143_v27 = vsel %vm10595_vm10, %v1138_v29, %v1142_v8  ;;  %v568_v43 = vsel %vm10587_vm9, %v560_v14, %v567_v30  ;;  %841 = vst [vmem:[#allocation2 + $0x44] sm:$0x1] %v840_v36 }
  0x65   : > { %v579_v44 = vshrl.u32 %v9691_v31, 16  ;;  %v582_v45 = vshll.u32 %v9691_v31, 16  ;;  %1434 = vrot.lane.b32.xlu0 %v1143_v27, %s10414_s29  ;;  %v1153_v46 = vsel %vm10595_vm10, %v1148_v35, %v1152_v13  ;;  %838 = vst.msk [vmem:[#allocation2 + $0x40] sm:$0xf] %vm244_vm0, %v568_v43  ;;  %v276_v48 = vsel %vm10578_vm8, 0, %v275_v32 }
  0x66   : > { %v573_v47 = vrot.slane %v571_v37, 7  ;;  %v9692_v50 = vpack.c.bf16 %v367_v28, %v367_v28  ;;  %277 = vst [vmem:[#allocation2 + $0x54] sm:$0x1] %v276_v48  ;;  %v9693_v52 = vpack.c.bf16 %v368_v41, %v368_v41  ;;  %v326_v53 = vsel %vm10567_vm3, 0, %v325_v34  ;;  %v281_v28 = vld [vmem:[#allocation2 + $0x6c] sm:$0x1] }
  0x67   : > { %v581_v51 = vrot.slane %v579_v44, 7  ;;  %v279_v54 = vsel %vm10578_vm8, 0, %v278_v42  ;;  %1436 = vrot.lane.b32.xlu1 %v1153_v46, %s10414_s29  ;;  %327 = vst [vmem:[#allocation2 + $0x5c] sm:$0x1] %v326_v53  ;;  %v9694_v9 = vpack.c.bf16 %v369_v55, %v369_v55  ;;  %v9695_v14 = vpack.c.bf16 %v370_v60, %v370_v60  ;;  %v371_v41 = vld [vmem:[%s10553_s28 + $0x80] sm:$0xff] }
  0x68   : > { %v576_v56 = vor.u32 %v574_v40, %v573_v47  ;;  %v577_v57 = vrot.slane %v573_v47, 4  ;;  %v588_v58 = vshrl.u32 %v9692_v50, 16  ;;  %v591_v59 = vshll.u32 %v9692_v50, 16  ;;  %280 = vst [vmem:[#allocation2 + $0x60] sm:$0x1] %v279_v54 }
  0x69   : > { %v998_v61 = vld [vmem:[#allocation2 + $0x3c] sm:$0xf]  ;;  %v584_v62 = vor.u32 %v582_v45, %v581_v51  ;;  %v586_v63 = vrot.slane %v581_v51, 4  ;;  %v596_v0 = vshrl.u32 %v9693_v52, 16  ;;  %v599_v2 = vshll.u32 %v9693_v52, 16  ;;  %v372_v45 = vld [vmem:[%s10553_s28 + $0x88] sm:$0xff] }
  0x6a   : > { %v1155_v3 = vshrl.u32 %v998_v61, 16  ;;  %v1158_v5 = vshll.u32 %v998_v61, 16  ;;  %v842_v7 = vld [vmem:[#allocation2 + $0x48] sm:$0xf]  ;;  %v590_v8 = vrot.slane %v588_v58, 7  ;;  %v605_v32 = vshrl.u32 %v9694_v9, 16 }
  0x6b   : > { %v585_v10 = vsel %vm10587_vm9, %v577_v57, %v584_v62  ;;  %v843_v11 = vsel %vm10622_vm11, %v576_v56, %v842_v7  ;;  %v846_v12 = vld [vmem:[#allocation2 + $0x50] sm:$0x1]  ;;  %v598_v13 = vrot.slane %v596_v0, 7  ;;  %v1000_v18 = vld [vmem:[#allocation2 + $0x44] sm:$0x1]  ;;  %v608_v40 = vshll.u32 %v9694_v9, 16 }
  0x6c   : > { %v1157_v15 = vrot.slane %v1155_v3, 4  ;;  %v1160_v17 = vrot.slane %v1158_v5, 5  ;;  %844 = vst [vmem:[#allocation2 + $0x48] sm:$0xf] %v843_v11  ;;  %845 = vst.msk [vmem:[#allocation2 + $0x4c] sm:$0xf] %vm244_vm0, %v585_v10  ;;  %v847_v19 = vsel %vm10578_vm8, %v586_v63, %v846_v12  ;;  %v593_v20 = vor.u32 %v591_v59, %v590_v8 }
  0x6d   : > { %v999_v22 = vld [vmem:[#allocation2 + $0x40] sm:$0xf]  ;;  %v1174_v23 = vshll.u32 %v1000_v18, 16  ;;  %848 = vst [vmem:[#allocation2 + $0x50] sm:$0x1] %v847_v19  ;;  %v594_v24 = vrot.slane %v590_v8, 4  ;;  %v601_v25 = vor.u32 %v599_v2, %v598_v13  ;;  %v10741_v55 = vpack.c.bf16 %v371_v41, %v371_v41 }
  0x6e   : > { %v603_v26 = vrot.slane %v598_v13, 4  ;;  %v1161_v29 = vor.u32 %v1160_v17, %v1157_v15  ;;  %v1164_v30 = vshll.u32 %v999_v22, 16  ;;  %v1168_v31 = vshrl.u32 %v999_v22, 16  ;;  %v849_v6 = vld [vmem:[#allocation2 + $0x54] sm:$0xf]  ;;  %v373_v56 = vld [vmem:[%s10553_s28 + $0x90] sm:$0xff] }
  0x6f   : > { %v1176_v34 = vrot.slane %v1174_v23, 5  ;;  %v602_v35 = vsel %vm10587_vm9, %v594_v24, %v601_v25  ;;  %v850_v36 = vsel %vm10622_vm11, %v593_v20, %v849_v6  ;;  %v853_v37 = vld [vmem:[#allocation2 + $0x5c] sm:$0x1]  ;;  %v607_v46 = vrot.slane %v605_v32, 7  ;;  %v856_v53 = vld [vmem:[#allocation2 + $0x60] sm:$0xf] }
  0x70   : > { %v1162_v42 = vrot.slane %v1161_v29, 4  ;;  %v1166_v27 = vrot.slane %v1164_v30, 5  ;;  %v1170_v43 = vrot.slane %v1168_v31, 4  ;;  %851 = vst [vmem:[#allocation2 + $0x54] sm:$0xf] %v850_v36  ;;  %v854_v44 = vsel %vm10578_vm8, %v603_v26, %v853_v37 }
  0x71   : > { %852 = vst.msk [vmem:[#allocation2 + $0x58] sm:$0xf] %vm244_vm0, %v602_v35  ;;  %855 = vst [vmem:[#allocation2 + $0x5c] sm:$0x1] %v854_v44  ;;  %v613_v47 = vshrl.u32 %v9695_v14, 16  ;;  %v616_v48 = vshll.u32 %v9695_v14, 16  ;;  %v610_v59 = vor.u32 %v608_v40, %v607_v46  ;;  %v10745_v62 = vpack.c.bf16 %v372_v45, %v372_v45 }
  0x72   : > { %v329_v50 = vsel %vm10567_vm3, 0, %v328_v21  ;;  %v1167_v51 = vsel %vm10595_vm10, %v1162_v42, %v1166_v27  ;;  %v1171_v52 = vor.u32 %v1170_v43, %v1166_v27  ;;  %v282_v54 = vsel %vm10578_vm8, 0, %v281_v28 }
  0x73   : > { %330 = vst [vmem:[#allocation2 + $0x68] sm:$0x1] %v329_v50  ;;  %1438 = vrot.lane.b32.xlu0 %v1167_v51, %s10414_s29  ;;  %v1001_v57 = vld [vmem:[#allocation2 + $0x48] sm:$0xf]  ;;  %v1002_v58 = vld [vmem:[#allocation2 + $0x4c] sm:$0xf]  ;;  %v857_v10 = vsel %vm10622_vm11, %v610_v59, %v856_v53  ;;  %v10754_v21 = vpack.c.bf16 %v373_v56, %v373_v56 }
  0x74   : > { %v611_v60 = vrot.slane %v607_v46, 4  ;;  %v615_v61 = vrot.slane %v613_v47, 7  ;;  %283 = vst [vmem:[#allocation2 + $0x6c] sm:$0x1] %v282_v54  ;;  %v1172_v63 = vrot.slane %v1171_v52, 4  ;;  %v1179_v0 = vshrl.u32 %v1001_v57, 16 }
  0x75   : > { %v1182_v2 = vshll.u32 %v1001_v57, 16  ;;  %v1188_v3 = vshll.u32 %v1002_v58, 16  ;;  %v1003_v5 = vld [vmem:[#allocation2 + $0x50] sm:$0x1]  ;;  %v1192_v7 = vshrl.u32 %v1002_v58, 16  ;;  %v622_v44 = vshrl.u32 %v10741_v55, 16 }
  0x76   : > { %v1198_v8 = vshll.u32 %v1003_v5, 16  ;;  %v618_v9 = vor.u32 %v616_v48, %v615_v61  ;;  %v1177_v11 = vsel %vm10595_vm10, %v1172_v63, %v1176_v34  ;;  %v1181_v12 = vrot.slane %v1179_v0, 4  ;;  %858 = vst [vmem:[#allocation2 + $0x60] sm:$0xf] %v857_v10  ;;  %v257_v46 = vld [vmem:[#allocation2 + $0xc] sm:$0x1] }
  0x77   : > { %v1184_v13 = vrot.slane %v1182_v2, 5  ;;  %v1190_v14 = vrot.slane %v1188_v3, 5  ;;  %1440 = vrot.lane.b32.xlu1 %v1177_v11, %s10414_s29  ;;  %v1194_v15 = vrot.slane %v1192_v7, 4  ;;  %v1004_v18 = vld [vmem:[#allocation2 + $0x54] sm:$0xf]  ;;  %v620_v31 = vrot.slane %v615_v61, 4 }
  0x78   : > { %v1200_v17 = vrot.slane %v1198_v8, 5  ;;  %v1005_v19 = vld [vmem:[#allocation2 + $0x58] sm:$0xf]  ;;  %v619_v20 = vsel %vm10587_vm9, %v611_v60, %v618_v9  ;;  %v1203_v23 = vshrl.u32 %v1004_v18, 16  ;;  %v1206_v24 = vshll.u32 %v1004_v18, 16 }
  0x79   : > { %v1185_v22 = vor.u32 %v1184_v13, %v1181_v12  ;;  %v1212_v25 = vshll.u32 %v1005_v19, 16  ;;  %v1006_v26 = vld [vmem:[#allocation2 + $0x5c] sm:$0x1]  ;;  %859 = vst.msk [vmem:[#allocation2 + $0x64] sm:$0xf] %vm244_vm0, %v619_v20  ;;  %v1195_v28 = vor.u32 %v1194_v15, %v1190_v14  ;;  %v1216_v29 = vshrl.u32 %v1005_v19, 16 }
  0x7a   : > { %v1222_v30 = vshll.u32 %v1006_v26, 16  ;;  %v860_v6 = vld [vmem:[#allocation2 + $0x68] sm:$0x1]  ;;  %v1205_v34 = vrot.slane %v1203_v23, 4  ;;  %v1208_v35 = vrot.slane %v1206_v24, 5  ;;  %v625_v45 = vshll.u32 %v10741_v55, 16 }
  0x7b   : > { %v1186_v32 = vrot.slane %v1185_v22, 4  ;;  %v1214_v36 = vrot.slane %v1212_v25, 5  ;;  %v1196_v37 = vrot.slane %v1195_v28, 4  ;;  %v1218_v40 = vrot.slane %v1216_v29, 4  ;;  %v284_v47 = vld [vmem:[#allocation2 + $0x78] sm:$0x1] }
  0x7c   : > { %v1224_v41 = vrot.slane %v1222_v30, 5  ;;  %v861_v42 = vsel %vm10578_vm8, %v620_v31, %v860_v6  ;;  %v1209_v43 = vor.u32 %v1208_v35, %v1205_v34  ;;  %v630_v52 = vshrl.u32 %v10745_v62, 16  ;;  %v374_v55 = vld [vmem:[%s10553_s28 + $0x98] sm:$0xff]  ;;  %v863_v7 = vld [vmem:[#allocation2 + $0x6c] sm:$0xf]  ;;  %v375_v29 = vld [vmem:[%s10553_s28 + $0xa0] sm:$0xff] }
  0x7d   : > { %v1191_v27 = vsel %vm10595_vm10, %v1186_v32, %v1190_v14  ;;  %862 = vst [vmem:[#allocation2 + $0x68] sm:$0x1] %v861_v42  ;;  %v1201_v48 = vsel %vm10595_vm10, %v1196_v37, %v1200_v17  ;;  %v1219_v50 = vor.u32 %v1218_v40, %v1214_v36  ;;  %v1007_v51 = vld [vmem:[#allocation2 + $0x60] sm:$0xf]  ;;  %v633_v53 = vshll.u32 %v10745_v62, 16 }
  0x7e   : > { %1442 = vrot.lane.b32.xlu0 %v1191_v27, %s10414_s29  ;;  %1444 = vrot.lane.b32.xlu1 %v1201_v48, %s10414_s29  ;;  %v1210_v54 = vrot.slane %v1209_v43, 4  ;;  %v1227_v56 = vshrl.u32 %v1007_v51, 16  ;;  %v1230_v57 = vshll.u32 %v1007_v51, 16  ;;  %v624_v58 = vrot.slane %v622_v44, 7  ;;  %v331_v17 = vld [vmem:[#allocation2 + $0x74] sm:$0x1] }
  0x7f   : > { %v1220_v59 = vrot.slane %v1219_v50, 4  ;;  %v10770_v61 = vrot.slane %v630_v52, 7  ;;  %v258_v63 = vsel %vm10578_vm8, 0, %v257_v46  ;;  %v285_v0 = vsel %vm10578_vm8, 0, %v284_v47  ;;  %v287_v34 = vld [vmem:[#allocation2 + $0x84] sm:$0x1] }
  0x80   : > { %v1008_v60 = vld [vmem:[#allocation2 + $0x64] sm:$0xf]  ;;  %v1215_v62 = vsel %vm10595_vm10, %v1210_v54, %v1214_v36  ;;  %v1229_v2 = vrot.slane %v1227_v56, 4  ;;  %v1232_v3 = vrot.slane %v1230_v57, 5  ;;  %259 = vst [vmem:[#allocation2 + $0xc] sm:$0x1] %v258_v63  ;;  %v627_v10 = vor.u32 %v625_v45, %v624_v58 }
  0x81   : > { %v1236_v5 = vshll.u32 %v1008_v60, 16  ;;  %286 = vst [vmem:[#allocation2 + $0x78] sm:$0x1] %v285_v0  ;;  %v1225_v8 = vsel %vm10595_vm10, %v1220_v59, %v1224_v41  ;;  %v1240_v9 = vshrl.u32 %v1008_v60, 16  ;;  %v628_v11 = vrot.slane %v624_v58, 4  ;;  %v376_v35 = vld [vmem:[%s10553_s28 + $0xa8] sm:$0xff] }
  0x82   : > { %1446 = vrot.lane.b32.xlu0 %v1215_v62, %s10414_s29  ;;  %1448 = vrot.lane.b32.xlu1 %v1225_v8, %s10414_s29  ;;  %v1233_v12 = vor.u32 %v1232_v3, %v1229_v2  ;;  %v635_v14 = vor.u32 %v633_v53, %v10770_v61  ;;  %v9699_v15 = vpack.c.bf16 %v374_v55, %v374_v55  ;;  %v639_v22 = vshrl.u32 %v10754_v21, 16  ;;  %v334_v41 = vld [vmem:[#allocation2 + $0x80] sm:$0x1]  ;;  %v290_v52 = vld [vmem:[#allocation2 + $0x90] sm:$0x1]  ;;  %v377_v53 = vld [vmem:[%s10553_s28 + $0xb0] sm:$0xff] }
  0x83   : > { %v1238_v13 = vrot.slane %v1236_v5, 5  ;;  %v1242_v19 = vrot.slane %v1240_v9, 4  ;;  %v864_v20 = vsel %vm10622_vm11, %v627_v10, %v863_v7  ;;  %v642_v23 = vshll.u32 %v10754_v21, 16  ;;  %v919_v54 = vld [vmem:[#allocation2] sm:$0xf] }
  0x84   : > { %v1009_v18 = vld [vmem:[#allocation2 + $0x68] sm:$0x1]  ;;  %v1234_v24 = vrot.slane %v1233_v12, 4  ;;  %v636_v26 = vsel %vm10587_vm9, %v628_v11, %v635_v14  ;;  %865 = vst [vmem:[#allocation2 + $0x6c] sm:$0xf] %v864_v20  ;;  %v647_v28 = vshrl.u32 %v9699_v15, 16  ;;  %v9700_v46 = vpack.c.bf16 %v375_v29, %v375_v29 }
  0x85   : > { %v1246_v25 = vshll.u32 %v1009_v18, 16  ;;  %v1243_v30 = vor.u32 %v1242_v19, %v1238_v13  ;;  %866 = vst.msk [vmem:[#allocation2 + $0x70] sm:$0xf] %vm244_vm0, %v636_v26  ;;  %v641_v31 = vrot.slane %v639_v22, 7  ;;  %v650_v6 = vshll.u32 %v9699_v15, 16 }
  0x86   : > { %v332_v32 = vsel %vm10567_vm3, 0, %v331_v17  ;;  %v1239_v21 = vsel %vm10595_vm10, %v1234_v24, %v1238_v13  ;;  %v10796_v37 = vrot.slane %v647_v28, 7  ;;  %v637_v40 = vrot.slane %v10770_v61, 4  ;;  %951 = vst.msk [vmem:[#allocation3] sm:$0xf] %vm244_vm0, %v919_v54 }
  0x87   : > { %v1248_v36 = vrot.slane %v1246_v25, 5  ;;  %333 = vst [vmem:[#allocation2 + $0x74] sm:$0x1] %v332_v32  ;;  %1450 = vrot.lane.b32.xlu0 %v1239_v21, %s10414_s29  ;;  %v1244_v42 = vrot.slane %v1243_v30, 4  ;;  %v807_v27 = vld [vmem:[#allocation2 + $0xc] sm:$0xf]  ;;  %v644_v43 = vor.u32 %v642_v23, %v641_v31  ;;  %v9701_v51 = vpack.c.bf16 %v376_v35, %v376_v35 }
  0x88   : > { %v645_v44 = vrot.slane %v641_v31, 4  ;;  %v870_v45 = vld [vmem:[#allocation2 + $0x78] sm:$0xf]  ;;  %v808_v47 = vsel %vm10622_vm11, %v10599_v39, %v807_v27  ;;  %v652_v48 = vor.u32 %v650_v6, %v10796_v37  ;;  %v288_v50 = vsel %vm10578_vm8, 0, %v287_v34  ;;  %v378_v39 = vld [vmem:[%s10553_s28 + $0xb8] sm:$0xff] }
  0x89   : > { %v1249_v56 = vsel %vm10595_vm10, %v1244_v42, %v1248_v36  ;;  %809 = vst [vmem:[#allocation2 + $0xc] sm:$0xf] %v808_v47  ;;  %v871_v57 = vsel %vm10622_vm11, %v644_v43, %v870_v45  ;;  %289 = vst [vmem:[#allocation2 + $0x84] sm:$0x1] %v288_v50  ;;  %v656_v58 = vshrl.u32 %v9700_v46, 16  ;;  %v659_v55 = vshll.u32 %v9700_v46, 16 }
  0x8a   : > { %1452 = vrot.lane.b32.xlu1 %v1249_v56, %s10414_s29  ;;  %v653_v59 = vsel %vm10587_vm9, %v645_v44, %v652_v48  ;;  %872 = vst [vmem:[#allocation2 + $0x78] sm:$0xf] %v871_v57  ;;  %v664_v60 = vshrl.u32 %v9701_v51, 16  ;;  %v667_v61 = vshll.u32 %v9701_v51, 16  ;;  %v335_v63 = vsel %vm10567_vm3, 0, %v334_v41 }
  0x8b   : > { %v920_v0 = vld [vmem:[#allocation2 + $0x4] sm:$0xf]  ;;  %v1010_v62 = vld [vmem:[#allocation2 + $0x6c] sm:$0xf]  ;;  %873 = vst.msk [vmem:[#allocation2 + $0x7c] sm:$0xf] %vm244_vm0, %v653_v59  ;;  %v9702_v7 = vpack.c.bf16 %v377_v53, %v377_v53  ;;  %v10825_v12 = vpack.c.bf16 %v378_v39, %v378_v39 }
  0x8c   : > { %v658_v2 = vrot.slane %v656_v58, 7  ;;  %336 = vst [vmem:[#allocation2 + $0x80] sm:$0x1] %v335_v63  ;;  %v654_v3 = vrot.slane %v10796_v37, 4  ;;  %v291_v5 = vsel %vm10578_vm8, 0, %v290_v52  ;;  %v1251_v9 = vshrl.u32 %v1010_v62, 16 }
  0x8d   : > { %952 = vst.msk [vmem:[#allocation3 + $0xc] sm:$0xf] %vm244_vm0, %v920_v0  ;;  %v1011_v8 = vld [vmem:[#allocation2 + $0x70] sm:$0xf]  ;;  %v1254_v10 = vshll.u32 %v1010_v62, 16  ;;  %v10823_v11 = vrot.slane %v664_v60, 7 }
  0x8e   : > { %292 = vst [vmem:[#allocation2 + $0x90] sm:$0x1] %v291_v5  ;;  %v1260_v13 = vshll.u32 %v1011_v8, 16  ;;  %v867_v14 = vld [vmem:[#allocation2 + $0x74] sm:$0x1]  ;;  %v1264_v15 = vshrl.u32 %v1011_v8, 16  ;;  %v661_v17 = vor.u32 %v659_v55, %v658_v2 }
  0x8f   : > { %v662_v18 = vrot.slane %v658_v2, 4  ;;  %v1253_v19 = vrot.slane %v1251_v9, 4  ;;  %v1256_v20 = vrot.slane %v1254_v10, 5  ;;  %v868_v22 = vsel %vm10578_vm8, %v637_v40, %v867_v14  ;;  %v337_v41 = vld [vmem:[#allocation2 + $0x8c] sm:$0x1] }
  0x90   : > { %v669_v23 = vor.u32 %v667_v61, %v10823_v11  ;;  %v1262_v24 = vrot.slane %v1260_v13, 5  ;;  %869 = vst [vmem:[#allocation2 + $0x74] sm:$0x1] %v868_v22  ;;  %v1266_v25 = vrot.slane %v1264_v15, 4  ;;  %v673_v26 = vshrl.u32 %v9702_v7, 16 }
  0x91   : > { %v676_v28 = vshll.u32 %v9702_v7, 16  ;;  %v1257_v29 = vor.u32 %v1256_v20, %v1253_v19  ;;  %v986_v30 = vld [vmem:[#allocation2 + $0xc] sm:$0xf]  ;;  %v877_v6 = vld [vmem:[#allocation2 + $0x84] sm:$0xf]  ;;  %v681_v32 = vshrl.u32 %v10825_v12, 16 }
  0x92   : > { %v670_v31 = vsel %vm10587_vm9, %v662_v18, %v669_v23  ;;  %v684_v34 = vshll.u32 %v10825_v12, 16  ;;  %v1059_v35 = vshrl.u32 %v986_v30, 16  ;;  %v1062_v21 = vshll.u32 %v986_v30, 16  ;;  %v1013_v36 = vld [vmem:[#allocation2 + $0x78] sm:$0xf] }
  0x93   : > { %v1267_v37 = vor.u32 %v1266_v25, %v1262_v24  ;;  %v878_v40 = vsel %vm10622_vm11, %v661_v17, %v877_v6  ;;  %880 = vst.msk [vmem:[#allocation2 + $0x88] sm:$0xf] %vm244_vm0, %v670_v31  ;;  %v1258_v42 = vrot.slane %v1257_v29, 4  ;;  %v1014_v27 = vld [vmem:[#allocation2 + $0x7c] sm:$0xf]  ;;  %v1275_v43 = vshrl.u32 %v1013_v36, 16 }
  0x94   : > { %v1278_v44 = vshll.u32 %v1013_v36, 16  ;;  %879 = vst [vmem:[#allocation2 + $0x84] sm:$0xf] %v878_v40  ;;  %v675_v45 = vrot.slane %v673_v26, 7  ;;  %v1061_v46 = vrot.slane %v1059_v35, 4  ;;  %v1064_v47 = vrot.slane %v1062_v21, 5 }
  0x95   : > { %v1284_v48 = vshll.u32 %v1014_v27, 16  ;;  %v10837_v50 = vrot.slane %v1267_v37, 4  ;;  %v874_v51 = vld [vmem:[#allocation2 + $0x80] sm:$0x1]  ;;  %v1263_v52 = vsel %vm10595_vm10, %v1258_v42, %v1262_v24  ;;  %v1277_v53 = vrot.slane %v1275_v43, 4  ;;  %v379_v23 = vld [vmem:[%s10553_s28 + $0xc0] sm:$0xff] }
  0x96   : > { %v1280_v54 = vrot.slane %v1278_v44, 5  ;;  %v875_v56 = vsel %vm10578_vm8, %v654_v3, %v874_v51  ;;  %v884_v57 = vld [vmem:[#allocation2 + $0x90] sm:$0xf]  ;;  %1454 = vrot.lane.b32.xlu0 %v1263_v52, %s10414_s29  ;;  %v1065_v58 = vor.u32 %v1064_v47, %v1061_v46  ;;  %v1288_v39 = vshrl.u32 %v1014_v27, 16  ;;  %v293_v60 = vld [vmem:[#allocation2 + $0x9c] sm:$0x1] }
  0x97   : > { %v1286_v55 = vrot.slane %v1284_v48, 5  ;;  %876 = vst [vmem:[#allocation2 + $0x80] sm:$0x1] %v875_v56  ;;  %v678_v59 = vor.u32 %v676_v28, %v675_v45  ;;  %v922_v61 = vld [vmem:[#allocation2 + $0x10] sm:$0xf]  ;;  %v679_v62 = vrot.slane %v675_v45, 4  ;;  %v9704_v36 = vpack.c.bf16 %v379_v23, %v379_v23 }
  0x98   : > { %v1281_v63 = vor.u32 %v1280_v54, %v1277_v53  ;;  %v1012_v0 = vld [vmem:[#allocation2 + $0x74] sm:$0x1]  ;;  %v10844_v2 = vrot.slane %v681_v32, 7  ;;  %v338_v5 = vsel %vm10567_vm3, 0, %v337_v41  ;;  %954 = vst.msk [vmem:[#allocation3 + $0x24] sm:$0xf] %vm244_vm0, %v922_v61 }
  0x99   : > { %v1066_v3 = vrot.slane %v1065_v58, 4  ;;  %v1270_v7 = vshll.u32 %v1012_v0, 16  ;;  %v1290_v8 = vrot.slane %v1288_v39, 4  ;;  %v885_v9 = vsel %vm10622_vm11, %v678_v59, %v884_v57  ;;  %339 = vst [vmem:[#allocation2 + $0x8c] sm:$0x1] %v338_v5  ;;  %v380_v24 = vld [vmem:[%s10553_s28 + $0xc8] sm:$0xff] }
  0x9a   : > { %v923_v10 = vld [vmem:[#allocation2 + $0x18] sm:$0xf]  ;;  %v1282_v12 = vrot.slane %v1281_v63, 4  ;;  %v1017_v13 = vld [vmem:[#allocation2 + $0x88] sm:$0xf]  ;;  %v686_v14 = vor.u32 %v684_v34, %v10844_v2  ;;  %v294_v15 = vsel %vm10578_vm8, 0, %v293_v60  ;;  %v9705_v37 = vpack.c.bf16 %v380_v24, %v380_v24 }
  0x9b   : > { %886 = vst [vmem:[#allocation2 + $0x90] sm:$0xf] %v885_v9  ;;  %955 = vst.msk [vmem:[#allocation3 + $0x30] sm:$0xf] %vm244_vm0, %v923_v10  ;;  %v1071_v17 = vsel %vm10595_vm10, %v1066_v3, %v10643_v49  ;;  %v1272_v18 = vrot.slane %v1270_v7, 5  ;;  %v1308_v20 = vshll.u32 %v1017_v13, 16  ;;  %v1291_v22 = vor.u32 %v1290_v8, %v1286_v55 }
  0x9c   : > { %v1016_v19 = vld [vmem:[#allocation2 + $0x84] sm:$0xf]  ;;  %295 = vst [vmem:[#allocation2 + $0x9c] sm:$0x1] %v294_v15  ;;  %1422 = vrot.lane.b32.xlu1 %v1071_v17, %s10414_s29  ;;  %v1287_v25 = vsel %vm10595_vm10, %v1282_v12, %v1286_v55  ;;  %v687_v29 = vsel %vm10587_vm9, %v679_v62, %v686_v14  ;;  %v340_v30 = vld [vmem:[#allocation2 + $0x98] sm:$0x1] }
  0x9d   : > { %v1299_v26 = vshrl.u32 %v1016_v19, 16  ;;  %v1302_v28 = vshll.u32 %v1016_v19, 16  ;;  %1458 = vrot.lane.b32.xlu0 %v1287_v25, %s10414_s29  ;;  %v1273_v49 = vsel %vm10595_vm10, %v10837_v50, %v1272_v18  ;;  %887 = vst.msk [vmem:[#allocation2 + $0x94] sm:$0xf] %vm244_vm0, %v687_v29  ;;  %v671_v31 = vrot.slane %v10823_v11, 4 }
  0x9e   : > { %v1312_v6 = vshrl.u32 %v1017_v13, 16  ;;  %v924_v32 = vld [vmem:[#allocation2 + $0x1c] sm:$0xf]  ;;  %v1015_v21 = vld [vmem:[#allocation2 + $0x80] sm:$0x1]  ;;  %v1310_v41 = vrot.slane %v1308_v20, 5 }
  0x9f   : > { %v1301_v34 = vrot.slane %v1299_v26, 4  ;;  %v1304_v35 = vrot.slane %v1302_v28, 5  ;;  %956 = vst.msk [vmem:[#allocation3 + $0x3c] sm:$0xf] %vm244_vm0, %v924_v32  ;;  %v925_v40 = vld [vmem:[#allocation2 + $0x24] sm:$0xf] }
  0xa0   : > { %v1292_v42 = vrot.slane %v1291_v22, 4  ;;  %v1294_v27 = vshll.u32 %v1015_v21, 16  ;;  %v341_v43 = vsel %vm10567_vm3, 0, %v340_v30  ;;  %957 = vst.msk [vmem:[#allocation3 + $0x48] sm:$0xf] %vm244_vm0, %v925_v40  ;;  %1456 = vrot.lane.b32.xlu1 %v1273_v49, %s10414_s29  ;;  %v690_v45 = vshrl.u32 %v9704_v36, 16 }
  0xa1   : > { %v1305_v11 = vor.u32 %v1304_v35, %v1301_v34  ;;  %v881_v44 = vld [vmem:[#allocation2 + $0x8c] sm:$0x1]  ;;  %v693_v46 = vshll.u32 %v9704_v36, 16  ;;  %v698_v47 = vshrl.u32 %v9705_v37, 16  ;;  %342 = vst [vmem:[#allocation2 + $0x98] sm:$0x1] %v341_v43 }
  0xa2   : > { %v1296_v48 = vrot.slane %v1294_v27, 5  ;;  %v1019_v50 = vld [vmem:[#allocation2 + $0x90] sm:$0xf]  ;;  %v882_v51 = vsel %vm10578_vm8, %v671_v31, %v881_v44  ;;  %v1314_v52 = vrot.slane %v1312_v6, 4  ;;  %v701_v53 = vshll.u32 %v9705_v37, 16  ;;  %v10135_v49 = vld [vmem:[%s14436_s1 + $0x78] sm:$0xff]  }
  0xa3   : > { %v1306_v54 = vrot.slane %v1305_v11, 4  ;;  %v1323_v56 = vshrl.u32 %v1019_v50, 16  ;;  %v1326_v57 = vshll.u32 %v1019_v50, 16  ;;  %883 = vst [vmem:[#allocation2 + $0x8c] sm:$0x1] %v882_v51  ;;  %v692_v58 = vrot.slane %v690_v45, 7  ;;  %9745 = vmatprep.subr.bf16.mxu0 %v10135_v49 }
  0xa4   : > { %v1297_v55 = vsel %vm10595_vm10, %v1292_v42, %v1296_v48  ;;  %v10880_v39 = vrot.slane %v698_v47, 7  ;;  %v891_v59 = vld [vmem:[#allocation2 + $0x9c] sm:$0xf]  ;;  %v688_v60 = vrot.slane %v10844_v2, 4  ;;  %v926_v61 = vld [vmem:[#allocation2 + $0x28] sm:$0xf]  ;;  %v1315_v12 = vor.u32 %v1314_v52, %v1310_v41 }
  0xa5   : > { %v1311_v63 = vsel %vm10595_vm10, %v1306_v54, %v1310_v41  ;;  %1460 = vrot.lane.b32.xlu1 %v1297_v55, %s10414_s29  ;;  %v1020_v0 = vld [vmem:[#allocation2 + $0x94] sm:$0xf]  ;;  %v1325_v62 = vrot.slane %v1323_v56, 4  ;;  %v1328_v5 = vrot.slane %v1326_v57, 5  ;;  %v695_v3 = vor.u32 %v693_v46, %v692_v58  ;;  %958 = vst.msk [vmem:[#allocation3 + $0x54] sm:$0xf] %vm244_vm0, %v926_v61 }
  0xa6   : > { %v927_v7 = vld [vmem:[#allocation2 + $0x30] sm:$0xf]  ;;  %1462 = vrot.lane.b32.xlu0 %v1311_v63, %s10414_s29  ;;  %v1332_v8 = vshll.u32 %v1020_v0, 16  ;;  %v696_v9 = vrot.slane %v692_v58, 4  ;;  %v703_v10 = vor.u32 %v701_v53, %v10880_v39  ;;  %v1336_v14 = vshrl.u32 %v1020_v0, 16  ;;  %v10136_v32 = vld [vmem:[%s14436_s1 + $0x38] sm:$0xff]  }
  0xa7   : > { %959 = vst.msk [vmem:[#allocation3 + $0x60] sm:$0xf] %vm244_vm0, %v927_v7  ;;  %v1329_v2 = vor.u32 %v1328_v5, %v1325_v62  ;;  %v892_v13 = vsel %vm10622_vm11, %v695_v3, %v891_v59  ;;  %v928_v15 = vld [vmem:[#allocation2 + $0x34] sm:$0xf]  ;;  %v929_v23 = vld [vmem:[#allocation2 + $0x3c] sm:$0xf]  ;;  %9746 = vmatpush3.bf16.msra.mxu0 %v10136_v32 }
  0xa8   : > { %v1334_v17 = vrot.slane %v1332_v8, 5  ;;  %v704_v18 = vsel %vm10587_vm9, %v696_v9, %v703_v10  ;;  %893 = vst [vmem:[#allocation2 + $0x9c] sm:$0xf] %v892_v13  ;;  %v888_v19 = vld [vmem:[#allocation2 + $0x98] sm:$0x1]  ;;  %v1338_v25 = vrot.slane %v1336_v14, 4 }
  0xa9   : > { %960 = vst.msk [vmem:[#allocation3 + $0x6c] sm:$0xf] %vm244_vm0, %v928_v15  ;;  %v1330_v20 = vrot.slane %v1329_v2, 4  ;;  %894 = vst.msk [vmem:[#allocation2 + $0xa0] sm:$0xf] %vm244_vm0, %v704_v18  ;;  %v889_v22 = vsel %vm10578_vm8, %v688_v60, %v888_v19  ;;  %v1316_v28 = vrot.slane %v1315_v12, 4 }
  0xaa   : > { %v1018_v24 = vld [vmem:[#allocation2 + $0x8c] sm:$0x1]  ;;  %890 = vst [vmem:[#allocation2 + $0x98] sm:$0x1] %v889_v22  ;;  %961 = vst.msk [vmem:[#allocation3 + $0x78] sm:$0xf] %vm244_vm0, %v929_v23  ;;  %v1339_v34 = vor.u32 %v1338_v25, %v1334_v17 }
  0xab   : > { %v1335_v26 = vsel %vm10595_vm10, %v1330_v20, %v1334_v17  ;;  %v1318_v29 = vshll.u32 %v1018_v24, 16  ;;  %v930_v30 = vld [vmem:[#allocation2 + $0x40] sm:$0xf]  ;;  %v931_v6 = vld [vmem:[#allocation2 + $0x48] sm:$0xf]  ;;  %v10137_v40 = vld [vmem:[%s14436_s1 + $0x70] sm:$0xff]  }
  0xac   : > { %1466 = vrot.lane.b32.xlu0 %v1335_v26, %s10414_s29  ;;  %962 = vst.msk [vmem:[#allocation3 + $0x84] sm:$0xf] %vm244_vm0, %v930_v30  ;;  %v2577_v35 = vld [vmem:[#allocation2 + $0x10] sm:$0xf]  ;;  %963 = vst.msk [vmem:[#allocation3 + $0x90] sm:$0xf] %vm244_vm0, %v931_v6  ;;  %9747 = vmatprep.subr.bf16.mxu0 %v10137_v40 }
  0xad   : > { %v1320_v31 = vrot.slane %v1318_v29, 5  ;;  %v2576_v37 = vld [vmem:[#allocation2 + $0xc] sm:$0xe]  ;;  %v10138_v43 = vld [vmem:[%s14436_s1 + $0x30] sm:$0xff]   ;;  %v2674_v46 = vrot.slane %v2577_v35, 5  ;;  %v1340_v50 = vrot.slane %v1339_v34, 4 }
  0xae   : > { %v2578_v45 = vld [vmem:[#allocation2 + $0x14] sm:$0x1]  ;;  %v1548_v52 = vld [vmem:[#allocation2 + $0x4] sm:$0xf]  ;;  %v9396_v53 = vrot.slane %v2576_v37, 9  ;;  %9748 = vmatpush3.bf16.msra.mxu0 %v10138_v43  ;;  %v10139_v60 = vld [vmem:[%s14436_s1 + $0x68] sm:$0xff]  }
  0xaf   : > { %v1321_v21 = vsel %vm10595_vm10, %v1316_v28, %v1320_v31  ;;  %v1022_v36 = vld [vmem:[#allocation2 + $0x9c] sm:$0xf]  ;;  %v1547_v54 = vld [vmem:[#allocation2] sm:$0xe]  ;;  %v932_v56 = vld [vmem:[#allocation2 + $0x4c] sm:$0xf]  ;;  %9749 = vmatprep.subr.bf16.mxu0 %v10139_v60 }
  0xb0   : > { %1464 = vrot.lane.b32.xlu1 %v1321_v21, %s10414_s29  ;;  %v1023_v41 = vld [vmem:[#allocation2 + $0xa0] sm:$0xf]  ;;  %v1347_v42 = vshrl.u32 %v1022_v36, 16  ;;  %v1350_v27 = vshll.u32 %v1022_v36, 16  ;;  %964 = vst.msk [vmem:[#allocation3 + $0x9c] sm:$0xf] %vm244_vm0, %v932_v56  ;;  %v2675_v10 = vsel %vm10933_vm14, %v9396_v53, %v2674_v46 }
  0xb1   : > { %v1356_v11 = vshll.u32 %v1023_v41, 16  ;;  %v1021_v44 = vld [vmem:[#allocation2 + $0x98] sm:$0x1]  ;;  %v933_v59 = vld [vmem:[#allocation2 + $0x54] sm:$0xf]  ;;  %v2676_v61 = vrot.slane %v2674_v46, 4 }
  0xb2   : > { %v1349_v47 = vrot.slane %v1347_v42, 4  ;;  %v1352_v48 = vrot.slane %v1350_v27, 5  ;;  %v1342_v51 = vshll.u32 %v1021_v44, 16  ;;  %v2677_v63 = vrot.slane %v2578_v45, 5  ;;  %v3105_v0 = vld [vmem:[#allocation2 + $0x18] sm:$0xf] }
  0xb3   : > { %v10919_v58 = vrot.slane %v1356_v11, 5  ;;  %965 = vst.msk [vmem:[#allocation3 + $0xa8] sm:$0xf] %vm244_vm0, %v933_v59  ;;  %v10140_v62 = vld [vmem:[%s14436_s1 + $0x28] sm:$0xff]   ;;  %v1648_v9 = vrot.slane %v1548_v52, 5  ;;  %v10141_v13 = vld [vmem:[%s14436_s1 + $0x60] sm:$0xff]  }
  0xb4   : > { %v1353_v57 = vor.u32 %v1352_v48, %v1349_v47  ;;  %v1344_v55 = vrot.slane %v1342_v51, 5  ;;  %v1549_v8 = vld [vmem:[#allocation2 + $0x8] sm:$0x1]  ;;  %v3106_v2 = vld [vmem:[#allocation2 + $0x1c] sm:$0xf]  ;;  %9750 = vmatpush3.bf16.msra.mxu0 %v10140_v62  ;;  %v9380_v15 = vrot.slane %v1547_v54, 9  ;;  %v2678_v20 = vsel %vm10933_vm14, %v2676_v61, %v2677_v63 }
  0xb5   : > { %v934_v12 = vld [vmem:[#allocation2 + $0x58] sm:$0xf]  ;;  %v3154_v17 = vshrl.u32 %v3105_v0, 16  ;;  %v3157_v18 = vshll.u32 %v3105_v0, 16  ;;  %v935_v19 = vld [vmem:[#allocation2 + $0x60] sm:$0xf]  ;;  %9751 = vmatprep.subr.bf16.mxu0 %v10141_v13 }
  0xb6   : > { %v1354_v5 = vrot.slane %v1353_v57, 4  ;;  %v1345_v3 = vsel %vm10595_vm10, %v1340_v50, %v1344_v55  ;;  %966 = vst.msk [vmem:[#allocation3 + $0xb4] sm:$0xf] %vm244_vm0, %v934_v12  ;;  %967 = vst.msk [vmem:[#allocation3 + $0xc0] sm:$0xf] %vm244_vm0, %v935_v19  ;;  %v10142_v22 = vld [vmem:[%s14436_s1 + $0x20] sm:$0xff]   ;;  %v1649_v49 = vsel %vm10933_vm14, %v9380_v15, %v1648_v9 }
  0xb7   : > { %1468 = vrot.lane.b32.xlu1 %v1345_v3, %s10414_s29  ;;  %v1650_v23 = vrot.slane %v1648_v9, 4  ;;  %v1651_v24 = vrot.slane %v1549_v8, 5  ;;  %v3163_v25 = vshll.u32 %v3106_v2, 16  ;;  %v3167_v26 = vshrl.u32 %v3106_v2, 16  ;;  %v936_v28 = vld [vmem:[#allocation2 + $0x64] sm:$0xf] }
  0xb8   : > { %v1359_v14 = vsel %vm10595_vm10, %v1354_v5, %v10919_v58  ;;  %968 = vst.msk [vmem:[#allocation3 + $0xcc] sm:$0xf] %vm244_vm0, %v936_v28  ;;  %v937_v29 = vld [vmem:[#allocation2 + $0x6c] sm:$0xf]  ;;  %9752 = vmatpush3.bf16.msra.mxu0 %v10142_v22  ;;  %v10143_v30 = vld [vmem:[%s14436_s1 + $0x58] sm:$0xff]   ;;  %v3156_v31 = vrot.slane %v3154_v17, 4 }
  0xb9   : > { %1470 = vrot.lane.b32.xlu0 %v1359_v14, %s10414_s29  ;;  %v3159_v6 = vrot.slane %v3157_v18, 5  ;;  %v1419_v32 = vpop.permute.xlu0 %1418  ;;  %969 = vst.msk [vmem:[#allocation3 + $0xd8] sm:$0xf] %vm244_vm0, %v937_v29  ;;  %v10144_v34 = vld [vmem:[%s14436_s1 + $0x18] sm:$0xff]   ;;  %v921_v35 = vld [vmem:[#allocation2 + $0xc] sm:$0xf]  ;;  %9753 = vmatprep.subr.bf16.mxu0 %v10143_v30  ;;  %v1652_v21 = vsel %vm10933_vm14, %v1650_v23, %v1651_v24 }
  0xba   : > { %1515 = vst.msk [vmem:[#allocation3] sm:$0xf] %vm1514_vm15, %v1419_v32  ;;  %v3165_v36 = vrot.slane %v3163_v25, 5  ;;  %v3169_v37 = vrot.slane %v3167_v26, 4  ;;  %v939_v40 = vld [vmem:[#allocation2 + $0x78] sm:$0xf] }
  0xbb   : > { %2784 = vrot.lane.b32.xlu1 %v2675_v10, %s10414_s29  ;;  %953 = vst.msk [vmem:[#allocation3 + $0x18] sm:$0xf] %vm244_vm0, %v921_v35  ;;  %v3107_v41 = vld [vmem:[#allocation2 + $0x20] sm:$0x1]  ;;  %971 = vst.msk [vmem:[#allocation3 + $0xf0] sm:$0xf] %vm244_vm0, %v939_v40  ;;  %v3160_v27 = vor.u32 %v3159_v6, %v3156_v31 }
  0xbc   : > { %9754 = vmatpush3.bf16.msra.mxu0 %v10144_v34  ;;  %v2913_v42 = vld [vmem:[#allocation2 + $0x18] sm:$0xf]  ;;  %v938_v11 = vld [vmem:[#allocation2 + $0x70] sm:$0xf]  ;;  %v2914_v45 = vld [vmem:[#allocation2 + $0x1c] sm:$0xf]  ;;  %v3170_v46 = vor.u32 %v3169_v37, %v3165_v36 }
  0xbd   : > { %2786 = vrot.lane.b32.xlu0 %v2678_v20, %s10414_s29  ;;  %v1421_v43 = vpop.permute.xlu0 %1420  ;;  %v10145_v44 = vld [vmem:[%s14436_s1 + $0x50] sm:$0xff]   ;;  %v3173_v47 = vshll.u32 %v3107_v41, 16  ;;  %970 = vst.msk [vmem:[#allocation3 + $0xe4] sm:$0xf] %vm244_vm0, %v938_v11  ;;  %v941_v48 = vld [vmem:[#allocation2 + $0x84] sm:$0xf] }
  0xbe   : > { %1516 = vst.msk [vmem:[#allocation3 + $0xc] sm:$0xf] %vm1514_vm15, %v1421_v43  ;;  %v10146_v50 = vld [vmem:[%s14436_s1 + $0x10] sm:$0xff]   ;;  %v2580_v51 = vld [vmem:[#allocation2 + $0x1c] sm:$0xf]  ;;  %9755 = vmatprep.subr.bf16.mxu0 %v10145_v44  ;;  %v3161_v53 = vrot.slane %v3160_v27, 4 }
  0xbf   : > { %1758 = vrot.lane.b32.xlu1 %v1649_v49, %s10415_s11  ;;  %973 = vst.msk [vmem:[#allocation3 + $0x108] sm:$0xf] %vm244_vm0, %v941_v48  ;;  %v1887_v52 = vld [vmem:[#allocation2 + $0xc] sm:$0xf]  ;;  %v2579_v54 = vld [vmem:[#allocation2 + $0x18] sm:$0xe] }
  0xc0   : > { %9756 = vmatpush3.bf16.msra.mxu0 %v10146_v50  ;;  %v940_v56 = vld [vmem:[#allocation2 + $0x7c] sm:$0xf]  ;;  %v943_v57 = vld [vmem:[#allocation2 + $0x90] sm:$0xf]  ;;  %v3171_v59 = vrot.slane %v3170_v46, 4  ;;  %v3175_v60 = vrot.slane %v3173_v47, 5  ;;  %v3166_v3 = vsel %vm10595_vm10, %v3161_v53, %v3165_v36 }
  0xc1   : > { %1760 = vrot.lane.b32.xlu0 %v1652_v21, %s10415_s11  ;;  %v1888_v55 = vld [vmem:[#allocation2 + $0x10] sm:$0xf]  ;;  %v2681_v61 = vrot.slane %v2580_v51, 5  ;;  %972 = vst.msk [vmem:[#allocation3 + $0xfc] sm:$0xf] %vm244_vm0, %v940_v56  ;;  %v10147_v63 = vld [vmem:[%s14436_s1 + $0x48] sm:$0xff]  }
  0xc2   : > { %975 = vst.msk [vmem:[#allocation3 + $0x120] sm:$0xf] %vm244_vm0, %v943_v57  ;;  %v2581_v0 = vld [vmem:[#allocation2 + $0x20] sm:$0x1]  ;;  %v1551_v62 = vld [vmem:[#allocation2 + $0x10] sm:$0xf]  ;;  %9757 = vmatprep.subr.bf16.mxu0 %v10147_v63  ;;  %v3176_v13 = vsel %vm10595_vm10, %v3171_v59, %v3175_v60 }
  0xc3   : > { %2977 = vrot.lane.b32.xlu1 %v2913_v42, %s10415_s11  ;;  %v3108_v5 = vld [vmem:[#allocation2 + $0x24] sm:$0xf]  ;;  %v9397_v8 = vrot.slane %v2579_v54, 9  ;;  %v1550_v9 = vld [vmem:[#allocation2 + $0xc] sm:$0xe]  ;;  %v2683_v14 = vrot.slane %v2681_v61, 4 }
  0xc4   : > { %v942_v10 = vld [vmem:[#allocation2 + $0x88] sm:$0xf]  ;;  %v945_v12 = vld [vmem:[#allocation2 + $0x9c] sm:$0xf]  ;;  %v2684_v15 = vrot.slane %v2581_v0, 5  ;;  %v1655_v17 = vrot.slane %v1551_v62, 5 }
  0xc5   : > { %2979 = vrot.lane.b32.xlu0 %v2914_v45, %s10415_s11  ;;  %v10148_v2 = vld [vmem:[%s14436_s1 + $0x8] sm:$0xff]   ;;  %974 = vst.msk [vmem:[#allocation3 + $0x114] sm:$0xf] %vm244_vm0, %v942_v10  ;;  %977 = vst.msk [vmem:[#allocation3 + $0x138] sm:$0xf] %vm244_vm0, %v945_v12  ;;  %v10149_v19 = vld [vmem:[%s14436_s1 + $0x40] sm:$0xff]   ;;  %v2682_v25 = vsel %vm10933_vm14, %v9397_v8, %v2681_v61 }
  0xc6   : > { %v3109_v18 = vld [vmem:[#allocation2 + $0x28] sm:$0xf]  ;;  %9758 = vmatpush3.bf16.msra.mxu0 %v10148_v2  ;;  %v1552_v20 = vld [vmem:[#allocation2 + $0x14] sm:$0x1]  ;;  %v9381_v22 = vrot.slane %v1550_v9, 9  ;;  %v3178_v23 = vshrl.u32 %v3108_v5, 16  ;;  %v2685_v31 = vsel %vm10933_vm14, %v2683_v14, %v2684_v15 }
  0xc7   : > { %1951 = vrot.lane.b32.xlu1 %v1887_v52, %s10416_s16  ;;  %v10150_v24 = vld [vmem:[%s14436_s1 + $0x88] sm:$0xff]   ;;  %v3181_v26 = vshll.u32 %v3108_v5, 16  ;;  %9759 = vmatprep.subr.bf16.mxu0 %v10149_v19  ;;  %v10151_v29 = vld [vmem:[%s14436_s1] sm:$0xff]   ;;  %v3187_v30 = vshll.u32 %v3109_v18, 16  ;;  %v944_v49 = vld [vmem:[#allocation2 + $0x94] sm:$0xf] }
  0xc8   : > { %v1425_v28 = vpop.permute.xlu1 %1424  ;;  %10005 = vmatprep.subr.bf16.mxu1 %v10150_v24  ;;  %v1657_v6 = vrot.slane %v1655_v17, 4  ;;  %v1658_v32 = vrot.slane %v1552_v20, 5  ;;  %v3191_v34 = vshrl.u32 %v3109_v18, 16  ;;  %976 = vst.msk [vmem:[#allocation3 + $0x12c] sm:$0xf] %vm244_vm0, %v944_v49  ;;  %v10154_v35 = vld [vmem:[%s14436_s1 + $0x80] sm:$0xff]   ;;  %v1656_v36 = vsel %vm10933_vm14, %v9381_v22, %v1655_v17 }
  0xc9   : > { %1953 = vrot.lane.b32.xlu0 %v1888_v55, %s10416_s16  ;;  %1518 = vst.msk [vmem:[#allocation3 + $0x24] sm:$0xf] %vm1514_vm15, %v1425_v28  ;;  %10006 = vmatpush3.bf16.msra.mxu1 %v10150_v24  ;;  %v2081_v21 = vld [vmem:[#allocation2 + $0x10] sm:$0xf]  ;;  %v3180_v37 = vrot.slane %v3178_v23, 4  ;;  %v3183_v40 = vrot.slane %v3181_v26, 5 }
  0xca   : > { %9760 = vmatpush3.bf16.msra.mxu0 %v10151_v29  ;;  %10007 = vmatprep.subr.bf16.mxu1 %v10154_v35  ;;  %v11024_v41 = vrot.slane %v3187_v30, 5  ;;  %v2082_v42 = vld [vmem:[#allocation2 + $0x14] sm:$0x1]  ;;  %v1659_v27 = vsel %vm10933_vm14, %v1657_v6, %v1658_v32  ;;  %v2915_v43 = vld [vmem:[#allocation2 + $0x24] sm:$0xf]  ;;  %v3193_v11 = vrot.slane %v3191_v34, 4 }
  0xcb   : > { %3537 = vrot.lane.b32.xlu1 %v3166_v3, %s10416_s16  ;;  %v2138_v45 = vshll.u32 %v2081_v21, 16  ;;  %v2142_v46 = vshrl.u32 %v2081_v21, 16  ;;  %v3110_v47 = vld [vmem:[#allocation2 + $0x2c] sm:$0x1]  ;;  %v3184_v48 = vor.u32 %v3183_v40, %v3180_v37  ;;  %v2148_v52 = vshll.u32 %v2082_v42, 16 }
  0xcc   : > { %v2080_v53 = vld [vmem:[#allocation2 + $0xc] sm:$0xf]  ;;  %v2916_v55 = vld [vmem:[#allocation2 + $0x28] sm:$0xf]  ;;  %v3194_v59 = vor.u32 %v3193_v11, %v11024_v41  ;;  %v3197_v60 = vshll.u32 %v3110_v47, 16  ;;  %vm4392_vm1 = vcmask 261120  }
  0xcd   : > { %3539 = vrot.lane.b32.xlu0 %v3176_v13, %s10416_s16  ;;  %10008 = vmatpush3.bf16.msra.mxu1 %v10154_v35  ;;  %v2140_v50 = vrot.slane %v2138_v45, 5  ;;  %v2144_v51 = vrot.slane %v2142_v46, 4  ;;  %v2129_v56 = vshrl.u32 %v2080_v53, 16  ;;  %v2132_v57 = vshll.u32 %v2080_v53, 16  ;;  %v1889_v62 = vld [vmem:[#allocation2 + $0x18] sm:$0xf] }
  0xce   : > { %v1427_v44 = vpop.permute.xlu0 %1426  ;;  %v2150_v0 = vrot.slane %v2148_v52, 5  ;;  %v2583_v5 = vld [vmem:[#allocation2 + $0x28] sm:$0xf]  ;;  %v1890_v9 = vld [vmem:[#allocation2 + $0x1c] sm:$0xf]  ;;  %v3185_v10 = vrot.slane %v3184_v48, 4 }
  0xcf   : > { %2788 = vrot.lane.b32.xlu1 %v2682_v25, %s10414_s29  ;;  %1519 = vst.msk [vmem:[#allocation3 + $0x30] sm:$0xf] %vm1514_vm15, %v1427_v44  ;;  %v2145_v63 = vor.u32 %v2144_v51, %v2140_v50  ;;  %v2131_v3 = vrot.slane %v2129_v56, 4  ;;  %v2134_v8 = vrot.slane %v2132_v57, 5  ;;  %v2582_v2 = vld [vmem:[#allocation2 + $0x24] sm:$0xe] }
  0xd0   : > { %v2584_v13 = vld [vmem:[#allocation2 + $0x2c] sm:$0x1]  ;;  %v3195_v17 = vrot.slane %v3194_v59, 4  ;;  %v3199_v18 = vrot.slane %v3197_v60, 5  ;;  %v2688_v19 = vrot.slane %v2583_v5, 5  ;;  %v3190_v28 = vsel %vm10595_vm10, %v3185_v10, %v11024_v41 }
  0xd1   : > { %2790 = vrot.lane.b32.xlu0 %v2685_v31, %s10414_s29  ;;  %v1429_v54 = vpop.permute.xlu1 %1428  ;;  %v2146_v12 = vrot.slane %v2145_v63, 4  ;;  %v2135_v15 = vor.u32 %v2134_v8, %v2131_v3  ;;  %v1553_v20 = vld [vmem:[#allocation2 + $0x18] sm:$0xe]  ;;  %v1554_v23 = vld [vmem:[#allocation2 + $0x1c] sm:$0xf]  ;;  %v9398_v29 = vrot.slane %v2582_v2, 9 }
  0xd2   : > { %1520 = vst.msk [vmem:[#allocation3 + $0x3c] sm:$0xf] %vm1514_vm15, %v1429_v54  ;;  %v3111_v24 = vld [vmem:[#allocation2 + $0x30] sm:$0xf]  ;;  %v3112_v30 = vld [vmem:[#allocation2 + $0x34] sm:$0xf]  ;;  %v3200_v32 = vsel %vm10595_vm10, %v3195_v17, %v3199_v18 }
  0xd3   : > { %1762 = vrot.lane.b32.xlu1 %v1656_v36, %s10415_s11  ;;  %v1431_v61 = vpop.permute.xlu0 %1430  ;;  %v2151_v22 = vsel %vm10595_vm10, %v2146_v12, %v2150_v0  ;;  %v2136_v26 = vrot.slane %v2135_v15, 4  ;;  %v2691_v49 = vrot.slane %v2584_v13, 5  ;;  %v2690_v34 = vrot.slane %v2688_v19, 4  ;;  %v1555_v37 = vld [vmem:[#allocation2 + $0x20] sm:$0x1] }
  0xd4   : > { %1521 = vst.msk [vmem:[#allocation3 + $0x48] sm:$0xf] %vm1514_vm15, %v1431_v61  ;;  %v1662_v35 = vrot.slane %v1554_v23, 5  ;;  %v3202_v21 = vshrl.u32 %v3111_v24, 16  ;;  %v9382_v36 = vrot.slane %v1553_v20, 9  ;;  %v2689_v40 = vsel %vm10933_vm14, %v9398_v29, %v2688_v19 }
  0xd5   : > { %1764 = vrot.lane.b32.xlu0 %v1659_v27, %s10415_s11  ;;  %v1433_v14 = vpop.permute.xlu1 %1432  ;;  %2545 = vst.msk [vmem:[#allocation3 + $0x10] sm:$0xf] %vm244_vm0, %v2151_v22  ;;  %v2141_v6 = vsel %vm10595_vm10, %v2136_v26, %v2140_v50  ;;  %v3205_v41 = vshll.u32 %v3111_v24, 16  ;;  %v3211_v42 = vshll.u32 %v3112_v30, 16  ;;  %v3215_v27 = vshrl.u32 %v3112_v30, 16 }
  0xd6   : > { %1522 = vst.msk [vmem:[#allocation3 + $0x54] sm:$0xf] %vm1514_vm15, %v1433_v14  ;;  %v1664_v11 = vrot.slane %v1662_v35, 4  ;;  %v1665_v44 = vrot.slane %v1555_v37, 5  ;;  %v3204_v45 = vrot.slane %v3202_v21, 4  ;;  %v1663_v46 = vsel %vm10933_vm14, %v9382_v36, %v1662_v35 }
  0xd7   : > { %2981 = vrot.lane.b32.xlu1 %v2915_v43, %s10415_s11  ;;  %v1435_v25 = vpop.permute.xlu0 %1434  ;;  %2544 = vst.msk [vmem:[#allocation3 + $0x4] sm:$0xf] %vm244_vm0, %v2141_v6  ;;  %v2692_v43 = vsel %vm10933_vm14, %v2690_v34, %v2691_v49  ;;  %v3207_v47 = vrot.slane %v3205_v41, 5  ;;  %v11061_v48 = vrot.slane %v3211_v42, 5  ;;  %v2084_v50 = vld [vmem:[#allocation2 + $0x1c] sm:$0xf] }
  0xd8   : > { %1523 = vst.msk [vmem:[#allocation3 + $0x60] sm:$0xf] %vm1514_vm15, %v1435_v25  ;;  %v2085_v51 = vld [vmem:[#allocation2 + $0x20] sm:$0x1]  ;;  %v3113_v52 = vld [vmem:[#allocation2 + $0x38] sm:$0x1] }
  0xd9   : > { %2983 = vrot.lane.b32.xlu0 %v2916_v55, %s10415_s11  ;;  %v1437_v31 = vpop.permute.xlu1 %1436  ;;  %v3217_v53 = vrot.slane %v3215_v27, 4  ;;  %v2162_v54 = vshll.u32 %v2084_v50, 16  ;;  %v2166_v56 = vshrl.u32 %v2084_v50, 16  ;;  %v2172_v57 = vshll.u32 %v2085_v51, 16  ;;  %v2083_v59 = vld [vmem:[#allocation2 + $0x18] sm:$0xf] }
  0xda   : > { %1524 = vst.msk [vmem:[#allocation3 + $0x6c] sm:$0xf] %vm1514_vm15, %v1437_v31  ;;  %v1666_v55 = vsel %vm10933_vm14, %v1664_v11, %v1665_v44  ;;  %v2153_v63 = vshrl.u32 %v2083_v59, 16  ;;  %v2917_v0 = vld [vmem:[#allocation2 + $0x30] sm:$0xf]  ;;  %v2156_v3 = vshll.u32 %v2083_v59, 16 }
  0xdb   : > { %1955 = vrot.lane.b32.xlu1 %v1889_v62, %s10416_s16  ;;  %v2164_v60 = vrot.slane %v2162_v54, 5  ;;  %v2168_v61 = vrot.slane %v2166_v56, 4  ;;  %v3208_v62 = vor.u32 %v3207_v47, %v3204_v45  ;;  %v2918_v8 = vld [vmem:[#allocation2 + $0x34] sm:$0xf]  ;;  %v2174_v10 = vrot.slane %v2172_v57, 5 }
  0xdc   : > { %v2155_v2 = vrot.slane %v2153_v63, 4  ;;  %v1891_v12 = vld [vmem:[#allocation2 + $0x24] sm:$0xf]  ;;  %v3218_v13 = vor.u32 %v3217_v53, %v11061_v48  ;;  %v3221_v14 = vshll.u32 %v3113_v52, 16  ;;  %v2585_v15 = vld [vmem:[#allocation2 + $0x30] sm:$0xe] }
  0xdd   : > { %1957 = vrot.lane.b32.xlu0 %v1890_v9, %s10416_s16  ;;  %v2169_v9 = vor.u32 %v2168_v61, %v2164_v60  ;;  %v2586_v17 = vld [vmem:[#allocation2 + $0x34] sm:$0xf]  ;;  %v11070_v18 = vld [vmem:[#allocation2 + $0x28] sm:$0xf]  ;;  %v2158_v19 = vrot.slane %v2156_v3, 5  ;;  %v3209_v24 = vrot.slane %v3208_v62, 4 }
  0xde   : > { %v3114_v20 = vld [vmem:[#allocation2 + $0x3c] sm:$0xf]  ;;  %v1892_v23 = vld [vmem:[#allocation2 + $0x28] sm:$0xf]  ;;  %v2587_v25 = vld [vmem:[#allocation2 + $0x38] sm:$0x1] }
  0xdf   : > { %3541 = vrot.lane.b32.xlu1 %v3190_v28, %s10416_s16  ;;  %v2170_v22 = vrot.slane %v2169_v9, 4  ;;  %v2159_v28 = vor.u32 %v2158_v19, %v2155_v2  ;;  %v2695_v29 = vrot.slane %v2586_v17, 5  ;;  %v1556_v30 = vld [vmem:[#allocation2 + $0x24] sm:$0xe]  ;;  %v3219_v31 = vrot.slane %v3218_v13, 4 }
  0xe0   : > { %v3223_v6 = vrot.slane %v3221_v14, 5  ;;  %v9399_v35 = vrot.slane %v2585_v15, 9  ;;  %v1558_v21 = vld [vmem:[#allocation2 + $0x2c] sm:$0x1]  ;;  %v3226_v36 = vshrl.u32 %v3114_v20, 16  ;;  %v3229_v37 = vshll.u32 %v3114_v20, 16 }
  0xe1   : > { %3543 = vrot.lane.b32.xlu0 %v3200_v32, %s10416_s16  ;;  %v2175_v49 = vsel %vm10595_vm10, %v2170_v22, %v2174_v10  ;;  %v1669_v32 = vrot.slane %v11070_v18, 5  ;;  %v2160_v34 = vrot.slane %v2159_v28, 4  ;;  %v2697_v42 = vrot.slane %v2695_v29, 4  ;;  %v3665_v50 = vld [vmem:[#allocation2 + $0x18] sm:$0xe] }
  0xe2   : > { %2547 = vst.msk [vmem:[#allocation3 + $0x28] sm:$0xf] %vm244_vm0, %v2175_v49  ;;  %v2698_v27 = vrot.slane %v2587_v25, 5  ;;  %v3224_v11 = vsel %vm10595_vm10, %v3219_v31, %v3223_v6  ;;  %v9383_v44 = vrot.slane %v1556_v30, 9  ;;  %v11092_v51 = vrot.slane %v3226_v36, 4 }
  0xe3   : > { %2792 = vrot.lane.b32.xlu1 %v2689_v40, %s10414_s29  ;;  %v3214_v40 = vsel %vm10595_vm10, %v3209_v24, %v11061_v48  ;;  %v2165_v41 = vsel %vm10595_vm10, %v2160_v34, %v2164_v60  ;;  %v1671_v45 = vrot.slane %v1669_v32, 4  ;;  %v2696_v48 = vsel %vm10933_vm14, %v9399_v35, %v2695_v29  ;;  %v3666_v54 = vld [vmem:[#allocation2 + $0x1c] sm:$0xf]  ;;  %v3667_v56 = vld [vmem:[#allocation2 + $0x20] sm:$0x1] }
  0xe4   : > { %2546 = vst.msk [vmem:[#allocation3 + $0x1c] sm:$0xf] %vm244_vm0, %v2165_v41  ;;  %v11094_v52 = vrot.slane %v3229_v37, 5  ;;  %v3763_v59 = vrot.slane %v3666_v54, 5  ;;  %v3766_v60 = vrot.slane %v3667_v56, 5  ;;  %v2699_v63 = vsel %vm10933_vm14, %v2697_v42, %v2698_v27 }
  0xe5   : > { %2794 = vrot.lane.b32.xlu0 %v2692_v43, %s10414_s29  ;;  %v1439_v5 = vpop.permute.xlu0 %1438  ;;  %v3115_v43 = vld [vmem:[#allocation2 + $0x40] sm:$0xf]  ;;  %v3668_v61 = vld [vmem:[#allocation2 + $0x24] sm:$0xe]  ;;  %v3669_v62 = vld [vmem:[#allocation2 + $0x28] sm:$0xf]  ;;  %v1670_v13 = vsel %vm10933_vm14, %v9383_v44, %v1669_v32 }
  0xe6   : > { %1525 = vst.msk [vmem:[#allocation3 + $0x78] sm:$0xf] %vm1514_vm15, %v1439_v5  ;;  %v3235_v57 = vshll.u32 %v3115_v43, 16  ;;  %v3670_v5 = vld [vmem:[#allocation2 + $0x2c] sm:$0x1]  ;;  %v9413_v3 = vrot.slane %v3668_v61, 9  ;;  %v3232_v17 = vor.u32 %v11094_v52, %v11092_v51 }
  0xe7   : > { %1766 = vrot.lane.b32.xlu1 %v1663_v46, %s10415_s11  ;;  %v1672_v46 = vrot.slane %v1558_v21, 5  ;;  %v3765_v10 = vrot.slane %v3763_v59, 4  ;;  %v3770_v2 = vrot.slane %v3669_v62, 5  ;;  %v2086_v22 = vld [vmem:[#allocation2 + $0x24] sm:$0xf]  ;;  %vm1854_vm2 = vcmask 781824  }
  0xe8   : > { %v2177_v24 = vshrl.u32 %v2086_v22, 16  ;;  %v2180_v25 = vshll.u32 %v2086_v22, 16  ;;  %v2088_v28 = vld [vmem:[#allocation2 + $0x2c] sm:$0x1]  ;;  %v11120_v30 = vrot.slane %v3235_v57, 5  ;;  %vm2047_vm4 = vcmask 1044224  }
  0xe9   : > { %1768 = vrot.lane.b32.xlu0 %v1666_v55, %s10415_s11  ;;  %v1441_v26 = vpop.permute.xlu1 %1440  ;;  %v9412_v55 = vrot.slane %v3665_v50, 9  ;;  %v1673_v14 = vsel %vm10933_vm14, %v1671_v45, %v1672_v46  ;;  %v3767_v18 = vsel %vm10933_vm14, %v3765_v10, %v3766_v60  ;;  %v3771_v19 = vsel %vm10933_vm14, %v9413_v3, %v3770_v2  ;;  %v3116_v32 = vld [vmem:[#allocation2 + $0x44] sm:$0x1]  ;;  %v2919_v37 = vld [vmem:[#allocation2 + $0x3c] sm:$0xf] }
  0xea   : > { %1526 = vst.msk [vmem:[#allocation3 + $0x84] sm:$0xf] %vm1514_vm15, %v1441_v26  ;;  %v3772_v20 = vrot.slane %v3770_v2, 4  ;;  %v2196_v6 = vshll.u32 %v2088_v28, 16  ;;  %v2179_v34 = vrot.slane %v2177_v24, 4  ;;  %v2182_v35 = vrot.slane %v2180_v25, 5 }
  0xeb   : > { %2985 = vrot.lane.b32.xlu1 %v2917_v0, %s10415_s11  ;;  %v3239_v0 = vshrl.u32 %v3115_v43, 16  ;;  %v3764_v9 = vsel %vm10933_vm14, %v9412_v55, %v3763_v59  ;;  %3906 = vst.msk [vmem:[#allocation3 + $0x14] sm:$0xf] %vm244_vm0, %v3767_v18  ;;  %3907 = vst.msk [vmem:[#allocation3 + $0x20] sm:$0xf] %vm244_vm0, %v3771_v19  ;;  %v3245_v45 = vshll.u32 %v3116_v32, 16 }
  0xec   : > { %3905 = vst.msk [vmem:[#allocation3 + $0x8] sm:$0xf] %vm244_vm0, %v3764_v9  ;;  %v2920_v41 = vld [vmem:[#allocation2 + $0x40] sm:$0xf]  ;;  %v2183_v42 = vor.u32 %v2182_v35, %v2179_v34  ;;  %v2198_v43 = vrot.slane %v2196_v6, 5 }
  0xed   : > { %2987 = vrot.lane.b32.xlu0 %v2918_v8, %s10415_s11  ;;  %v3241_v49 = vrot.slane %v3239_v0, 4  ;;  %v2589_v46 = vld [vmem:[#allocation2 + $0x40] sm:$0xf]  ;;  %v2588_v50 = vld [vmem:[#allocation2 + $0x3c] sm:$0xe] }
  0xee   : > { %v2184_v51 = vrot.slane %v2183_v42, 4  ;;  %v2702_v56 = vrot.slane %v2589_v46, 5  ;;  %v2590_v57 = vld [vmem:[#allocation2 + $0x44] sm:$0x1]  ;;  %v1559_v55 = vld [vmem:[#allocation2 + $0x30] sm:$0xe] }
  0xef   : > { %1959 = vrot.lane.b32.xlu1 %v1891_v12, %s10416_s16  ;;  %v3773_v12 = vrot.slane %v3670_v5, 5  ;;  %v3242_v44 = vor.u32 %v3241_v49, %v11120_v30  ;;  %v9400_v62 = vrot.slane %v2588_v50, 9  ;;  %v1560_v5 = vld [vmem:[#allocation2 + $0x34] sm:$0xf]  ;;  %v3117_v9 = vld [vmem:[#allocation2 + $0x48] sm:$0xf] }
  0xf0   : > { %v1443_v47 = vpop.permute.xlu0 %1442  ;;  %v1445_v53 = vpop.permute.xlu1 %1444  ;;  %v3118_v10 = vld [vmem:[#allocation2 + $0x4c] sm:$0xf]  ;;  %v2704_v2 = vrot.slane %v2702_v56, 4  ;;  %v3250_v28 = vshrl.u32 %v3117_v9, 16  ;;  %v3693_v1 = vld [vmem:[#allocation2 + $0x88] sm:$0xf] }
  0xf1   : > { %1961 = vrot.lane.b32.xlu0 %v1892_v23, %s10416_s16  ;;  %1527 = vst.msk [vmem:[#allocation3 + $0x90] sm:$0xf] %vm1514_vm15, %v1443_v47  ;;  %1528 = vst.msk [vmem:[#allocation3 + $0x9c] sm:$0xf] %vm1514_vm15, %v1445_v53  ;;  %v2087_v23 = vld [vmem:[#allocation2 + $0x28] sm:$0xf]  ;;  %v3774_v31 = vsel %vm10933_vm14, %v3772_v20, %v3773_v12  ;;  %v2703_v22 = vsel %vm10933_vm14, %v9400_v62, %v2702_v56 }
  0xf2   : > { %v2186_v26 = vshll.u32 %v2087_v23, 16  ;;  %v2190_v29 = vshrl.u32 %v2087_v23, 16  ;;  %3908 = vst.msk [vmem:[#allocation3 + $0x2c] sm:$0xf] %vm244_vm0, %v3774_v31  ;;  %v3233_v47 = vrot.slane %v3232_v17, 4  ;;  %v3243_v61 = vrot.slane %v3242_v44, 4 }
  0xf3   : > { %3545 = vrot.lane.b32.xlu1 %v3214_v40, %s10416_s16  ;;  %v1894_v53 = vld [vmem:[#allocation2 + $0x34] sm:$0xf]  ;;  %v10155_v54 = vld [vmem:[#allocation3 + $0x8] ss:$12 sps:$4 sm:$0xff]   ;;  %v9384_v12 = vrot.slane %v1559_v55, 9  ;;  %v1676_v17 = vrot.slane %v1560_v5, 5 }
  0xf4   : > { %v1447_v8 = vpop.permute.xlu0 %1446  ;;  %v1449_v15 = vpop.permute.xlu1 %1448  ;;  %v2188_v21 = vrot.slane %v2186_v26, 5  ;;  %v2192_v36 = vrot.slane %v2190_v29, 4  ;;  %10009 = vmatprep.mubr.msk.bf16.mxu1 %vm4392_vm1, %v10155_v54  ;;  %v3238_v3 = vsel %vm10595_vm10, %v3233_v47, %v11120_v30  ;;  %v2091_v20 = vld [vmem:[#allocation2 + $0x38] sm:$0x1]  ;;  %v3253_v29 = vshll.u32 %v3117_v9, 16 }
  0xf5   : > { %3547 = vrot.lane.b32.xlu0 %v3224_v11, %s10416_s16  ;;  %1529 = vst.msk [vmem:[#allocation3 + $0xa8] sm:$0xf] %vm1514_vm15, %v1447_v8  ;;  %1530 = vst.msk [vmem:[#allocation3 + $0xb4] sm:$0xf] %vm1514_vm15, %v1449_v15  ;;  %v1893_v11 = vld [vmem:[#allocation2 + $0x30] sm:$0xf] }
  0xf6   : > { %v2193_v27 = vor.u32 %v2192_v36, %v2188_v21  ;;  %v2189_v59 = vsel %vm10595_vm10, %v2184_v51, %v2188_v21  ;;  %v2705_v8 = vrot.slane %v2590_v57, 5  ;;  %v1561_v23 = vld [vmem:[#allocation2 + $0x38] sm:$0x1]  ;;  %v2220_v26 = vshll.u32 %v2091_v20, 16  ;;  %v3119_v44 = vld [vmem:[#allocation2 + $0x50] sm:$0x1] }
  0xf7   : > { %2796 = vrot.lane.b32.xlu1 %v2696_v48, %s10414_s29  ;;  %2548 = vst.msk [vmem:[#allocation3 + $0x34] sm:$0xf] %vm244_vm0, %v2189_v59  ;;  %v3259_v31 = vshll.u32 %v3118_v10, 16  ;;  %v3263_v6 = vshrl.u32 %v3118_v10, 16  ;;  %v1678_v21 = vrot.slane %v1676_v17, 4  ;;  %v1679_v36 = vrot.slane %v1561_v23, 5 }
  0xf8   : > { %v2194_v52 = vrot.slane %v2193_v27, 4  ;;  %v2706_v35 = vsel %vm10933_vm14, %v2704_v2, %v2705_v8  ;;  %v2222_v42 = vrot.slane %v2220_v26, 5  ;;  %v1677_v27 = vsel %vm10933_vm14, %v9384_v12, %v1676_v17  ;;  %v3673_v54 = vld [vmem:[#allocation2 + $0x38] sm:$0x1]  ;;  %v2921_v56 = vld [vmem:[#allocation2 + $0x48] sm:$0xf] }
  0xf9   : > { %2798 = vrot.lane.b32.xlu0 %v2699_v63, %s10414_s29  ;;  %v1451_v40 = vpop.permute.xlu0 %1450  ;;  %v3247_v63 = vrot.slane %v3245_v45, 5  ;;  %v10156_v0 = vld [vmem:[#allocation3 + $0x20] ss:$12 sps:$4 sm:$0xff]   ;;  %v11158_v46 = vrot.slane %v3259_v31, 5  ;;  %v3265_v47 = vrot.slane %v3263_v6, 4  ;;  %v1680_v51 = vsel %vm10933_vm14, %v1678_v21, %v1679_v36 }
  0xfa   : > { %1531 = vst.msk [vmem:[#allocation3 + $0xc0] sm:$0xf] %vm1514_vm15, %v1451_v40  ;;  %v2199_v60 = vsel %vm10595_vm10, %v2194_v52, %v2198_v43  ;;  %10010 = vmatmul.mubr.msk.bf16.vlgmr.msra.gmra.mxu1 %vm4392_vm1, %v10156_v0  ;;  %v3252_v43 = vrot.slane %v3250_v28, 4  ;;  %v3269_v62 = vshll.u32 %v3119_v44, 16  ;;  %v3780_v5 = vrot.slane %v3673_v54, 5 }
  0xfb   : > { %1770 = vrot.lane.b32.xlu1 %v1670_v13, %s10415_s11  ;;  %2549 = vst.msk [vmem:[#allocation3 + $0x40] sm:$0xf] %vm244_vm0, %v2199_v60  ;;  %v2089_v13 = vld [vmem:[#allocation2 + $0x30] sm:$0xf]  ;;  %v3248_v15 = vsel %vm10595_vm10, %v3243_v61, %v3247_v63  ;;  %v3674_v61 = vld [vmem:[#allocation2 + $0x3c] sm:$0xe]  ;;  %v3266_v9 = vor.u32 %v3265_v47, %v11158_v46 }
  0xfc   : > { %v1453_v48 = vpop.permute.xlu1 %1452  ;;  %v2201_v18 = vshrl.u32 %v2089_v13, 16  ;;  %v2204_v19 = vshll.u32 %v2089_v13, 16  ;;  %v3676_v8 = vld [vmem:[#allocation2 + $0x44] sm:$0x1]  ;;  %v11173_v10 = vld [vmem:[#allocation2 + $0x4c] sm:$0xf] }
  0xfd   : > { %1772 = vrot.lane.b32.xlu0 %v1673_v14, %s10415_s11  ;;  %1532 = vst.msk [vmem:[#allocation3 + $0xcc] sm:$0xf] %vm1514_vm15, %v1453_v48  ;;  %v2090_v14 = vld [vmem:[#allocation2 + $0x34] sm:$0xf]  ;;  %v3671_v48 = vld [vmem:[#allocation2 + $0x30] sm:$0xe] }
  0xfe   : > { %v2210_v24 = vshll.u32 %v2090_v14, 16  ;;  %v2214_v25 = vshrl.u32 %v2090_v14, 16  ;;  %v2203_v30 = vrot.slane %v2201_v18, 4  ;;  %v2206_v49 = vrot.slane %v2204_v19, 5  ;;  %v2922_v14 = vld [vmem:[#allocation2 + $0x4c] sm:$0xf] }
  0xff   : > { %2989 = vrot.lane.b32.xlu1 %v2919_v37, %s10415_s11  ;;  %v9414_v59 = vrot.slane %v3671_v48, 9  ;;  %v9415_v13 = vrot.slane %v3674_v61, 9  ;;  %v3787_v17 = vrot.slane %v3676_v8, 5  ;;  %v1895_v18 = vld [vmem:[#allocation2 + $0x3c] sm:$0xf]  ;;  %v3271_v31 = vrot.slane %v3269_v62, 5 }
 0x100   : > { %v2212_v32 = vrot.slane %v2210_v24, 5  ;;  %v2216_v34 = vrot.slane %v2214_v25, 4  ;;  %v2207_v40 = vor.u32 %v2206_v49, %v2203_v30  ;;  %v2591_v20 = vld [vmem:[#allocation2 + $0x48] sm:$0xe]  ;;  %v1896_v23 = vld [vmem:[#allocation2 + $0x40] sm:$0xf] }
 0x101   : > { %2991 = vrot.lane.b32.xlu0 %v2920_v41, %s10415_s11  ;;  %v2709_v25 = vrot.slane %v11173_v10, 5  ;;  %v2593_v26 = vld [vmem:[#allocation2 + $0x50] sm:$0x1]  ;;  %v11183_v28 = vld [vmem:[#allocation2 + $0x40] sm:$0xf]  ;;  %v3267_v49 = vrot.slane %v3266_v9, 4 }
 0x102   : > { %v2217_v41 = vor.u32 %v2216_v34, %v2212_v32  ;;  %v2208_v45 = vrot.slane %v2207_v40, 4  ;;  %v2092_v6 = vld [vmem:[#allocation2 + $0x3c] sm:$0xf]  ;;  %v9401_v40 = vrot.slane %v2591_v20, 9 }
 0x103   : > { %1963 = vrot.lane.b32.xlu1 %v1893_v11, %s10416_s16  ;;  %v3255_v11 = vrot.slane %v3253_v29, 5  ;;  %v2228_v21 = vshll.u32 %v2092_v6, 16  ;;  %v3272_v54 = vsel %vm10595_vm10, %v3267_v49, %v3271_v31  ;;  %v11227_v49 = vld [vmem:[#allocation2 + $0x58] sm:$0xf]  ;;  %v2095_v31 = vld [vmem:[#allocation2 + $0x48] sm:$0xf] }
 0x104   : > { %v2218_v50 = vrot.slane %v2217_v41, 4  ;;  %v2213_v52 = vsel %vm10595_vm10, %v2208_v45, %v2212_v32  ;;  %v2093_v32 = vld [vmem:[#allocation2 + $0x40] sm:$0xf]  ;;  %v1562_v45 = vld [vmem:[#allocation2 + $0x3c] sm:$0xe]  ;;  %v2710_v62 = vsel %vm10933_vm14, %v9401_v40, %v2709_v25 }
 0x105   : > { %1965 = vrot.lane.b32.xlu0 %v1894_v53, %s10416_s16  ;;  %v3672_v53 = vld [vmem:[#allocation2 + $0x34] sm:$0xf]  ;;  %2550 = vst.msk [vmem:[#allocation3 + $0x4c] sm:$0xf] %vm244_vm0, %v2213_v52  ;;  %v3256_v0 = vor.u32 %v3255_v11, %v3252_v43  ;;  %v2234_v36 = vshll.u32 %v2093_v32, 16  ;;  %v1683_v52 = vrot.slane %v11183_v28, 5 }
 0x106   : > { %v2223_v55 = vsel %vm10595_vm10, %v2218_v50, %v2222_v42  ;;  %v3777_v60 = vrot.slane %v3672_v53, 5  ;;  %v3120_v42 = vld [vmem:[#allocation2 + $0x54] sm:$0xf]  ;;  %v2230_v50 = vrot.slane %v2228_v21, 5  ;;  %v2097_v21 = vld [vmem:[#allocation2 + $0x50] sm:$0x1] }
 0x107   : > { %3549 = vrot.lane.b32.xlu1 %v3238_v3, %s10416_s16  ;;  %2551 = vst.msk [vmem:[#allocation3 + $0x58] sm:$0xf] %vm244_vm0, %v2223_v55  ;;  %v3675_v3 = vld [vmem:[#allocation2 + $0x40] sm:$0xf]  ;;  %v3257_v24 = vrot.slane %v3256_v0, 4  ;;  %v2236_v48 = vrot.slane %v2234_v36, 5 }
 0x108   : > { %v1455_v37 = vpop.permute.xlu0 %1454  ;;  %v3778_v2 = vsel %vm10933_vm14, %v9414_v59, %v3777_v60  ;;  %v3779_v12 = vrot.slane %v3777_v60, 4  ;;  %v3274_v55 = vshrl.u32 %v3120_v42, 16  ;;  %v3277_v60 = vshll.u32 %v3120_v42, 16  ;;  %v2923_v28 = vld [vmem:[#allocation2 + $0x54] sm:$0xf] }
 0x109   : > { %3551 = vrot.lane.b32.xlu0 %v3248_v15, %s10416_s16  ;;  %1533 = vst.msk [vmem:[#allocation3 + $0xd8] sm:$0xf] %vm1514_vm15, %v1455_v37  ;;  %v3784_v15 = vrot.slane %v3675_v3, 5  ;;  %v2094_v37 = vld [vmem:[#allocation2 + $0x44] sm:$0x1]  ;;  %v3262_v11 = vsel %vm10595_vm10, %v3257_v24, %v11158_v46  ;;  %v1685_v8 = vrot.slane %v1683_v52, 4 }
 0x10a   : > { %3909 = vst.msk [vmem:[#allocation3 + $0x38] sm:$0xf] %vm244_vm0, %v3778_v2  ;;  %v2244_v43 = vshll.u32 %v2094_v37, 16  ;;  %v1564_v46 = vld [vmem:[#allocation2 + $0x44] sm:$0x1] }
 0x10b   : > { %2800 = vrot.lane.b32.xlu1 %v2703_v22, %s10414_s29  ;;  %v3781_v22 = vsel %vm10933_vm14, %v3779_v12, %v3780_v5  ;;  %v3785_v29 = vsel %vm10933_vm14, %v9415_v13, %v3784_v15  ;;  %v3786_v30 = vrot.slane %v3784_v15, 4  ;;  %v9385_v5 = vrot.slane %v1562_v45, 9  ;;  %v3122_v24 = vld [vmem:[#allocation2 + $0x5c] sm:$0x1]  ;;  %v2924_v36 = vld [vmem:[#allocation2 + $0x58] sm:$0xf] }
 0x10c   : > { %3910 = vst.msk [vmem:[#allocation3 + $0x44] sm:$0xf] %vm244_vm0, %v3781_v22  ;;  %3911 = vst.msk [vmem:[#allocation3 + $0x50] sm:$0xf] %vm244_vm0, %v3785_v29  ;;  %v2246_v0 = vrot.slane %v2244_v43, 5  ;;  %v1686_v9 = vrot.slane %v1564_v46, 5 }
 0x10d   : > { %2802 = vrot.lane.b32.xlu0 %v2706_v35, %s10414_s29  ;;  %v3788_v34 = vsel %vm10933_vm14, %v3786_v30, %v3787_v17  ;;  %v2225_v35 = vshrl.u32 %v2092_v6, 16  ;;  %v1684_v22 = vsel %vm10933_vm14, %v9385_v5, %v1683_v52  ;;  %v3293_v37 = vshll.u32 %v3122_v24, 16  ;;  %v3123_v40 = vld [vmem:[#allocation2 + $0x60] sm:$0xf]  ;;  %v2594_v43 = vld [vmem:[#allocation2 + $0x54] sm:$0xe] }
 0x10e   : > { %v1423_v57 = vpop.permute.xlu1 %1422  ;;  %3912 = vst.msk [vmem:[#allocation3 + $0x5c] sm:$0xf] %vm244_vm0, %v3788_v34  ;;  %v2249_v34 = vshrl.u32 %v2095_v31, 16  ;;  %v3298_v46 = vshrl.u32 %v3123_v40, 16  ;;  %v3677_v24 = vld [vmem:[#allocation2 + $0x48] sm:$0xe] }
 0x10f   : > { %1774 = vrot.lane.b32.xlu1 %v1677_v27, %s10415_s11  ;;  %1517 = vst.msk [vmem:[#allocation3 + $0x18] sm:$0xf] %vm1514_vm15, %v1423_v57  ;;  %v1459_v63 = vpop.permute.xlu0 %1458  ;;  %v2238_v27 = vshrl.u32 %v2093_v32, 16  ;;  %v2227_v47 = vrot.slane %v2225_v35, 4  ;;  %v3121_v57 = vld [vmem:[#allocation2 + $0x58] sm:$0xf] }
 0x110   : > { %1535 = vst.msk [vmem:[#allocation3 + $0xf0] sm:$0xf] %vm1514_vm15, %v1459_v63  ;;  %v3283_v13 = vshll.u32 %v3121_v57, 16  ;;  %v2096_v32 = vld [vmem:[#allocation2 + $0x4c] sm:$0xf]  ;;  %v2252_v35 = vshll.u32 %v2095_v31, 16 }
 0x111   : > { %1776 = vrot.lane.b32.xlu0 %v1680_v51, %s10415_s11  ;;  %v2712_v51 = vrot.slane %v2593_v26, 5  ;;  %v2240_v53 = vrot.slane %v2238_v27, 4  ;;  %v2231_v59 = vor.u32 %v2230_v50, %v2227_v47  ;;  %v2262_v42 = vshrl.u32 %v2096_v32, 16  ;;  %v1897_v47 = vld [vmem:[#allocation2 + $0x48] sm:$0xf] }
 0x112   : > { %v1457_v19 = vpop.permute.xlu1 %1456  ;;  %v11225_v29 = vrot.slane %v3283_v13, 5  ;;  %v2268_v27 = vshll.u32 %v2097_v21, 16  ;;  %v2254_v45 = vrot.slane %v2252_v35, 5  ;;  %v3295_v5 = vrot.slane %v3293_v37, 5  ;;  %v3680_v35 = vld [vmem:[#allocation2 + $0x54] sm:$0xe] }
 0x113   : > { %2993 = vrot.lane.b32.xlu1 %v2921_v56, %s10415_s11  ;;  %1534 = vst.msk [vmem:[#allocation3 + $0xe4] sm:$0xf] %vm1514_vm15, %v1457_v19  ;;  %v2711_v56 = vrot.slane %v2709_v25, 4  ;;  %v10161_v61 = vld [vmem:[#allocation3 + $0x38] ss:$12 sps:$4 sm:$0xff]   ;;  %v2241_v63 = vor.u32 %v2240_v53, %v2236_v48  ;;  %v2232_v3 = vrot.slane %v2231_v59, 4  ;;  %v1687_v25 = vsel %vm10933_vm14, %v1685_v8, %v1686_v9 }
 0x114   : > { %10013 = vmatprep.mubr.msk.bf16.mxu1 %vm4392_vm1, %v10161_v61  ;;  %v3279_v19 = vrot.slane %v3277_v60, 5  ;;  %v2264_v53 = vrot.slane %v2262_v42, 4  ;;  %v1566_v59 = vld [vmem:[#allocation2 + $0x4c] sm:$0xf]  ;;  %v9417_v42 = vrot.slane %v3680_v35, 9 }
 0x115   : > { %2995 = vrot.lane.b32.xlu0 %v2922_v14, %s10415_s11  ;;  %v2242_v10 = vrot.slane %v2241_v63, 4  ;;  %v2713_v2 = vsel %vm10933_vm14, %v2711_v56, %v2712_v51  ;;  %v3287_v14 = vshrl.u32 %v3121_v57, 16  ;;  %v10162_v15 = vld [vmem:[#allocation3 + $0x50] ss:$12 sps:$4 sm:$0xff]   ;;  %v2237_v17 = vsel %vm10595_vm10, %v2232_v3, %v2236_v48  ;;  %v2596_v51 = vld [vmem:[#allocation2 + $0x5c] sm:$0x1] }
 0x116   : > { %2552 = vst.msk [vmem:[#allocation3 + $0x64] sm:$0xf] %vm244_vm0, %v2237_v17  ;;  %10014 = vmatmul.mubr.msk.bf16.gmra.mxu1 %vm4392_vm1, %v10162_v15  ;;  %v2716_v48 = vrot.slane %v11227_v49, 5  ;;  %v1565_v56 = vld [vmem:[#allocation2 + $0x48] sm:$0xe]  ;;  %v3301_v57 = vshll.u32 %v3123_v40, 16 }
 0x117   : > { %1967 = vrot.lane.b32.xlu1 %v1895_v18, %s10416_s16  ;;  %v1461_v41 = vpop.permute.xlu1 %1460  ;;  %v3276_v18 = vrot.slane %v3274_v55, 4  ;;  %v2247_v20 = vsel %vm10595_vm10, %v2242_v10, %v2246_v0  ;;  %v3289_v30 = vrot.slane %v3287_v14, 4  ;;  %v2270_v0 = vrot.slane %v2268_v27, 5  ;;  %v1898_v10 = vld [vmem:[#allocation2 + $0x4c] sm:$0xf] }
 0x118   : > { %v1463_v44 = vpop.permute.xlu0 %1462  ;;  %1536 = vst.msk [vmem:[#allocation3 + $0xfc] sm:$0xf] %vm1514_vm15, %v1461_v41  ;;  %v2258_v41 = vshll.u32 %v2096_v32, 16  ;;  %v9402_v3 = vrot.slane %v2594_v43, 9  ;;  %v2719_v8 = vrot.slane %v2596_v51, 5  ;;  %v9386_v13 = vrot.slane %v1565_v56, 9 }
 0x119   : > { %1969 = vrot.lane.b32.xlu0 %v1896_v23, %s10416_s16  ;;  %1537 = vst.msk [vmem:[#allocation3 + $0x108] sm:$0xf] %vm1514_vm15, %v1463_v44  ;;  %v705_v23 = vrot.slane %v10880_v39, 4  ;;  %v3280_v6 = vor.u32 %v3279_v19, %v3276_v18  ;;  %v2251_v44 = vrot.slane %v2249_v34, 4  ;;  %v3290_v50 = vor.u32 %v3289_v30, %v11225_v29  ;;  %v11241_v19 = vld [vmem:[#allocation2 + $0x50] sm:$0x1] }
 0x11a   : > { %2553 = vst.msk [vmem:[#allocation3 + $0x70] sm:$0xf] %vm244_vm0, %v2247_v20  ;;  %v2260_v52 = vrot.slane %v2258_v41, 5  ;;  %v1690_v18 = vrot.slane %v1566_v59, 5  ;;  %v11243_v20 = vrot.slane %v3298_v46, 4  ;;  %v9416_v32 = vrot.slane %v3677_v24, 9 }
 0x11b   : > { %3553 = vrot.lane.b32.xlu1 %v3262_v11, %s10416_s16  ;;  %v3124_v11 = vld [vmem:[#allocation2 + $0x64] sm:$0xf]  ;;  %v2255_v55 = vor.u32 %v2254_v45, %v2251_v44  ;;  %v3678_v49 = vld [vmem:[#allocation2 + $0x4c] sm:$0xf]  ;;  %v3681_v40 = vld [vmem:[#allocation2 + $0x58] sm:$0xf] }
 0x11c   : > { %v3307_v60 = vshll.u32 %v3124_v11, 16  ;;  %v3311_v61 = vshrl.u32 %v3124_v11, 16  ;;  %v2265_v63 = vor.u32 %v2264_v53, %v2260_v52  ;;  %v3791_v34 = vrot.slane %v3678_v49, 5  ;;  %v3682_v41 = vld [vmem:[#allocation2 + $0x5c] sm:$0x1]  ;;  %v381_v59 = vld [vmem:[%s10553_s28 + $0xd0] sm:$0xff] }
 0x11d   : > { %3555 = vrot.lane.b32.xlu0 %v3272_v54, %s10416_s16  ;;  %v3281_v54 = vrot.slane %v3280_v6, 4  ;;  %v2256_v9 = vrot.slane %v2255_v55, 4  ;;  %v3679_v6 = vld [vmem:[#allocation2 + $0x50] sm:$0x1]  ;;  %v3798_v45 = vrot.slane %v3681_v40, 5 }
 0x11e   : > { %v1467_v12 = vpop.permute.xlu0 %1466  ;;  %v2266_v14 = vrot.slane %v2265_v63, 4  ;;  %v11254_v30 = vrot.slane %v3311_v61, 4  ;;  %v3794_v37 = vrot.slane %v3679_v6, 5  ;;  %v3792_v11 = vsel %vm10933_vm14, %v9416_v32, %v3791_v34  ;;  %v11275_v51 = vld [vmem:[#allocation2 + $0x64] sm:$0xf] }
 0x11f   : > { %2804 = vrot.lane.b32.xlu1 %v2710_v62, %s10414_s29  ;;  %1539 = vst.msk [vmem:[#allocation3 + $0x120] sm:$0xf] %vm1514_vm15, %v1467_v12  ;;  %v2718_v12 = vrot.slane %v2716_v48, 4  ;;  %v3286_v17 = vsel %vm10595_vm10, %v3281_v54, %v11225_v29  ;;  %v3793_v44 = vrot.slane %v3791_v34, 4  ;;  %v3799_v46 = vsel %vm10933_vm14, %v9417_v42, %v3798_v45  ;;  %v2098_v55 = vld [vmem:[#allocation2 + $0x54] sm:$0xf] }
 0x120   : > { %v2271_v29 = vsel %vm10595_vm10, %v2266_v14, %v2270_v0  ;;  %3913 = vst.msk [vmem:[#allocation3 + $0x68] sm:$0xf] %vm244_vm0, %v3792_v11  ;;  %v11290_v63 = vld [vmem:[#allocation2 + $0x60] sm:$0xe]  ;;  %3915 = vst.msk [vmem:[#allocation3 + $0x80] sm:$0xf] %vm244_vm0, %v3799_v46 }
 0x121   : > { %2806 = vrot.lane.b32.xlu0 %v2713_v2, %s10414_s29  ;;  %v3291_v2 = vrot.slane %v3290_v50, 4  ;;  %2555 = vst.msk [vmem:[#allocation3 + $0x88] sm:$0xf] %vm244_vm0, %v2271_v29  ;;  %v2720_v43 = vsel %vm10933_vm14, %v2718_v12, %v2719_v8  ;;  %v1692_v50 = vrot.slane %v1690_v18, 4  ;;  %v3795_v56 = vsel %vm10933_vm14, %v3793_v44, %v3794_v37  ;;  %v2099_v0 = vld [vmem:[#allocation2 + $0x58] sm:$0xf] }
 0x122   : > { %v1465_v26 = vpop.permute.xlu1 %1464  ;;  %3914 = vst.msk [vmem:[#allocation3 + $0x74] sm:$0xf] %vm244_vm0, %v3795_v56  ;;  %v2723_v8 = vrot.slane %v11275_v51, 5  ;;  %v2286_v12 = vshrl.u32 %v2099_v0, 16  ;;  %v9403_v49 = vrot.slane %v11290_v63, 9 }
 0x123   : > { %1778 = vrot.lane.b32.xlu1 %v1684_v22, %s10415_s11  ;;  %1538 = vst.msk [vmem:[#allocation3 + $0x114] sm:$0xf] %vm1514_vm15, %v1465_v26  ;;  %v2261_v22 = vsel %vm10595_vm10, %v2256_v9, %v2260_v52  ;;  %v11250_v26 = vrot.slane %v3307_v60, 5  ;;  %v3296_v21 = vsel %vm10595_vm10, %v3291_v2, %v3295_v5  ;;  %v3801_v52 = vrot.slane %v3682_v41, 5  ;;  %v2100_v2 = vld [vmem:[#allocation2 + $0x5c] sm:$0x1] }
 0x124   : > { %2554 = vst.msk [vmem:[#allocation3 + $0x7c] sm:$0xf] %vm244_vm0, %v2261_v22  ;;  %v2276_v5 = vshll.u32 %v2098_v55, 16  ;;  %v2725_v32 = vrot.slane %v2723_v8, 4  ;;  %v11317_v35 = vld [vmem:[#allocation2 + $0x58] sm:$0xf] }
 0x125   : > { %1780 = vrot.lane.b32.xlu0 %v1687_v25, %s10415_s11  ;;  %v11248_v25 = vrot.slane %v3301_v57, 5  ;;  %v3800_v57 = vrot.slane %v3798_v45, 4  ;;  %v3314_v61 = vor.u32 %v11254_v30, %v11250_v26  ;;  %v11320_v37 = vld [vmem:[#allocation2 + $0x54] sm:$0xe]  ;;  %v343_v42 = vld [vmem:[#allocation2 + $0xa4] sm:$0x1] }
 0x126   : > { %v1697_v45 = vrot.slane %v11317_v35, 5  ;;  %v344_v51 = vsel %vm10567_vm3, 0, %v343_v42  ;;  %v1899_v46 = vld [vmem:[#allocation2 + $0x54] sm:$0xf]  ;;  %v296_v63 = vld [vmem:[#allocation2 + $0xa8] sm:$0x1] }
 0x127   : > { %2997 = vrot.lane.b32.xlu1 %v2923_v28, %s10415_s11  ;;  %v11252_v28 = vld [vmem:[#allocation2 + $0x68] sm:$0x1]  ;;  %v3304_v60 = vor.u32 %v11248_v25, %v11243_v20  ;;  %v3802_v9 = vsel %vm10933_vm14, %v3800_v57, %v3801_v52  ;;  %v2288_v25 = vrot.slane %v2286_v12, 4  ;;  %v11312_v29 = vrot.slane %v3314_v61, 4  ;;  %345 = vst [vmem:[#allocation2 + $0xa4] sm:$0x1] %v344_v51 }
 0x128   : > { %v3317_v54 = vshll.u32 %v11252_v28, 16  ;;  %3916 = vst.msk [vmem:[#allocation3 + $0x8c] sm:$0xf] %vm244_vm0, %v3802_v9  ;;  %v2925_v28 = vld [vmem:[#allocation2 + $0x60] sm:$0xf] }
 0x129   : > { %2999 = vrot.lane.b32.xlu0 %v2924_v36, %s10415_s11  ;;  %v1469_v62 = vpop.permute.xlu1 %1468  ;;  %v2717_v36 = vsel %vm10933_vm14, %v9402_v3, %v2716_v48  ;;  %v1693_v48 = vrot.slane %v11241_v19, 5  ;;  %v11310_v30 = vrot.slane %v3304_v60, 4  ;;  %v10167_v44 = vld [vmem:[#allocation3 + $0x68] ss:$12 sps:$4 sm:$0xff]   ;;  %v11351_v60 = vld [vmem:[#allocation2 + $0x70] sm:$0xf] }
 0x12a   : > { %1540 = vst.msk [vmem:[#allocation3 + $0x12c] sm:$0xf] %vm1514_vm15, %v1469_v62  ;;  %v2273_v62 = vshrl.u32 %v2098_v55, 16  ;;  %v11307_v22 = vrot.slane %v3317_v54, 5  ;;  %10017 = vmatprep.mubr.msk.bf16.mxu1 %vm4392_vm1, %v10167_v44  ;;  %v3684_v51 = vld [vmem:[#allocation2 + $0x64] sm:$0xf] }
 0x12b   : > { %v1471_v15 = vpop.permute.xlu0 %1470  ;;  %1971 = vrot.lane.b32.xlu1 %v1897_v47, %s10416_s16  ;;  %v1691_v47 = vsel %vm10933_vm14, %v9386_v13, %v1690_v18  ;;  %v11299_v13 = vld [vmem:[#allocation2 + $0x68] sm:$0x1]  ;;  %v11302_v18 = vpack.c.bf16 %v381_v59, %v381_v59  ;;  %v1694_v20 = vsel %vm10933_vm14, %v1692_v50, %v1693_v48  ;;  %v3310_v57 = vsel %vm10595_vm10, %v11310_v30, %v11250_v26 }
 0x12c   : > { %1541 = vst.msk [vmem:[#allocation3 + $0x138] sm:$0xf] %vm1514_vm15, %v1471_v15  ;;  %v2275_v14 = vrot.slane %v2273_v62, 4  ;;  %v2278_v15 = vrot.slane %v2276_v5, 5  ;;  %v2726_v34 = vrot.slane %v11299_v13, 5  ;;  %v3320_v55 = vsel %vm10595_vm10, %v11312_v29, %v11307_v22 }
 0x12d   : > { %1973 = vrot.lane.b32.xlu0 %v1898_v10, %s10416_s16  ;;  %v2785_v31 = vpop.permute.xlu1 %2784  ;;  %v2282_v10 = vshll.u32 %v2099_v0, 16  ;;  %v11349_v59 = vsel %vm10933_vm14, %v9403_v49, %v2723_v8  ;;  %v1900_v62 = vld [vmem:[#allocation2 + $0x58] sm:$0xf]  ;;  %v9387_v26 = vrot.slane %v11320_v37, 9  ;;  %v710_v12 = vshll.u32 %v11302_v18, 16 }
 0x12e   : > { %2880 = vst.msk [vmem:[#allocation3 + $0x4] sm:$0xf] %vm1514_vm15, %v2785_v31  ;;  %v2279_v31 = vor.u32 %v2278_v15, %v2275_v14  ;;  %v11365_v9 = vsel %vm10933_vm14, %v2725_v32, %v2726_v34  ;;  %v2101_v13 = vld [vmem:[#allocation2 + $0x60] sm:$0xf]  ;;  %v2102_v22 = vld [vmem:[#allocation2 + $0x64] sm:$0xf] }
 0x12f   : > { %v2787_v27 = vpop.permute.xlu0 %2786  ;;  %3557 = vrot.lane.b32.xlu1 %v3286_v17, %s10416_s16  ;;  %v2292_v17 = vshll.u32 %v2100_v2, 16  ;;  %v2284_v24 = vrot.slane %v2282_v10, 5  ;;  %v10168_v54 = vld [vmem:[#allocation3 + $0x80] ss:$12 sps:$4 sm:$0xff]   ;;  %v11369_v10 = vrot.slane %v1697_v45, 4  ;;  %v2300_v30 = vshll.u32 %v2101_v13, 16 }
 0x130   : > { %2881 = vst.msk [vmem:[#allocation3 + $0x10] sm:$0xf] %vm1514_vm15, %v2787_v27  ;;  %v2280_v40 = vrot.slane %v2279_v31, 4  ;;  %v707_v27 = vshrl.u32 %v11302_v18, 16  ;;  %10018 = vmatmul.mubr.msk.bf16.gmra.mxu1 %vm4392_vm1, %v10168_v54  ;;  %v2103_v29 = vld [vmem:[#allocation2 + $0x68] sm:$0x1] }
 0x131   : > { %3559 = vrot.lane.b32.xlu0 %v3296_v21, %s10416_s16  ;;  %v1759_v53 = vpop.permute.xlu1 %1758  ;;  %v2289_v21 = vor.u32 %v2288_v25, %v2284_v24  ;;  %v2294_v41 = vrot.slane %v2292_v17, 5  ;;  %v3331_v17 = vshll.u32 %v11351_v60, 16  ;;  %v2310_v32 = vshrl.u32 %v2102_v22, 16  ;;  %v346_v34 = vld [vmem:[#allocation2 + $0xb0] sm:$0x1] }
 0x132   : > { %1855 = vst.msk [vmem:[#allocation3] sm:$0xf] %vm1854_vm2, %v1759_v53  ;;  %v2285_v50 = vsel %vm10595_vm10, %v2280_v40, %v2284_v24  ;;  %v11334_v53 = vld [vmem:[#allocation2 + $0x6c] sm:$0xf]  ;;  %v709_v8 = vrot.slane %v707_v27, 7  ;;  %v3335_v24 = vshrl.u32 %v11351_v60, 16 }
 0x133   : > { %v1761_v3 = vpop.permute.xlu0 %1760  ;;  %2808 = vrot.lane.b32.xlu1 %v2717_v36, %s10414_s29  ;;  %v2926_v36 = vld [vmem:[#allocation2 + $0x64] sm:$0xf]  ;;  %v2290_v48 = vrot.slane %v2289_v21, 4  ;;  %2556 = vst.msk [vmem:[#allocation3 + $0x94] sm:$0xf] %vm244_vm0, %v2285_v50  ;;  %v3322_v2 = vshrl.u32 %v11334_v53, 16 }
 0x134   : > { %1856 = vst.msk [vmem:[#allocation3 + $0xc] sm:$0xf] %vm1854_vm2, %v1761_v3  ;;  %v297_v3 = vsel %vm10578_vm8, 0, %v296_v63  ;;  %v3325_v15 = vshll.u32 %v11334_v53, 16  ;;  %v713_v25 = vrot.slane %v709_v8, 4  ;;  %v712_v49 = vor.u32 %v710_v12, %v709_v8 }
 0x135   : > { %2810 = vrot.lane.b32.xlu0 %v2720_v43, %s10414_s29  ;;  %v2978_v19 = vpop.permute.xlu1 %2977  ;;  %v382_v43 = vld [vmem:[%s10553_s28 + $0xd8] sm:$0xff]  ;;  %v2295_v61 = vsel %vm10595_vm10, %v2290_v48, %v2294_v41  ;;  %298 = vst [vmem:[#allocation2 + $0xa8] sm:$0x1] %v297_v3  ;;  %v895_v21 = vld [vmem:[#allocation2 + $0xa4] sm:$0x1]  ;;  %v2302_v40 = vrot.slane %v2300_v30, 5 }
 0x136   : > { %3073 = vst.msk [vmem:[#allocation3 + $0x4] sm:$0xf] %vm1854_vm2, %v2978_v19  ;;  %v9707_v56 = vpack.c.bf16 %v382_v43, %v382_v43  ;;  %v2316_v41 = vshll.u32 %v2103_v29, 16  ;;  %v347_v42 = vsel %vm10567_vm3, 0, %v346_v34  ;;  %v11385_v43 = vrot.slane %v3322_v2, 4 }
 0x137   : > { %v2980_v6 = vpop.permute.xlu0 %2979  ;;  %1782 = vrot.lane.b32.xlu1 %v1691_v47, %s10415_s11  ;;  %v11327_v47 = vld [vmem:[#allocation2 + $0x5c] sm:$0x1]  ;;  %2557 = vst.msk [vmem:[#allocation3 + $0xa0] sm:$0xf] %vm244_vm0, %v2295_v61  ;;  %348 = vst [vmem:[#allocation2 + $0xb0] sm:$0x1] %v347_v42 }
 0x138   : > { %3074 = vst.msk [vmem:[#allocation3 + $0x10] sm:$0xf] %vm1854_vm2, %v2980_v6  ;;  %v1700_v5 = vrot.slane %v11327_v47, 5  ;;  %v715_v19 = vshrl.u32 %v9707_v56, 16  ;;  %v2306_v6 = vshll.u32 %v2102_v22, 16  ;;  %v2312_v54 = vrot.slane %v2310_v32, 4 }
 0x139   : > { %1784 = vrot.lane.b32.xlu0 %v1694_v20, %s10415_s11  ;;  %v1952_v11 = vpop.permute.xlu1 %1951  ;;  %v718_v20 = vshll.u32 %v9707_v56, 16  ;;  %v3683_v48 = vld [vmem:[#allocation2 + $0x60] sm:$0xe]  ;;  %v3685_v56 = vld [vmem:[#allocation2 + $0x68] sm:$0x1]  ;;  %v3337_v47 = vrot.slane %v3335_v24, 4 }
 0x13a   : > { %2048 = vst.msk [vmem:[#allocation3] sm:$0xf] %vm2047_vm4, %v1952_v11  ;;  %v11379_v31 = vrot.slane %v715_v19, 7  ;;  %v896_v11 = vsel %vm10578_vm8, %v705_v23, %v895_v21  ;;  %v2308_v50 = vrot.slane %v2306_v6, 5  ;;  %v3686_v12 = vld [vmem:[#allocation2 + $0x6c] sm:$0xe] }
 0x13b   : > { %v1954_v52 = vpop.permute.xlu0 %1953  ;;  %3001 = vrot.lane.b32.xlu1 %v2925_v28, %s10415_s11  ;;  %v2297_v28 = vshrl.u32 %v2101_v13, 16  ;;  %897 = vst [vmem:[#allocation2 + $0xa4] sm:$0x1] %v896_v11  ;;  %v3687_v13 = vld [vmem:[#allocation2 + $0x70] sm:$0xf]  ;;  %v9419_v35 = vrot.slane %v3686_v12, 9 }
 0x13c   : > { %2049 = vst.msk [vmem:[#allocation3 + $0xc] sm:$0xf] %vm2047_vm4, %v1954_v52  ;;  %v720_v44 = vor.u32 %v718_v20, %v11379_v31  ;;  %v11393_v52 = vrot.slane %v3325_v15, 5  ;;  %v898_v23 = vld [vmem:[#allocation2 + $0xa8] sm:$0xf]  ;;  %v722_v63 = vrot.slane %v11379_v31, 4  ;;  %v2313_v2 = vor.u32 %v2312_v54, %v2308_v50 }
 0x13d   : > { %3003 = vrot.lane.b32.xlu0 %v2926_v36, %s10415_s11  ;;  %v3538_v0 = vpop.permute.xlu1 %3537  ;;  %v2299_v36 = vrot.slane %v2297_v28, 4  ;;  %v899_v3 = vsel %vm10622_vm11, %v712_v49, %v898_v23  ;;  %v1698_v20 = vsel %vm10933_vm14, %v9387_v26, %v1697_v45  ;;  %v3688_v28 = vld [vmem:[#allocation2 + $0x74] sm:$0x1]  ;;  %v1701_v45 = vsel %vm10933_vm14, %v11369_v10, %v1700_v5  ;;  %v383_v49 = vld [vmem:[%s10553_s28 + $0xe0] sm:$0xff]  ;;  %v384_v6 = vld [vmem:[%s10553_s28 + $0xe8] sm:$0xff] }
 0x13e   : > { %3633 = vst.msk [vmem:[#allocation3 + $0x4] sm:$0xf] %vm2047_vm4, %v3538_v0  ;;  %v721_v61 = vsel %vm10587_vm9, %v713_v25, %v720_v44  ;;  %v3805_v0 = vrot.slane %v3684_v51, 5  ;;  %900 = vst [vmem:[#allocation2 + $0xa8] sm:$0xf] %v899_v3  ;;  %v2314_v29 = vrot.slane %v2313_v2, 4  ;;  %v9709_v44 = vpack.c.bf16 %v384_v6, %v384_v6 }
 0x13f   : > { %v3540_v14 = vpop.permute.xlu0 %3539  ;;  %1975 = vrot.lane.b32.xlu1 %v1899_v46, %s10416_s16  ;;  %v2303_v53 = vor.u32 %v2302_v40, %v2299_v36  ;;  %v9418_v46 = vrot.slane %v3683_v48, 9  ;;  %901 = vst.msk [vmem:[#allocation2 + $0xac] sm:$0xf] %vm244_vm0, %v721_v61  ;;  %v902_v10 = vld [vmem:[#allocation2 + $0xb0] sm:$0x1]  ;;  %v3815_v31 = vrot.slane %v3688_v28, 5  ;;  %v3328_v36 = vor.u32 %v11393_v52, %v11385_v43 }
 0x140   : > { %3634 = vst.msk [vmem:[#allocation3 + $0x10] sm:$0xf] %vm2047_vm4, %v3540_v14  ;;  %v3807_v25 = vrot.slane %v3805_v0, 4  ;;  %v3128_v34 = vld [vmem:[#allocation2 + $0x74] sm:$0x1]  ;;  %v732_v3 = vshrl.u32 %v9709_v44, 16 }
 0x141   : > { %1977 = vrot.lane.b32.xlu0 %v1900_v62, %s10416_s16  ;;  %v2789_v18 = vpop.permute.xlu1 %2788  ;;  %v3808_v62 = vrot.slane %v3685_v56, 5  ;;  %v2304_v8 = vrot.slane %v2303_v53, 4  ;;  %v3806_v22 = vsel %vm10933_vm14, %v9418_v46, %v3805_v0  ;;  %v2601_v21 = vld [vmem:[#allocation2 + $0x70] sm:$0xf]  ;;  %v2927_v24 = vld [vmem:[#allocation2 + $0x6c] sm:$0xf] }
 0x142   : > { %2882 = vst.msk [vmem:[#allocation3 + $0x1c] sm:$0xf] %vm1514_vm15, %v2789_v18  ;;  %v3812_v18 = vrot.slane %v3687_v13, 5  ;;  %v11452_v11 = vld [vmem:[#allocation2 + $0x64] sm:$0xf]  ;;  %v3341_v51 = vshll.u32 %v3128_v34, 16 }
 0x143   : > { %v2791_v27 = vpop.permute.xlu0 %2790  ;;  %3561 = vrot.lane.b32.xlu1 %v3310_v57, %s10416_s16  ;;  %3917 = vst.msk [vmem:[#allocation3 + $0x98] sm:$0xf] %vm244_vm0, %v3806_v22  ;;  %v3809_v26 = vsel %vm10933_vm14, %v3807_v25, %v3808_v62  ;;  %v2600_v43 = vld [vmem:[#allocation2 + $0x6c] sm:$0xe]  ;;  %v2730_v52 = vrot.slane %v2601_v21, 5  ;;  %v1704_v23 = vrot.slane %v11452_v11, 5 }
 0x144   : > { %2883 = vst.msk [vmem:[#allocation3 + $0x28] sm:$0xf] %vm1514_vm15, %v2791_v27  ;;  %v3813_v60 = vsel %vm10933_vm14, %v9419_v35, %v3812_v18  ;;  %v3814_v40 = vrot.slane %v3812_v18, 4  ;;  %v2928_v27 = vld [vmem:[#allocation2 + $0x70] sm:$0xf]  ;;  %v9404_v62 = vrot.slane %v2600_v43, 9 }
 0x145   : > { %3563 = vrot.lane.b32.xlu0 %v3320_v55, %s10416_s16  ;;  %v1763_v39 = vpop.permute.xlu1 %1762  ;;  %v3937_v57 = vld [vmem:[#allocation3] sm:$0xff]  ;;  %v2318_v55 = vrot.slane %v2316_v41, 5  ;;  %3918 = vst.msk [vmem:[#allocation3 + $0xa4] sm:$0xf] %vm244_vm0, %v3809_v26  ;;  %3919 = vst.msk [vmem:[#allocation3 + $0xb0] sm:$0xf] %vm244_vm0, %v3813_v60  ;;  %v11449_v41 = vpack.c.bf16 %v383_v49, %v383_v49 }
 0x146   : > { %1857 = vst.msk [vmem:[#allocation3 + $0x18] sm:$0xf] %vm1854_vm2, %v1763_v39  ;;  %v3816_v53 = vsel %vm10933_vm14, %v3814_v40, %v3815_v31  ;;  %v2602_v56 = vld [vmem:[#allocation2 + $0x74] sm:$0x1]  ;;  %v11459_v46 = vld [vmem:[#allocation2 + $0x60] sm:$0xe]  ;;  %v2731_v35 = vsel %vm10933_vm14, %v9404_v62, %v2730_v52 }
 0x147   : > { %v1765_v14 = vpop.permute.xlu0 %1764  ;;  %2812 = vrot.lane.b32.xlu1 %v11349_v59, %s10414_s29  ;;  %v3939_v15 = vld [vmem:[#allocation3 + $0xc] sm:$0xff]  ;;  %v2309_v59 = vsel %vm10595_vm10, %v2304_v8, %v2308_v50  ;;  %v2319_v5 = vsel %vm10595_vm10, %v2314_v29, %v2318_v55  ;;  %v1901_v50 = vld [vmem:[#allocation2 + $0x60] sm:$0xf]  ;;  %3920 = vst.msk [vmem:[#allocation3 + $0xbc] sm:$0xf] %vm244_vm0, %v3816_v53  ;;  %v724_v61 = vshrl.u32 %v11449_v41, 16 }
 0x148   : > { %v10152_v19 = vld [vmem:[#allocation3 + $0x4] ss:$12 sps:$4 sm:$0xff]   ;;  %1858 = vst.msk [vmem:[#allocation3 + $0x24] sm:$0xf] %vm1854_vm2, %v1765_v14  ;;  %v9429_v30 = vcombine.low %v3937_v57, %v3939_v15  ;;  %v3329_v57 = vrot.slane %v3328_v36, 4  ;;  %v3343_v2 = vrot.slane %v3341_v51, 5 }
 0x149   : > { %2814 = vrot.lane.b32.xlu0 %v11365_v9, %s10414_s29  ;;  %4473 = vmatprep.mubr.bf16.mxu0 %v10152_v19  ;;  %v2982_v37 = vpop.permute.xlu1 %2981  ;;  %2558 = vst.msk [vmem:[#allocation3 + $0xac] sm:$0xf] %vm244_vm0, %v2309_v59  ;;  %v11431_v9 = vrot.slane %v3331_v17, 5  ;;  %2559 = vst.msk [vmem:[#allocation3 + $0xb8] sm:$0xf] %vm244_vm0, %v2319_v5  ;;  %v903_v17 = vsel %vm10578_vm8, %v722_v63, %v902_v10  ;;  %v2732_v55 = vrot.slane %v2730_v52, 4 }
 0x14a   : > { %3075 = vst.msk [vmem:[#allocation3 + $0x1c] sm:$0xf] %vm1854_vm2, %v2982_v37  ;;  %4474 = vmatmul.mubr.bf16.vlgmr.msra.gmra.mxu0 %v9429_v30  ;;  %904 = vst [vmem:[#allocation2 + $0xb0] sm:$0x1] %v903_v17  ;;  %v11461_v39 = vld [vmem:[#allocation2 + $0x68] sm:$0x1] }
 0x14b   : > { %v2984_v32 = vpop.permute.xlu0 %2983  ;;  %1786 = vrot.lane.b32.xlu1 %v1698_v20, %s10415_s11  ;;  %v3338_v48 = vor.u32 %v3337_v47, %v11431_v9  ;;  %v1902_v0 = vld [vmem:[#allocation2 + $0x64] sm:$0xf]  ;;  %v2733_v12 = vrot.slane %v2602_v56, 5  ;;  %v9388_v15 = vrot.slane %v11459_v46, 9  ;;  %v1707_v19 = vrot.slane %v11461_v39, 5 }
 0x14c   : > { %3076 = vst.msk [vmem:[#allocation3 + $0x28] sm:$0xf] %vm1854_vm2, %v2984_v32  ;;  %v10173_v13 = vld [vmem:[#allocation3 + $0x98] ss:$12 sps:$4 sm:$0xff]   ;;  %v3129_v20 = vld [vmem:[#allocation2 + $0x78] sm:$0xf]  ;;  %v3334_v22 = vsel %vm10595_vm10, %v3329_v57, %v11431_v9 }
 0x14d   : > { %1788 = vrot.lane.b32.xlu0 %v1701_v45, %s10415_s11  ;;  %v1956_v42 = vpop.permute.xlu1 %1955  ;;  %v3339_v8 = vrot.slane %v3338_v48, 4  ;;  %v11478_v25 = vrot.slane %v1704_v23, 4  ;;  %v11480_v28 = vld [vmem:[#allocation2 + $0x7c] sm:$0xf]  ;;  %10021 = vmatprep.mubr.msk.bf16.mxu1 %vm4392_vm1, %v10173_v13  ;;  %v726_v30 = vrot.slane %v724_v61, 7  ;;  %v11486_v37 = vrot.slane %v732_v3, 7 }
 0x14e   : > { %2050 = vst.msk [vmem:[#allocation3 + $0x18] sm:$0xf] %vm2047_vm4, %v1956_v42  ;;  %v299_v59 = vld [vmem:[#allocation2 + $0xb4] sm:$0x1]  ;;  %v735_v45 = vshll.u32 %v9709_v44, 16  ;;  %v2734_v9 = vsel %vm10933_vm14, %v2732_v55, %v2733_v12  ;;  %v3346_v47 = vshrl.u32 %v3129_v20, 16  ;;  %v1705_v55 = vsel %vm10933_vm14, %v9388_v15, %v1704_v23 }
 0x14f   : > { %v1958_v54 = vpop.permute.xlu0 %1957  ;;  %3005 = vrot.lane.b32.xlu1 %v2927_v24, %s10415_s11  ;;  %v2104_v26 = vld [vmem:[#allocation2 + $0x6c] sm:$0xf]  ;;  %v2105_v18 = vld [vmem:[#allocation2 + $0x70] sm:$0xf]  ;;  %v3344_v49 = vsel %vm10595_vm10, %v3339_v8, %v3343_v2  ;;  %v10174_v5 = vld [vmem:[#allocation3 + $0xb0] ss:$12 sps:$4 sm:$0xff]   ;;  %v1708_v11 = vsel %vm10933_vm14, %v11478_v25, %v1707_v19 }
 0x150   : > { %2051 = vst.msk [vmem:[#allocation3 + $0x24] sm:$0xf] %vm2047_vm4, %v1958_v54  ;;  %v730_v10 = vrot.slane %v726_v30, 4  ;;  %v3349_v6 = vshll.u32 %v3129_v20, 16  ;;  %v3355_v32 = vshll.u32 %v11480_v28, 16  ;;  %v737_v34 = vor.u32 %v735_v45, %v11486_v37  ;;  %10022 = vmatmul.mubr.msk.bf16.gmra.mxu1 %vm4392_vm1, %v10174_v5 }
 0x151   : > { %3007 = vrot.lane.b32.xlu0 %v2928_v27, %s10415_s11  ;;  %v3542_v63 = vpop.permute.xlu1 %3541  ;;  %v300_v21 = vsel %vm10578_vm8, 0, %v299_v59  ;;  %v2106_v17 = vld [vmem:[#allocation2 + $0x74] sm:$0x1]  ;;  %v3359_v60 = vshrl.u32 %v11480_v28, 16  ;;  %v727_v24 = vshll.u32 %v11449_v41, 16  ;;  %v2321_v36 = vshrl.u32 %v2104_v26, 16 }
 0x152   : > { %3635 = vst.msk [vmem:[#allocation3 + $0x1c] sm:$0xf] %vm2047_vm4, %v3542_v63  ;;  %301 = vst [vmem:[#allocation2 + $0xb4] sm:$0x1] %v300_v21  ;;  %v2324_v40 = vshll.u32 %v2104_v26, 16  ;;  %v2330_v48 = vshll.u32 %v2105_v18, 16 }
 0x153   : > { %v3544_v14 = vpop.permute.xlu0 %3543  ;;  %1979 = vrot.lane.b32.xlu1 %v1901_v50, %s10416_s16  ;;  %v3131_v44 = vld [vmem:[#allocation2 + $0x80] sm:$0x1]  ;;  %v738_v50 = vsel %vm10587_vm9, %v730_v10, %v737_v34  ;;  %v2334_v51 = vshrl.u32 %v2105_v18, 16  ;;  %v2340_v43 = vshll.u32 %v2106_v17, 16  ;;  %v349_v52 = vld [vmem:[#allocation2 + $0xbc] sm:$0x1]  ;;  %v729_v12 = vor.u32 %v727_v24, %v726_v30 }
 0x154   : > { %3636 = vst.msk [vmem:[#allocation3 + $0x28] sm:$0xf] %vm2047_vm4, %v3544_v14  ;;  %v3348_v53 = vrot.slane %v3346_v47, 4  ;;  %v11506_v54 = vld [vmem:[#allocation2 + $0x7c] sm:$0xf]  ;;  %v2323_v41 = vrot.slane %v2321_v36, 4 }
 0x155   : > { %1981 = vrot.lane.b32.xlu0 %v1902_v0, %s10416_s16  ;;  %v2793_v29 = vpop.permute.xlu1 %2792  ;;  %908 = vst.msk [vmem:[#allocation2 + $0xb8] sm:$0xf] %vm244_vm0, %v738_v50  ;;  %v2326_v56 = vrot.slane %v2324_v40, 5  ;;  %v350_v57 = vsel %vm10567_vm3, 0, %v349_v52  ;;  %v3351_v62 = vrot.slane %v3349_v6, 5  ;;  %v2332_v3 = vrot.slane %v2330_v48, 5 }
 0x156   : > { %2884 = vst.msk [vmem:[#allocation3 + $0x34] sm:$0xf] %vm1514_vm15, %v2793_v29  ;;  %v2336_v8 = vrot.slane %v2334_v51, 4  ;;  %351 = vst [vmem:[#allocation2 + $0xbc] sm:$0x1] %v350_v57  ;;  %v11520_v20 = vrot.slane %v3355_v32, 5 }
 0x157   : > { %v2795_v31 = vpop.permute.xlu0 %2794  ;;  %3565 = vrot.lane.b32.xlu1 %v3334_v22, %s10416_s16  ;;  %v2327_v13 = vor.u32 %v2326_v56, %v2323_v41  ;;  %v3361_v22 = vrot.slane %v3359_v60, 4  ;;  %v2342_v59 = vrot.slane %v2340_v43, 5  ;;  %v3365_v46 = vshll.u32 %v3131_v44, 16  ;;  %v2603_v23 = vld [vmem:[#allocation2 + $0x78] sm:$0xe] }
 0x158   : > { %2885 = vst.msk [vmem:[#allocation3 + $0x40] sm:$0xf] %vm1514_vm15, %v2795_v31  ;;  %v2337_v28 = vor.u32 %v2336_v8, %v2332_v3  ;;  %v2737_v15 = vrot.slane %v11506_v54, 5  ;;  %v2605_v45 = vld [vmem:[#allocation2 + $0x80] sm:$0x1]  ;;  %v739_v26 = vrot.slane %v11486_v37, 4 }
 0x159   : > { %3567 = vrot.lane.b32.xlu0 %v3344_v49, %s10416_s16  ;;  %v1767_v42 = vpop.permute.xlu1 %1766  ;;  %v3941_v27 = vld [vmem:[#allocation3 + $0x18] sm:$0xff]  ;;  %v2328_v30 = vrot.slane %v2327_v13, 4  ;;  %v2929_v39 = vld [vmem:[#allocation2 + $0x78] sm:$0xf]  ;;  %v2930_v5 = vld [vmem:[#allocation2 + $0x7c] sm:$0xf]  ;;  %v3362_v10 = vor.u32 %v3361_v22, %v11520_v20 }
 0x15a   : > { %1859 = vst.msk [vmem:[#allocation3 + $0x30] sm:$0xf] %vm1854_vm2, %v1767_v42  ;;  %v905_v18 = vld [vmem:[#allocation2 + $0xb4] sm:$0xf]  ;;  %v2338_v49 = vrot.slane %v2337_v28, 4  ;;  %v11543_v31 = vrot.slane %v3365_v46, 5 }
 0x15b   : > { %v1769_v61 = vpop.permute.xlu0 %1768  ;;  %2816 = vrot.lane.b32.xlu1 %v2731_v35, %s10414_s29  ;;  %v3943_v63 = vld [vmem:[#allocation3 + $0x24] sm:$0xff]  ;;  %v3352_v35 = vor.u32 %v3351_v62, %v3348_v53  ;;  %v906_v19 = vsel %vm10622_vm11, %v729_v12, %v905_v18  ;;  %v2333_v25 = vsel %vm10595_vm10, %v2328_v30, %v2332_v3  ;;  %v9405_v6 = vrot.slane %v2603_v23, 9  ;;  %v1903_v17 = vld [vmem:[#allocation2 + $0x6c] sm:$0xf]  ;;  %v2107_v40 = vld [vmem:[#allocation2 + $0x78] sm:$0xf] }
 0x15c   : > { %v10157_v0 = vld [vmem:[#allocation3 + $0x1c] ss:$12 sps:$4 sm:$0xff]   ;;  %1860 = vst.msk [vmem:[#allocation3 + $0x3c] sm:$0xf] %vm1854_vm2, %v1769_v61  ;;  %v9432_v2 = vcombine.low %v3941_v27, %v3943_v63  ;;  %907 = vst [vmem:[#allocation2 + $0xb4] sm:$0xf] %v906_v19  ;;  %v2343_v37 = vsel %vm10595_vm10, %v2338_v49, %v2342_v59 }
 0x15d   : > { %2818 = vrot.lane.b32.xlu0 %v2734_v9, %s10414_s29  ;;  %4481 = vmatprep.mubr.bf16.mxu0 %v10157_v0  ;;  %v2986_v14 = vpop.permute.xlu1 %2985  ;;  %v385_v9 = vld [vmem:[%s10553_s28 + $0xf0] sm:$0xff]  ;;  %2560 = vst.msk [vmem:[#allocation3 + $0xc4] sm:$0xf] %vm244_vm0, %v2333_v25  ;;  %v2740_v32 = vrot.slane %v2605_v45, 5  ;;  %2561 = vst.msk [vmem:[#allocation3 + $0xd0] sm:$0xf] %vm244_vm0, %v2343_v37  ;;  %v2738_v56 = vsel %vm10933_vm14, %v9405_v6, %v2737_v15 }
 0x15e   : > { %3077 = vst.msk [vmem:[#allocation3 + $0x34] sm:$0xf] %vm1854_vm2, %v2986_v14  ;;  %4482 = vmatmul.mubr.bf16.gmra.mxu0 %v9432_v2  ;;  %v909_v34 = vld [vmem:[#allocation2 + $0xbc] sm:$0x1]  ;;  %v3353_v60 = vrot.slane %v3352_v35, 4  ;;  %v2739_v24 = vrot.slane %v2737_v15, 4  ;;  %v11549_v42 = vpack.c.bf16 %v385_v9, %v385_v9 }
 0x15f   : > { %v2988_v29 = vpop.permute.xlu0 %2987  ;;  %1790 = vrot.lane.b32.xlu1 %v1705_v55, %s10415_s11  ;;  %v910_v36 = vsel %vm10578_vm8, %v739_v26, %v909_v34  ;;  %v1904_v27 = vld [vmem:[#allocation2 + $0x70] sm:$0xf]  ;;  %v1574_v44 = vld [vmem:[#allocation2 + $0x6c] sm:$0xe]  ;;  %v3132_v48 = vld [vmem:[#allocation2 + $0x84] sm:$0xf] }
 0x160   : > { %3078 = vst.msk [vmem:[#allocation3 + $0x40] sm:$0xf] %vm1854_vm2, %v2988_v29  ;;  %v1575_v50 = vld [vmem:[#allocation2 + $0x70] sm:$0xf]  ;;  %911 = vst [vmem:[#allocation2 + $0xbc] sm:$0x1] %v910_v36  ;;  %v11562_v3 = vsel %vm10933_vm14, %v2739_v24, %v2740_v32  ;;  %v3358_v12 = vsel %vm10595_vm10, %v3353_v60, %v11520_v20 }
 0x161   : > { %1792 = vrot.lane.b32.xlu0 %v1708_v11, %s10415_s11  ;;  %v1960_v47 = vpop.permute.xlu1 %1959  ;;  %v2108_v51 = vld [vmem:[#allocation2 + $0x7c] sm:$0xf]  ;;  %v3363_v52 = vrot.slane %v3362_v10, 4  ;;  %v11553_v53 = vld [vmem:[#allocation2 + $0x88] sm:$0xf]  ;;  %v2345_v54 = vshrl.u32 %v2107_v40, 16 }
 0x162   : > { %2052 = vst.msk [vmem:[#allocation3 + $0x30] sm:$0xf] %vm2047_vm4, %v1960_v47  ;;  %v2109_v41 = vld [vmem:[#allocation2 + $0x80] sm:$0x1]  ;;  %v2348_v57 = vshll.u32 %v2107_v40, 16  ;;  %v2354_v61 = vshll.u32 %v2108_v51, 16 }
 0x163   : > { %v1962_v21 = vpop.permute.xlu0 %1961  ;;  %3009 = vrot.lane.b32.xlu1 %v2929_v39, %s10415_s11  ;;  %v2358_v63 = vshrl.u32 %v2108_v51, 16  ;;  %v386_v0 = vld [vmem:[%s10553_s28 + $0xf8] sm:$0xff]  ;;  %v2347_v8 = vrot.slane %v2345_v54, 4  ;;  %v2364_v2 = vshll.u32 %v2109_v41, 16  ;;  %v741_v55 = vshrl.u32 %v11549_v42, 16 }
 0x164   : > { %2053 = vst.msk [vmem:[#allocation3 + $0x3c] sm:$0xf] %vm2047_vm4, %v1962_v21  ;;  %v1711_v13 = vrot.slane %v1575_v50, 5  ;;  %v11569_v14 = vld [vmem:[#allocation2 + $0x74] sm:$0x1]  ;;  %v3370_v22 = vshrl.u32 %v3132_v48, 16  ;;  %v9711_v15 = vpack.c.bf16 %v386_v0, %v386_v0  ;;  %v3368_v30 = vsel %vm10595_vm10, %v3363_v52, %v11543_v31 }
 0x165   : > { %3011 = vrot.lane.b32.xlu0 %v2930_v5, %s10415_s11  ;;  %v3546_v43 = vpop.permute.xlu1 %3545  ;;  %v2350_v28 = vrot.slane %v2348_v57, 5  ;;  %v9389_v11 = vrot.slane %v1574_v44, 9  ;;  %v2356_v46 = vrot.slane %v2354_v61, 5  ;;  %v2360_v23 = vrot.slane %v2358_v63, 4  ;;  %v3134_v35 = vld [vmem:[#allocation2 + $0x8c] sm:$0x1] }
 0x166   : > { %3637 = vst.msk [vmem:[#allocation3 + $0x34] sm:$0xf] %vm2047_vm4, %v3546_v43  ;;  %v3373_v29 = vshll.u32 %v3132_v48, 16  ;;  %v3379_v20 = vshll.u32 %v11553_v53, 16  ;;  %v1714_v18 = vrot.slane %v11569_v14, 5  ;;  %v2366_v39 = vrot.slane %v2364_v2, 5 }
 0x167   : > { %v3548_v62 = vpop.permute.xlu0 %3547  ;;  %1983 = vrot.lane.b32.xlu1 %v1903_v17, %s10416_s16  ;;  %v2351_v45 = vor.u32 %v2350_v28, %v2347_v8  ;;  %v2361_v49 = vor.u32 %v2360_v23, %v2356_v46  ;;  %v743_v19 = vrot.slane %v741_v55, 7  ;;  %v1713_v25 = vrot.slane %v1711_v13, 4  ;;  %v302_v10 = vld [vmem:[#allocation2 + $0xc0] sm:$0x1]  ;;  %v352_v17 = vld [vmem:[#allocation2 + $0xc8] sm:$0x1] }
 0x168   : > { %3638 = vst.msk [vmem:[#allocation3 + $0x40] sm:$0xf] %vm2047_vm4, %v3548_v62  ;;  %v11580_v9 = vrot.slane %v3370_v22, 4  ;;  %v3383_v47 = vshrl.u32 %v11553_v53, 16  ;;  %v1712_v6 = vsel %vm10933_vm14, %v9389_v11, %v1711_v13  ;;  %v3389_v32 = vshll.u32 %v3134_v35, 16 }
 0x169   : > { %1985 = vrot.lane.b32.xlu0 %v1904_v27, %s10416_s16  ;;  %v2797_v59 = vpop.permute.xlu1 %2796  ;;  %v2352_v5 = vrot.slane %v2351_v45, 4  ;;  %v2362_v34 = vrot.slane %v2361_v49, 4  ;;  %v749_v21 = vshrl.u32 %v9711_v15, 16  ;;  %v11587_v60 = vrot.slane %v3373_v29, 5  ;;  %v3689_v57 = vld [vmem:[#allocation2 + $0x78] sm:$0xe] }
 0x16a   : > { %2886 = vst.msk [vmem:[#allocation3 + $0x4c] sm:$0xf] %vm1514_vm15, %v2797_v59  ;;  %v11589_v24 = vrot.slane %v3379_v20, 5  ;;  %v752_v40 = vshll.u32 %v9711_v15, 16  ;;  %v747_v51 = vrot.slane %v743_v19, 4  ;;  %v303_v52 = vsel %vm10578_vm8, 0, %v302_v10 }
 0x16b   : > { %v2799_v26 = vpop.permute.xlu0 %2798  ;;  %3569 = vrot.lane.b32.xlu1 %v3358_v12, %s10416_s16  ;;  %v2357_v36 = vsel %vm10595_vm10, %v2352_v5, %v2356_v46  ;;  %v2367_v48 = vsel %vm10595_vm10, %v2362_v34, %v2366_v39  ;;  %v11597_v43 = vrot.slane %v749_v21, 7  ;;  %v11602_v54 = vrot.slane %v3383_v47, 4  ;;  %304 = vst [vmem:[#allocation2 + $0xc0] sm:$0x1] %v303_v52  ;;  %v3690_v0 = vld [vmem:[#allocation2 + $0x7c] sm:$0xf] }
 0x16c   : > { %2887 = vst.msk [vmem:[#allocation3 + $0x58] sm:$0xf] %vm1514_vm15, %v2799_v26  ;;  %v744_v41 = vshll.u32 %v11549_v42, 16  ;;  %v1715_v62 = vsel %vm10933_vm14, %v1713_v25, %v1714_v18  ;;  %v3691_v42 = vld [vmem:[#allocation2 + $0x80] sm:$0x1]  ;;  %v11615_v55 = vrot.slane %v3389_v32, 5  ;;  %v3376_v22 = vor.u32 %v11587_v60, %v11580_v9 }
 0x16d   : > { %3571 = vrot.lane.b32.xlu0 %v3368_v30, %s10416_s16  ;;  %v1771_v37 = vpop.permute.xlu1 %1770  ;;  %v3945_v31 = vld [vmem:[#allocation3 + $0x30] sm:$0xff]  ;;  %2562 = vst.msk [vmem:[#allocation3 + $0xdc] sm:$0xf] %vm244_vm0, %v2357_v36  ;;  %2563 = vst.msk [vmem:[#allocation3 + $0xe8] sm:$0xf] %vm244_vm0, %v2367_v48  ;;  %v754_v63 = vor.u32 %v752_v40, %v11597_v43  ;;  %v9420_v12 = vrot.slane %v3689_v57, 9  ;;  %v3386_v28 = vor.u32 %v11602_v54, %v11589_v24 }
 0x16e   : > { %1861 = vst.msk [vmem:[#allocation3 + $0x48] sm:$0xf] %vm1854_vm2, %v1771_v37  ;;  %v3692_v8 = vld [vmem:[#allocation2 + $0x84] sm:$0xe]  ;;  %v3694_v13 = vld [vmem:[#allocation2 + $0x8c] sm:$0x1]  ;;  %v746_v59 = vor.u32 %v744_v41, %v743_v19 }
 0x16f   : > { %v1773_v27 = vpop.permute.xlu0 %1772  ;;  %2820 = vrot.lane.b32.xlu1 %v2738_v56, %s10414_s29  ;;  %v3947_v44 = vld [vmem:[#allocation3 + $0x3c] sm:$0xff]  ;;  %v353_v56 = vsel %vm10567_vm3, 0, %v352_v17  ;;  %v2931_v14 = vld [vmem:[#allocation2 + $0x84] sm:$0xf]  ;;  %v3819_v11 = vrot.slane %v3690_v0, 5  ;;  %v756_v30 = vrot.slane %v11597_v43, 4 }
 0x170   : > { %v10159_v50 = vld [vmem:[#allocation3 + $0x34] ss:$12 sps:$4 sm:$0xff]   ;;  %1862 = vst.msk [vmem:[#allocation3 + $0x54] sm:$0xf] %vm1854_vm2, %v1773_v27  ;;  %v9435_v53 = vcombine.low %v3945_v31, %v3947_v44  ;;  %354 = vst [vmem:[#allocation2 + $0xc8] sm:$0x1] %v353_v56 }
 0x171   : > { %2822 = vrot.lane.b32.xlu0 %v11562_v3, %s10414_s29  ;;  %4489 = vmatprep.mubr.bf16.mxu0 %v10159_v50  ;;  %v2990_v61 = vpop.permute.xlu1 %2989  ;;  %v755_v3 = vsel %vm10587_vm9, %v747_v51, %v754_v63  ;;  %v2110_v46 = vld [vmem:[#allocation2 + $0x84] sm:$0xf]  ;;  %v2932_v15 = vld [vmem:[#allocation2 + $0x88] sm:$0xf]  ;;  %v3822_v29 = vrot.slane %v3691_v42, 5  ;;  %v9421_v20 = vrot.slane %v3692_v8, 9  ;;  %v3820_v39 = vsel %vm10933_vm14, %v9420_v12, %v3819_v11 }
 0x172   : > { %3079 = vst.msk [vmem:[#allocation3 + $0x4c] sm:$0xf] %vm1854_vm2, %v2990_v61  ;;  %4490 = vmatmul.mubr.bf16.gmra.mxu0 %v9435_v53  ;;  %v3826_v35 = vrot.slane %v3693_v1, 5  ;;  %v1905_v45 = vld [vmem:[#allocation2 + $0x78] sm:$0xf]  ;;  %v3821_v19 = vrot.slane %v3819_v11, 4 }
 0x173   : > { %v2992_v2 = vpop.permute.xlu0 %2991  ;;  %1794 = vrot.lane.b32.xlu1 %v1712_v6, %s10415_s11  ;;  %915 = vst.msk [vmem:[#allocation2 + $0xc4] sm:$0xf] %vm244_vm0, %v755_v3  ;;  %v11628_v26 = vld [vmem:[#allocation2 + $0x84] sm:$0xe]  ;;  %v11630_v18 = vld [vmem:[#allocation2 + $0x88] sm:$0xf] }
 0x174   : > { %3080 = vst.msk [vmem:[#allocation3 + $0x58] sm:$0xf] %vm1854_vm2, %v2992_v2  ;;  %v11632_v49 = vld [vmem:[#allocation2 + $0x78] sm:$0xe]  ;;  %v3829_v25 = vrot.slane %v3694_v13, 5  ;;  %v3827_v10 = vsel %vm10933_vm14, %v9421_v20, %v3826_v35  ;;  %v3828_v37 = vrot.slane %v3826_v35, 4  ;;  %v3823_v60 = vsel %vm10933_vm14, %v3821_v19, %v3822_v29 }
 0x175   : > { %1796 = vrot.lane.b32.xlu0 %v1715_v62, %s10415_s11  ;;  %v1964_v23 = vpop.permute.xlu1 %1963  ;;  %v3135_v47 = vld [vmem:[#allocation2 + $0x90] sm:$0xf]  ;;  %v912_v5 = vld [vmem:[#allocation2 + $0xc0] sm:$0xf]  ;;  %3921 = vst.msk [vmem:[#allocation3 + $0xc8] sm:$0xf] %vm244_vm0, %v3820_v39 }
 0x176   : > { %2054 = vst.msk [vmem:[#allocation3 + $0x48] sm:$0xf] %vm2047_vm4, %v1964_v23  ;;  %v11640_v31 = vld [vmem:[#allocation2 + $0x88] sm:$0xf]  ;;  %v2369_v6 = vshrl.u32 %v2110_v46, 16  ;;  %v3377_v34 = vrot.slane %v3376_v22, 4  ;;  %v913_v21 = vsel %vm10622_vm11, %v746_v59, %v912_v5  ;;  %v3830_v50 = vsel %vm10933_vm14, %v3828_v37, %v3829_v25 }
 0x177   : > { %v1966_v9 = vpop.permute.xlu0 %1965  ;;  %3013 = vrot.lane.b32.xlu1 %v2931_v14, %s10415_s11  ;;  %v1906_v32 = vld [vmem:[#allocation2 + $0x7c] sm:$0xf]  ;;  %v916_v17 = vld [vmem:[#allocation2 + $0xc8] sm:$0x1]  ;;  %3923 = vst.msk [vmem:[#allocation3 + $0xe0] sm:$0xf] %vm244_vm0, %v3827_v10 }
 0x178   : > { %2055 = vst.msk [vmem:[#allocation3 + $0x54] sm:$0xf] %vm2047_vm4, %v1966_v9  ;;  %v2372_v36 = vshll.u32 %v2110_v46, 16  ;;  %v3387_v27 = vrot.slane %v3386_v28, 4  ;;  %914 = vst [vmem:[#allocation2 + $0xc0] sm:$0xf] %v913_v21  ;;  %v917_v44 = vsel %vm10578_vm8, %v756_v30, %v916_v17  ;;  %v3382_v63 = vsel %vm10595_vm10, %v3377_v34, %v11589_v24 }
 0x179   : > { %3015 = vrot.lane.b32.xlu0 %v2932_v15, %s10415_s11  ;;  %v3550_v40 = vpop.permute.xlu1 %3549  ;;  %3922 = vst.msk [vmem:[#allocation3 + $0xd4] sm:$0xf] %vm244_vm0, %v3823_v60  ;;  %v2371_v48 = vrot.slane %v2369_v6, 4  ;;  %v11655_v51 = vld [vmem:[#allocation2 + $0x7c] sm:$0xf]  ;;  %v2378_v53 = vshll.u32 %v11640_v31, 16 }
 0x17a   : > { %3639 = vst.msk [vmem:[#allocation3 + $0x4c] sm:$0xf] %vm2047_vm4, %v3550_v40  ;;  %v2608_v43 = vld [vmem:[#allocation2 + $0x8c] sm:$0x1]  ;;  %918 = vst [vmem:[#allocation2 + $0xc8] sm:$0x1] %v917_v44  ;;  %v3392_v2 = vsel %vm10595_vm10, %v3387_v27, %v11615_v55 }
 0x17b   : > { %3924 = vst.msk [vmem:[#allocation3 + $0xec] sm:$0xf] %vm244_vm0, %v3830_v50  ;;  %v2374_v52 = vrot.slane %v2372_v36, 5  ;;  %v3552_v54 = vpop.permute.xlu0 %3551  ;;  %1987 = vrot.lane.b32.xlu1 %v1905_v45, %s10416_s16  ;;  %v9406_v41 = vrot.slane %v11628_v26, 9  ;;  %v2744_v56 = vrot.slane %v11630_v18, 5  ;;  %v9390_v57 = vrot.slane %v11632_v49, 9 }
 0x17c   : > { %v3136_v61 = vld [vmem:[#allocation2 + $0x94] sm:$0xf]  ;;  %3640 = vst.msk [vmem:[#allocation3 + $0x58] sm:$0xf] %vm2047_vm4, %v3552_v54  ;;  %v11667_v0 = vld [vmem:[#allocation2 + $0x80] sm:$0x1] }
 0x17d   : > { %v3394_v62 = vshrl.u32 %v3135_v47, 16  ;;  %v3397_v42 = vshll.u32 %v3135_v47, 16  ;;  %v2375_v8 = vor.u32 %v2374_v52, %v2371_v48  ;;  %1989 = vrot.lane.b32.xlu0 %v1906_v32, %s10416_s16  ;;  %v2801_v1 = vpop.permute.xlu1 %2800  ;;  %v1718_v3 = vrot.slane %v11655_v51, 5  ;;  %v2112_v14 = vld [vmem:[#allocation2 + $0x8c] sm:$0x1] }
 0x17e   : > { %v2746_v12 = vrot.slane %v2744_v56, 4  ;;  %v2747_v13 = vrot.slane %v2608_v43, 5  ;;  %2888 = vst.msk [vmem:[#allocation3 + $0x64] sm:$0xf] %vm1514_vm15, %v2801_v1  ;;  %v3403_v24 = vshll.u32 %v3136_v61, 16  ;;  %v3407_v22 = vshrl.u32 %v3136_v61, 16 }
 0x17f   : > { %v2376_v28 = vrot.slane %v2375_v8, 4  ;;  %v2380_v59 = vrot.slane %v2378_v53, 5  ;;  %v2803_v11 = vpop.permute.xlu0 %2802  ;;  %3573 = vrot.lane.b32.xlu1 %v3382_v63, %s10416_s16  ;;  %v2745_v46 = vsel %vm10933_vm14, %v9406_v41, %v2744_v56  ;;  %v1720_v23 = vrot.slane %v1718_v3, 4  ;;  %v11684_v18 = vld [vmem:[#allocation2 + $0x90] sm:$0xe] }
 0x180   : > { %v1721_v55 = vrot.slane %v11667_v0, 5  ;;  %v2382_v15 = vshrl.u32 %v11640_v31, 16  ;;  %2889 = vst.msk [vmem:[#allocation3 + $0x70] sm:$0xf] %vm1514_vm15, %v2803_v11  ;;  %v3396_v30 = vrot.slane %v3394_v62, 4  ;;  %v3399_v29 = vrot.slane %v3397_v42, 5 }
 0x181   : > { %v2381_v20 = vsel %vm10595_vm10, %v2376_v28, %v2380_v59  ;;  %v2388_v35 = vshll.u32 %v2112_v14, 16  ;;  %3575 = vrot.lane.b32.xlu0 %v3392_v2, %s10416_s16  ;;  %v1775_v45 = vpop.permute.xlu1 %1774  ;;  %v3949_v26 = vld [vmem:[#allocation3 + $0x48] sm:$0xff]  ;;  %v11686_v49 = vld [vmem:[#allocation2 + $0x94] sm:$0xf]  ;;  %v2748_v19 = vsel %vm10933_vm14, %v2746_v12, %v2747_v13  ;;  %v11692_v25 = vrot.slane %v3403_v24, 5 }
 0x182   : > { %2564 = vst.msk [vmem:[#allocation3 + $0xf4] sm:$0xf] %vm244_vm0, %v2381_v20  ;;  %v2384_v39 = vrot.slane %v2382_v15, 4  ;;  %v3137_v9 = vld [vmem:[#allocation2 + $0x98] sm:$0x1]  ;;  %v3409_v47 = vrot.slane %v3407_v22, 4  ;;  %v1719_v21 = vsel %vm10933_vm14, %v9390_v57, %v1718_v3  ;;  %v3400_v40 = vor.u32 %v3399_v29, %v3396_v30 }
 0x183   : > { %1863 = vst.msk [vmem:[#allocation3 + $0x60] sm:$0xf] %vm1854_vm2, %v1775_v45  ;;  %v10180_v5 = vld [vmem:[#allocation3 + $0xc8] ss:$12 sps:$4 sm:$0xff]   ;;  %v1777_v10 = vpop.permute.xlu0 %1776  ;;  %2824 = vrot.lane.b32.xlu1 %v2745_v46, %s10414_s29  ;;  %v10163_v31 = vld [vmem:[#allocation3 + $0x4c] ss:$12 sps:$4 sm:$0xff]   ;;  %v1722_v51 = vsel %vm10933_vm14, %v1720_v23, %v1721_v55 }
 0x184   : > { %v3951_v37 = vld [vmem:[#allocation3 + $0x54] sm:$0xff]  ;;  %v11695_v6 = vld [vmem:[#allocation2 + $0x84] sm:$0xe]  ;;  %v2385_v32 = vor.u32 %v2384_v39, %v2380_v59  ;;  %1864 = vst.msk [vmem:[#allocation3 + $0x6c] sm:$0xf] %vm1854_vm2, %v1777_v10  ;;  %10025 = vmatprep.mubr.msk.bf16.mxu1 %vm4392_vm1, %v10180_v5  ;;  %v2390_v60 = vrot.slane %v2388_v35, 5  ;;  %4497 = vmatprep.mubr.bf16.mxu0 %v10163_v31  ;;  %v3410_v53 = vor.u32 %v3409_v47, %v11692_v25 }
 0x185   : > { %v9438_v34 = vcombine.low %v3949_v26, %v3951_v37  ;;  %v11700_v17 = vld [vmem:[#allocation2 + $0x88] sm:$0xf]  ;;  %v2994_v36 = vpop.permute.xlu1 %2993  ;;  %2826 = vrot.lane.b32.xlu0 %v2748_v19, %s10414_s29  ;;  %v3413_v27 = vshll.u32 %v3137_v9, 16  ;;  %v10181_v44 = vld [vmem:[#allocation3 + $0xe0] ss:$12 sps:$4 sm:$0xff]   ;;  %v9407_v43 = vrot.slane %v11684_v18, 9 }
 0x186   : > { %v2386_v50 = vrot.slane %v2385_v32, 4  ;;  %3081 = vst.msk [vmem:[#allocation3 + $0x64] sm:$0xf] %vm1854_vm2, %v2994_v36  ;;  %v2933_v48 = vld [vmem:[#allocation2 + $0x90] sm:$0xf]  ;;  %v2751_v52 = vrot.slane %v11686_v49, 5  ;;  %10026 = vmatmul.mubr.msk.bf16.gmra.mxu1 %vm4392_vm1, %v10181_v44 }
 0x187   : > { %4498 = vmatmul.mubr.bf16.gmra.mxu0 %v9438_v34  ;;  %v2996_v54 = vpop.permute.xlu0 %2995  ;;  %1798 = vrot.lane.b32.xlu1 %v1719_v21, %s10415_s11  ;;  %v9391_v41 = vrot.slane %v11695_v6, 9  ;;  %v1725_v56 = vrot.slane %v11700_v17, 5  ;;  %v11713_v57 = vld [vmem:[#allocation2 + $0x98] sm:$0x1]  ;;  %v2113_v63 = vld [vmem:[#allocation2 + $0x90] sm:$0xf] }
 0x188   : > { %v2391_v61 = vsel %vm10595_vm10, %v2386_v50, %v2390_v60  ;;  %3082 = vst.msk [vmem:[#allocation3 + $0x70] sm:$0xf] %vm1854_vm2, %v2996_v54  ;;  %v2934_v0 = vld [vmem:[#allocation2 + $0x94] sm:$0xf]  ;;  %v11719_v62 = vld [vmem:[#allocation2 + $0x8c] sm:$0x1] }
 0x189   : > { %2565 = vst.msk [vmem:[#allocation3 + $0x100] sm:$0xf] %vm244_vm0, %v2391_v61  ;;  %v2114_v42 = vld [vmem:[#allocation2 + $0x94] sm:$0xf]  ;;  %v1968_v8 = vpop.permute.xlu1 %1967  ;;  %1800 = vrot.lane.b32.xlu0 %v1722_v51, %s10415_s11  ;;  %v3401_v1 = vrot.slane %v3400_v40, 4  ;;  %v3415_v2 = vrot.slane %v3413_v27, 5  ;;  %v2752_v27 = vsel %vm10933_vm14, %v9407_v43, %v2751_v52 }
 0x18a   : > { %v2393_v3 = vshrl.u32 %v2113_v63, 16  ;;  %v2396_v12 = vshll.u32 %v2113_v63, 16  ;;  %2056 = vst.msk [vmem:[#allocation3 + $0x60] sm:$0xf] %vm2047_vm4, %v1968_v8  ;;  %v1907_v13 = vld [vmem:[#allocation2 + $0x84] sm:$0xf]  ;;  %v1726_v63 = vsel %vm10933_vm14, %v9391_v41, %v1725_v56 }
 0x18b   : > { %v3411_v14 = vrot.slane %v3410_v53, 4  ;;  %v2753_v24 = vrot.slane %v2751_v52, 4  ;;  %v2754_v22 = vrot.slane %v11713_v57, 5  ;;  %v11729_v28 = vrot.slane %v1725_v56, 4  ;;  %v1970_v59 = vpop.permute.xlu0 %1969  ;;  %3017 = vrot.lane.b32.xlu1 %v2933_v48, %s10415_s11  ;;  %v1908_v15 = vld [vmem:[#allocation2 + $0x88] sm:$0xf] }
 0x18c   : > { %v1728_v11 = vrot.slane %v11719_v62, 5  ;;  %v2395_v46 = vrot.slane %v2393_v3, 4  ;;  %v2398_v23 = vrot.slane %v2396_v12, 5  ;;  %v2402_v55 = vshll.u32 %v2114_v42, 16  ;;  %2057 = vst.msk [vmem:[#allocation3 + $0x6c] sm:$0xf] %vm2047_vm4, %v1970_v59 }
 0x18d   : > { %v3554_v30 = vpop.permute.xlu1 %3553  ;;  %3019 = vrot.lane.b32.xlu0 %v2934_v0, %s10415_s11  ;;  %v3138_v29 = vld [vmem:[#allocation2 + $0x9c] sm:$0xf]  ;;  %v3139_v35 = vld [vmem:[#allocation2 + $0xa0] sm:$0xf]  ;;  %v2115_v26 = vld [vmem:[#allocation2 + $0x98] sm:$0x1]  ;;  %v3406_v5 = vsel %vm10595_vm10, %v3401_v1, %v11692_v25  ;;  %v3416_v36 = vsel %vm10595_vm10, %v3411_v14, %v3415_v2  ;;  %v2755_v54 = vsel %vm10933_vm14, %v2753_v24, %v2754_v22 }
 0x18e   : > { %v2399_v20 = vor.u32 %v2398_v23, %v2395_v46  ;;  %3641 = vst.msk [vmem:[#allocation3 + $0x64] sm:$0xf] %vm2047_vm4, %v3554_v30  ;;  %v2404_v45 = vrot.slane %v2402_v55, 5  ;;  %v2406_v39 = vshrl.u32 %v2114_v42, 16  ;;  %v2412_v47 = vshll.u32 %v2115_v26, 16 }
 0x18f   : > { %v3556_v19 = vpop.permute.xlu0 %3555  ;;  %1991 = vrot.lane.b32.xlu1 %v1907_v13, %s10416_s16  ;;  %v3418_v10 = vshrl.u32 %v3138_v29, 16  ;;  %v3421_v32 = vshll.u32 %v3138_v29, 16  ;;  %v3427_v34 = vshll.u32 %v3139_v35, 16  ;;  %v3431_v53 = vshrl.u32 %v3139_v35, 16  ;;  %v3696_v0 = vld [vmem:[#allocation2 + $0x94] sm:$0xf] }
 0x190   : > { %v2400_v9 = vrot.slane %v2399_v20, 4  ;;  %3642 = vst.msk [vmem:[#allocation3 + $0x70] sm:$0xf] %vm2047_vm4, %v3556_v19  ;;  %v2408_v37 = vrot.slane %v2406_v39, 4  ;;  %v2414_v60 = vrot.slane %v2412_v47, 5  ;;  %v3833_v1 = vrot.slane %v3696_v0, 5 }
 0x191   : > { %v2805_v31 = vpop.permute.xlu1 %2804  ;;  %1993 = vrot.lane.b32.xlu0 %v1908_v15, %s10416_s16  ;;  %v11756_v44 = vrot.slane %v3418_v10, 4  ;;  %v3423_v57 = vrot.slane %v3421_v32, 5  ;;  %v11774_v8 = vrot.slane %v3427_v34, 5  ;;  %v3699_v2 = vld [vmem:[#allocation2 + $0xa0] sm:$0xf]  ;;  %v1729_v6 = vsel %vm10933_vm14, %v11729_v28, %v1728_v11 }
 0x192   : > { %v2405_v21 = vsel %vm10595_vm10, %v2400_v9, %v2404_v45  ;;  %2890 = vst.msk [vmem:[#allocation3 + $0x7c] sm:$0xf] %vm1514_vm15, %v2805_v31  ;;  %v2409_v40 = vor.u32 %v2408_v37, %v2404_v45  ;;  %v2935_v3 = vld [vmem:[#allocation2 + $0x9c] sm:$0xf]  ;;  %v3433_v17 = vrot.slane %v3431_v53, 4  ;;  %v3840_v12 = vrot.slane %v3699_v2, 5 }
 0x193   : > { %2566 = vst.msk [vmem:[#allocation3 + $0x10c] sm:$0xf] %vm244_vm0, %v2405_v21  ;;  %v2807_v25 = vpop.permute.xlu0 %2806  ;;  %3577 = vrot.lane.b32.xlu1 %v3406_v5, %s10416_s16  ;;  %v3695_v41 = vld [vmem:[#allocation2 + $0x90] sm:$0xe]  ;;  %v3697_v56 = vld [vmem:[#allocation2 + $0x98] sm:$0x1]  ;;  %v3424_v46 = vor.u32 %v3423_v57, %v11756_v44 }
 0x194   : > { %2891 = vst.msk [vmem:[#allocation3 + $0x88] sm:$0xf] %vm1514_vm15, %v2807_v25  ;;  %v2410_v50 = vrot.slane %v2409_v40, 4  ;;  %v3140_v14 = vld [vmem:[#allocation2 + $0xa4] sm:$0x1]  ;;  %v9422_v24 = vrot.slane %v3695_v41, 9  ;;  %v3434_v45 = vor.u32 %v3433_v17, %v11774_v8 }
 0x195   : > { %v1779_v48 = vpop.permute.xlu1 %1778  ;;  %3579 = vrot.lane.b32.xlu0 %v3416_v36, %s10416_s16  ;;  %v3953_v51 = vld [vmem:[#allocation3 + $0x60] sm:$0xff]  ;;  %v3835_v22 = vrot.slane %v3833_v1, 4  ;;  %v3836_v59 = vrot.slane %v3697_v56, 5  ;;  %v3700_v23 = vld [vmem:[#allocation2 + $0xa4] sm:$0x1]  ;;  %v3842_v55 = vrot.slane %v3840_v12, 4 }
 0x196   : > { %1865 = vst.msk [vmem:[#allocation3 + $0x78] sm:$0xf] %vm1854_vm2, %v1779_v48  ;;  %v2415_v49 = vsel %vm10595_vm10, %v2410_v50, %v2414_v60  ;;  %v3698_v62 = vld [vmem:[#allocation2 + $0x9c] sm:$0xe]  ;;  %v3834_v28 = vsel %vm10933_vm14, %v9422_v24, %v3833_v1  ;;  %v3843_v29 = vrot.slane %v3700_v23, 5  ;;  %v3437_v26 = vshll.u32 %v3140_v14, 16 }
 0x197   : > { %v1781_v18 = vpop.permute.xlu0 %1780  ;;  %2828 = vrot.lane.b32.xlu1 %v2752_v27, %s10414_s29  ;;  %v3955_v43 = vld [vmem:[#allocation3 + $0x6c] sm:$0xff]  ;;  %2567 = vst.msk [vmem:[#allocation3 + $0x118] sm:$0xf] %vm244_vm0, %v2415_v49  ;;  %v3837_v11 = vsel %vm10933_vm14, %v3835_v22, %v3836_v59  ;;  %v9423_v30 = vrot.slane %v3698_v62, 9  ;;  %v2936_v20 = vld [vmem:[#allocation2 + $0xa0] sm:$0xf] }
 0x198   : > { %v10165_v52 = vld [vmem:[#allocation3 + $0x64] ss:$12 sps:$4 sm:$0xff]   ;;  %1866 = vst.msk [vmem:[#allocation3 + $0x84] sm:$0xf] %vm1854_vm2, %v1781_v18  ;;  %v9441_v61 = vcombine.low %v3953_v51, %v3955_v43  ;;  %v2613_v35 = vld [vmem:[#allocation2 + $0xa0] sm:$0xf]  ;;  %v3844_v9 = vsel %vm10933_vm14, %v3842_v55, %v3843_v29 }
 0x199   : > { %4505 = vmatprep.mubr.bf16.mxu0 %v10165_v52  ;;  %v2998_v42 = vpop.permute.xlu1 %2997  ;;  %2830 = vrot.lane.b32.xlu0 %v2755_v54, %s10414_s29  ;;  %3925 = vst.msk [vmem:[#allocation3 + $0xf8] sm:$0xf] %vm244_vm0, %v3834_v28  ;;  %3926 = vst.msk [vmem:[#allocation3 + $0x104] sm:$0xf] %vm244_vm0, %v3837_v11  ;;  %v3841_v19 = vsel %vm10933_vm14, %v9423_v30, %v3840_v12  ;;  %v1909_v47 = vld [vmem:[#allocation2 + $0x90] sm:$0xf] }
 0x19a   : > { %3083 = vst.msk [vmem:[#allocation3 + $0x7c] sm:$0xf] %vm1854_vm2, %v2998_v42  ;;  %4506 = vmatmul.mubr.bf16.gmra.mxu0 %v9441_v61  ;;  %v3425_v5 = vrot.slane %v3424_v46, 4  ;;  %v2612_v10 = vld [vmem:[#allocation2 + $0x9c] sm:$0xe]  ;;  %v2758_v32 = vrot.slane %v2613_v35, 5 }
 0x19b   : > { %v3000_v13 = vpop.permute.xlu0 %2999  ;;  %1802 = vrot.lane.b32.xlu1 %v1726_v63, %s10415_s11  ;;  %3927 = vst.msk [vmem:[#allocation3 + $0x110] sm:$0xf] %vm244_vm0, %v3841_v19  ;;  %3928 = vst.msk [vmem:[#allocation3 + $0x11c] sm:$0xf] %vm244_vm0, %v3844_v9  ;;  %v1910_v31 = vld [vmem:[#allocation2 + $0x94] sm:$0xf] }
 0x19c   : > { %3084 = vst.msk [vmem:[#allocation3 + $0x88] sm:$0xf] %vm1854_vm2, %v3000_v13  ;;  %v2614_v34 = vld [vmem:[#allocation2 + $0xa4] sm:$0x1]  ;;  %v3435_v21 = vrot.slane %v3434_v45, 4  ;;  %v3439_v60 = vrot.slane %v3437_v26, 5  ;;  %v3430_v51 = vsel %vm10595_vm10, %v3425_v5, %v11774_v8 }
 0x19d   : > { %v1972_v15 = vpop.permute.xlu1 %1971  ;;  %1804 = vrot.lane.b32.xlu0 %v1729_v6, %s10415_s11  ;;  %v2116_v36 = vld [vmem:[#allocation2 + $0x9c] sm:$0xf]  ;;  %v11804_v40 = vld [vmem:[#allocation2 + $0xa0] sm:$0xf]  ;;  %v9408_v27 = vrot.slane %v2612_v10, 9  ;;  %v2760_v54 = vrot.slane %v2758_v32, 4 }
 0x19e   : > { %2058 = vst.msk [vmem:[#allocation3 + $0x78] sm:$0xf] %vm2047_vm4, %v1972_v15  ;;  %v1583_v44 = vld [vmem:[#allocation2 + $0x90] sm:$0xe]  ;;  %v2417_v50 = vshrl.u32 %v2116_v36, 16  ;;  %v2420_v48 = vshll.u32 %v2116_v36, 16  ;;  %v3440_v0 = vsel %vm10595_vm10, %v3435_v21, %v3439_v60 }
 0x19f   : > { %v1974_v39 = vpop.permute.xlu0 %1973  ;;  %3021 = vrot.lane.b32.xlu1 %v2935_v3, %s10415_s11  ;;  %v1584_v53 = vld [vmem:[#allocation2 + $0x94] sm:$0xf]  ;;  %v3141_v49 = vld [vmem:[#allocation2 + $0xa8] sm:$0xf]  ;;  %v2761_v43 = vrot.slane %v2614_v34, 5  ;;  %v2426_v63 = vshll.u32 %v11804_v40, 16  ;;  %v2759_v2 = vsel %vm10933_vm14, %v9408_v27, %v2758_v32 }
 0x1a0   : > { %2059 = vst.msk [vmem:[#allocation3 + $0x84] sm:$0xf] %vm2047_vm4, %v1974_v39  ;;  %v1585_v52 = vld [vmem:[#allocation2 + $0x98] sm:$0x1]  ;;  %v2419_v57 = vrot.slane %v2417_v50, 4  ;;  %v2422_v61 = vrot.slane %v2420_v48, 5 }
 0x1a1   : > { %v3558_v37 = vpop.permute.xlu1 %3557  ;;  %3023 = vrot.lane.b32.xlu0 %v2936_v20, %s10415_s11  ;;  %v3142_v42 = vld [vmem:[#allocation2 + $0xac] sm:$0xf]  ;;  %v10187_v1 = vld [vmem:[#allocation3 + $0xf8] ss:$12 sps:$4 sm:$0xff]   ;;  %v9392_v17 = vrot.slane %v1583_v44, 9  ;;  %v1732_v41 = vrot.slane %v1584_v53, 5  ;;  %v2762_v62 = vsel %vm10933_vm14, %v2760_v54, %v2761_v43 }
 0x1a2   : > { %3643 = vst.msk [vmem:[#allocation3 + $0x7c] sm:$0xf] %vm2047_vm4, %v3558_v37  ;;  %v2423_v3 = vor.u32 %v2422_v61, %v2419_v57  ;;  %v10188_v6 = vld [vmem:[#allocation3 + $0x110] ss:$12 sps:$4 sm:$0xff]   ;;  %v3442_v56 = vshrl.u32 %v3141_v49, 16  ;;  %v3445_v12 = vshll.u32 %v3141_v49, 16  ;;  %10029 = vmatprep.mubr.msk.bf16.mxu1 %vm4392_vm1, %v10187_v1 }
 0x1a3   : > { %v3560_v25 = vpop.permute.xlu0 %3559  ;;  %1995 = vrot.lane.b32.xlu1 %v1909_v47, %s10416_s16  ;;  %v3451_v24 = vshll.u32 %v3142_v42, 16  ;;  %v3455_v22 = vshrl.u32 %v3142_v42, 16  ;;  %v11822_v46 = vrot.slane %v2426_v63, 5  ;;  %10030 = vmatmul.mubr.msk.bf16.gmra.mxu1 %vm4392_vm1, %v10188_v6  ;;  %v1734_v23 = vrot.slane %v1732_v41, 4  ;;  %v10276_v15 = vld [vmem:[#allocation2 + $0xa0] sm:$0xf] }
 0x1a4   : > { %3644 = vst.msk [vmem:[#allocation3 + $0x88] sm:$0xf] %vm2047_vm4, %v3560_v25  ;;  %v2424_v59 = vrot.slane %v2423_v3, 4  ;;  %v1735_v55 = vrot.slane %v1585_v52, 5  ;;  %v1360_v28 = vshrl.u32 %v10276_v15, 16  ;;  %v1733_v45 = vsel %vm10933_vm14, %v9392_v17, %v1732_v41 }
 0x1a5   : > { %v2809_v18 = vpop.permute.xlu1 %2808  ;;  %1997 = vrot.lane.b32.xlu0 %v1910_v31, %s10416_s16  ;;  %v3444_v26 = vrot.slane %v3442_v56, 4  ;;  %v3447_v39 = vrot.slane %v3445_v12, 5  ;;  %v11837_v9 = vrot.slane %v3451_v24, 5  ;;  %v3457_v47 = vrot.slane %v3455_v22, 4  ;;  %v3143_v31 = vld [vmem:[#allocation2 + $0xb0] sm:$0x1] }
 0x1a6   : > { %2892 = vst.msk [vmem:[#allocation3 + $0x94] sm:$0xf] %vm1514_vm15, %v2809_v18  ;;  %v2429_v20 = vsel %vm10595_vm10, %v2424_v59, %v11822_v46  ;;  %v1736_v5 = vsel %vm10933_vm14, %v1734_v23, %v1735_v55  ;;  %v1362_v10 = vrot.slane %v1360_v28, 4  ;;  %v2937_v32 = vld [vmem:[#allocation2 + $0xa8] sm:$0xf]  ;;  %v3461_v27 = vshll.u32 %v3143_v31, 16 }
 0x1a7   : > { %v2811_v8 = vpop.permute.xlu0 %2810  ;;  %3581 = vrot.lane.b32.xlu1 %v3430_v51, %s10416_s16  ;;  %2568 = vst.msk [vmem:[#allocation3 + $0x124] sm:$0xf] %vm244_vm0, %v2429_v20  ;;  %v3448_v34 = vor.u32 %v3447_v39, %v3444_v26  ;;  %v1024_v60 = vld [vmem:[#allocation2 + $0xa4] sm:$0x1]  ;;  %v3458_v36 = vor.u32 %v3457_v47, %v11837_v9  ;;  %v2938_v25 = vld [vmem:[#allocation2 + $0xac] sm:$0xf] }
 0x1a8   : > { %2893 = vst.msk [vmem:[#allocation3 + $0xa0] sm:$0xf] %vm1514_vm15, %v2811_v8  ;;  %v2118_v44 = vld [vmem:[#allocation2 + $0xa4] sm:$0x1]  ;;  %v2430_v50 = vshrl.u32 %v11804_v40, 16  ;;  %v1363_v48 = vor.u32 %v1362_v10, %v10919_v58  ;;  %v1366_v18 = vshll.u32 %v1024_v60, 16 }
 0x1a9   : > { %v1783_v13 = vpop.permute.xlu1 %1782  ;;  %3583 = vrot.lane.b32.xlu0 %v3440_v0, %s10416_s16  ;;  %v3957_v14 = vld [vmem:[#allocation3 + $0x78] sm:$0xff]  ;;  %v1911_v53 = vld [vmem:[#allocation2 + $0x9c] sm:$0xf]  ;;  %v2436_v54 = vshll.u32 %v2118_v44, 16  ;;  %v3449_v49 = vrot.slane %v3448_v34, 4  ;;  %v3459_v63 = vrot.slane %v3458_v36, 4 }
 0x1aa   : > { %1867 = vst.msk [vmem:[#allocation3 + $0x90] sm:$0xf] %vm1854_vm2, %v1783_v13  ;;  %v2616_v43 = vld [vmem:[#allocation2 + $0xac] sm:$0xf]  ;;  %v2432_v52 = vrot.slane %v2430_v50, 4  ;;  %v3463_v58 = vrot.slane %v3461_v27, 5 }
 0x1ab   : > { %v1785_v11 = vpop.permute.xlu0 %1784  ;;  %2832 = vrot.lane.b32.xlu1 %v2759_v2, %s10414_s29  ;;  %v3959_v30 = vld [vmem:[#allocation3 + $0x84] sm:$0xff]  ;;  %v1025_v0 = vld [vmem:[#allocation2 + $0xa8] sm:$0xf]  ;;  %v3145_v40 = vld [vmem:[#allocation2 + $0xb8] sm:$0xf]  ;;  %v2438_v1 = vrot.slane %v2436_v54, 5  ;;  %v3454_v41 = vsel %vm10595_vm10, %v3449_v49, %v11837_v9 }
 0x1ac   : > { %v10169_v29 = vld [vmem:[#allocation3 + $0x7c] ss:$12 sps:$4 sm:$0xff]   ;;  %1868 = vst.msk [vmem:[#allocation3 + $0x9c] sm:$0xf] %vm1854_vm2, %v1785_v11  ;;  %v9444_v35 = vcombine.low %v3957_v14, %v3959_v30  ;;  %v2433_v42 = vor.u32 %v2432_v52, %v11822_v46  ;;  %v1364_v3 = vrot.slane %v1363_v48, 4  ;;  %v2765_v6 = vrot.slane %v2616_v43, 5 }
 0x1ad   : > { %4513 = vmatprep.mubr.bf16.mxu0 %v10169_v29  ;;  %v3002_v19 = vpop.permute.xlu1 %3001  ;;  %2834 = vrot.lane.b32.xlu0 %v2762_v62, %s10414_s29  ;;  %v1912_v61 = vld [vmem:[#allocation2 + $0xa0] sm:$0xf]  ;;  %v2615_v17 = vld [vmem:[#allocation2 + $0xa8] sm:$0xe]  ;;  %v1368_v56 = vrot.slane %v1366_v18, 5  ;;  %v3475_v22 = vshll.u32 %v3145_v40, 16  ;;  %v3464_v55 = vsel %vm10595_vm10, %v3459_v63, %v3463_v58 }
 0x1ae   : > { %3085 = vst.msk [vmem:[#allocation3 + $0x94] sm:$0xf] %vm1854_vm2, %v3002_v19  ;;  %4514 = vmatmul.mubr.bf16.gmra.mxu0 %v9444_v35  ;;  %v946_v8 = vld [vmem:[#allocation2 + $0xa0] sm:$0xf]  ;;  %v2617_v12 = vld [vmem:[#allocation2 + $0xb0] sm:$0x1] }
 0x1af   : > { %v3004_v37 = vpop.permute.xlu0 %3003  ;;  %1806 = vrot.lane.b32.xlu1 %v1733_v45, %s10415_s11  ;;  %978 = vst.msk [vmem:[#allocation3 + $0x144] sm:$0xf] %vm244_vm0, %v946_v8  ;;  %v1587_v13 = vld [vmem:[#allocation2 + $0xa0] sm:$0xf]  ;;  %v2434_v14 = vrot.slane %v2433_v42, 4  ;;  %v3479_v59 = vshrl.u32 %v3145_v40, 16  ;;  %v1369_v45 = vsel %vm10595_vm10, %v1364_v3, %v1368_v56 }
 0x1b0   : > { %3086 = vst.msk [vmem:[#allocation3 + $0xa0] sm:$0xf] %vm1854_vm2, %v3004_v37  ;;  %v3144_v46 = vld [vmem:[#allocation2 + $0xb4] sm:$0xf]  ;;  %v1371_v62 = vshrl.u32 %v1025_v0, 16  ;;  %v1374_v23 = vshll.u32 %v1025_v0, 16 }
 0x1b1   : > { %v1976_v21 = vpop.permute.xlu1 %1975  ;;  %1808 = vrot.lane.b32.xlu0 %v1736_v5, %s10415_s11  ;;  %v9409_v15 = vrot.slane %v2615_v17, 9  ;;  %v2439_v28 = vsel %vm10595_vm10, %v2434_v14, %v2438_v1  ;;  %v2767_v30 = vrot.slane %v2765_v6, 4  ;;  %v2768_v29 = vrot.slane %v2617_v12, 5  ;;  %v1586_v35 = vld [vmem:[#allocation2 + $0x9c] sm:$0xe] }
 0x1b2   : > { %2060 = vst.msk [vmem:[#allocation3 + $0x90] sm:$0xf] %vm2047_vm4, %v1976_v21  ;;  %v1739_v20 = vrot.slane %v1587_v13, 5  ;;  %v1588_v26 = vld [vmem:[#allocation2 + $0xa4] sm:$0x1]  ;;  %v3466_v39 = vshrl.u32 %v3144_v46, 16 }
 0x1b3   : > { %v1978_v51 = vpop.permute.xlu0 %1977  ;;  %3025 = vrot.lane.b32.xlu1 %v2937_v32, %s10415_s11  ;;  %2569 = vst.msk [vmem:[#allocation3 + $0x130] sm:$0xf] %vm244_vm0, %v2439_v28  ;;  %v3469_v19 = vshll.u32 %v3144_v46, 16  ;;  %v1026_v9 = vld [vmem:[#allocation2 + $0xac] sm:$0xf]  ;;  %v11872_v10 = vrot.slane %v3475_v22, 5  ;;  %v2766_v34 = vsel %vm10933_vm14, %v9409_v15, %v2765_v6  ;;  %v2769_v27 = vsel %vm10933_vm14, %v2767_v30, %v2768_v29 }
 0x1b4   : > { %2061 = vst.msk [vmem:[#allocation3 + $0x9c] sm:$0xf] %vm2047_vm4, %v1978_v51  ;;  %v3481_v37 = vrot.slane %v3479_v59, 4  ;;  %v1373_v31 = vrot.slane %v1371_v62, 4  ;;  %v1376_v32 = vrot.slane %v1374_v23, 5  ;;  %v9393_v21 = vrot.slane %v1586_v35, 9 }
 0x1b5   : > { %v3562_v57 = vpop.permute.xlu1 %3561  ;;  %3027 = vrot.lane.b32.xlu0 %v2938_v25, %s10415_s11  ;;  %v1741_v44 = vrot.slane %v1739_v20, 4  ;;  %v1742_v50 = vrot.slane %v1588_v26, 5  ;;  %v1380_v48 = vshll.u32 %v1026_v9, 16  ;;  %v3471_v54 = vrot.slane %v3469_v19, 5  ;;  %v11883_v52 = vld [vmem:[#allocation2 + $0xb0] sm:$0x1] }
 0x1b6   : > { %3645 = vst.msk [vmem:[#allocation3 + $0x94] sm:$0xf] %vm2047_vm4, %v3562_v57  ;;  %v1384_v49 = vshrl.u32 %v1026_v9, 16  ;;  %v3482_v43 = vor.u32 %v3481_v37, %v11872_v10  ;;  %v1377_v57 = vor.u32 %v1376_v32, %v1373_v31  ;;  %v1390_v1 = vshll.u32 %v11883_v52, 16  ;;  %v3146_v3 = vld [vmem:[#allocation2 + $0xbc] sm:$0x1] }
 0x1b7   : > { %v3564_v2 = vpop.permute.xlu0 %3563  ;;  %1999 = vrot.lane.b32.xlu1 %v1911_v53, %s10416_s16  ;;  %v3468_v53 = vrot.slane %v3466_v39, 4  ;;  %v1743_v0 = vsel %vm10933_vm14, %v1741_v44, %v1742_v50  ;;  %v11892_v40 = vrot.slane %v1380_v48, 5  ;;  %v2121_v56 = vld [vmem:[#allocation2 + $0xb0] sm:$0x1]  ;;  %v2119_v12 = vld [vmem:[#allocation2 + $0xa8] sm:$0xf] }
 0x1b8   : > { %3646 = vst.msk [vmem:[#allocation3 + $0xa0] sm:$0xf] %vm2047_vm4, %v3564_v2  ;;  %v11894_v42 = vrot.slane %v1384_v49, 4  ;;  %v2939_v2 = vld [vmem:[#allocation2 + $0xb4] sm:$0xf]  ;;  %v11898_v6 = vrot.slane %v3482_v43, 4 }
 0x1b9   : > { %v2813_v24 = vpop.permute.xlu1 %2812  ;;  %2001 = vrot.lane.b32.xlu0 %v1912_v61, %s10416_s16  ;;  %v1740_v61 = vsel %vm10933_vm14, %v9393_v21, %v1739_v20  ;;  %v3472_v58 = vor.u32 %v3471_v54, %v3468_v53  ;;  %v11900_v17 = vrot.slane %v1377_v57, 4  ;;  %v2460_v22 = vshll.u32 %v2121_v56, 16  ;;  %v3702_v46 = vld [vmem:[#allocation2 + $0xac] sm:$0xf]  ;;  %v2940_v62 = vld [vmem:[#allocation2 + $0xb8] sm:$0xf] }
 0x1ba   : > { %2894 = vst.msk [vmem:[#allocation3 + $0xac] sm:$0xf] %vm1514_vm15, %v2813_v24  ;;  %v2441_v59 = vshrl.u32 %v2119_v12, 16  ;;  %v3485_v23 = vshll.u32 %v3146_v3, 16  ;;  %v2444_v15 = vshll.u32 %v2119_v12, 16  ;;  %v3847_v28 = vrot.slane %v3702_v46, 5 }
 0x1bb   : > { %v2815_v11 = vpop.permute.xlu0 %2814  ;;  %3585 = vrot.lane.b32.xlu1 %v3454_v41, %s10416_s16  ;;  %v2120_v41 = vld [vmem:[#allocation2 + $0xac] sm:$0xf]  ;;  %v1913_v30 = vld [vmem:[#allocation2 + $0xa8] sm:$0xf]  ;;  %v2462_v35 = vrot.slane %v2460_v22, 5  ;;  %v1387_v31 = vor.u32 %v11894_v42, %v11892_v40 }
 0x1bc   : > { %2895 = vst.msk [vmem:[#allocation3 + $0xb8] sm:$0xf] %vm1514_vm15, %v2815_v11  ;;  %v2450_v14 = vshll.u32 %v2120_v41, 16  ;;  %v2454_v24 = vshrl.u32 %v2120_v41, 16  ;;  %v1914_v26 = vld [vmem:[#allocation2 + $0xac] sm:$0xf] }
 0x1bd   : > { %v1787_v47 = vpop.permute.xlu1 %1786  ;;  %3587 = vrot.lane.b32.xlu0 %v3464_v55, %s10416_s16  ;;  %v3961_v5 = vld [vmem:[#allocation3 + $0x90] sm:$0xff]  ;;  %v3473_v55 = vrot.slane %v3472_v58, 4  ;;  %v11907_v39 = vld [vmem:[#allocation2 + $0xb8] sm:$0xf]  ;;  %v2446_v19 = vrot.slane %v2444_v15, 5  ;;  %v1392_v58 = vrot.slane %v1390_v1, 5 }
 0x1be   : > { %1869 = vst.msk [vmem:[#allocation3 + $0xa8] sm:$0xf] %vm1854_vm2, %v1787_v47  ;;  %v2452_v29 = vrot.slane %v2450_v14, 5  ;;  %v2456_v20 = vrot.slane %v2454_v24, 4  ;;  %v3701_v9 = vld [vmem:[#allocation2 + $0xa8] sm:$0xe] }
 0x1bf   : > { %v1789_v60 = vpop.permute.xlu0 %1788  ;;  %1472 = vrot.lane.b32.xlu1 %v1369_v45, %s10414_s29  ;;  %v3963_v36 = vld [vmem:[#allocation3 + $0x9c] sm:$0xff]  ;;  %v2443_v45 = vrot.slane %v2441_v59, 4  ;;  %v3703_v47 = vld [vmem:[#allocation2 + $0xb0] sm:$0x1]  ;;  %v3706_v44 = vld [vmem:[#allocation2 + $0xbc] sm:$0x1]  ;;  %v3478_v43 = vsel %vm10595_vm10, %v3473_v55, %v11872_v10 }
 0x1c0   : > { %v10171_v25 = vld [vmem:[#allocation3 + $0x94] ss:$12 sps:$4 sm:$0xff]   ;;  %1870 = vst.msk [vmem:[#allocation3 + $0xb4] sm:$0xf] %vm1854_vm2, %v1789_v60  ;;  %v9447_v51 = vcombine.low %v3961_v5, %v3963_v36  ;;  %v3849_v5 = vrot.slane %v3847_v28, 4  ;;  %v2457_v32 = vor.u32 %v2456_v20, %v2452_v29  ;;  %v3850_v21 = vrot.slane %v3703_v47, 5 }
 0x1c1   : > { %4521 = vmatprep.mubr.bf16.mxu0 %v10171_v25  ;;  %v3006_v18 = vpop.permute.xlu1 %3005  ;;  %2836 = vrot.lane.b32.xlu0 %v2766_v34, %s10414_s29  ;;  %v9424_v34 = vrot.slane %v3701_v9, 9  ;;  %v3704_v60 = vld [vmem:[#allocation2 + $0xb4] sm:$0xe]  ;;  %v3705_v36 = vld [vmem:[#allocation2 + $0xb8] sm:$0xf]  ;;  %v3487_v25 = vrot.slane %v3485_v23, 5 }
 0x1c2   : > { %3087 = vst.msk [vmem:[#allocation3 + $0xac] sm:$0xf] %vm1854_vm2, %v3006_v18  ;;  %4522 = vmatmul.mubr.bf16.gmra.mxu0 %v9447_v51  ;;  %v9425_v50 = vrot.slane %v3704_v60, 9  ;;  %v3854_v48 = vrot.slane %v3705_v36, 5  ;;  %v2458_v53 = vrot.slane %v2457_v32, 4  ;;  %v3851_v49 = vsel %vm10933_vm14, %v3849_v5, %v3850_v21 }
 0x1c3   : > { %v3008_v63 = vpop.permute.xlu0 %3007  ;;  %2838 = vrot.lane.b32.xlu1 %v2769_v27, %s10414_s29  ;;  %v2447_v27 = vor.u32 %v2446_v19, %v2443_v45  ;;  %v3848_v54 = vsel %vm10933_vm14, %v9424_v34, %v3847_v28  ;;  %v3857_v18 = vrot.slane %v3706_v44, 5  ;;  %3930 = vst.msk [vmem:[#allocation3 + $0x134] sm:$0xf] %vm244_vm0, %v3851_v49  ;;  %v2772_v42 = vrot.slane %v11907_v39, 5  ;;  %v1589_v14 = vld [vmem:[#allocation2 + $0xa8] sm:$0xe] }
 0x1c4   : > { %3088 = vst.msk [vmem:[#allocation3 + $0xb8] sm:$0xf] %vm1854_vm2, %v3008_v63  ;;  %v3856_v63 = vrot.slane %v3854_v48, 4  ;;  %v2463_v10 = vsel %vm10595_vm10, %v2458_v53, %v2462_v35  ;;  %v3488_v3 = vsel %vm10595_vm10, %v11898_v6, %v3487_v25  ;;  %v1388_v41 = vrot.slane %v1387_v31, 4  ;;  %v1591_v22 = vld [vmem:[#allocation2 + $0xb0] sm:$0x1] }
 0x1c5   : > { %v1980_v8 = vpop.permute.xlu1 %1979  ;;  %1810 = vrot.lane.b32.xlu0 %v1740_v61, %s10415_s11  ;;  %v2448_v57 = vrot.slane %v2447_v27, 4  ;;  %3929 = vst.msk [vmem:[#allocation3 + $0x128] sm:$0xf] %vm244_vm0, %v3848_v54  ;;  %v3855_v61 = vsel %vm10933_vm14, %v9425_v50, %v3854_v48  ;;  %2571 = vst.msk [vmem:[#allocation3 + $0x148] sm:$0xf] %vm244_vm0, %v2463_v10  ;;  %v1383_v6 = vsel %vm10595_vm10, %v11900_v17, %v11892_v40  ;;  %v2774_v55 = vrot.slane %v2772_v42, 4 }
 0x1c6   : > { %2062 = vst.msk [vmem:[#allocation3 + $0xa8] sm:$0xf] %vm2047_vm4, %v1980_v8  ;;  %v2618_v8 = vld [vmem:[#allocation2 + $0xb4] sm:$0xe]  ;;  %v3858_v1 = vsel %vm10933_vm14, %v3856_v63, %v3857_v18  ;;  %v3147_v15 = vld [vmem:[#allocation2 + $0xc0] sm:$0xf] }
 0x1c7   : > { %v1982_v13 = vpop.permute.xlu0 %1981  ;;  %1812 = vrot.lane.b32.xlu1 %v1743_v0, %s10415_s11  ;;  %3931 = vst.msk [vmem:[#allocation3 + $0x140] sm:$0xf] %vm244_vm0, %v3855_v61  ;;  %v2453_v52 = vsel %vm10595_vm10, %v2448_v57, %v2452_v29  ;;  %3932 = vst.msk [vmem:[#allocation3 + $0x14c] sm:$0xf] %vm244_vm0, %v3858_v1  ;;  %v9410_v24 = vrot.slane %v2618_v8, 9  ;;  %v9394_v29 = vrot.slane %v1589_v14, 9 }
 0x1c8   : > { %2063 = vst.msk [vmem:[#allocation3 + $0xb4] sm:$0xf] %vm2047_vm4, %v1982_v13  ;;  %v2620_v13 = vld [vmem:[#allocation2 + $0xbc] sm:$0x1]  ;;  %v3148_v20 = vld [vmem:[#allocation2 + $0xc4] sm:$0xf] }
 0x1c9   : > { %v3566_v11 = vpop.permute.xlu1 %3565  ;;  %3029 = vrot.lane.b32.xlu0 %v2939_v2, %s10415_s11  ;;  %v1590_v2 = vld [vmem:[#allocation2 + $0xac] sm:$0xf]  ;;  %2570 = vst.msk [vmem:[#allocation3 + $0x13c] sm:$0xf] %vm244_vm0, %v2453_v52  ;;  %v11954_v40 = vld [vmem:[#allocation2 + $0xb8] sm:$0xf]  ;;  %v2773_v45 = vsel %vm10933_vm14, %v9410_v24, %v2772_v42 }
 0x1ca   : > { %3647 = vst.msk [vmem:[#allocation3 + $0xac] sm:$0xf] %vm2047_vm4, %v3566_v11  ;;  %v1746_v59 = vrot.slane %v1590_v2, 5  ;;  %v1393_v11 = vsel %vm10595_vm10, %v1388_v41, %v1392_v58  ;;  %v3493_v39 = vshll.u32 %v3147_v15, 16  ;;  %v1028_v19 = vld [vmem:[#allocation2 + $0xb4] sm:$0xf] }
 0x1cb   : > { %v3568_v37 = vpop.permute.xlu0 %3567  ;;  %3031 = vrot.lane.b32.xlu1 %v2940_v62, %s10415_s11  ;;  %v1749_v5 = vrot.slane %v1591_v22, 5  ;;  %v3499_v32 = vshll.u32 %v3148_v20, 16  ;;  %v3503_v34 = vshrl.u32 %v3148_v20, 16  ;;  %v1395_v36 = vshrl.u32 %v1028_v19, 16  ;;  %v948_v48 = vld [vmem:[#allocation2 + $0xac] sm:$0xf] }
 0x1cc   : > { %3648 = vst.msk [vmem:[#allocation3 + $0xb8] sm:$0xf] %vm2047_vm4, %v3568_v37  ;;  %v10195_v35 = vld [vmem:[#allocation3 + $0x128] ss:$12 sps:$4 sm:$0xff]   ;;  %v1748_v47 = vrot.slane %v1746_v59, 4  ;;  %v1404_v37 = vshll.u32 %v11954_v40, 16  ;;  %v1747_v27 = vsel %vm10933_vm14, %v9394_v29, %v1746_v59 }
 0x1cd   : > { %v2817_v51 = vpop.permute.xlu1 %2816  ;;  %2003 = vrot.lane.b32.xlu0 %v1913_v30, %s10416_s16  ;;  %v2775_v30 = vrot.slane %v2620_v13, 5  ;;  %10033 = vmatprep.mubr.msk.bf16.mxu1 %vm4392_vm1, %v10195_v35  ;;  %v1398_v25 = vshll.u32 %v1028_v19, 16  ;;  %v3495_v50 = vrot.slane %v3493_v39, 5  ;;  %980 = vst.msk [vmem:[#allocation3 + $0x15c] sm:$0xf] %vm244_vm0, %v948_v48  ;;  %v11977_v49 = vrot.slane %v3499_v32, 5 }
 0x1ce   : > { %2896 = vst.msk [vmem:[#allocation3 + $0xc4] sm:$0xf] %vm1514_vm15, %v2817_v51  ;;  %v10196_v21 = vld [vmem:[#allocation3 + $0x140] ss:$12 sps:$4 sm:$0xff]   ;;  %v947_v51 = vld [vmem:[#allocation2 + $0xa8] sm:$0xf]  ;;  %v1750_v54 = vsel %vm10933_vm14, %v1748_v47, %v1749_v5 }
 0x1cf   : > { %v2819_v0 = vpop.permute.xlu0 %2818  ;;  %2005 = vrot.lane.b32.xlu1 %v1914_v26, %s10416_s16  ;;  %v3490_v26 = vshrl.u32 %v3147_v15, 16  ;;  %v2776_v31 = vsel %vm10933_vm14, %v2774_v55, %v2775_v30  ;;  %10034 = vmatmul.mubr.msk.bf16.gmra.mxu1 %vm4392_vm1, %v10196_v21  ;;  %979 = vst.msk [vmem:[#allocation3 + $0x150] sm:$0xf] %vm244_vm0, %v947_v51  ;;  %v3505_v18 = vrot.slane %v3503_v34, 4  ;;  %v1408_v57 = vshrl.u32 %v11954_v40, 16 }
 0x1d0   : > { %2897 = vst.msk [vmem:[#allocation3 + $0xd0] sm:$0xf] %vm1514_vm15, %v2819_v0  ;;  %v2941_v63 = vld [vmem:[#allocation2 + $0xc0] sm:$0xf]  ;;  %v3149_v0 = vld [vmem:[#allocation2 + $0xc8] sm:$0x1] }
 0x1d1   : > { %v1791_v56 = vpop.permute.xlu1 %1790  ;;  %3589 = vrot.lane.b32.xlu0 %v3478_v43, %s10416_s16  ;;  %v3965_v12 = vld [vmem:[#allocation3 + $0xa8] sm:$0xff]  ;;  %v3492_v44 = vrot.slane %v3490_v26, 4  ;;  %v11979_v43 = vrot.slane %v1404_v37, 5  ;;  %v1397_v58 = vrot.slane %v1395_v36, 4  ;;  %v1400_v42 = vrot.slane %v1398_v25, 5 }
 0x1d2   : > { %1871 = vst.msk [vmem:[#allocation3 + $0xc0] sm:$0xf] %vm1854_vm2, %v1791_v56  ;;  %v2123_v2 = vld [vmem:[#allocation2 + $0xb8] sm:$0xf]  ;;  %v2124_v10 = vld [vmem:[#allocation2 + $0xbc] sm:$0x1] }
 0x1d3   : > { %v1793_v46 = vpop.permute.xlu0 %1792  ;;  %3591 = vrot.lane.b32.xlu1 %v3488_v3, %s10416_s16  ;;  %v3967_v62 = vld [vmem:[#allocation3 + $0xb4] sm:$0xff]  ;;  %v3496_v8 = vor.u32 %v3495_v50, %v3492_v44  ;;  %v2122_v3 = vld [vmem:[#allocation2 + $0xb4] sm:$0xf]  ;;  %v1030_v52 = vld [vmem:[#allocation2 + $0xbc] sm:$0x1]  ;;  %v2474_v1 = vshll.u32 %v2123_v2, 16 }
 0x1d4   : > { %v10175_v23 = vld [vmem:[#allocation3 + $0xac] ss:$12 sps:$4 sm:$0xff]   ;;  %1872 = vst.msk [vmem:[#allocation3 + $0xcc] sm:$0xf] %vm1854_vm2, %v1793_v46  ;;  %v9450_v28 = vcombine.low %v3965_v12, %v3967_v62  ;;  %v2478_v56 = vshrl.u32 %v2123_v2, 16  ;;  %v2484_v12 = vshll.u32 %v2124_v10, 16 }
 0x1d5   : > { %4529 = vmatprep.mubr.bf16.mxu0 %v10175_v23  ;;  %v3010_v17 = vpop.permute.xlu1 %3009  ;;  %1474 = vrot.lane.b32.xlu0 %v1383_v6, %s10414_s29  ;;  %v2465_v13 = vshrl.u32 %v2122_v3, 16  ;;  %v2942_v14 = vld [vmem:[#allocation2 + $0xc4] sm:$0xf]  ;;  %v3506_v6 = vor.u32 %v3505_v18, %v11977_v49  ;;  %v3509_v24 = vshll.u32 %v3149_v0, 16  ;;  %v1410_v22 = vrot.slane %v1408_v57, 4 }
 0x1d6   : > { %3089 = vst.msk [vmem:[#allocation3 + $0xc4] sm:$0xf] %vm1854_vm2, %v3010_v17  ;;  %4530 = vmatmul.mubr.bf16.gmra.mxu0 %v9450_v28  ;;  %v2468_v59 = vshll.u32 %v2122_v3, 16  ;;  %v2476_v62 = vrot.slane %v2474_v1, 5  ;;  %v2480_v23 = vrot.slane %v2478_v56, 4  ;;  %v3497_v28 = vrot.slane %v3496_v8, 4 }
 0x1d7   : > { %v3012_v9 = vpop.permute.xlu0 %3011  ;;  %1476 = vrot.lane.b32.xlu1 %v1393_v11, %s10414_s29  ;;  %v2467_v55 = vrot.slane %v2465_v13, 4  ;;  %v1915_v15 = vld [vmem:[#allocation2 + $0xb4] sm:$0xf]  ;;  %v1401_v11 = vor.u32 %v1400_v42, %v1397_v58  ;;  %v1414_v20 = vshll.u32 %v1030_v52, 16  ;;  %v2486_v17 = vrot.slane %v2484_v12, 5 }
 0x1d8   : > { %3090 = vst.msk [vmem:[#allocation3 + $0xd0] sm:$0xf] %vm1854_vm2, %v3012_v9  ;;  %v2470_v30 = vrot.slane %v2468_v59, 5  ;;  %v2481_v40 = vor.u32 %v2480_v23, %v2476_v62  ;;  %v1916_v35 = vld [vmem:[#allocation2 + $0xb8] sm:$0xf]  ;;  %v3511_v26 = vrot.slane %v3509_v24, 5  ;;  %v1411_v39 = vor.u32 %v1410_v22, %v11979_v43 }
 0x1d9   : > { %v1984_v60 = vpop.permute.xlu1 %1983  ;;  %2840 = vrot.lane.b32.xlu0 %v2773_v45, %s10414_s29  ;;  %v3507_v45 = vrot.slane %v3506_v6, 4  ;;  %v2622_v19 = vld [vmem:[#allocation2 + $0xc4] sm:$0xf]  ;;  %v3502_v37 = vsel %vm10595_vm10, %v3497_v28, %v11977_v49  ;;  %v2621_v32 = vld [vmem:[#allocation2 + $0xc0] sm:$0xe]  ;;  %v1416_v48 = vrot.slane %v1414_v20, 5 }
 0x1da   : > { %2064 = vst.msk [vmem:[#allocation3 + $0xc0] sm:$0xf] %vm2047_vm4, %v1984_v60  ;;  %v2471_v9 = vor.u32 %v2470_v30, %v2467_v55  ;;  %v2482_v5 = vrot.slane %v2481_v40, 4  ;;  %v2779_v25 = vrot.slane %v2622_v19, 5  ;;  %v1412_v50 = vrot.slane %v1411_v39, 4 }
 0x1db   : > { %v1986_v53 = vpop.permute.xlu0 %1985  ;;  %2842 = vrot.lane.b32.xlu1 %v2776_v31, %s10414_s29  ;;  %v1402_v31 = vrot.slane %v1401_v11, 4  ;;  %v3512_v44 = vsel %vm10595_vm10, %v3507_v45, %v3511_v26  ;;  %v2623_v51 = vld [vmem:[#allocation2 + $0xc8] sm:$0x1]  ;;  %v3150_v18 = vld [vmem:[#allocation2 + $0xcc] sm:$0xf] }
 0x1dc   : > { %2065 = vst.msk [vmem:[#allocation3 + $0xcc] sm:$0xf] %vm2047_vm4, %v1986_v53  ;;  %v2472_v34 = vrot.slane %v2471_v9, 4  ;;  %v1593_v53 = vld [vmem:[#allocation2 + $0xb8] sm:$0xf]  ;;  %v2781_v58 = vrot.slane %v2779_v25, 4  ;;  %v1417_v2 = vsel %vm10595_vm10, %v1412_v50, %v1416_v48 }
 0x1dd   : > { %v3570_v61 = vpop.permute.xlu1 %3569  ;;  %1814 = vrot.lane.b32.xlu0 %v1747_v27, %s10415_s11  ;;  %v2487_v27 = vsel %vm10595_vm10, %v2482_v5, %v2486_v17  ;;  %v1407_v57 = vsel %vm10595_vm10, %v1402_v31, %v11979_v43  ;;  %v2782_v42 = vrot.slane %v2623_v51, 5  ;;  %v1753_v8 = vrot.slane %v1593_v53, 5  ;;  %v1594_v10 = vld [vmem:[#allocation2 + $0xbc] sm:$0x1]  ;;  %v3151_v1 = vld [vmem:[#allocation2 + $0xd0] sm:$0xf] }
 0x1de   : > { %3649 = vst.msk [vmem:[#allocation3 + $0xc4] sm:$0xf] %vm2047_vm4, %v3570_v61  ;;  %v9411_v61 = vrot.slane %v2621_v32, 9  ;;  %v3514_v3 = vshrl.u32 %v3150_v18, 16  ;;  %v5387_v56 = vld [vmem:[#allocation2] sm:$0xf] }
 0x1df   : > { %v3572_v41 = vpop.permute.xlu0 %3571  ;;  %1816 = vrot.lane.b32.xlu1 %v1750_v54, %s10415_s11  ;;  %2573 = vst.msk [vmem:[#allocation3 + $0x160] sm:$0xf] %vm244_vm0, %v2487_v27  ;;  %v2477_v54 = vsel %vm10595_vm10, %v2472_v34, %v2476_v62  ;;  %v5388_v13 = vld [vmem:[#allocation2 + $0x4] sm:$0xf]  ;;  %v949_v6 = vld [vmem:[#allocation2 + $0xb4] sm:$0xf]  ;;  %v2783_v22 = vsel %vm10933_vm14, %v2781_v58, %v2782_v42 }
 0x1e0   : > { %3650 = vst.msk [vmem:[#allocation3 + $0xd0] sm:$0xf] %vm2047_vm4, %v3572_v41  ;;  %v3517_v41 = vshll.u32 %v3150_v18, 16  ;;  %v2780_v12 = vsel %vm10933_vm14, %v9411_v61, %v2779_v25  ;;  %v1755_v59 = vrot.slane %v1753_v8, 4  ;;  %v3523_v62 = vshll.u32 %v3151_v1, 16 }
 0x1e1   : > { %v2821_v46 = vpop.permute.xlu1 %2820  ;;  %3033 = vrot.lane.b32.xlu0 %v2941_v63, %s10415_s11  ;;  %2572 = vst.msk [vmem:[#allocation3 + $0x154] sm:$0xf] %vm244_vm0, %v2477_v54  ;;  %v1592_v63 = vld [vmem:[#allocation2 + $0xb4] sm:$0xe]  ;;  %981 = vst.msk [vmem:[#allocation3 + $0x168] sm:$0xf] %vm244_vm0, %v949_v6 }
 0x1e2   : > { %2898 = vst.msk [vmem:[#allocation3 + $0xdc] sm:$0xf] %vm1514_vm15, %v2821_v46  ;;  %v9395_v43 = vrot.slane %v1592_v63, 9  ;;  %v1756_v46 = vrot.slane %v1594_v10, 5  ;;  %v3527_v23 = vshrl.u32 %v3151_v1, 16  ;;  %v3516_v55 = vrot.slane %v3514_v3, 4 }
 0x1e3   : > { %v2823_v29 = vpop.permute.xlu0 %2822  ;;  %3035 = vrot.lane.b32.xlu1 %v2942_v14, %s10415_s11  ;;  %v10179_v36 = vld [vmem:[#allocation3 + $0xc0] ss:$12 sps:$4 sm:$0xff]   ;;  %v5436_v11 = vshrl.u32 %v5387_v56, 16  ;;  %v5439_v30 = vshll.u32 %v5387_v56, 16  ;;  %v5449_v20 = vshrl.u32 %v5388_v13, 16 }
 0x1e4   : > { %2899 = vst.msk [vmem:[#allocation3 + $0xe8] sm:$0xf] %vm1514_vm15, %v2823_v29  ;;  %v950_v14 = vld [vmem:[#allocation2 + $0xb8] sm:$0xf]  ;;  %v5445_v29 = vshll.u32 %v5388_v13, 16  ;;  %v1754_v40 = vsel %vm10933_vm14, %v9395_v43, %v1753_v8  ;;  %v1757_v5 = vsel %vm10933_vm14, %v1755_v59, %v1756_v46  ;;  %v3529_v31 = vrot.slane %v3527_v23, 4 }
 0x1e5   : > { %v1795_v47 = vpop.permute.xlu1 %1794  ;;  %2007 = vrot.lane.b32.xlu0 %v1915_v15, %s10416_s16  ;;  %982 = vst.msk [vmem:[#allocation3 + $0x174] sm:$0xf] %vm244_vm0, %v950_v14  ;;  %v3519_v15 = vrot.slane %v3517_v41, 5  ;;  %v2126_v17 = vld [vmem:[#allocation2 + $0xc4] sm:$0xf]  ;;  %v5438_v50 = vrot.slane %v5436_v11, 4 }
 0x1e6   : > { %1873 = vst.msk [vmem:[#allocation3 + $0xd8] sm:$0xf] %vm1854_vm2, %v1795_v47  ;;  %v2125_v45 = vld [vmem:[#allocation2 + $0xc0] sm:$0xf]  ;;  %v2498_v39 = vshll.u32 %v2126_v17, 16  ;;  %v2502_v19 = vshrl.u32 %v2126_v17, 16 }
 0x1e7   : > { %v1797_v21 = vpop.permute.xlu0 %1796  ;;  %2009 = vrot.lane.b32.xlu1 %v1916_v35, %s10416_s16  ;;  %v10177_v60 = vld [vmem:[#allocation3 + $0xc4] ss:$12 sps:$4 sm:$0xff]   ;;  %v2489_v47 = vshrl.u32 %v2125_v45, 16  ;;  %v2492_v32 = vshll.u32 %v2125_v45, 16  ;;  %v2943_v27 = vld [vmem:[#allocation2 + $0xcc] sm:$0xf] }
 0x1e8   : > { %1874 = vst.msk [vmem:[#allocation3 + $0xe4] sm:$0xf] %vm1854_vm2, %v1797_v21  ;;  %4537 = vmatprep.mubr.bf16.mxu0 %v10177_v60  ;;  %v2127_v35 = vld [vmem:[#allocation2 + $0xc8] sm:$0x1]  ;;  %v3152_v21 = vld [vmem:[#allocation2 + $0xd4] sm:$0x1] }
 0x1e9   : > { %v3014_v49 = vpop.permute.xlu1 %3013  ;;  %3593 = vrot.lane.b32.xlu0 %v3502_v37, %s10416_s16  ;;  %4538 = vmatmul.mubr.bf16.gmra.mxu0 %v10179_v36  ;;  %v2508_v9 = vshll.u32 %v2127_v35, 16  ;;  %v12034_v37 = vrot.slane %v3523_v62, 5  ;;  %v2500_v60 = vrot.slane %v2498_v39, 5  ;;  %v2504_v36 = vrot.slane %v2502_v19, 4  ;;  %v2944_v61 = vld [vmem:[#allocation2 + $0xd0] sm:$0xf] }
 0x1ea   : > { %3091 = vst.msk [vmem:[#allocation3 + $0xdc] sm:$0xf] %vm1854_vm2, %v3014_v49  ;;  %v2491_v25 = vrot.slane %v2489_v47, 4  ;;  %v5441_v48 = vrot.slane %v5439_v30, 5  ;;  %v2494_v51 = vrot.slane %v2492_v32, 5  ;;  %v12039_v54 = vrot.slane %v5445_v29, 5 }
 0x1eb   : > { %v3016_v0 = vpop.permute.xlu0 %3015  ;;  %3595 = vrot.lane.b32.xlu1 %v3512_v44, %s10416_s16  ;;  %v3520_v44 = vor.u32 %v3519_v15, %v3516_v55  ;;  %v5451_v49 = vrot.slane %v5449_v20, 4  ;;  %v2505_v18 = vor.u32 %v2504_v36, %v2500_v60  ;;  %v3530_v63 = vor.u32 %v3529_v31, %v12034_v37  ;;  %v5389_v58 = vld [vmem:[#allocation2 + $0x8] sm:$0x1]  ;;  %v1917_v3 = vld [vmem:[#allocation2 + $0xc0] sm:$0xf] }
 0x1ec   : > { %3092 = vst.msk [vmem:[#allocation3 + $0xe8] sm:$0xf] %vm1854_vm2, %v3016_v0  ;;  %v3533_v0 = vshll.u32 %v3152_v21, 16  ;;  %v2495_v42 = vor.u32 %v2494_v51, %v2491_v25  ;;  %v5455_v14 = vshll.u32 %v5389_v58, 16  ;;  %v3707_v39 = vld [vmem:[#allocation2 + $0xc0] sm:$0xe] }
 0x1ed   : > { %v1988_v52 = vpop.permute.xlu1 %1987  ;;  %1478 = vrot.lane.b32.xlu0 %v1407_v57, %s10414_s29  ;;  %v2510_v57 = vrot.slane %v2508_v9, 5  ;;  %v2506_v10 = vrot.slane %v2505_v18, 4  ;;  %v3521_v41 = vrot.slane %v3520_v44, 4  ;;  %v5452_v13 = vor.u32 %v5451_v49, %v12039_v54  ;;  %v3709_v19 = vld [vmem:[#allocation2 + $0xc8] sm:$0x1] }
 0x1ee   : > { %2066 = vst.msk [vmem:[#allocation3 + $0xd8] sm:$0xf] %vm2047_vm4, %v1988_v52  ;;  %v5442_v52 = vor.u32 %v5441_v48, %v5438_v50  ;;  %v2496_v43 = vrot.slane %v2495_v42, 4  ;;  %v3531_v59 = vrot.slane %v3530_v63, 4  ;;  %v3535_v46 = vrot.slane %v3533_v0, 5  ;;  %v12079_v36 = vld [vmem:[%s14438_s3 + $0x88] sm:$0xff]  }
 0x1ef   : > { %v1990_v24 = vpop.permute.xlu0 %1989  ;;  %1480 = vrot.lane.b32.xlu1 %v1417_v2, %s10414_s29  ;;  %v2511_v6 = vsel %vm10595_vm10, %v2506_v10, %v2510_v57  ;;  %v3526_v55 = vsel %vm10595_vm10, %v3521_v41, %v12034_v37  ;;  %v5453_v11 = vrot.slane %v5452_v13, 4  ;;  %v5457_v30 = vrot.slane %v5455_v14, 5  ;;  %v3711_v9 = vld [vmem:[#allocation2 + $0xd0] sm:$0xf]  ;;  %v3712_v21 = vld [vmem:[#allocation2 + $0xd4] sm:$0x1]  ;;  %10041 = vmatprep.subr.bf16.mxu0 %v12079_v36 }
 0x1f0   : > { %2067 = vst.msk [vmem:[#allocation3 + $0xe4] sm:$0xf] %vm2047_vm4, %v1990_v24  ;;  %v2501_v62 = vsel %vm10595_vm10, %v2496_v43, %v2500_v60  ;;  %v5443_v15 = vrot.slane %v5442_v52, 4  ;;  %v3536_v29 = vsel %vm10595_vm10, %v3531_v59, %v3535_v46  ;;  %v9426_v47 = vrot.slane %v3707_v39, 9  ;;  %v12074_v60 = vpop.f32.mrf.mxu1  ;;  %v10210_v48 = vld [vmem:[%s14438_s3 + $0x80] sm:$0xff]   ;;  %10042 = vmatpush3.bf16.msra.mxu0 %v12079_v36 }
 0x1f1   : > { %v3574_v28 = vpop.permute.xlu1 %3573  ;;  %2844 = vrot.lane.b32.xlu0 %v2780_v12, %s10414_s29  ;;  %2575 = vst.msk [vmem:[#allocation3 + $0x178] sm:$0xf] %vm244_vm0, %v2511_v6  ;;  %2574 = vst.msk [vmem:[#allocation3 + $0x16c] sm:$0xf] %vm244_vm0, %v2501_v62  ;;  %v3864_v37 = vrot.slane %v3709_v19, 5  ;;  %v3868_v31 = vrot.slane %v3711_v9, 5  ;;  %10043 = vmatprep.subr.bf16.mxu0 %v10210_v48 }
 0x1f2   : > { %3651 = vst.msk [vmem:[#allocation3 + $0xdc] sm:$0xf] %vm2047_vm4, %v3574_v28  ;;  %v5448_v17 = vsel %vm10595_vm10, %v5443_v15, %v12039_v54  ;;  %v8105_v54 = vld [vmem:[#allocation2 + $0xd0] sm:$0xf]  ;;  %v8104_v18 = vld [vmem:[#allocation2 + $0xcc] sm:$0xe]  ;;  %v4636_v42 = vpop.f32.mrf.mxu1 }
 0x1f3   : > { %v3576_v26 = vpop.permute.xlu0 %3575  ;;  %2846 = vrot.lane.b32.xlu1 %v2783_v22, %s10414_s29  ;;  %v1918_v22 = vld [vmem:[#allocation2 + $0xc4] sm:$0xf]  ;;  %v3870_v50 = vrot.slane %v3868_v31, 4  ;;  %v8106_v57 = vld [vmem:[#allocation2 + $0xd4] sm:$0x1] }
 0x1f4   : > { %3652 = vst.msk [vmem:[#allocation3 + $0xe8] sm:$0xf] %vm2047_vm4, %v3576_v26  ;;  %v5458_v26 = vsel %vm10595_vm10, %v5453_v11, %v5457_v30  ;;  %v12105_v52 = vld [vmem:[%s14437_s2] ss:$0 sm:$0xff]  ;;  %10044 = vmatpush3.bf16.msra.mxu0 %v10210_v48 }
 0x1f5   : > { %v2825_v34 = vpop.permute.xlu1 %2824  ;;  %1818 = vrot.lane.b32.xlu0 %v1754_v40, %s10415_s11  ;;  %v3708_v40 = vld [vmem:[#allocation2 + $0xc4] sm:$0xf] }
 0x1f6   : > { %2900 = vst.msk [vmem:[#allocation3 + $0xf4] sm:$0xf] %vm1514_vm15, %v2825_v34  ;;  %v3861_v35 = vrot.slane %v3708_v40, 5  ;;  %v3710_v34 = vld [vmem:[#allocation2 + $0xcc] sm:$0xe] }
 0x1f7   : > { %1820 = vrot.lane.b32.xlu1 %v1757_v5, %s10415_s11  ;;  %v2827_v53 = vpop.permute.xlu0 %2826  ;;  %v9427_v44 = vrot.slane %v3710_v34, 9 }
 0x1f8   : > { %2901 = vst.msk [vmem:[#allocation3 + $0x100] sm:$0xf] %vm1514_vm15, %v2827_v53  ;;  %v3863_v5 = vrot.slane %v3861_v35, 4  ;;  %v3862_v25 = vsel %vm10933_vm14, %v9426_v47, %v3861_v35  ;;  %v3871_v53 = vrot.slane %v3712_v21, 5 }
 0x1f9   : > { %v1799_v8 = vpop.permute.xlu1 %1798  ;;  %3037 = vrot.lane.b32.xlu0 %v2943_v27, %s10415_s11  ;;  %v3973_v2 = vld [vmem:[#allocation3 + $0xd8] sm:$0xff]  ;;  %3933 = vst.msk [vmem:[#allocation3 + $0x158] sm:$0xf] %vm244_vm0, %v3862_v25  ;;  %v3869_v49 = vsel %vm10933_vm14, %v9427_v44, %v3868_v31 }
 0x1fa   : > { %1875 = vst.msk [vmem:[#allocation3 + $0xf0] sm:$0xf] %vm1854_vm2, %v1799_v8  ;;  %v3865_v27 = vsel %vm10933_vm14, %v3863_v5, %v3864_v37  ;;  %v3872_v0 = vsel %vm10933_vm14, %v3870_v50, %v3871_v53  ;;  %v5211_v37 = vld [vmem:[#allocation2 + $0xc] sm:$0xf]  ;;  %v5215_v50 = vld [vmem:[#allocation2 + $0x14] sm:$0x1] }
 0x1fb   : > { %3039 = vrot.lane.b32.xlu1 %v2944_v61, %s10415_s11  ;;  %v3975_v1 = vld [vmem:[#allocation3 + $0xe4] sm:$0xff]  ;;  %v1801_v12 = vpop.permute.xlu0 %1800  ;;  %3934 = vst.msk [vmem:[#allocation3 + $0x164] sm:$0xf] %vm244_vm0, %v3865_v27  ;;  %v8262_v61 = vrot.slane %v8105_v54, 5  ;;  %3935 = vst.msk [vmem:[#allocation3 + $0x170] sm:$0xf] %vm244_vm0, %v3869_v49 }
 0x1fc   : > { %v10182_v56 = vld [vmem:[#allocation3 + $0xdc] ss:$12 sps:$4 sm:$0xff]   ;;  %1876 = vst.msk [vmem:[#allocation3 + $0xfc] sm:$0xf] %vm1854_vm2, %v1801_v12  ;;  %v9456_v24 = vcombine.low %v3973_v2, %v3975_v1  ;;  %v9590_v2 = vrot.slane %v8104_v18, 9  ;;  %v12108_v12 = vpop.f32.mrf.mxu1 }
 0x1fd   : > { %4545 = vmatprep.mubr.bf16.mxu0 %v10182_v56  ;;  %v3018_v23 = vpop.permute.xlu1 %3017  ;;  %2011 = vrot.lane.b32.xlu0 %v1917_v3, %s10416_s16  ;;  %3936 = vst.msk [vmem:[#allocation3 + $0x17c] sm:$0xf] %vm244_vm0, %v3872_v0  ;;  %v8264_v10 = vrot.slane %v8262_v61, 4  ;;  %v8265_v3 = vrot.slane %v8106_v57, 5 }
 0x1fe   : > { %3093 = vst.msk [vmem:[#allocation3 + $0xf4] sm:$0xf] %vm1854_vm2, %v3018_v23  ;;  %4546 = vmatmul.mubr.bf16.gmra.mxu0 %v9456_v24  ;;  %v8263_v59 = vsel %vm10933_vm14, %v9590_v2, %v8262_v61  ;;  %v4639_v11 = vpop.f32.mrf.mxu1 }
 0x1ff   : > { %2013 = vrot.lane.b32.xlu1 %v1918_v22, %s10416_s16  ;;  %v3020_v28 = vpop.permute.xlu0 %3019  ;;  %v8266_v46 = vsel %vm10933_vm14, %v8264_v10, %v8265_v3 }
 0x200   : > { %3094 = vst.msk [vmem:[#allocation3 + $0x100] sm:$0xf] %vm1854_vm2, %v3020_v28 }
 0x201   : > { %v1992_v20 = vpop.permute.xlu1 %1991  ;;  %3597 = vrot.lane.b32.xlu0 %v3526_v55, %s10416_s16 }
 0x202   : > { %2068 = vst.msk [vmem:[#allocation3 + $0xf0] sm:$0xf] %vm2047_vm4, %v1992_v20  ;;  %v10207_v13 = vld [vmem:[#allocation3 + $0x158] ss:$12 sps:$4 sm:$0xff]  }
 0x203   : > { %3599 = vrot.lane.b32.xlu1 %v3536_v29, %s10416_s16  ;;  %v1994_v45 = vpop.permute.xlu0 %1993  ;;  %10037 = vmatprep.mubr.msk.bf16.mxu1 %vm4392_vm1, %v10207_v13 }
 0x204   : > { %2069 = vst.msk [vmem:[#allocation3 + $0xfc] sm:$0xf] %vm2047_vm4, %v1994_v45  ;;  %v10209_v28 = vld [vmem:[#allocation3 + $0x170] ss:$12 sps:$4 sm:$0xff]  }
 0x205   : > { %v3578_v32 = vpop.permute.xlu1 %3577  ;;  %5819 = vrot.lane.b32.xlu0 %v5448_v17, %s10414_s29  ;;  %8329 = vst.msk [vmem:[#allocation3 + $0x170] sm:$0xf] %vm244_vm0, %v8263_v59  ;;  %8330 = vst.msk [vmem:[#allocation3 + $0x17c] sm:$0xf] %vm244_vm0, %v8266_v46  ;;  %10038 = vmatmul.mubr.msk.bf16.gmra.mxu1 %vm4392_vm1, %v10209_v28  ;;  %v5949_v28 = vld [vmem:[#allocation2 + $0x8] sm:$0x1] }
 0x206   : > { %3653 = vst.msk [vmem:[#allocation3 + $0xf4] sm:$0xf] %vm2047_vm4, %v3578_v32 }
 0x207   : > { %v3580_v51 = vpop.permute.xlu0 %3579  ;;  %5821 = vrot.lane.b32.xlu1 %v5458_v26, %s10414_s29 }
 0x208   : > { %3654 = vst.msk [vmem:[#allocation3 + $0x100] sm:$0xf] %vm2047_vm4, %v3580_v51 }
 0x209   : > { %v2829_v63 = vpop.permute.xlu1 %2828 }
 0x20a   : > { %2902 = vst.msk [vmem:[#allocation3 + $0x10c] sm:$0xf] %vm1514_vm15, %v2829_v63  ;;  %v9761_v58 = vpop.f32.mrf.mxu0 }
 0x20b   : > { %v2831_v8 = vpop.permute.xlu0 %2830  ;;  %v10186_v22 = vld [vmem:[#allocation3 + $0xf0] ss:$12 sps:$4 sm:$0xff]  }
 0x20c   : > { %v9762_v41 = vpop.f32.mrf.mxu0  ;;  %2903 = vst.msk [vmem:[#allocation3 + $0x118] sm:$0xf] %vm1514_vm15, %v2831_v8 }
 0x20d   : > { %v9763_v43 = vadd.f32 %v9762_v41, %v9761_v58  ;;  %v1803_v1 = vpop.permute.xlu1 %1802 }
 0x20e   : > { %1877 = vst.msk [vmem:[#allocation3 + $0x108] sm:$0xf] %vm1854_vm2, %v1803_v1  ;;  %v9764_v56 = vpop.f32.mrf.mxu0 }
 0x20f   : > { %v4476_v14 = vadd.f32 %v9763_v43, %v12105_v52  ;;  %v1805_v6 = vpop.permute.xlu0 %1804  ;;  %v10184_v24 = vld [vmem:[#allocation3 + $0xf4] ss:$12 sps:$4 sm:$0xff]  }
 0x210   : > { %v9765_v62 = vpop.f32.mrf.mxu0  ;;  %1878 = vst.msk [vmem:[#allocation3 + $0x114] sm:$0xf] %vm1854_vm2, %v1805_v6  ;;  %4553 = vmatprep.mubr.bf16.mxu0 %v10184_v24 }
 0x211   : > { %v9766_v23 = vadd.f32 %v9765_v62, %v9764_v56  ;;  %v4637_v55 = vadd.f32 %v4636_v42, %v4476_v14  ;;  %v3022_v15 = vpop.permute.xlu1 %3021  ;;  %4554 = vmatmul.mubr.bf16.gmra.mxu0 %v10186_v22  ;;  %v5948_v56 = vld [vmem:[#allocation2 + $0x4] sm:$0xf]  ;;  %v5947_v22 = vld [vmem:[#allocation2] sm:$0xe] }
 0x212   : > { %3095 = vst.msk [vmem:[#allocation3 + $0x10c] sm:$0xf] %vm1854_vm2, %v3022_v15  ;;  %v6045_v59 = vrot.slane %v5948_v56, 5 }
 0x213   : > { %v4763_v30 = vmax.f32 %v4637_v55, 0.0  ;;  %v4479_v29 = vadd.f32 %v9766_v23, %v12105_v52  ;;  %v3024_v20 = vpop.permute.xlu0 %3023 }
 0x214   : > { %3096 = vst.msk [vmem:[#allocation3 + $0x118] sm:$0xf] %vm1854_vm2, %v3024_v20 }
 0x215   : > { %v9712_v40 = vpack.c.bf16 %v4763_v30, %v4763_v30  ;;  %v4640_v17 = vadd.f32 %v4639_v11, %v4479_v29  ;;  %v1996_v35 = vpop.permute.xlu1 %1995  ;;  %v9543_v29 = vrot.slane %v5947_v22, 9 }
 0x216   : > { %2070 = vst.msk [vmem:[#allocation3 + $0x108] sm:$0xf] %vm2047_vm4, %v1996_v35  ;;  %v6047_v35 = vrot.slane %v6045_v59, 4 }
 0x217   : > { %v4892_v45 = vshrl.u32 %v9712_v40, 16  ;;  %v4764_v26 = vmax.f32 %v4640_v17, 0.0  ;;  %v1998_v39 = vpop.permute.xlu0 %1997  ;;  %v4895_v9 = vshll.u32 %v9712_v40, 16 }
 0x218   : > { %2071 = vst.msk [vmem:[#allocation3 + $0x114] sm:$0xf] %vm2047_vm4, %v1998_v39 }
 0x219   : > { %v4894_v19 = vrot.slane %v4892_v45, 7  ;;  %v9713_v47 = vpack.c.bf16 %v4764_v26, %v4764_v26  ;;  %v3582_v5 = vpop.permute.xlu1 %3581 }
 0x21a   : > { %3655 = vst.msk [vmem:[#allocation3 + $0x10c] sm:$0xf] %vm2047_vm4, %v3582_v5 }
 0x21b   : > { %v4897_v31 = vor.u32 %v4895_v9, %v4894_v19  ;;  %v4900_v32 = vshrl.u32 %v9713_v47, 16  ;;  %v3584_v34 = vpop.permute.xlu0 %3583  ;;  %v4903_v27 = vshll.u32 %v9713_v47, 16  ;;  %v4898_v51 = vrot.slane %v4894_v19, 4 }
 0x21c   : > { %3656 = vst.msk [vmem:[#allocation3 + $0x118] sm:$0xf] %vm2047_vm4, %v3584_v34  ;;  %v6048_v19 = vrot.slane %v5949_v28, 5 }
 0x21d   : > { %v5212_v21 = vsel %vm10622_vm11, %v4897_v31, %v5211_v37  ;;  %v4902_v25 = vrot.slane %v4900_v32, 7  ;;  %v2833_v44 = vpop.permute.xlu1 %2832  ;;  %v5323_v31 = vld [vmem:[#allocation2] sm:$0xf]  ;;  %v5218_v32 = vld [vmem:[#allocation2 + $0x18] sm:$0xf] }
 0x21e   : > { %5213 = vst [vmem:[#allocation2 + $0xc] sm:$0xf] %v5212_v21  ;;  %2904 = vst.msk [vmem:[#allocation3 + $0x124] sm:$0xf] %vm1514_vm15, %v2833_v44  ;;  %v9767_v48 = vpop.f32.mrf.mxu0  ;;  %v6046_v21 = vsel %vm10933_vm14, %v9543_v29, %v6045_v59  ;;  %v10215_v44 = vld [vmem:[%s14438_s3 + $0x78] sm:$0xff]  }
 0x21f   : > { %v4905_v53 = vor.u32 %v4903_v27, %v4902_v25  ;;  %v4907_v54 = vrot.slane %v4902_v25, 4  ;;  %v2835_v49 = vpop.permute.xlu0 %2834  ;;  %v10191_v10 = vld [vmem:[#allocation3 + $0x108] ss:$12 sps:$4 sm:$0xff]   ;;  %5355 = vst.msk [vmem:[#allocation3] sm:$0xf] %vm244_vm0, %v5323_v31  ;;  %9875 = vmatprep.subr.bf16.mxu1 %v10215_v44 }
 0x220   : > { %v9768_v18 = vpop.f32.mrf.mxu0  ;;  %2905 = vst.msk [vmem:[#allocation3 + $0x130] sm:$0xf] %vm1514_vm15, %v2835_v49  ;;  %v5222_v49 = vld [vmem:[#allocation2 + $0x20] sm:$0x1] }
 0x221   : > { %v4906_v57 = vsel %vm10587_vm9, %v4898_v51, %v4905_v53  ;;  %v5216_v61 = vsel %vm10578_vm8, %v4907_v54, %v5215_v50  ;;  %v9769_v63 = vadd.f32 %v9768_v18, %v9767_v48  ;;  %v1807_v0 = vpop.permute.xlu1 %1806  ;;  %v5324_v53 = vld [vmem:[#allocation2 + $0x4] sm:$0xf]  ;;  %v10216_v54 = vld [vmem:[%s14438_s3 + $0x38] sm:$0xff]   ;;  %v12167_v18 = vpop.f32.mrf.mxu1 }
 0x222   : > { %5214 = vst.msk [vmem:[#allocation2 + $0x10] sm:$0xf] %vm244_vm0, %v4906_v57  ;;  %5217 = vst [vmem:[#allocation2 + $0x14] sm:$0x1] %v5216_v61  ;;  %v9770_v58 = vpop.f32.mrf.mxu0  ;;  %v6049_v57 = vsel %vm10933_vm14, %v6047_v35, %v6048_v19  ;;  %9876 = vmatpush3.bf16.msra.mxu1 %v10216_v54  ;;  %v10220_v35 = vld [vmem:[%s14438_s3 + $0x28] sm:$0xff]   ;;  %v10221_v19 = vld [vmem:[%s14438_s3 + $0x60] sm:$0xff]  }
 0x223   : > { %1879 = vst.msk [vmem:[#allocation3 + $0x120] sm:$0xf] %vm1854_vm2, %v1807_v0  ;;  %v4484_v42 = vadd.f32 %v9769_v63, %v12105_v52  ;;  %v1809_v8 = vpop.permute.xlu0 %1808  ;;  %v10189_v2 = vld [vmem:[#allocation3 + $0x10c] ss:$12 sps:$4 sm:$0xff]  }
 0x224   : > { %v9771_v3 = vpop.f32.mrf.mxu0  ;;  %1880 = vst.msk [vmem:[#allocation3 + $0x12c] sm:$0xf] %vm1854_vm2, %v1809_v8  ;;  %4561 = vmatprep.mubr.bf16.mxu0 %v10189_v2  ;;  %v10217_v63 = vld [vmem:[%s14438_s3 + $0x70] sm:$0xff]  }
 0x225   : > { %v4645_v41 = vadd.f32 %v12074_v60, %v4484_v42  ;;  %v9772_v43 = vadd.f32 %v9771_v3, %v9770_v58  ;;  %v3026_v1 = vpop.permute.xlu1 %3025  ;;  %4562 = vmatmul.mubr.bf16.gmra.mxu0 %v10191_v10  ;;  %v6971_v24 = vld [vmem:[#allocation2 + $0xc] sm:$0xe]  ;;  %5356 = vst.msk [vmem:[#allocation3 + $0xc] sm:$0xf] %vm244_vm0, %v5324_v53  ;;  %v10218_v3 = vld [vmem:[%s14438_s3 + $0x30] sm:$0xff]   ;;  %9877 = vmatprep.subr.bf16.mxu1 %v10217_v63 }
 0x226   : > { %3097 = vst.msk [vmem:[#allocation3 + $0x124] sm:$0xf] %vm1854_vm2, %v3026_v1  ;;  %v5325_v46 = vld [vmem:[#allocation2 + $0xc] sm:$0xf]  ;;  %v9559_v11 = vrot.slane %v6971_v24, 9  ;;  %9878 = vmatpush3.bf16.msra.mxu1 %v10218_v3  ;;  %v10224_v3 = vld [vmem:[%s14438_s3 + $0x58] sm:$0xff]  }
 0x227   : > { %v4765_v13 = vmax.f32 %v4645_v41, 0.0  ;;  %v4487_v14 = vadd.f32 %v9772_v43, %v12105_v52  ;;  %v3028_v6 = vpop.permute.xlu0 %3027  ;;  %5357 = vst.msk [vmem:[#allocation3 + $0x18] sm:$0xf] %vm244_vm0, %v5325_v46  ;;  %v6475_v45 = vld [vmem:[#allocation2 + $0xc] sm:$0xf] }
 0x228   : > { %3098 = vst.msk [vmem:[#allocation3 + $0x130] sm:$0xf] %vm1854_vm2, %v3028_v6  ;;  %v6524_v25 = vshrl.u32 %v6475_v45, 16  ;;  %v6527_v27 = vshll.u32 %v6475_v45, 16  ;;  %v12182_v43 = vld [vmem:[#allocation2 + $0xc] sm:$0xf] }
 0x229   : > { %v9714_v62 = vpack.c.bf16 %v4765_v13, %v4765_v13  ;;  %v4648_v60 = vadd.f32 %v12108_v12, %v4487_v14  ;;  %v2000_v23 = vpop.permute.xlu1 %1999  ;;  %v6972_v55 = vld [vmem:[#allocation2 + $0x10] sm:$0xf]  ;;  %v6973_v15 = vld [vmem:[#allocation2 + $0x14] sm:$0x1]  ;;  %v10219_v14 = vld [vmem:[%s14438_s3 + $0x68] sm:$0xff]  }
 0x22a   : > { %2072 = vst.msk [vmem:[#allocation3 + $0x120] sm:$0xf] %vm2047_vm4, %v2000_v23  ;;  %v7069_v30 = vrot.slane %v6972_v55, 5  ;;  %v7072_v39 = vrot.slane %v6973_v15, 5  ;;  %v6476_v61 = vld [vmem:[#allocation2 + $0x10] sm:$0xf]  ;;  %v4652_v23 = vpop.f32.mrf.mxu1  ;;  %9879 = vmatprep.subr.bf16.mxu1 %v10219_v14 }
 0x22b   : > { %v4909_v20 = vshrl.u32 %v9714_v62, 16  ;;  %v4766_v40 = vmax.f32 %v4648_v60, 0.0  ;;  %v2002_v17 = vpop.permute.xlu0 %2001  ;;  %v4912_v47 = vshll.u32 %v9714_v62, 16  ;;  %v6533_v2 = vshll.u32 %v6476_v61, 16  ;;  %v6477_v10 = vld [vmem:[#allocation2 + $0x14] sm:$0x1]  ;;  %9880 = vmatpush3.bf16.msra.mxu1 %v10220_v35 }
 0x22c   : > { %v7070_v26 = vsel %vm10933_vm14, %v9559_v11, %v7069_v30  ;;  %2073 = vst.msk [vmem:[#allocation3 + $0x12c] sm:$0xf] %vm2047_vm4, %v2002_v17  ;;  %v7071_v12 = vrot.slane %v7069_v30, 4  ;;  %v6537_v1 = vshrl.u32 %v6476_v61, 16  ;;  %v6526_v56 = vrot.slane %v6524_v25, 4  ;;  %9881 = vmatprep.subr.bf16.mxu1 %v10221_v19  ;;  %v10225_v14 = vld [vmem:[%s14438_s3 + $0x18] sm:$0xff]  }
 0x22d   : > { %v12149_v9 = vrot.slane %v4909_v20, 7  ;;  %v9715_v5 = vpack.c.bf16 %v4766_v40, %v4766_v40  ;;  %7179 = vrot.lane.b32.xlu0 %v7070_v26, %s10414_s29  ;;  %v3586_v37 = vpop.permute.xlu1 %3585  ;;  %v6529_v13 = vrot.slane %v6527_v27, 5  ;;  %v6535_v46 = vrot.slane %v6533_v2, 5  ;;  %v5326_v62 = vld [vmem:[#allocation2 + $0x10] sm:$0xf] }
 0x22e   : > { %3657 = vst.msk [vmem:[#allocation3 + $0x124] sm:$0xf] %vm2047_vm4, %v3586_v37  ;;  %v7073_v34 = vsel %vm10933_vm14, %v7071_v12, %v7072_v39  ;;  %v5391_v55 = vld [vmem:[#allocation2 + $0x10] sm:$0xf]  ;;  %v6543_v28 = vshll.u32 %v6477_v10, 16  ;;  %v6539_v11 = vrot.slane %v6537_v1, 4 }
 0x22f   : > { %v4914_v50 = vor.u32 %v4912_v47, %v12149_v9  ;;  %v4917_v48 = vshrl.u32 %v9715_v5, 16  ;;  %7181 = vrot.lane.b32.xlu1 %v7073_v34, %s10414_s29  ;;  %v3588_v51 = vpop.permute.xlu0 %3587  ;;  %v4920_v42 = vshll.u32 %v9715_v5, 16  ;;  %v4915_v6 = vrot.slane %v12149_v9, 4  ;;  %5358 = vst.msk [vmem:[#allocation3 + $0x24] sm:$0xf] %vm244_vm0, %v5326_v62  ;;  %v12206_v34 = vpop.f32.mrf.mxu1 }
 0x230   : > { %3658 = vst.msk [vmem:[#allocation3 + $0x130] sm:$0xf] %vm2047_vm4, %v3588_v51  ;;  %v6530_v15 = vor.u32 %v6529_v13, %v6526_v56  ;;  %v5460_v17 = vshrl.u32 %v12182_v43, 16  ;;  %v5463_v26 = vshll.u32 %v12182_v43, 16  ;;  %v6540_v39 = vor.u32 %v6539_v11, %v6535_v46  ;;  %v6283_v10 = vld [vmem:[#allocation2 + $0xc] sm:$0xf] }
 0x231   : > { %v5219_v0 = vsel %vm10622_vm11, %v4914_v50, %v5218_v32  ;;  %v4919_v58 = vrot.slane %v4917_v48, 7  ;;  %v1473_v8 = vpop.permute.xlu1 %1472  ;;  %6155 = vrot.lane.b32.xlu0 %v6046_v21, %s10415_s11  ;;  %v5469_v5 = vshll.u32 %v5391_v55, 16  ;;  %v5473_v21 = vshrl.u32 %v5391_v55, 16 }
 0x232   : > { %5220 = vst [vmem:[#allocation2 + $0x18] sm:$0xf] %v5219_v0  ;;  %1542 = vst.msk [vmem:[#allocation3 + $0x144] sm:$0xf] %vm1514_vm15, %v1473_v8  ;;  %v9773_v41 = vpop.f32.mrf.mxu0  ;;  %v6531_v12 = vrot.slane %v6530_v15, 4  ;;  %v6545_v27 = vrot.slane %v6543_v28, 5 }
 0x233   : > { %v4922_v24 = vor.u32 %v4920_v42, %v4919_v58  ;;  %v4924_v22 = vrot.slane %v4919_v58, 4  ;;  %v2837_v59 = vpop.permute.xlu0 %2836  ;;  %6157 = vrot.lane.b32.xlu1 %v6049_v57, %s10415_s11  ;;  %v10194_v31 = vld [vmem:[#allocation3 + $0x120] ss:$12 sps:$4 sm:$0xff]   ;;  %v6541_v44 = vrot.slane %v6540_v39, 4  ;;  %v5465_v0 = vrot.slane %v5463_v26, 5  ;;  %v10226_v28 = vld [vmem:[%s14438_s3 + $0x50] sm:$0xff]  }
 0x234   : > { %v9774_v60 = vpop.f32.mrf.mxu0  ;;  %2906 = vst.msk [vmem:[#allocation3 + $0x13c] sm:$0xf] %vm1514_vm15, %v2837_v59  ;;  %v6536_v25 = vsel %vm10595_vm10, %v6531_v12, %v6535_v46  ;;  %v10223_v57 = vld [vmem:[%s14438_s3 + $0x20] sm:$0xff]   ;;  %v12227_v56 = vrot.slane %v5469_v5, 5  ;;  %v5475_v13 = vrot.slane %v5473_v21, 4 }
 0x235   : > { %v4923_v30 = vsel %vm10587_vm9, %v4915_v6, %v4922_v24  ;;  %v5223_v29 = vsel %vm10578_vm8, %v4924_v22, %v5222_v49  ;;  %v9775_v20 = vadd.f32 %v9774_v60, %v9773_v41  ;;  %v2839_v40 = vpop.permute.xlu1 %2838  ;;  %v12211_v49 = vrot.slane %v5460_v17, 4  ;;  %6939 = vst.msk [vmem:[#allocation3 + $0x4] sm:$0xf] %vm244_vm0, %v6536_v25  ;;  %v4655_v41 = vpop.f32.mrf.mxu1  ;;  %9882 = vmatpush3.bf16.msra.mxu1 %v10223_v57  ;;  %v5225_v5 = vld [vmem:[#allocation2 + $0x24] sm:$0xf]  ;;  %v10228_v57 = vld [vmem:[%s14438_s3 + $0x48] sm:$0xff]  }
 0x236   : > { %5221 = vst.msk [vmem:[#allocation2 + $0x1c] sm:$0xf] %vm244_vm0, %v4923_v30  ;;  %5224 = vst [vmem:[#allocation2 + $0x20] sm:$0x1] %v5223_v29  ;;  %v9776_v45 = vpop.f32.mrf.mxu0  ;;  %v6546_v58 = vsel %vm10595_vm10, %v6541_v44, %v6545_v27  ;;  %9883 = vmatprep.subr.bf16.mxu1 %v10224_v3 }
 0x237   : > { %2907 = vst.msk [vmem:[#allocation3 + $0x148] sm:$0xf] %vm1514_vm15, %v2839_v40  ;;  %v4492_v9 = vadd.f32 %v9775_v20, %v12105_v52  ;;  %v1811_v47 = vpop.permute.xlu0 %1810  ;;  %v10192_v37 = vld [vmem:[#allocation3 + $0x124] ss:$12 sps:$4 sm:$0xff]   ;;  %v5466_v15 = vor.u32 %v5465_v0, %v12211_v49  ;;  %v5392_v20 = vld [vmem:[#allocation2 + $0x14] sm:$0x1] }
 0x238   : > { %v9777_v32 = vpop.f32.mrf.mxu0  ;;  %1881 = vst.msk [vmem:[#allocation3 + $0x138] sm:$0xf] %vm1854_vm2, %v1811_v47  ;;  %4569 = vmatprep.mubr.bf16.mxu0 %v10192_v37  ;;  %v5476_v47 = vor.u32 %v5475_v13, %v12227_v56  ;;  %v5479_v21 = vshll.u32 %v5392_v20, 16 }
 0x239   : > { %v4653_v50 = vadd.f32 %v4652_v23, %v4492_v9  ;;  %v9778_v48 = vadd.f32 %v9777_v32, %v9776_v45  ;;  %v1813_v51 = vpop.permute.xlu1 %1812  ;;  %v7307_v53 = vld [vmem:[#allocation2 + $0x18] sm:$0xf]  ;;  %4570 = vmatmul.mubr.bf16.gmra.mxu0 %v10194_v31  ;;  %6940 = vst.msk [vmem:[#allocation3 + $0x10] sm:$0xf] %vm244_vm0, %v6546_v58  ;;  %v6284_v9 = vld [vmem:[#allocation2 + $0x10] sm:$0xf]  ;;  %9884 = vmatpush3.bf16.msra.mxu1 %v10225_v14 }
 0x23a   : > { %v7499_v54 = vld [vmem:[#allocation2 + $0x18] sm:$0xf]  ;;  %1882 = vst.msk [vmem:[#allocation3 + $0x144] sm:$0xf] %vm1854_vm2, %v1813_v51  ;;  %7371 = vrot.lane.b32.xlu0 %v7307_v53, %s10415_s11  ;;  %v5467_v32 = vrot.slane %v5466_v15, 4  ;;  %9885 = vmatprep.subr.bf16.mxu1 %v10226_v28  ;;  %v10227_v51 = vld [vmem:[%s14438_s3 + $0x10] sm:$0xff]  }
 0x23b   : > { %v7548_v61 = vshrl.u32 %v7499_v54, 16  ;;  %v7551_v63 = vshll.u32 %v7499_v54, 16  ;;  %v4767_v42 = vmax.f32 %v4653_v50, 0.0  ;;  %v4495_v8 = vadd.f32 %v9778_v48, %v12105_v52  ;;  %v3030_v2 = vpop.permute.xlu0 %3029  ;;  %v12246_v48 = vld [vmem:[#allocation2 + $0x10] sm:$0xf] }
 0x23c   : > { %3099 = vst.msk [vmem:[#allocation3 + $0x13c] sm:$0xf] %vm1854_vm2, %v3030_v2  ;;  %v6974_v49 = vld [vmem:[#allocation2 + $0x18] sm:$0xe]  ;;  %v10229_v2 = vld [vmem:[%s14438_s3 + $0x8] sm:$0xff]  }
 0x23d   : > { %v7550_v43 = vrot.slane %v7548_v61, 4  ;;  %v7553_v1 = vrot.slane %v7551_v63, 5  ;;  %v9716_v6 = vpack.c.bf16 %v4767_v42, %v4767_v42  ;;  %v4656_v24 = vadd.f32 %v4655_v41, %v4495_v8  ;;  %v3032_v22 = vpop.permute.xlu1 %3031  ;;  %v7308_v59 = vld [vmem:[#allocation2 + $0x1c] sm:$0xf]  ;;  %v7501_v62 = vld [vmem:[#allocation2 + $0x20] sm:$0x1]  ;;  %9886 = vmatpush3.bf16.msra.mxu1 %v10227_v51 }
 0x23e   : > { %v7500_v46 = vld [vmem:[#allocation2 + $0x1c] sm:$0xf]  ;;  %3100 = vst.msk [vmem:[#allocation3 + $0x148] sm:$0xf] %vm1854_vm2, %v3032_v22  ;;  %7373 = vrot.lane.b32.xlu1 %v7308_v59, %s10415_s11  ;;  %6347 = vrot.lane.b32.xlu0 %v6283_v10, %s10416_s16  ;;  %v7567_v45 = vshll.u32 %v7501_v62, 16  ;;  %v5477_v42 = vrot.slane %v5476_v47, 4 }
 0x23f   : > { %v7554_v60 = vor.u32 %v7553_v1, %v7550_v43  ;;  %v7557_v23 = vshll.u32 %v7500_v46, 16  ;;  %v7561_v55 = vshrl.u32 %v7500_v46, 16  ;;  %v4926_v11 = vshrl.u32 %v9716_v6, 16  ;;  %v2004_v29 = vpop.permute.xlu0 %2003  ;;  %v6975_v50 = vld [vmem:[#allocation2 + $0x1c] sm:$0xf]  ;;  %9887 = vmatprep.subr.bf16.mxu1 %v10228_v57 }
 0x240   : > { %v4768_v30 = vmax.f32 %v4656_v24, 0.0  ;;  %2074 = vst.msk [vmem:[#allocation3 + $0x138] sm:$0xf] %vm2047_vm4, %v2004_v29  ;;  %v4929_v12 = vshll.u32 %v9716_v6, 16  ;;  %v7569_v54 = vrot.slane %v7567_v45, 5  ;;  %v5472_v43 = vsel %vm10595_vm10, %v5467_v32, %v12227_v56 }
 0x241   : > { %v7555_v40 = vrot.slane %v7554_v60, 4  ;;  %v7559_v17 = vrot.slane %v7557_v23, 5  ;;  %v7563_v35 = vrot.slane %v7561_v55, 4  ;;  %v4928_v26 = vrot.slane %v4926_v11, 7  ;;  %v2006_v19 = vpop.permute.xlu1 %2005  ;;  %v12257_v8 = vld [vmem:[#allocation2 + $0x18] sm:$0xf]  ;;  %9888 = vmatpush3.bf16.msra.mxu1 %v10229_v2 }
 0x242   : > { %v9717_v39 = vpack.c.bf16 %v4768_v30, %v4768_v30  ;;  %2075 = vst.msk [vmem:[#allocation3 + $0x144] sm:$0xf] %vm2047_vm4, %v2006_v19  ;;  %6349 = vrot.lane.b32.xlu1 %v6284_v9, %s10416_s16  ;;  %v5229_v10 = vld [vmem:[#allocation2 + $0x2c] sm:$0x1]  ;;  %v5481_v1 = vrot.slane %v5479_v21, 5  ;;  %v7076_v13 = vrot.slane %v6975_v50, 5 }
 0x243   : > { %v7560_v37 = vsel %vm10595_vm10, %v7555_v40, %v7559_v17  ;;  %v7564_v31 = vor.u32 %v7563_v35, %v7559_v17  ;;  %v4931_v25 = vor.u32 %v4929_v12, %v4928_v26  ;;  %v3590_v44 = vpop.permute.xlu0 %3589  ;;  %v5950_v14 = vld [vmem:[#allocation2 + $0xc] sm:$0xe]  ;;  %v4932_v6 = vrot.slane %v4928_v26, 4  ;;  %v8059_v46 = vld [vmem:[#allocation2 + $0x18] sm:$0xe] }
 0x244   : > { %v4934_v27 = vshrl.u32 %v9717_v39, 16  ;;  %7931 = vrot.lane.b32.xlu0 %v7560_v37, %s10416_s16  ;;  %3659 = vst.msk [vmem:[#allocation3 + $0x13c] sm:$0xf] %vm2047_vm4, %v3590_v44  ;;  %v4937_v0 = vshll.u32 %v9717_v39, 16  ;;  %v8060_v62 = vld [vmem:[#allocation2 + $0x1c] sm:$0xf]  ;;  %v5482_v40 = vsel %vm10595_vm10, %v5477_v42, %v5481_v1 }
 0x245   : > { %v7565_v53 = vrot.slane %v7564_v31, 4  ;;  %v5226_v61 = vsel %vm10622_vm11, %v4931_v25, %v5225_v5  ;;  %v3592_v58 = vpop.permute.xlu1 %3591  ;;  %v9560_v23 = vrot.slane %v6974_v49, 9  ;;  %v6976_v55 = vld [vmem:[#allocation2 + $0x20] sm:$0x1]  ;;  %v6052_v56 = vrot.slane %v12246_v48, 5 }
 0x246   : > { %v4936_v63 = vrot.slane %v4934_v27, 7  ;;  %5227 = vst [vmem:[#allocation2 + $0x24] sm:$0xf] %v5226_v61  ;;  %3660 = vst.msk [vmem:[#allocation3 + $0x148] sm:$0xf] %vm2047_vm4, %v3592_v58  ;;  %v5484_v15 = vshrl.u32 %v12257_v8, 16 }
 0x247   : > { %v9779_v3 = vpop.f32.mrf.mxu0  ;;  %v7570_v41 = vsel %vm10595_vm10, %v7565_v53, %v7569_v54  ;;  %v1475_v59 = vpop.permute.xlu0 %1474  ;;  %v5487_v28 = vshll.u32 %v12257_v8, 16  ;;  %v8061_v17 = vld [vmem:[#allocation2 + $0x20] sm:$0x1]  ;;  %v5327_v35 = vld [vmem:[#allocation2 + $0x18] sm:$0xf]  ;;  %v7077_v12 = vsel %vm10933_vm14, %v9560_v23, %v7076_v13  ;;  %v7078_v39 = vrot.slane %v7076_v13, 4 }
 0x248   : > { %v4939_v24 = vor.u32 %v4937_v0, %v4936_v63  ;;  %v4941_v22 = vrot.slane %v4936_v63, 4  ;;  %7933 = vrot.lane.b32.xlu1 %v7570_v41, %s10416_s16  ;;  %5823 = vrot.lane.b32.xlu0 %v5472_v43, %s10414_s29  ;;  %1543 = vst.msk [vmem:[#allocation3 + $0x150] sm:$0xf] %vm1514_vm15, %v1475_v59  ;;  %v5328_v45 = vld [vmem:[#allocation2 + $0x1c] sm:$0xf]  ;;  %v9575_v19 = vrot.slane %v8059_v46, 9 }
 0x249   : > { %v9780_v60 = vpop.f32.mrf.mxu0  ;;  %v1477_v20 = vpop.permute.xlu1 %1476  ;;  %v8157_v9 = vrot.slane %v8060_v62, 5  ;;  %5359 = vst.msk [vmem:[#allocation3 + $0x30] sm:$0xf] %vm244_vm0, %v5327_v35  ;;  %5360 = vst.msk [vmem:[#allocation3 + $0x3c] sm:$0xf] %vm244_vm0, %v5328_v45  ;;  %v9544_v37 = vrot.slane %v5950_v14, 9 }
 0x24a   : > { %v4940_v11 = vsel %vm10587_vm9, %v4932_v6, %v4939_v24  ;;  %v5230_v30 = vsel %vm10578_vm8, %v4941_v22, %v5229_v10  ;;  %v9781_v29 = vadd.f32 %v9780_v60, %v9779_v3  ;;  %1544 = vst.msk [vmem:[#allocation3 + $0x15c] sm:$0xf] %vm1514_vm15, %v1477_v20  ;;  %v7079_v32 = vrot.slane %v6976_v55, 5  ;;  %v5952_v21 = vld [vmem:[#allocation2 + $0x14] sm:$0x1] }
 0x24b   : > { %5228 = vst.msk [vmem:[#allocation2 + $0x28] sm:$0xf] %vm244_vm0, %v4940_v11  ;;  %5231 = vst [vmem:[#allocation2 + $0x2c] sm:$0x1] %v5230_v30  ;;  %v9782_v26 = vpop.f32.mrf.mxu0  ;;  %v2841_v5 = vpop.permute.xlu0 %2840  ;;  %v8158_v25 = vsel %vm10933_vm14, %v9575_v19, %v8157_v9  ;;  %v8159_v27 = vrot.slane %v8157_v9, 4  ;;  %v8160_v44 = vrot.slane %v8061_v17, 5  ;;  %v6053_v53 = vsel %vm10933_vm14, %v9544_v37, %v6052_v56 }
 0x24c   : > { %v4500_v47 = vadd.f32 %v9781_v29, %v12105_v52  ;;  %5825 = vrot.lane.b32.xlu1 %v5482_v40, %s10414_s29  ;;  %7183 = vrot.lane.b32.xlu0 %v7077_v12, %s10414_s29  ;;  %2908 = vst.msk [vmem:[#allocation3 + $0x154] sm:$0xf] %vm1514_vm15, %v2841_v5  ;;  %v6054_v54 = vrot.slane %v6052_v56, 4  ;;  %v5394_v57 = vld [vmem:[#allocation2 + $0x1c] sm:$0xf]  ;;  %v7080_v61 = vsel %vm10933_vm14, %v7078_v39, %v7079_v32  ;;  %v12299_v58 = vrot.slane %v5484_v15, 4 }
 0x24d   : > { %v9783_v31 = vpop.f32.mrf.mxu0  ;;  %v2843_v51 = vpop.permute.xlu1 %2842  ;;  %v10197_v49 = vld [vmem:[#allocation3 + $0x13c] ss:$12 sps:$4 sm:$0xff]   ;;  %8299 = vst.msk [vmem:[#allocation3 + $0x8] sm:$0xf] %vm244_vm0, %v8158_v25  ;;  %v7502_v63 = vld [vmem:[#allocation2 + $0x24] sm:$0xf]  ;;  %v8161_v42 = vsel %vm10933_vm14, %v8159_v27, %v8160_v44 }
 0x24e   : > { %v4661_v50 = vadd.f32 %v12167_v18, %v4500_v47  ;;  %v9784_v48 = vadd.f32 %v9783_v31, %v9782_v26  ;;  %2909 = vst.msk [vmem:[#allocation3 + $0x160] sm:$0xf] %vm1514_vm15, %v2843_v51  ;;  %v10199_v0 = vld [vmem:[#allocation3 + $0x138] ss:$12 sps:$4 sm:$0xff]   ;;  %v12301_v18 = vrot.slane %v5487_v28, 5  ;;  %v7572_v3 = vshrl.u32 %v7502_v63, 16  ;;  %4577 = vmatprep.mubr.bf16.mxu0 %v10197_v49 }
 0x24f   : > { %v1815_v10 = vpop.permute.xlu0 %1814  ;;  %v7575_v41 = vshll.u32 %v7502_v63, 16  ;;  %8300 = vst.msk [vmem:[#allocation3 + $0x14] sm:$0xf] %vm244_vm0, %v8161_v42  ;;  %v6055_v43 = vrot.slane %v5952_v21, 5  ;;  %v5493_v1 = vshll.u32 %v5394_v57, 16  ;;  %v5497_v13 = vshrl.u32 %v5394_v57, 16  ;;  %4578 = vmatmul.mubr.bf16.gmra.mxu0 %v10199_v0  ;;  %v12330_v21 = vpop.f32.mrf.mxu1 }
 0x250   : > { %v4769_v8 = vmax.f32 %v4661_v50, 0.0  ;;  %v4503_v2 = vadd.f32 %v9784_v48, %v12105_v52  ;;  %7185 = vrot.lane.b32.xlu1 %v7080_v61, %s10414_s29  ;;  %6159 = vrot.lane.b32.xlu0 %v6053_v53, %s10415_s11  ;;  %1883 = vst.msk [vmem:[#allocation3 + $0x150] sm:$0xf] %vm1854_vm2, %v1815_v10  ;;  %v7574_v59 = vrot.slane %v7572_v3, 4  ;;  %v7309_v60 = vld [vmem:[#allocation2 + $0x24] sm:$0xf]  ;;  %v5490_v11 = vor.u32 %v12301_v18, %v12299_v58 }
 0x251   : > { %v1817_v24 = vpop.permute.xlu1 %1816  ;;  %v7577_v46 = vrot.slane %v7575_v41, 5  ;;  %v6056_v62 = vsel %vm10933_vm14, %v6054_v54, %v6055_v43  ;;  %v5395_v30 = vld [vmem:[#allocation2 + $0x20] sm:$0x1]  ;;  %v5232_v20 = vld [vmem:[#allocation2 + $0x30] sm:$0xf]  ;;  %v12322_v45 = vrot.slane %v5493_v1, 5  ;;  %v4668_v43 = vpop.f32.mrf.mxu1 }
 0x252   : > { %v9718_v14 = vpack.c.bf16 %v4769_v8, %v4769_v8  ;;  %v4664_v6 = vadd.f32 %v12206_v34, %v4503_v2  ;;  %v7503_v22 = vld [vmem:[#allocation2 + $0x28] sm:$0xf]  ;;  %1884 = vst.msk [vmem:[#allocation3 + $0x15c] sm:$0xf] %vm1854_vm2, %v1817_v24  ;;  %v10230_v29 = vld [vmem:[%s14438_s3 + $0x40] sm:$0xff]   ;;  %v5499_v26 = vrot.slane %v5497_v13, 4 }
 0x253   : > { %v7581_v23 = vshll.u32 %v7503_v22, 16  ;;  %v7585_v55 = vshrl.u32 %v7503_v22, 16  ;;  %v3034_v34 = vpop.permute.xlu0 %3033  ;;  %v7578_v28 = vor.u32 %v7577_v46, %v7574_v59  ;;  %v6285_v40 = vld [vmem:[#allocation2 + $0x18] sm:$0xf]  ;;  %v7504_v5 = vld [vmem:[#allocation2 + $0x2c] sm:$0x1]  ;;  %9889 = vmatprep.subr.bf16.mxu1 %v10230_v29 }
 0x254   : > { %v4943_v56 = vshrl.u32 %v9718_v14, 16  ;;  %v4770_v15 = vmax.f32 %v4664_v6, 0.0  ;;  %6161 = vrot.lane.b32.xlu1 %v6056_v62, %s10415_s11  ;;  %7375 = vrot.lane.b32.xlu0 %v7309_v60, %s10415_s11  ;;  %3101 = vst.msk [vmem:[#allocation3 + $0x154] sm:$0xf] %vm1854_vm2, %v3034_v34  ;;  %v12324_v12 = vld [vmem:[#allocation2 + $0x18] sm:$0xe]  ;;  %v5500_v57 = vor.u32 %v5499_v26, %v12322_v45 }
 0x255   : > { %v7583_v17 = vrot.slane %v7581_v23, 5  ;;  %v7587_v35 = vrot.slane %v7585_v55, 4  ;;  %v4946_v19 = vshll.u32 %v9718_v14, 16  ;;  %v3036_v47 = vpop.permute.xlu1 %3035  ;;  %v10231_v37 = vld [vmem:[%s14438_s3] sm:$0xff]   ;;  %v7310_v31 = vld [vmem:[#allocation2 + $0x28] sm:$0xf] }
 0x256   : > { %v4945_v39 = vrot.slane %v4943_v56, 7  ;;  %v9719_v9 = vpack.c.bf16 %v4770_v15, %v4770_v15  ;;  %3102 = vst.msk [vmem:[#allocation3 + $0x160] sm:$0xf] %vm1854_vm2, %v3036_v47  ;;  %v7579_v32 = vrot.slane %v7578_v28, 4  ;;  %v5503_v27 = vshll.u32 %v5395_v30, 16  ;;  %9890 = vmatpush3.bf16.msra.mxu1 %v10231_v37 }
 0x257   : > { %v7588_v25 = vor.u32 %v7587_v35, %v7583_v17  ;;  %v12332_v44 = vld [vmem:[#allocation2 + $0x1c] sm:$0xf]  ;;  %v2008_v51 = vpop.permute.xlu0 %2007  ;;  %v12336_v53 = vld [vmem:[#allocation2 + $0x18] sm:$0xf]  ;;  %v7591_v54 = vshll.u32 %v7504_v5, 16  ;;  %v5491_v49 = vrot.slane %v5490_v11, 4  ;;  %10077 = vmatprep.subr.bf16.mxu1 %v12079_v36 }
 0x258   : > { %v4948_v50 = vor.u32 %v4946_v19, %v4945_v39  ;;  %v4951_v48 = vshrl.u32 %v9719_v9, 16  ;;  %7377 = vrot.lane.b32.xlu1 %v7310_v31, %s10415_s11  ;;  %6351 = vrot.lane.b32.xlu0 %v6285_v40, %s10416_s16  ;;  %2076 = vst.msk [vmem:[#allocation3 + $0x150] sm:$0xf] %vm2047_vm4, %v2008_v51  ;;  %v9545_v61 = vrot.slane %v12324_v12, 9  ;;  %v4954_v58 = vshll.u32 %v9719_v9, 16  ;;  %v12367_v40 = vpop.f32.mrf.mxu1 }
 0x259   : > { %v5236_v18 = vld [vmem:[#allocation2 + $0x38] sm:$0x1]  ;;  %v2010_v42 = vpop.permute.xlu1 %2009  ;;  %v6059_v8 = vrot.slane %v12332_v44, 5  ;;  %v6286_v10 = vld [vmem:[#allocation2 + $0x1c] sm:$0xf]  ;;  %v7584_v3 = vsel %vm10595_vm10, %v7579_v32, %v7583_v17  ;;  %v7589_v41 = vrot.slane %v7588_v25, 4  ;;  %v5496_v60 = vsel %vm10595_vm10, %v5491_v49, %v12322_v45 }
 0x25a   : > { %v5233_v63 = vsel %vm10622_vm11, %v4948_v50, %v5232_v20  ;;  %v4953_v0 = vrot.slane %v4951_v48, 7  ;;  %2077 = vst.msk [vmem:[#allocation3 + $0x15c] sm:$0xf] %vm2047_vm4, %v2010_v42  ;;  %v9785_v2 = vpop.f32.mrf.mxu0  ;;  %v12348_v1 = vrot.slane %v5503_v27, 5  ;;  %v6548_v13 = vshrl.u32 %v12336_v53, 16 }
 0x25b   : > { %5234 = vst [vmem:[#allocation2 + $0x30] sm:$0xf] %v5233_v63  ;;  %v4949_v14 = vrot.slane %v4945_v39, 4  ;;  %v3594_v36 = vpop.permute.xlu0 %3593  ;;  %v6977_v22 = vld [vmem:[#allocation2 + $0x24] sm:$0xe]  ;;  %v7593_v62 = vrot.slane %v7591_v54, 5  ;;  %v6060_v32 = vsel %vm10933_vm14, %v9545_v61, %v6059_v8  ;;  %v4671_v61 = vpop.f32.mrf.mxu1 }
 0x25c   : > { %v4956_v6 = vor.u32 %v4954_v58, %v4953_v0  ;;  %v4958_v24 = vrot.slane %v4953_v0, 4  ;;  %6353 = vrot.lane.b32.xlu1 %v6286_v10, %s10416_s16  ;;  %7935 = vrot.lane.b32.xlu0 %v7584_v3, %s10416_s16  ;;  %v6978_v59 = vld [vmem:[#allocation2 + $0x28] sm:$0xf]  ;;  %v9786_v46 = vpop.f32.mrf.mxu0  ;;  %3661 = vst.msk [vmem:[#allocation3 + $0x154] sm:$0xf] %vm2047_vm4, %v3594_v36  ;;  %v5501_v23 = vrot.slane %v5500_v57, 4 }
 0x25d   : > { %v8062_v55 = vld [vmem:[#allocation2 + $0x24] sm:$0xe]  ;;  %v8063_v56 = vld [vmem:[#allocation2 + $0x28] sm:$0xf]  ;;  %v9787_v28 = vadd.f32 %v9786_v46, %v9785_v2  ;;  %v3596_v11 = vpop.permute.xlu1 %3595  ;;  %v12361_v30 = vrot.slane %v6059_v8, 4  ;;  %v7594_v20 = vsel %vm10595_vm10, %v7589_v41, %v7593_v62  ;;  %v7083_v17 = vrot.slane %v6978_v59, 5 }
 0x25e   : > { %v4957_v15 = vsel %vm10587_vm9, %v4949_v14, %v4956_v6  ;;  %v5237_v34 = vsel %vm10578_vm8, %v4958_v24, %v5236_v18  ;;  %3662 = vst.msk [vmem:[#allocation3 + $0x160] sm:$0xf] %vm2047_vm4, %v3596_v11  ;;  %v9788_v29 = vpop.f32.mrf.mxu0  ;;  %v6979_v35 = vld [vmem:[#allocation2 + $0x2c] sm:$0x1]  ;;  %v12369_v45 = vrot.slane %v6548_v13, 4  ;;  %v6551_v26 = vshll.u32 %v12336_v53, 16 }
 0x25f   : > { %5235 = vst.msk [vmem:[#allocation2 + $0x34] sm:$0xf] %vm244_vm0, %v4957_v15  ;;  %5238 = vst [vmem:[#allocation2 + $0x38] sm:$0x1] %v5237_v34  ;;  %v4508_v12 = vadd.f32 %v9787_v28, %v12105_v52  ;;  %v1479_v39 = vpop.permute.xlu0 %1478  ;;  %v9561_v19 = vrot.slane %v6977_v22, 9  ;;  %v9576_v9 = vrot.slane %v8062_v55, 9  ;;  %v5506_v31 = vsel %vm10595_vm10, %v5501_v23, %v12348_v1 }
 0x260   : > { %7937 = vrot.lane.b32.xlu1 %v7594_v20, %s10416_s16  ;;  %5827 = vrot.lane.b32.xlu0 %v5496_v60, %s10414_s29  ;;  %v8164_v47 = vrot.slane %v8063_v56, 5  ;;  %v5329_v5 = vld [vmem:[#allocation2 + $0x24] sm:$0xf]  ;;  %v9789_v37 = vpop.f32.mrf.mxu0  ;;  %1545 = vst.msk [vmem:[#allocation3 + $0x168] sm:$0xf] %vm1514_vm15, %v1479_v39  ;;  %v7086_v51 = vrot.slane %v6979_v35, 5 }
 0x261   : > { %v5396_v25 = vld [vmem:[#allocation2 + $0x24] sm:$0xf]  ;;  %v8064_v27 = vld [vmem:[#allocation2 + $0x2c] sm:$0x1]  ;;  %5361 = vst.msk [vmem:[#allocation3 + $0x48] sm:$0xf] %vm244_vm0, %v5329_v5  ;;  %v9790_v44 = vadd.f32 %v9789_v37, %v9788_v29  ;;  %v4669_v50 = vadd.f32 %v4668_v43, %v4508_v12  ;;  %v1481_v48 = vpop.permute.xlu1 %1480  ;;  %v7084_v57 = vsel %vm10933_vm14, %v9561_v19, %v7083_v17 }
 0x262   : > { %v5330_v52 = vld [vmem:[#allocation2 + $0x28] sm:$0xf]  ;;  %v7505_v53 = vld [vmem:[#allocation2 + $0x30] sm:$0xf]  ;;  %v8165_v49 = vsel %vm10933_vm14, %v9576_v9, %v8164_v47  ;;  %1546 = vst.msk [vmem:[#allocation3 + $0x174] sm:$0xf] %vm1514_vm15, %v1481_v48 }
 0x263   : > { %v12382_v54 = vld [vmem:[#allocation2 + $0x28] sm:$0xf]  ;;  %5362 = vst.msk [vmem:[#allocation3 + $0x54] sm:$0xf] %vm244_vm0, %v5330_v52  ;;  %v7085_v63 = vrot.slane %v7083_v17, 4  ;;  %v7596_v0 = vshrl.u32 %v7505_v53, 16  ;;  %v2845_v2 = vpop.permute.xlu0 %2844 }
 0x264   : > { %v7599_v58 = vshll.u32 %v7505_v53, 16  ;;  %8301 = vst.msk [vmem:[#allocation3 + $0x20] sm:$0xf] %vm244_vm0, %v8165_v49  ;;  %v4771_v18 = vmax.f32 %v4669_v50, 0.0  ;;  %5829 = vrot.lane.b32.xlu1 %v5506_v31, %s10414_s29  ;;  %7187 = vrot.lane.b32.xlu0 %v7084_v57, %s10414_s29  ;;  %v12396_v42 = vld [vmem:[%s14437_s2] ss:$0 sm:$0xff] }
 0x265   : > { %v4511_v8 = vadd.f32 %v12396_v42, %v9790_v44  ;;  %v8166_v10 = vrot.slane %v8164_v47, 4  ;;  %v8167_v3 = vrot.slane %v8064_v27, 5  ;;  %2910 = vst.msk [vmem:[#allocation3 + $0x16c] sm:$0xf] %vm1514_vm15, %v2845_v2  ;;  %v12400_v41 = vrot.slane %v7596_v0, 4  ;;  %v2847_v24 = vpop.permute.xlu1 %2846 }
 0x266   : > { %v5508_v43 = vshrl.u32 %v5396_v25, 16  ;;  %v5511_v1 = vshll.u32 %v5396_v25, 16  ;;  %v5517_v13 = vshll.u32 %v12382_v54, 16  ;;  %v9720_v14 = vpack.c.bf16 %v4771_v18, %v4771_v18  ;;  %v5955_v36 = vld [vmem:[#allocation2 + $0x20] sm:$0x1] }
 0x267   : > { %v4672_v6 = vadd.f32 %v4671_v61, %v4511_v8  ;;  %v7506_v22 = vld [vmem:[#allocation2 + $0x34] sm:$0xf]  ;;  %v7601_v59 = vrot.slane %v7599_v58, 5  ;;  %v8168_v46 = vsel %vm10933_vm14, %v8166_v10, %v8167_v3  ;;  %2911 = vst.msk [vmem:[#allocation3 + $0x178] sm:$0xf] %vm1514_vm15, %v2847_v24  ;;  %v7087_v62 = vsel %vm10933_vm14, %v7085_v63, %v7086_v51  ;;  %v1819_v11 = vpop.permute.xlu0 %1818 }
 0x268   : > { %v7605_v60 = vshll.u32 %v7506_v22, 16  ;;  %v7609_v23 = vshrl.u32 %v7506_v22, 16  ;;  %v10200_v55 = vld [vmem:[#allocation3 + $0x154] ss:$12 sps:$4 sm:$0xff]   ;;  %8302 = vst.msk [vmem:[#allocation3 + $0x2c] sm:$0xf] %vm244_vm0, %v8168_v46  ;;  %7189 = vrot.lane.b32.xlu1 %v7087_v62, %s10414_s29  ;;  %6163 = vrot.lane.b32.xlu0 %v6060_v32, %s10415_s11 }
 0x269   : > { %v12409_v56 = vrot.slane %v6551_v26, 5  ;;  %v4960_v15 = vshrl.u32 %v9720_v14, 16  ;;  %v4963_v34 = vshll.u32 %v9720_v14, 16  ;;  %v4772_v28 = vmax.f32 %v4672_v6, 0.0  ;;  %v10202_v20 = vld [vmem:[#allocation3 + $0x150] ss:$12 sps:$4 sm:$0xff]   ;;  %4585 = vmatprep.mubr.bf16.mxu0 %v10200_v55  ;;  %v1821_v47 = vpop.permute.xlu1 %1820 }
 0x26a   : > { %v5521_v29 = vshrl.u32 %v12382_v54, 16  ;;  %v5239_v17 = vld [vmem:[#allocation2 + $0x3c] sm:$0xf]  ;;  %1885 = vst.msk [vmem:[#allocation3 + $0x168] sm:$0xf] %vm1854_vm2, %v1819_v11  ;;  %v6062_v35 = vrot.slane %v5955_v36, 5  ;;  %v7602_v5 = vor.u32 %v7601_v59, %v12400_v41  ;;  %4586 = vmatmul.mubr.bf16.gmra.mxu0 %v10202_v20 }
 0x26b   : > { %v12415_v12 = vrot.slane %v5508_v43, 4  ;;  %v12417_v39 = vrot.slane %v5511_v1, 5  ;;  %v12419_v26 = vld [vmem:[#allocation2 + $0x2c] sm:$0x1]  ;;  %v4962_v19 = vrot.slane %v4960_v15, 7  ;;  %v9721_v9 = vpack.c.bf16 %v4772_v28, %v4772_v28  ;;  %v3038_v49 = vpop.permute.xlu0 %3037 }
 0x26c   : > { %v12422_v37 = vrot.slane %v5517_v13, 5  ;;  %v8065_v31 = vld [vmem:[#allocation2 + $0x30] sm:$0xe]  ;;  %1886 = vst.msk [vmem:[#allocation3 + $0x174] sm:$0xf] %vm1854_vm2, %v1821_v47  ;;  %v6063_v32 = vsel %vm10933_vm14, %v12361_v30, %v6062_v35  ;;  %v12428_v27 = vrot.slane %v7605_v60, 5  ;;  %v6554_v48 = vor.u32 %v12409_v56, %v12369_v45 }
 0x26d   : > { %v7311_v25 = vld [vmem:[#allocation2 + $0x30] sm:$0xf]  ;;  %v7611_v52 = vrot.slane %v7609_v23, 4  ;;  %v8066_v44 = vld [vmem:[#allocation2 + $0x34] sm:$0xf]  ;;  %v4965_v51 = vor.u32 %v4963_v34, %v4962_v19  ;;  %v4968_v53 = vshrl.u32 %v9721_v9, 16  ;;  %6165 = vrot.lane.b32.xlu1 %v6063_v32, %s10415_s11  ;;  %v5514_v0 = vor.u32 %v12417_v39, %v12415_v12  ;;  %v3040_v3 = vpop.permute.xlu1 %3039 }
 0x26e   : > { %v12430_v50 = vld [vmem:[#allocation2 + $0x1c] sm:$0xf]  ;;  %v4971_v54 = vshll.u32 %v9721_v9, 16  ;;  %7379 = vrot.lane.b32.xlu0 %v7311_v25, %s10415_s11  ;;  %v5523_v57 = vrot.slane %v5521_v29, 4  ;;  %v8067_v30 = vld [vmem:[#allocation2 + $0x38] sm:$0x1]  ;;  %v9791_v43 = vpop.f32.mrf.mxu0 }
 0x26f   : > { %v5243_v61 = vld [vmem:[#allocation2 + $0x44] sm:$0x1]  ;;  %3103 = vst.msk [vmem:[#allocation3 + $0x16c] sm:$0xf] %vm1854_vm2, %v3038_v49  ;;  %v7507_v63 = vld [vmem:[#allocation2 + $0x38] sm:$0x1]  ;;  %v5240_v2 = vsel %vm10622_vm11, %v4965_v51, %v5239_v17  ;;  %v7612_v14 = vor.u32 %v7611_v52, %v12428_v27  ;;  %v2012_v46 = vpop.permute.xlu0 %2011 }
 0x270   : > { %v5527_v58 = vshll.u32 %v12419_v26, 16  ;;  %v9577_v45 = vrot.slane %v8065_v31, 9  ;;  %v8171_v18 = vrot.slane %v8066_v44, 5  ;;  %v4966_v8 = vrot.slane %v4962_v19, 4  ;;  %5241 = vst [vmem:[#allocation2 + $0x3c] sm:$0xf] %v5240_v2  ;;  %v9792_v55 = vpop.f32.mrf.mxu0 }
 0x271   : > { %v4970_v10 = vrot.slane %v4968_v53, 7  ;;  %v7603_v41 = vrot.slane %v7602_v5, 4  ;;  %3104 = vst.msk [vmem:[#allocation3 + $0x178] sm:$0xf] %vm1854_vm2, %v3040_v3  ;;  %v7312_v1 = vld [vmem:[#allocation2 + $0x34] sm:$0xf]  ;;  %v5524_v62 = vor.u32 %v5523_v57, %v12422_v37  ;;  %v9793_v11 = vadd.f32 %v9792_v55, %v9791_v43  ;;  %v2014_v29 = vpop.permute.xlu1 %2013 }
 0x272   : > { %v6287_v13 = vld [vmem:[#allocation2 + $0x24] sm:$0xf]  ;;  %v8172_v6 = vsel %vm10933_vm14, %v9577_v45, %v8171_v18  ;;  %v8173_v24 = vrot.slane %v8171_v18, 4  ;;  %v8174_v36 = vrot.slane %v8067_v30, 5  ;;  %7381 = vrot.lane.b32.xlu1 %v7312_v1, %s10415_s11  ;;  %v12449_v60 = vld [vmem:[#allocation2 + $0x28] sm:$0xf]  ;;  %v9794_v39 = vpop.f32.mrf.mxu0 }
 0x273   : > { %v4973_v22 = vor.u32 %v4971_v54, %v4970_v10  ;;  %v4975_v59 = vrot.slane %v4970_v10, 4  ;;  %6355 = vrot.lane.b32.xlu0 %v6287_v13, %s10416_s16  ;;  %8303 = vst.msk [vmem:[#allocation3 + $0x38] sm:$0xf] %vm244_vm0, %v8172_v6  ;;  %v6557_v23 = vshll.u32 %v12430_v50, 16  ;;  %v7615_v56 = vshll.u32 %v7507_v63, 16  ;;  %v3598_v32 = vpop.permute.xlu0 %3597 }
 0x274   : > { %2078 = vst.msk [vmem:[#allocation3 + $0x168] sm:$0xf] %vm2047_vm4, %v2012_v46  ;;  %v8175_v15 = vsel %vm10933_vm14, %v8173_v24, %v8174_v36  ;;  %v6288_v20 = vld [vmem:[#allocation2 + $0x28] sm:$0xf]  ;;  %v12460_v17 = vld [vmem:[#allocation2 + $0x24] sm:$0xe]  ;;  %v7608_v26 = vsel %vm10595_vm10, %v7603_v41, %v12428_v27  ;;  %v4516_v31 = vadd.f32 %v12396_v42, %v9793_v11  ;;  %v9795_v51 = vpop.f32.mrf.mxu0 }
 0x275   : > { %v4974_v34 = vsel %vm10587_vm9, %v4966_v8, %v4973_v22  ;;  %v5244_v28 = vsel %vm10578_vm8, %v4975_v59, %v5243_v61  ;;  %8304 = vst.msk [vmem:[#allocation3 + $0x44] sm:$0xf] %vm244_vm0, %v8175_v15  ;;  %v12463_v35 = vld [vmem:[#allocation2 + $0x30] sm:$0xf]  ;;  %v6555_v12 = vrot.slane %v6554_v48, 4  ;;  %v7613_v19 = vrot.slane %v7612_v14, 4  ;;  %v3600_v61 = vpop.permute.xlu1 %3599 }
 0x276   : > { %5242 = vst.msk [vmem:[#allocation2 + $0x40] sm:$0xf] %vm244_vm0, %v4974_v34  ;;  %5245 = vst [vmem:[#allocation2 + $0x44] sm:$0x1] %v5244_v28  ;;  %v5515_v9 = vrot.slane %v5514_v0, 4  ;;  %v6066_v5 = vrot.slane %v12449_v60, 5  ;;  %6357 = vrot.lane.b32.xlu1 %v6288_v20, %s10416_s16  ;;  %v4677_v57 = vadd.f32 %v12330_v21, %v4516_v31  ;;  %v9796_v30 = vadd.f32 %v9795_v51, %v9794_v39 }
 0x277   : > { %2079 = vst.msk [vmem:[#allocation3 + $0x174] sm:$0xf] %vm2047_vm4, %v2014_v29  ;;  %v6981_v47 = vld [vmem:[#allocation2 + $0x34] sm:$0xf]  ;;  %7939 = vrot.lane.b32.xlu0 %v7608_v26, %s10416_s16  ;;  %v5525_v25 = vrot.slane %v5524_v62, 4  ;;  %v5529_v52 = vrot.slane %v5527_v58, 5  ;;  %v5820_v13 = vpop.permute.xlu0 %5819 }
 0x278   : > { %v6980_v44 = vld [vmem:[#allocation2 + $0x30] sm:$0xe]  ;;  %v12474_v48 = vrot.slane %v6557_v23, 5  ;;  %3663 = vst.msk [vmem:[#allocation3 + $0x16c] sm:$0xf] %vm2047_vm4, %v3598_v32  ;;  %v7617_v27 = vrot.slane %v7615_v56, 5  ;;  %v5520_v21 = vsel %vm10595_vm10, %v5515_v9, %v12422_v37  ;;  %v4519_v3 = vadd.f32 %v12396_v42, %v9796_v30 }
 0x279   : > { %v5532_v53 = vshrl.u32 %v12463_v35, 16  ;;  %v5331_v54 = vld [vmem:[#allocation2 + $0x30] sm:$0xf]  ;;  %v5332_v49 = vld [vmem:[#allocation2 + $0x34] sm:$0xf]  ;;  %v7090_v63 = vrot.slane %v6981_v47, 5  ;;  %v5530_v37 = vsel %vm10595_vm10, %v5525_v25, %v5529_v52  ;;  %v5822_v55 = vpop.permute.xlu1 %5821 }
 0x27a   : > { %v6982_v0 = vld [vmem:[#allocation2 + $0x38] sm:$0x1]  ;;  %v12479_v45 = vld [vmem:[#allocation2 + $0x2c] sm:$0x1]  ;;  %v6560_v58 = vsel %vm10595_vm10, %v6555_v12, %v12474_v48  ;;  %5363 = vst.msk [vmem:[#allocation3 + $0x60] sm:$0xf] %vm244_vm0, %v5331_v54  ;;  %v7618_v18 = vsel %vm10595_vm10, %v7613_v19, %v7617_v27  ;;  %v4680_v22 = vadd.f32 %v12367_v40, %v4519_v3 }
 0x27b   : > { %5364 = vst.msk [vmem:[#allocation3 + $0x6c] sm:$0xf] %vm244_vm0, %v5332_v49  ;;  %v9546_v8 = vrot.slane %v12460_v17, 9  ;;  %v12495_v2 = vrot.slane %v6066_v5, 4  ;;  %6941 = vst.msk [vmem:[#allocation3 + $0x1c] sm:$0xf] %vm244_vm0, %v6560_v58  ;;  %7941 = vrot.lane.b32.xlu1 %v7618_v18, %s10416_s16  ;;  %5831 = vrot.lane.b32.xlu0 %v5520_v21, %s10414_s29 }
 0x27c   : > { %3664 = vst.msk [vmem:[#allocation3 + $0x178] sm:$0xf] %vm2047_vm4, %v3600_v61  ;;  %v4773_v10 = vmax.f32 %v4677_v57, 0.0  ;;  %v9562_v41 = vrot.slane %v6980_v44, 9  ;;  %v7508_v43 = vld [vmem:[#allocation2 + $0x3c] sm:$0xf]  ;;  %v12520_v44 = vpop.f32.mrf.mxu1 }
 0x27d   : > { %v5400_v1 = vld [vmem:[#allocation2 + $0x34] sm:$0xf]  ;;  %v7093_v14 = vrot.slane %v6982_v0, 5  ;;  %v6069_v6 = vrot.slane %v12479_v45, 5  ;;  %v12504_v24 = vrot.slane %v5532_v53, 4  ;;  %v7092_v46 = vrot.slane %v7090_v63, 4 }
 0x27e   : > { %5915 = vst.msk [vmem:[#allocation3] sm:$0xf] %vm1514_vm15, %v5820_v13  ;;  %v9722_v36 = vpack.c.bf16 %v4773_v10, %v4773_v10  ;;  %v7091_v59 = vsel %vm10933_vm14, %v9562_v41, %v7090_v63  ;;  %v7509_v62 = vld [vmem:[#allocation2 + $0x40] sm:$0xf]  ;;  %v8068_v23 = vld [vmem:[#allocation2 + $0x3c] sm:$0xe]  ;;  %v6067_v31 = vsel %vm10933_vm14, %v9546_v8, %v6066_v5  ;;  %v4684_v13 = vpop.f32.mrf.mxu1 }
 0x27f   : > { %v7620_v56 = vshrl.u32 %v7508_v43, 16  ;;  %v7623_v15 = vshll.u32 %v7508_v43, 16  ;;  %v5535_v34 = vshll.u32 %v12463_v35, 16  ;;  %v5541_v28 = vshll.u32 %v5400_v1, 16  ;;  %v8069_v11 = vld [vmem:[#allocation2 + $0x40] sm:$0xf]  ;;  %5833 = vrot.lane.b32.xlu1 %v5530_v37, %s10414_s29  ;;  %7191 = vrot.lane.b32.xlu0 %v7091_v59, %s10414_s29 }
 0x280   : > { %5916 = vst.msk [vmem:[#allocation3 + $0xc] sm:$0xf] %vm1514_vm15, %v5822_v55  ;;  %v4977_v29 = vshrl.u32 %v9722_v36, 16  ;;  %v4774_v20 = vmax.f32 %v4680_v22, 0.0  ;;  %v5545_v40 = vshrl.u32 %v5400_v1, 16  ;;  %v4980_v12 = vshll.u32 %v9722_v36, 16 }
 0x281   : > { %v8070_v17 = vld [vmem:[#allocation2 + $0x44] sm:$0x1]  ;;  %v7629_v39 = vshll.u32 %v7509_v62, 16  ;;  %v7633_v26 = vshrl.u32 %v7509_v62, 16  ;;  %v9578_v19 = vrot.slane %v8068_v23, 9  ;;  %v7094_v35 = vsel %vm10933_vm14, %v7092_v46, %v7093_v14 }
 0x282   : > { %v4979_v9 = vrot.slane %v4977_v29, 7  ;;  %v9723_v47 = vpack.c.bf16 %v4774_v20, %v4774_v20  ;;  %v10205_v25 = vld [vmem:[#allocation3 + $0x168] ss:$12 sps:$4 sm:$0xff]   ;;  %v5246_v52 = vld [vmem:[#allocation2 + $0x48] sm:$0xf]  ;;  %v7622_v51 = vrot.slane %v7620_v56, 4  ;;  %v9797_v41 = vpop.f32.mrf.mxu0  ;;  %v6070_v43 = vsel %vm10933_vm14, %v12495_v2, %v6069_v6 }
 0x283   : > { %v10203_v32 = vld [vmem:[#allocation3 + $0x16c] ss:$12 sps:$4 sm:$0xff]   ;;  %v7625_v27 = vrot.slane %v7623_v15, 5  ;;  %v8178_v53 = vrot.slane %v8069_v11, 5  ;;  %v8181_v54 = vrot.slane %v8070_v17, 5  ;;  %7193 = vrot.lane.b32.xlu1 %v7094_v35, %s10414_s29  ;;  %6167 = vrot.lane.b32.xlu0 %v6067_v31, %s10415_s11  ;;  %v12524_v60 = vrot.slane %v5535_v34, 5 }
 0x284   : > { %v4982_v49 = vor.u32 %v4980_v12, %v4979_v9  ;;  %v4985_v57 = vshrl.u32 %v9723_v47, 16  ;;  %v10208_v30 = vld [vmem:[#allocation3 + $0x8] ss:$12 sps:$4 sm:$0xff]   ;;  %v12526_v61 = vrot.slane %v5541_v28, 5  ;;  %4593 = vmatprep.mubr.bf16.mxu0 %v10203_v32  ;;  %v12528_v5 = vrot.slane %v7629_v39, 5  ;;  %v9798_v23 = vpop.f32.mrf.mxu0  ;;  %v12558_v12 = vpop.f32.mrf.mxu1 }
 0x285   : > { %v7635_v63 = vrot.slane %v7633_v26, 4  ;;  %v8179_v0 = vsel %vm10933_vm14, %v9578_v19, %v8178_v53  ;;  %v8180_v45 = vrot.slane %v8178_v53, 4  ;;  %v5401_v58 = vld [vmem:[#allocation2 + $0x38] sm:$0x1]  ;;  %v4988_v8 = vshll.u32 %v9723_v47, 16  ;;  %4594 = vmatmul.mubr.bf16.gmra.mxu0 %v10205_v25 }
 0x286   : > { %v5247_v18 = vsel %vm10622_vm11, %v4982_v49, %v5246_v52  ;;  %v4987_v21 = vrot.slane %v4985_v57, 7  ;;  %8305 = vst.msk [vmem:[#allocation3 + $0x50] sm:$0xf] %vm244_vm0, %v8179_v0  ;;  %v5547_v10 = vrot.slane %v5545_v40, 4  ;;  %v5250_v3 = vld [vmem:[#allocation2 + $0x50] sm:$0x1]  ;;  %10045 = vmatprep.mubr.msk.bf16.mxu0 %vm4392_vm1, %v10208_v30  ;;  %v7626_v37 = vor.u32 %v7625_v27, %v7622_v51  ;;  %v4687_v0 = vpop.f32.mrf.mxu1 }
 0x287   : > { %5248 = vst [vmem:[#allocation2 + $0x48] sm:$0xf] %v5247_v18  ;;  %v7313_v1 = vld [vmem:[#allocation2 + $0x3c] sm:$0xf]  ;;  %v8182_v14 = vsel %vm10933_vm14, %v8180_v45, %v8181_v54  ;;  %v4983_v36 = vrot.slane %v4979_v9, 4  ;;  %6169 = vrot.lane.b32.xlu1 %v6070_v43, %s10415_s11  ;;  %v5551_v62 = vshll.u32 %v5401_v58, 16  ;;  %v7636_v2 = vor.u32 %v7635_v63, %v12528_v5 }
 0x288   : > { %v4990_v22 = vor.u32 %v4988_v8, %v4987_v21  ;;  %v4992_v59 = vrot.slane %v4987_v21, 4  ;;  %7383 = vrot.lane.b32.xlu0 %v7313_v1, %s10415_s11  ;;  %v7510_v46 = vld [vmem:[#allocation2 + $0x44] sm:$0x1]  ;;  %8306 = vst.msk [vmem:[#allocation3 + $0x5c] sm:$0xf] %vm244_vm0, %v8182_v14  ;;  %v5538_v6 = vor.u32 %v12524_v60, %v12504_v24  ;;  %v6561_v56 = vshrl.u32 %v12430_v50, 16  ;;  %v9800_v24 = vpop.f32.mrf.mxu0 }
 0x289   : > { %v12547_v55 = vld [vmem:[#allocation2 + $0x30] sm:$0xe]  ;;  %v9799_v28 = vadd.f32 %v9798_v23, %v9797_v41  ;;  %v10211_v29 = vld [vmem:[#allocation3 + $0x20] ss:$12 sps:$4 sm:$0xff]   ;;  %v5548_v20 = vor.u32 %v5547_v10, %v12526_v61  ;;  %v12555_v40 = vld [vmem:[#allocation2 + $0x34] sm:$0xf] }
 0x28a   : > { %v4991_v15 = vsel %vm10587_vm9, %v4983_v36, %v4990_v22  ;;  %v5251_v34 = vsel %vm10578_vm8, %v4992_v59, %v5250_v3  ;;  %v6289_v11 = vld [vmem:[#allocation2 + $0x30] sm:$0xf]  ;;  %v7314_v17 = vld [vmem:[#allocation2 + $0x40] sm:$0xf]  ;;  %v7627_v50 = vrot.slane %v7626_v37, 4  ;;  %v7639_v39 = vshll.u32 %v7510_v46, 16  ;;  %v9801_v32 = vpop.f32.mrf.mxu0 }
 0x28b   : > { %5249 = vst.msk [vmem:[#allocation2 + $0x4c] sm:$0xf] %vm244_vm0, %v4991_v15  ;;  %5252 = vst [vmem:[#allocation2 + $0x50] sm:$0x1] %v5251_v34  ;;  %v5333_v26 = vld [vmem:[#allocation2 + $0x3c] sm:$0xf]  ;;  %7385 = vrot.lane.b32.xlu1 %v7314_v17, %s10415_s11  ;;  %v4524_v19 = vadd.f32 %v12396_v42, %v9799_v28  ;;  %v9802_v53 = vadd.f32 %v9801_v32, %v9800_v24 }
 0x28c   : > { %6359 = vrot.lane.b32.xlu0 %v6289_v11, %s10416_s16  ;;  %v12563_v9 = vrot.slane %v5551_v62, 5  ;;  %v9547_v47 = vrot.slane %v12547_v55, 9  ;;  %v12566_v35 = vld [vmem:[#allocation2 + $0x38] sm:$0x1]  ;;  %5365 = vst.msk [vmem:[#allocation3 + $0x78] sm:$0xf] %vm244_vm0, %v5333_v26  ;;  %v7632_v63 = vsel %vm10595_vm10, %v7627_v50, %v12528_v5 }
 0x28d   : > { %v5334_v31 = vld [vmem:[#allocation2 + $0x40] sm:$0xf]  ;;  %v10212_v25 = vld [vmem:[#allocation3 + $0x38] ss:$12 sps:$4 sm:$0xff]   ;;  %v6290_v52 = vld [vmem:[#allocation2 + $0x34] sm:$0xf]  ;;  %v4685_v54 = vadd.f32 %v4684_v13, %v4524_v19  ;;  %10046 = vmatmul.mubr.msk.bf16.vlgmr.msra.gmra.mxu0 %vm4392_vm1, %v10211_v29  ;;  %v4527_v8 = vadd.f32 %v12396_v42, %v9802_v53 }
 0x28e   : > { %v7637_v51 = vrot.slane %v7636_v2, 4  ;;  %v5539_v27 = vrot.slane %v5538_v6, 4  ;;  %5366 = vst.msk [vmem:[#allocation3 + $0x84] sm:$0xf] %vm244_vm0, %v5334_v31  ;;  %v5549_v49 = vrot.slane %v5548_v20, 4  ;;  %v6073_v60 = vrot.slane %v12555_v40, 5  ;;  %10049 = vmatprep.mubr.msk.bf16.mxu0 %vm4392_vm1, %v10212_v25 }
 0x28f   : > { %v6983_v57 = vld [vmem:[#allocation2 + $0x3c] sm:$0xe]  ;;  %v6984_v30 = vld [vmem:[#allocation2 + $0x40] sm:$0xf]  ;;  %v7641_v45 = vrot.slane %v7639_v39, 5  ;;  %v6076_v18 = vrot.slane %v12566_v35, 5  ;;  %6361 = vrot.lane.b32.xlu1 %v6290_v52, %s10416_s16  ;;  %v4688_v36 = vadd.f32 %v4687_v0, %v4527_v8 }
 0x290   : > { %v12576_v58 = vld [vmem:[#allocation2 + $0x44] sm:$0x1]  ;;  %v4775_v21 = vmax.f32 %v4685_v54, 0.0  ;;  %7943 = vrot.lane.b32.xlu0 %v7632_v63, %s10416_s16  ;;  %v8071_v10 = vld [vmem:[#allocation2 + $0x48] sm:$0xe]  ;;  %v12582_v41 = vrot.slane %v6561_v56, 4  ;;  %v5544_v43 = vsel %vm10595_vm10, %v5539_v27, %v12526_v61  ;;  %v5554_v22 = vsel %vm10595_vm10, %v5549_v49, %v12563_v9 }
 0x291   : > { %v5402_v3 = vld [vmem:[#allocation2 + $0x3c] sm:$0xf]  ;;  %v7642_v5 = vsel %vm10595_vm10, %v7637_v51, %v7641_v45  ;;  %v9563_v1 = vrot.slane %v6983_v57, 9  ;;  %v7097_v13 = vrot.slane %v6984_v30, 5  ;;  %v7511_v37 = vld [vmem:[#allocation2 + $0x48] sm:$0xf] }
 0x292   : > { %v9724_v14 = vpack.c.bf16 %v4775_v21, %v4775_v21  ;;  %v7100_v59 = vrot.slane %v12576_v58, 5  ;;  %v8072_v46 = vld [vmem:[#allocation2 + $0x4c] sm:$0xf]  ;;  %v8073_v62 = vld [vmem:[#allocation2 + $0x50] sm:$0x1]  ;;  %v9579_v23 = vrot.slane %v8071_v10, 9  ;;  %v6074_v10 = vsel %vm10933_vm14, %v9547_v47, %v6073_v60 }
 0x293   : > { %v8185_v2 = vrot.slane %v8072_v46, 5  ;;  %v5403_v6 = vld [vmem:[#allocation2 + $0x40] sm:$0xf]  ;;  %v5556_v56 = vshrl.u32 %v5402_v3, 16  ;;  %v5559_v15 = vshll.u32 %v5402_v3, 16  ;;  %v4776_v28 = vmax.f32 %v4688_v36, 0.0  ;;  %7945 = vrot.lane.b32.xlu1 %v7642_v5, %s10416_s16 }
 0x294   : > { %v4994_v34 = vshrl.u32 %v9724_v14, 16  ;;  %v4997_v61 = vshll.u32 %v9724_v14, 16  ;;  %5835 = vrot.lane.b32.xlu0 %v5544_v43, %s10414_s29  ;;  %v10213_v11 = vld [vmem:[#allocation3 + $0x50] ss:$12 sps:$4 sm:$0xff]   ;;  %v7644_v29 = vshrl.u32 %v7511_v37, 16  ;;  %v8188_v17 = vrot.slane %v8073_v62, 5 }
 0x295   : > { %v8186_v20 = vsel %vm10933_vm14, %v9579_v23, %v8185_v2  ;;  %v8187_v24 = vrot.slane %v8185_v2, 4  ;;  %v7647_v50 = vshll.u32 %v7511_v37, 16  ;;  %v9725_v26 = vpack.c.bf16 %v4776_v28, %v4776_v28  ;;  %10050 = vmatmul.mubr.msk.bf16.gmra.mxu0 %vm4392_vm1, %v10213_v11  ;;  %v7512_v31 = vld [vmem:[#allocation2 + $0x4c] sm:$0xf]  ;;  %v5253_v32 = vld [vmem:[#allocation2 + $0x54] sm:$0xf] }
 0x296   : > { %v4996_v39 = vrot.slane %v4994_v34, 7  ;;  %v7098_v19 = vsel %vm10933_vm14, %v9563_v1, %v7097_v13  ;;  %v7099_v9 = vrot.slane %v7097_v13, 4  ;;  %8307 = vst.msk [vmem:[#allocation3 + $0x68] sm:$0xf] %vm244_vm0, %v8186_v20  ;;  %v5558_v52 = vrot.slane %v5556_v56, 4  ;;  %v9803_v5 = vpop.f32.mrf.mxu0 }
 0x297   : > { %v8189_v25 = vsel %vm10933_vm14, %v8187_v24, %v8188_v17  ;;  %v5565_v51 = vshll.u32 %v5403_v6, 16  ;;  %v5569_v27 = vshrl.u32 %v5403_v6, 16  ;;  %v5002_v54 = vshrl.u32 %v9725_v26, 16  ;;  %5837 = vrot.lane.b32.xlu1 %v5554_v22, %s10414_s29  ;;  %v5257_v3 = vld [vmem:[#allocation2 + $0x5c] sm:$0x1] }
 0x298   : > { %v4999_v53 = vor.u32 %v4997_v61, %v4996_v39  ;;  %v5005_v49 = vshll.u32 %v9725_v26, 16  ;;  %7195 = vrot.lane.b32.xlu0 %v7098_v19, %s10414_s29  ;;  %8308 = vst.msk [vmem:[#allocation3 + $0x74] sm:$0xf] %vm244_vm0, %v8189_v25  ;;  %v5561_v57 = vrot.slane %v5559_v15, 5  ;;  %v7646_v30 = vrot.slane %v7644_v29, 4  ;;  %v9804_v62 = vpop.f32.mrf.mxu0 }
 0x299   : > { %v7649_v63 = vrot.slane %v7647_v50, 5  ;;  %v7653_v0 = vshll.u32 %v7512_v31, 16  ;;  %v7657_v45 = vshrl.u32 %v7512_v31, 16  ;;  %v5000_v58 = vrot.slane %v4996_v39, 4  ;;  %v5404_v47 = vld [vmem:[#allocation2 + $0x44] sm:$0x1] }
 0x29a   : > { %v5254_v21 = vsel %vm10622_vm11, %v4999_v53, %v5253_v32  ;;  %v5004_v8 = vrot.slane %v5002_v54, 7  ;;  %v7101_v43 = vsel %vm10933_vm14, %v7099_v9, %v7100_v59  ;;  %v6075_v1 = vrot.slane %v6073_v60, 4  ;;  %v6480_v22 = vld [vmem:[#allocation2 + $0x20] sm:$0x1]  ;;  %v12626_v60 = vld [vmem:[#allocation2 + $0x3c] sm:$0xe] }
 0x29b   : > { %5255 = vst [vmem:[#allocation2 + $0x54] sm:$0xf] %v5254_v21  ;;  %v12618_v13 = vrot.slane %v5565_v51, 5  ;;  %v5571_v37 = vrot.slane %v5569_v27, 4  ;;  %7197 = vrot.lane.b32.xlu1 %v7101_v43, %s10414_s29  ;;  %v5562_v55 = vor.u32 %v5561_v57, %v5558_v52  ;;  %v6564_v46 = vor.u32 %v12582_v41, %v12474_v48  ;;  %v7315_v15 = vld [vmem:[#allocation2 + $0x48] sm:$0xf]  ;;  %v9806_v48 = vpop.f32.mrf.mxu0 }
 0x29c   : > { %v5007_v14 = vor.u32 %v5005_v49, %v5004_v8  ;;  %v5009_v36 = vrot.slane %v5004_v8, 4  ;;  %6171 = vrot.lane.b32.xlu0 %v6074_v10, %s10415_s11  ;;  %v7650_v59 = vor.u32 %v7649_v63, %v7646_v30  ;;  %v12624_v23 = vrot.slane %v7653_v0, 5  ;;  %v7513_v34 = vld [vmem:[#allocation2 + $0x50] sm:$0x1]  ;;  %v5335_v61 = vld [vmem:[#allocation2 + $0x48] sm:$0xf] }
 0x29d   : > { %v7659_v40 = vrot.slane %v7657_v45, 4  ;;  %v9805_v56 = vadd.f32 %v9804_v62, %v9803_v5  ;;  %v6077_v41 = vsel %vm10933_vm14, %v6075_v1, %v6076_v18  ;;  %v5572_v11 = vor.u32 %v5571_v37, %v12618_v13  ;;  %5367 = vst.msk [vmem:[#allocation3 + $0x90] sm:$0xf] %vm244_vm0, %v5335_v61  ;;  %v12644_v50 = vld [vmem:[#allocation2 + $0x48] sm:$0xe]  ;;  %v9807_v39 = vpop.f32.mrf.mxu0 }
 0x29e   : > { %v5008_v2 = vsel %vm10587_vm9, %v5000_v58, %v5007_v14  ;;  %v5258_v6 = vsel %vm10578_vm8, %v5009_v36, %v5257_v3  ;;  %v5575_v29 = vshll.u32 %v5404_v47, 16  ;;  %v6567_v20 = vshll.u32 %v6480_v22, 16  ;;  %v12646_v35 = vld [vmem:[#allocation2 + $0x40] sm:$0xf]  ;;  %v6291_v26 = vld [vmem:[#allocation2 + $0x3c] sm:$0xf] }
 0x29f   : > { %5256 = vst.msk [vmem:[#allocation2 + $0x58] sm:$0xf] %vm244_vm0, %v5008_v2  ;;  %5259 = vst [vmem:[#allocation2 + $0x5c] sm:$0x1] %v5258_v6  ;;  %v10214_v28 = vld [vmem:[#allocation3 + $0x68] ss:$12 sps:$4 sm:$0xff]   ;;  %v4532_v24 = vadd.f32 %v12396_v42, %v9805_v56  ;;  %6173 = vrot.lane.b32.xlu1 %v6077_v41, %s10415_s11  ;;  %v7660_v9 = vor.u32 %v7659_v40, %v12624_v23  ;;  %v9808_v52 = vadd.f32 %v9807_v39, %v9806_v48 }
 0x2a0   : > { %7387 = vrot.lane.b32.xlu0 %v7315_v15, %s10415_s11  ;;  %v12642_v17 = vrot.slane %v5562_v55, 4  ;;  %v6565_v18 = vrot.slane %v6564_v46, 4  ;;  %10053 = vmatprep.mubr.msk.bf16.mxu0 %vm4392_vm1, %v10214_v28  ;;  %v7651_v19 = vrot.slane %v7650_v59, 4  ;;  %v9548_v31 = vrot.slane %v12626_v60, 9  ;;  %v5336_v32 = vld [vmem:[#allocation2 + $0x4c] sm:$0xf] }
 0x2a1   : > { %v4693_v25 = vadd.f32 %v12520_v44, %v4532_v24  ;;  %v7663_v51 = vshll.u32 %v7513_v34, 16  ;;  %v5405_v53 = vld [vmem:[#allocation2 + $0x48] sm:$0xf]  ;;  %v6569_v54 = vrot.slane %v6567_v20, 5  ;;  %5368 = vst.msk [vmem:[#allocation3 + $0x9c] sm:$0xf] %vm244_vm0, %v5336_v32  ;;  %v4535_v58 = vadd.f32 %v12396_v42, %v9808_v52  ;;  %v7180_v44 = vpop.permute.xlu0 %7179  ;;  %v7182_v36 = vpop.permute.xlu1 %7181 }
 0x2a2   : > { %v8074_v27 = vld [vmem:[#allocation2 + $0x54] sm:$0xe]  ;;  %v7316_v49 = vld [vmem:[#allocation2 + $0x4c] sm:$0xf]  ;;  %v12653_v57 = vrot.slane %v5572_v11, 4  ;;  %v12655_v30 = vrot.slane %v5575_v29, 5  ;;  %v5568_v21 = vsel %vm10595_vm10, %v12642_v17, %v12618_v13  ;;  %v7656_v42 = vsel %vm10595_vm10, %v7651_v19, %v12624_v23 }
 0x2a3   : > { %v9564_v63 = vrot.slane %v12644_v50, 9  ;;  %v6080_v0 = vrot.slane %v12646_v35, 5  ;;  %v4777_v45 = vmax.f32 %v4693_v25, 0.0  ;;  %7389 = vrot.lane.b32.xlu1 %v7316_v49, %s10415_s11  ;;  %v6987_v8 = vld [vmem:[#allocation2 + $0x4c] sm:$0xf]  ;;  %v6570_v3 = vsel %vm10595_vm10, %v6565_v18, %v6569_v54  ;;  %v12708_v54 = vpop.f32.mrf.mxu1 }
 0x2a4   : > { %6363 = vrot.lane.b32.xlu0 %v6291_v26, %s10416_s16  ;;  %v7514_v10 = vld [vmem:[#allocation2 + $0x54] sm:$0xf]  ;;  %7275 = vst.msk [vmem:[#allocation3 + $0x4] sm:$0xf] %vm1514_vm15, %v7180_v44  ;;  %v7661_v5 = vrot.slane %v7660_v9, 4  ;;  %v9580_v43 = vrot.slane %v8074_v27, 9  ;;  %v4696_v13 = vadd.f32 %v12558_v12, %v4535_v58  ;;  %v5578_v27 = vsel %vm10595_vm10, %v12653_v57, %v12655_v30 }
 0x2a5   : > { %v12672_v1 = vld [vmem:[#allocation2 + $0x4c] sm:$0xf]  ;;  %v5580_v37 = vshrl.u32 %v5405_v53, 16  ;;  %6942 = vst.msk [vmem:[#allocation3 + $0x28] sm:$0xf] %vm244_vm0, %v6570_v3  ;;  %v9726_v14 = vpack.c.bf16 %v4777_v45, %v4777_v45  ;;  %v7665_v55 = vrot.slane %v7663_v51, 5  ;;  %v6156_v15 = vpop.permute.xlu0 %6155  ;;  %v6158_v17 = vpop.permute.xlu1 %6157 }
 0x2a6   : > { %v8075_v47 = vld [vmem:[#allocation2 + $0x58] sm:$0xf]  ;;  %v8076_v22 = vld [vmem:[#allocation2 + $0x5c] sm:$0x1]  ;;  %v5583_v46 = vshll.u32 %v5405_v53, 16  ;;  %v7668_v40 = vshrl.u32 %v7514_v10, 16 }
 0x2a7   : > { %7276 = vst.msk [vmem:[#allocation3 + $0x10] sm:$0xf] %vm1514_vm15, %v7182_v36  ;;  %v6292_v62 = vld [vmem:[#allocation2 + $0x40] sm:$0xf]  ;;  %v8192_v59 = vrot.slane %v8075_v47, 5  ;;  %v8195_v23 = vrot.slane %v8076_v22, 5  ;;  %v7666_v61 = vsel %vm10595_vm10, %v7661_v5, %v7665_v55  ;;  %v4700_v47 = vpop.f32.mrf.mxu1 }
 0x2a8   : > { %v7671_v2 = vshll.u32 %v7514_v10, 16  ;;  %v5011_v6 = vshrl.u32 %v9726_v14, 16  ;;  %v4778_v56 = vmax.f32 %v4696_v13, 0.0  ;;  %6365 = vrot.lane.b32.xlu1 %v6292_v62, %s10416_s16  ;;  %7947 = vrot.lane.b32.xlu0 %v7656_v42, %s10416_s16  ;;  %v7104_v12 = vrot.slane %v6987_v8, 5  ;;  %6251 = vst.msk [vmem:[#allocation3] sm:$0xf] %vm1854_vm2, %v6156_v15 }
 0x2a9   : > { %v5589_v34 = vshll.u32 %v12672_v1, 16  ;;  %v8193_v48 = vsel %vm10933_vm14, %v9580_v43, %v8192_v59  ;;  %v8194_v41 = vrot.slane %v8192_v59, 4  ;;  %v12685_v28 = vld [vmem:[#allocation2 + $0x44] sm:$0x1]  ;;  %v12687_v11 = vrot.slane %v5580_v37, 4  ;;  %v9809_v5 = vpop.f32.mrf.mxu0 }
 0x2aa   : > { %v5013_v29 = vrot.slane %v5011_v6, 7  ;;  %v5014_v20 = vshll.u32 %v9726_v14, 16  ;;  %v9727_v24 = vpack.c.bf16 %v4778_v56, %v4778_v56  ;;  %v6988_v18 = vld [vmem:[#allocation2 + $0x50] sm:$0x1]  ;;  %8309 = vst.msk [vmem:[#allocation3 + $0x80] sm:$0xf] %vm244_vm0, %v8193_v48  ;;  %v7105_v45 = vsel %vm10933_vm14, %v9564_v63, %v7104_v12 }
 0x2ab   : > { %v12690_v39 = vrot.slane %v5583_v46, 5  ;;  %v5260_v26 = vld [vmem:[#allocation2 + $0x60] sm:$0xf]  ;;  %6252 = vst.msk [vmem:[#allocation3 + $0xc] sm:$0xf] %vm1854_vm2, %v6158_v17  ;;  %v8196_v19 = vsel %vm10933_vm14, %v8194_v41, %v8195_v23  ;;  %v12695_v9 = vrot.slane %v7668_v40, 4  ;;  %v9810_v23 = vpop.f32.mrf.mxu0 }
 0x2ac   : > { %v12697_v32 = vrot.slane %v7671_v2, 5  ;;  %v5593_v25 = vshrl.u32 %v12672_v1, 16  ;;  %v5016_v52 = vor.u32 %v5014_v20, %v5013_v29  ;;  %v5019_v51 = vshrl.u32 %v9727_v24, 16  ;;  %7949 = vrot.lane.b32.xlu1 %v7666_v61, %s10416_s16  ;;  %5839 = vrot.lane.b32.xlu0 %v5568_v21, %s10414_s29  ;;  %8310 = vst.msk [vmem:[#allocation3 + $0x8c] sm:$0xf] %vm244_vm0, %v8196_v19  ;;  %v7372_v59 = vpop.permute.xlu0 %7371 }
 0x2ad   : > { %v6083_v53 = vrot.slane %v12685_v28, 5  ;;  %v6481_v49 = vld [vmem:[#allocation2 + $0x24] sm:$0xf]  ;;  %v7106_v58 = vrot.slane %v7104_v12, 4  ;;  %v7107_v44 = vrot.slane %v6988_v18, 5  ;;  %v6082_v21 = vrot.slane %v6080_v0, 4  ;;  %v9812_v20 = vpop.f32.mrf.mxu0 }
 0x2ae   : > { %v12716_v8 = vld [vmem:[#allocation2 + $0x28] sm:$0xf]  ;;  %v5261_v57 = vsel %vm10622_vm11, %v5016_v52, %v5260_v26  ;;  %v5021_v30 = vrot.slane %v5019_v51, 7  ;;  %v5022_v10 = vshll.u32 %v9727_v24, 16  ;;  %v12720_v3 = vld [vmem:[#allocation2 + $0x58] sm:$0xf]  ;;  %v7674_v63 = vor.u32 %v12697_v32, %v12695_v9 }
 0x2af   : > { %v12722_v42 = vrot.slane %v5589_v34, 5  ;;  %5262 = vst [vmem:[#allocation2 + $0x60] sm:$0xf] %v5261_v57  ;;  %v5264_v50 = vld [vmem:[#allocation2 + $0x68] sm:$0x1]  ;;  %v5586_v43 = vor.u32 %v12690_v39, %v12687_v11  ;;  %v12728_v37 = vrot.slane %v5593_v25, 4  ;;  %v9811_v34 = vadd.f32 %v9810_v23, %v9809_v5 }
 0x2b0   : > { %v5407_v1 = vld [vmem:[#allocation2 + $0x50] sm:$0x1]  ;;  %v6572_v14 = vshrl.u32 %v6481_v49, 16  ;;  %v5017_v13 = vrot.slane %v5013_v29, 4  ;;  %v5024_v36 = vor.u32 %v5022_v10, %v5021_v30  ;;  %v5026_v55 = vrot.slane %v5021_v30, 4  ;;  %5841 = vrot.lane.b32.xlu1 %v5578_v27, %s10414_s29  ;;  %7199 = vrot.lane.b32.xlu0 %v7105_v45, %s10414_s29  ;;  %v7374_v19 = vpop.permute.xlu1 %7373  ;;  %v6348_v9 = vpop.permute.xlu0 %6347 }
 0x2b1   : > { %v12732_v22 = vld [vmem:[#allocation2 + $0x48] sm:$0xe]  ;;  %v12734_v46 = vld [vmem:[#allocation2 + $0x4c] sm:$0xf]  ;;  %v6575_v62 = vshll.u32 %v6481_v49, 16  ;;  %v7677_v40 = vshll.u32 %v12720_v3, 16  ;;  %v7108_v28 = vsel %vm10933_vm14, %v7106_v58, %v7107_v44  ;;  %v6081_v11 = vsel %vm10933_vm14, %v9548_v31, %v6080_v0  ;;  %v12766_v0 = vpop.f32.mrf.mxu1 }
 0x2b2   : > { %v7681_v2 = vshrl.u32 %v12720_v3, 16  ;;  %v6574_v6 = vrot.slane %v6572_v14, 4  ;;  %v6581_v56 = vshll.u32 %v12716_v8, 16  ;;  %v5025_v15 = vsel %vm10587_vm9, %v5017_v13, %v5024_v36  ;;  %7467 = vst.msk [vmem:[#allocation3 + $0x4] sm:$0xf] %vm1854_vm2, %v7372_v59 }
 0x2b3   : > { %v5265_v12 = vsel %vm10578_vm8, %v5026_v55, %v5264_v50  ;;  %v6577_v61 = vrot.slane %v6575_v62, 5  ;;  %v5337_v48 = vld [vmem:[#allocation2 + $0x54] sm:$0xf]  ;;  %v5338_v41 = vld [vmem:[#allocation2 + $0x58] sm:$0xf]  ;;  %v5599_v24 = vshll.u32 %v5407_v1, 16  ;;  %v6084_v35 = vsel %vm10933_vm14, %v6082_v21, %v6083_v53  ;;  %v9813_v53 = vpop.f32.mrf.mxu0  ;;  %v4703_v5 = vpop.f32.mrf.mxu1 }
 0x2b4   : > { %5263 = vst.msk [vmem:[#allocation2 + $0x64] sm:$0xf] %vm244_vm0, %v5025_v15  ;;  %5266 = vst [vmem:[#allocation2 + $0x68] sm:$0x1] %v5265_v12  ;;  %v10222_v29 = vld [vmem:[#allocation3 + $0x80] ss:$12 sps:$4 sm:$0xff]   ;;  %7201 = vrot.lane.b32.xlu1 %v7108_v28, %s10414_s29  ;;  %6175 = vrot.lane.b32.xlu0 %v6081_v11, %s10415_s11  ;;  %v5596_v25 = vor.u32 %v12728_v37, %v12722_v42  ;;  %v9814_v57 = vadd.f32 %v9813_v53, %v9812_v20  ;;  %v6350_v14 = vpop.permute.xlu1 %6349 }
 0x2b5   : > { %v6585_v17 = vshrl.u32 %v12716_v8, 16  ;;  %5369 = vst.msk [vmem:[#allocation3 + $0xa8] sm:$0xf] %vm244_vm0, %v5337_v48  ;;  %5370 = vst.msk [vmem:[#allocation3 + $0xb4] sm:$0xf] %vm244_vm0, %v5338_v41  ;;  %v12768_v18 = vrot.slane %v5586_v43, 4  ;;  %v6578_v26 = vor.u32 %v6577_v61, %v6574_v6  ;;  %10054 = vmatmul.mubr.msk.bf16.gmra.mxu0 %vm4392_vm1, %v10222_v29 }
 0x2b6   : > { %v12763_v60 = vld [vmem:[%s14437_s2] ss:$0 sm:$0xff]  ;;  %v12770_v39 = vld [vmem:[#allocation2 + $0x50] sm:$0x1]  ;;  %v12773_v32 = vrot.slane %v7674_v63, 4  ;;  %v9549_v51 = vrot.slane %v12732_v22, 9  ;;  %v7932_v59 = vpop.permute.xlu0 %7931 }
 0x2b7   : > { %v4540_v31 = vadd.f32 %v12763_v60, %v9811_v34  ;;  %v12777_v52 = vld [vmem:[#allocation2 + $0x54] sm:$0xe]  ;;  %v6087_v27 = vrot.slane %v12734_v46, 5  ;;  %7468 = vst.msk [vmem:[#allocation3 + $0x10] sm:$0xf] %vm1854_vm2, %v7374_v19  ;;  %v12783_v45 = vrot.slane %v7677_v40, 5  ;;  %v5592_v63 = vsel %vm10595_vm10, %v12768_v18, %v12722_v42 }
 0x2b8   : > { %6443 = vst.msk [vmem:[#allocation3] sm:$0xf] %vm2047_vm4, %v6348_v9  ;;  %v7516_v58 = vld [vmem:[#allocation2 + $0x5c] sm:$0x1]  ;;  %v7683_v44 = vrot.slane %v7681_v2, 4  ;;  %v12785_v21 = vrot.slane %v6581_v56, 5  ;;  %6177 = vrot.lane.b32.xlu1 %v6084_v35, %s10415_s11  ;;  %v4543_v13 = vadd.f32 %v12763_v60, %v9814_v57 }
 0x2b9   : > { %v4701_v49 = vadd.f32 %v4700_v47, %v4540_v31  ;;  %v7317_v8 = vld [vmem:[#allocation2 + $0x54] sm:$0xf]  ;;  %v12787_v30 = vrot.slane %v5599_v24, 5  ;;  %v6090_v10 = vrot.slane %v12770_v39, 5  ;;  %v12790_v3 = vrot.slane %v6585_v17, 4  ;;  %v10280_v39 = vld [vmem:[%s14438_s3 + $0x80] sm:$0xff]  }
 0x2ba   : > { %7391 = vrot.lane.b32.xlu0 %v7317_v8, %s10415_s11  ;;  %v8077_v43 = vld [vmem:[#allocation2 + $0x60] sm:$0xe]  ;;  %v6579_v37 = vrot.slane %v6578_v26, 4  ;;  %v7687_v36 = vshll.u32 %v7516_v58, 16  ;;  %v12799_v55 = vrot.slane %v5596_v25, 4  ;;  %v9565_v47 = vrot.slane %v12777_v52, 9  ;;  %v7934_v25 = vpop.permute.xlu1 %7933  ;;  %v5824_v53 = vpop.permute.xlu0 %5823 }
 0x2bb   : > { %v4779_v50 = vmax.f32 %v4701_v49, 0.0  ;;  %v7517_v1 = vld [vmem:[#allocation2 + $0x60] sm:$0xf]  ;;  %v12802_v62 = vld [vmem:[#allocation2 + $0x2c] sm:$0x1]  ;;  %v7680_v2 = vsel %vm10595_vm10, %v12773_v32, %v12783_v45  ;;  %v7684_v6 = vor.u32 %v7683_v44, %v12783_v45  ;;  %v4704_v61 = vadd.f32 %v4703_v5, %v4543_v13 }
 0x2bc   : > { %6444 = vst.msk [vmem:[#allocation3 + $0xc] sm:$0xf] %vm2047_vm4, %v6350_v14  ;;  %v6293_v40 = vld [vmem:[#allocation2 + $0x48] sm:$0xf]  ;;  %v8078_v56 = vld [vmem:[#allocation2 + $0x64] sm:$0xf]  ;;  %v6584_v12 = vsel %vm10595_vm10, %v6579_v37, %v12785_v21  ;;  %v6588_v17 = vor.u32 %v12790_v3, %v12785_v21  ;;  %v6088_v52 = vsel %vm10933_vm14, %v9549_v51, %v6087_v27 }
 0x2bd   : > { %v9728_v23 = vpack.c.bf16 %v4779_v50, %v4779_v50  ;;  %v8079_v15 = vld [vmem:[#allocation2 + $0x68] sm:$0x1]  ;;  %8027 = vst.msk [vmem:[#allocation3 + $0x4] sm:$0xf] %vm2047_vm4, %v7932_v59  ;;  %v7318_v34 = vld [vmem:[#allocation2 + $0x58] sm:$0xf] }
 0x2be   : > { %v9581_v48 = vrot.slane %v8077_v43, 9  ;;  %v8199_v41 = vrot.slane %v8078_v56, 5  ;;  %v7692_v28 = vshrl.u32 %v7517_v1, 16  ;;  %6943 = vst.msk [vmem:[#allocation3 + $0x34] sm:$0xf] %vm244_vm0, %v6584_v12  ;;  %7393 = vrot.lane.b32.xlu1 %v7318_v34, %s10415_s11  ;;  %6367 = vrot.lane.b32.xlu0 %v6293_v40, %s10416_s16  ;;  %v7695_v20 = vshll.u32 %v7517_v1, 16  ;;  %v5826_v56 = vpop.permute.xlu1 %5825 }
 0x2bf   : > { %v5028_v11 = vshrl.u32 %v9728_v23, 16  ;;  %v5031_v29 = vshll.u32 %v9728_v23, 16  ;;  %v5408_v24 = vld [vmem:[#allocation2 + $0x54] sm:$0xf]  ;;  %v4780_v35 = vmax.f32 %v4704_v61, 0.0  ;;  %v8202_v9 = vrot.slane %v8079_v15, 5  ;;  %v7184_v15 = vpop.permute.xlu0 %7183 }
 0x2c0   : > { %v12819_v31 = vld [vmem:[#allocation2 + $0x58] sm:$0xf]  ;;  %v8200_v26 = vsel %vm10933_vm14, %v9581_v48, %v8199_v41  ;;  %v8201_v19 = vrot.slane %v8199_v41, 4  ;;  %v7685_v49 = vrot.slane %v7684_v6, 4  ;;  %v7689_v45 = vrot.slane %v7687_v36, 5  ;;  %v9815_v41 = vpop.f32.mrf.mxu0 }
 0x2c1   : > { %v12823_v32 = vrot.slane %v5028_v11, 7  ;;  %8311 = vst.msk [vmem:[#allocation3 + $0x98] sm:$0xf] %vm244_vm0, %v8200_v26  ;;  %v7518_v58 = vld [vmem:[#allocation2 + $0x64] sm:$0xf]  ;;  %v6591_v44 = vshll.u32 %v12802_v62, 16  ;;  %v9729_v8 = vpack.c.bf16 %v4780_v35, %v4780_v35 }
 0x2c2   : > { %v5267_v21 = vld [vmem:[#allocation2 + $0x6c] sm:$0xf]  ;;  %8028 = vst.msk [vmem:[#allocation3 + $0x10] sm:$0xf] %vm2047_vm4, %v7934_v25  ;;  %v8203_v3 = vsel %vm10933_vm14, %v8201_v19, %v8202_v9  ;;  %v5604_v50 = vshrl.u32 %v5408_v24, 16  ;;  %v5607_v5 = vshll.u32 %v5408_v24, 16  ;;  %7951 = vrot.lane.b32.xlu0 %v7680_v2, %s10416_s16  ;;  %v7690_v2 = vsel %vm10595_vm10, %v7685_v49, %v7689_v45 }
 0x2c3   : > { %5917 = vst.msk [vmem:[#allocation3 + $0x18] sm:$0xf] %vm1514_vm15, %v5824_v53  ;;  %v6294_v57 = vld [vmem:[#allocation2 + $0x4c] sm:$0xf]  ;;  %v5033_v43 = vor.u32 %v5031_v29, %v12823_v32  ;;  %v7111_v1 = vrot.slane %v12819_v31, 5  ;;  %v12836_v37 = vrot.slane %v7692_v28, 4  ;;  %v6160_v49 = vpop.permute.xlu0 %6159  ;;  %v5602_v45 = vsel %vm10595_vm10, %v12799_v55, %v12787_v30 }
 0x2c4   : > { %6369 = vrot.lane.b32.xlu1 %v6294_v57, %s10416_s16  ;;  %8312 = vst.msk [vmem:[#allocation3 + $0xa4] sm:$0xf] %vm244_vm0, %v8203_v3  ;;  %v6589_v14 = vrot.slane %v6588_v17, 4  ;;  %v5036_v13 = vshrl.u32 %v9729_v8, 16  ;;  %v5039_v36 = vshll.u32 %v9729_v8, 16  ;;  %v7697_v59 = vrot.slane %v7695_v20, 5 }
 0x2c5   : > { %v12838_v62 = vld [vmem:[#allocation2 + $0x5c] sm:$0x1]  ;;  %v7701_v23 = vshll.u32 %v7518_v58, 16  ;;  %v5268_v40 = vsel %vm10622_vm11, %v5033_v43, %v5267_v21  ;;  %v5271_v6 = vld [vmem:[#allocation2 + $0x74] sm:$0x1]  ;;  %v7705_v12 = vshrl.u32 %v7518_v58, 16  ;;  %v7112_v30 = vsel %vm10933_vm14, %v9565_v47, %v7111_v1 }
 0x2c6   : > { %v6593_v34 = vrot.slane %v6591_v44, 5  ;;  %v5034_v61 = vrot.slane %v12823_v32, 4  ;;  %5269 = vst [vmem:[#allocation2 + $0x6c] sm:$0xf] %v5268_v40  ;;  %v5038_v48 = vrot.slane %v5036_v13, 7  ;;  %v5606_v11 = vrot.slane %v5604_v50, 4  ;;  %5843 = vrot.lane.b32.xlu0 %v5592_v63, %s10414_s29  ;;  %v9816_v32 = vpop.f32.mrf.mxu0  ;;  %v7186_v63 = vpop.permute.xlu1 %7185 }
 0x2c7   : > { %5918 = vst.msk [vmem:[#allocation3 + $0x24] sm:$0xf] %vm1514_vm15, %v5826_v56  ;;  %7277 = vst.msk [vmem:[#allocation3 + $0x1c] sm:$0xf] %vm1514_vm15, %v7184_v15  ;;  %v12847_v28 = vld [vmem:[#allocation2 + $0x58] sm:$0xf]  ;;  %v7698_v25 = vor.u32 %v7697_v59, %v12836_v37  ;;  %v9817_v18 = vadd.f32 %v9816_v32, %v9815_v41  ;;  %v7376_v51 = vpop.permute.xlu0 %7375 }
 0x2c8   : > { %v5609_v29 = vrot.slane %v5607_v5, 5  ;;  %7953 = vrot.lane.b32.xlu1 %v7690_v2, %s10416_s16  ;;  %v7113_v20 = vrot.slane %v7111_v1, 4  ;;  %v7114_v24 = vrot.slane %v12838_v62, 5  ;;  %v12857_v17 = vld [vmem:[#allocation2 + $0x68] sm:$0x1]  ;;  %v6594_v35 = vsel %vm10595_vm10, %v6589_v14, %v6593_v34  ;;  %v9818_v3 = vpop.f32.mrf.mxu0 }
 0x2c9   : > { %v6484_v31 = vld [vmem:[#allocation2 + $0x30] sm:$0xf]  ;;  %v5339_v26 = vld [vmem:[#allocation2 + $0x60] sm:$0xf]  ;;  %v5041_v19 = vor.u32 %v5039_v36, %v5038_v48  ;;  %v5043_v9 = vrot.slane %v5038_v48, 4  ;;  %v12862_v53 = vrot.slane %v7701_v23, 5  ;;  %v4548_v5 = vadd.f32 %v12763_v60, %v9817_v18 }
 0x2ca   : > { %6944 = vst.msk [vmem:[#allocation3 + $0x40] sm:$0xf] %vm244_vm0, %v6594_v35  ;;  %5371 = vst.msk [vmem:[#allocation3 + $0xc0] sm:$0xf] %vm244_vm0, %v5339_v26  ;;  %v5340_v42 = vld [vmem:[#allocation2 + $0x64] sm:$0xf]  ;;  %v5610_v50 = vor.u32 %v5609_v29, %v5606_v11  ;;  %7203 = vrot.lane.b32.xlu0 %v7112_v30, %s10414_s29  ;;  %v9819_v1 = vpop.f32.mrf.mxu0  ;;  %v6162_v59 = vpop.permute.xlu1 %6161  ;;  %v7115_v46 = vsel %vm10933_vm14, %v7113_v20, %v7114_v24 }
 0x2cb   : > { %v10232_v58 = vld [vmem:[#allocation3] ss:$12 sps:$4 sm:$0xff]   ;;  %v10234_v44 = vld [vmem:[#allocation3 + $0x4] ss:$12 sps:$4 sm:$0xff]   ;;  %v7707_v21 = vrot.slane %v7705_v12, 4  ;;  %v5042_v8 = vsel %vm10587_vm9, %v5034_v61, %v5041_v19  ;;  %v5272_v57 = vsel %vm10578_vm8, %v5043_v9, %v5271_v6  ;;  %v6089_v47 = vrot.slane %v6087_v27, 4  ;;  %v6352_v35 = vpop.permute.xlu0 %6351 }
 0x2cc   : > { %5372 = vst.msk [vmem:[#allocation3 + $0xcc] sm:$0xf] %vm244_vm0, %v5340_v42  ;;  %v10235_v55 = vld [vmem:[#allocation3 + $0x98] ss:$12 sps:$4 sm:$0xff]   ;;  %5270 = vst.msk [vmem:[#allocation2 + $0x70] sm:$0xf] %vm244_vm0, %v5042_v8  ;;  %5845 = vrot.lane.b32.xlu1 %v5602_v45, %s10414_s29  ;;  %8866 = vmatprep.mubr.bf16.mxu1 %v10234_v44  ;;  %v4709_v22 = vadd.f32 %v12708_v54, %v4548_v5  ;;  %v9820_v62 = vadd.f32 %v9819_v1, %v9818_v3 }
 0x2cd   : > { %7278 = vst.msk [vmem:[#allocation3 + $0x28] sm:$0xf] %vm1514_vm15, %v7186_v63  ;;  %5273 = vst [vmem:[#allocation2 + $0x74] sm:$0x1] %v5272_v57  ;;  %v5613_v43 = vshll.u32 %v12847_v28, 16  ;;  %10057 = vmatprep.mubr.msk.bf16.mxu0 %vm4392_vm1, %v10235_v55  ;;  %v12895_v37 = vrot.slane %v7698_v25, 4  ;;  %8867 = vmatmul.mubr.bf16.vlgmr.msra.gmra.mxu1 %v10232_v58  ;;  %v7708_v27 = vor.u32 %v7707_v21, %v12862_v53 }
 0x2ce   : > { %6253 = vst.msk [vmem:[#allocation3 + $0x18] sm:$0xf] %vm1854_vm2, %v6160_v49  ;;  %v7711_v14 = vshll.u32 %v12857_v17, 16  ;;  %v6596_v13 = vshrl.u32 %v6484_v31, 16  ;;  %v6599_v36 = vshll.u32 %v6484_v31, 16  ;;  %v12906_v40 = vrot.slane %v5610_v50, 4  ;;  %6179 = vrot.lane.b32.xlu0 %v6088_v52, %s10415_s11  ;;  %v7378_v17 = vpop.permute.xlu1 %7377 }
 0x2cf   : > { %v12902_v23 = vld [vmem:[#allocation2 + $0x34] sm:$0xf]  ;;  %6254 = vst.msk [vmem:[#allocation3 + $0x24] sm:$0xf] %vm1854_vm2, %v6162_v59  ;;  %7469 = vst.msk [vmem:[#allocation3 + $0x1c] sm:$0xf] %vm1854_vm2, %v7376_v51  ;;  %v4551_v34 = vadd.f32 %v12763_v60, %v9820_v62  ;;  %v6091_v61 = vsel %vm10933_vm14, %v6089_v47, %v6090_v10  ;;  %v12966_v59 = vpop.f32.mrf.mxu1 }
 0x2d0   : > { %v5617_v6 = vshrl.u32 %v12847_v28, 16  ;;  %v8080_v54 = vld [vmem:[#allocation2 + $0x6c] sm:$0xe]  ;;  %v12909_v56 = vrot.slane %v6596_v13, 4  ;;  %v6601_v15 = vrot.slane %v6599_v36, 5  ;;  %v4781_v12 = vmax.f32 %v4709_v22, 0.0  ;;  %7205 = vrot.lane.b32.xlu1 %v7115_v46, %s10414_s29 }
 0x2d1   : > { %v10279_v2 = vld [vmem:[%s14438_s3 + $0x88] sm:$0xff]   ;;  %v12921_v48 = vld [vmem:[#allocation2 + $0x5c] sm:$0x1]  ;;  %v7319_v41 = vld [vmem:[#allocation2 + $0x60] sm:$0xf]  ;;  %v7704_v28 = vsel %vm10595_vm10, %v12895_v37, %v12862_v53  ;;  %v12927_v11 = vrot.slane %v7711_v14, 5  ;;  %v4712_v24 = vadd.f32 %v12766_v0, %v4551_v34 }
 0x2d2   : > { %10079 = vmatpush3.bf16.msra.mxu1 %v10279_v2  ;;  %v12929_v29 = vrot.slane %v5613_v43, 5  ;;  %v6605_v20 = vshll.u32 %v12902_v23, 16  ;;  %v9730_v10 = vpack.c.bf16 %v4781_v12, %v4781_v12  ;;  %v12936_v31 = vrot.slane %v7708_v27, 4  ;;  %v12938_v26 = vld [vmem:[#allocation2 + $0x60] sm:$0xe]  ;;  %7395 = vrot.lane.b32.xlu0 %v7319_v41, %s10415_s11  ;;  %v6354_v47 = vpop.permute.xlu1 %6353  ;;  %v7936_v43 = vpop.permute.xlu0 %7935 }
 0x2d3   : > { %10078 = vmatprep.subr.bf16.mxu1 %v10280_v39  ;;  %v12940_v19 = vld [vmem:[#allocation2 + $0x64] sm:$0xf]  ;;  %v9582_v9 = vrot.slane %v8080_v54, 9  ;;  %7470 = vst.msk [vmem:[#allocation3 + $0x28] sm:$0xf] %vm1854_vm2, %v7378_v17  ;;  %v5619_v25 = vrot.slane %v5617_v6, 4  ;;  %v6602_v63 = vor.u32 %v6601_v15, %v12909_v56 }
 0x2d4   : > { %6445 = vst.msk [vmem:[#allocation3 + $0x18] sm:$0xf] %vm2047_vm4, %v6352_v35  ;;  %v5616_v32 = vsel %vm10595_vm10, %v12906_v40, %v12929_v29  ;;  %v5623_v0 = vshll.u32 %v12921_v48, 16  ;;  %v8081_v42 = vld [vmem:[#allocation2 + $0x70] sm:$0xf]  ;;  %v5045_v49 = vshrl.u32 %v9730_v10, 16  ;;  %6181 = vrot.lane.b32.xlu1 %v6091_v61, %s10415_s11 }
 0x2d5   : > { %v8082_v18 = vld [vmem:[#allocation2 + $0x74] sm:$0x1]  ;;  %v5048_v45 = vshll.u32 %v9730_v10, 16  ;;  %v4782_v58 = vmax.f32 %v4712_v24, 0.0  ;;  %v8206_v44 = vrot.slane %v8081_v42, 5  ;;  %v9566_v3 = vrot.slane %v12938_v26, 9 }
 0x2d6   : > { %10080 = vmatpush3.bf16.msra.mxu1 %v10280_v39  ;;  %v7520_v21 = vld [vmem:[#allocation2 + $0x6c] sm:$0xf]  ;;  %v5274_v8 = vld [vmem:[#allocation2 + $0x78] sm:$0xf]  ;;  %v6295_v57 = vld [vmem:[#allocation2 + $0x54] sm:$0xf]  ;;  %v5620_v62 = vor.u32 %v5619_v25, %v12929_v29  ;;  %v7938_v24 = vpop.permute.xlu1 %7937  ;;  %v5828_v17 = vpop.permute.xlu0 %5827 }
 0x2d7   : > { %v7118_v30 = vrot.slane %v12940_v19, 5  ;;  %v8209_v55 = vrot.slane %v8082_v18, 5  ;;  %v12954_v50 = vrot.slane %v6605_v20, 5  ;;  %v12956_v5 = vrot.slane %v5045_v49, 7  ;;  %v7521_v13 = vld [vmem:[#allocation2 + $0x70] sm:$0xf]  ;;  %6371 = vrot.lane.b32.xlu0 %v6295_v57, %s10416_s16 }
 0x2d8   : > { %v9731_v52 = vpack.c.bf16 %v4782_v58, %v4782_v58  ;;  %v8207_v1 = vsel %vm10933_vm14, %v9582_v9, %v8206_v44  ;;  %v8208_v14 = vrot.slane %v8206_v44, 4  ;;  %v12960_v36 = vld [vmem:[#allocation2 + $0x60] sm:$0xf]  ;;  %6446 = vst.msk [vmem:[#allocation3 + $0x24] sm:$0xf] %vm2047_vm4, %v6354_v47  ;;  %v7716_v51 = vshrl.u32 %v7520_v21, 16 }
 0x2d9   : > { %8029 = vst.msk [vmem:[#allocation3 + $0x1c] sm:$0xf] %vm2047_vm4, %v7936_v43  ;;  %v7320_v22 = vld [vmem:[#allocation2 + $0x64] sm:$0xf]  ;;  %v7719_v46 = vshll.u32 %v7520_v21, 16  ;;  %v6603_v27 = vrot.slane %v6602_v63, 4  ;;  %v5050_v6 = vor.u32 %v5048_v45, %v12956_v5  ;;  %v7119_v40 = vsel %vm10933_vm14, %v9566_v3, %v7118_v30 }
 0x2da   : > { %8313 = vst.msk [vmem:[#allocation3 + $0xb0] sm:$0xf] %vm244_vm0, %v8207_v1  ;;  %v5053_v54 = vshrl.u32 %v9731_v52, 16  ;;  %v5056_v56 = vshll.u32 %v9731_v52, 16  ;;  %7397 = vrot.lane.b32.xlu1 %v7320_v22, %s10415_s11  ;;  %v12971_v15 = vld [vmem:[#allocation2 + $0x68] sm:$0x1]  ;;  %v8210_v34 = vsel %vm10933_vm14, %v8208_v14, %v8209_v55  ;;  %v5830_v37 = vpop.permute.xlu1 %5829 }
 0x2db   : > { %v6609_v2 = vshrl.u32 %v12902_v23, 16  ;;  %v5278_v12 = vld [vmem:[#allocation2 + $0x80] sm:$0x1]  ;;  %v7725_v61 = vshll.u32 %v7521_v13, 16  ;;  %v7729_v48 = vshrl.u32 %v7521_v13, 16  ;;  %v6608_v41 = vsel %vm10595_vm10, %v6603_v27, %v12954_v50  ;;  %7955 = vrot.lane.b32.xlu0 %v7704_v28, %s10416_s16  ;;  %v7188_v28 = vpop.permute.xlu0 %7187 }
 0x2dc   : > { %v5051_v20 = vrot.slane %v12956_v5, 4  ;;  %v5275_v39 = vsel %vm10622_vm11, %v5050_v6, %v5274_v8  ;;  %v5055_v10 = vrot.slane %v5053_v54, 7  ;;  %v7714_v23 = vsel %vm10595_vm10, %v12936_v31, %v12927_v11  ;;  %v12986_v35 = vld [vmem:[#allocation2 + $0x54] sm:$0xe]  ;;  %8314 = vst.msk [vmem:[#allocation3 + $0xbc] sm:$0xf] %vm244_vm0, %v8210_v34  ;;  %v9821_v11 = vpop.f32.mrf.mxu0  ;;  %v4716_v31 = vpop.f32.mrf.mxu1 }
 0x2dd   : > { %6945 = vst.msk [vmem:[#allocation3 + $0x4c] sm:$0xf] %vm244_vm0, %v6608_v41  ;;  %v6486_v9 = vld [vmem:[#allocation2 + $0x38] sm:$0x1]  ;;  %5276 = vst [vmem:[#allocation2 + $0x78] sm:$0xf] %v5275_v39 }
 0x2de   : > { %8030 = vst.msk [vmem:[#allocation3 + $0x28] sm:$0xf] %vm2047_vm4, %v7938_v24  ;;  %v6296_v25 = vld [vmem:[#allocation2 + $0x58] sm:$0xf]  ;;  %v12992_v42 = vrot.slane %v5620_v62, 4  ;;  %v12994_v18 = vrot.slane %v5623_v0, 5  ;;  %v5058_v45 = vor.u32 %v5056_v56, %v5055_v10  ;;  %v9822_v8 = vpop.f32.mrf.mxu0  ;;  %v13027_v27 = vpop.f32.mrf.mxu1 }
 0x2df   : > { %5919 = vst.msk [vmem:[#allocation3 + $0x30] sm:$0xf] %vm1514_vm15, %v5828_v17  ;;  %v7121_v63 = vrot.slane %v12971_v15, 5  ;;  %v5628_v49 = vshrl.u32 %v12960_v36, 16  ;;  %v5060_v58 = vrot.slane %v5055_v10, 4  ;;  %6373 = vrot.lane.b32.xlu1 %v6296_v25, %s10416_s16  ;;  %v13007_v0 = vrot.slane %v7716_v51, 4  ;;  %5847 = vrot.lane.b32.xlu0 %v5616_v32, %s10414_s29  ;;  %v6164_v39 = vpop.permute.xlu0 %6163 }
 0x2e0   : > { %v13005_v44 = vld [vmem:[#allocation2 + $0x58] sm:$0xf]  ;;  %v7721_v21 = vrot.slane %v7719_v46, 5  ;;  %v13009_v57 = vrot.slane %v7725_v61, 5  ;;  %v13011_v55 = vld [vmem:[#allocation2 + $0x74] sm:$0x1]  ;;  %v5059_v43 = vsel %vm10587_vm9, %v5051_v20, %v5058_v45  ;;  %v9823_v1 = vadd.f32 %v9822_v8, %v9821_v11  ;;  %v9824_v46 = vpop.f32.mrf.mxu0  ;;  %v7190_v20 = vpop.permute.xlu1 %7189 }
 0x2e1   : > { %v7731_v5 = vrot.slane %v7729_v48, 4  ;;  %v6611_v52 = vrot.slane %v6609_v2, 4  ;;  %v6615_v47 = vshll.u32 %v6486_v9, 16  ;;  %v5279_v53 = vsel %vm10578_vm8, %v5060_v58, %v5278_v12  ;;  %5277 = vst.msk [vmem:[#allocation2 + $0x7c] sm:$0xf] %vm244_vm0, %v5059_v43  ;;  %v8335_v6 = vld [vmem:[#allocation3 + $0x18] sm:$0xff]  ;;  %v4719_v11 = vpop.f32.mrf.mxu1 }
 0x2e2   : > { %v5631_v14 = vshll.u32 %v12960_v36, 16  ;;  %5280 = vst [vmem:[#allocation2 + $0x80] sm:$0x1] %v5279_v53  ;;  %5920 = vst.msk [vmem:[#allocation3 + $0x3c] sm:$0xf] %vm1514_vm15, %v5830_v37  ;;  %v7120_v13 = vrot.slane %v7118_v30, 4  ;;  %v4556_v54 = vadd.f32 %v12763_v60, %v9823_v1  ;;  %v7722_v56 = vor.u32 %v7721_v21, %v13007_v0  ;;  %v9825_v32 = vpop.f32.mrf.mxu0 }
 0x2e3   : > { %7279 = vst.msk [vmem:[#allocation3 + $0x34] sm:$0xf] %vm1514_vm15, %v7188_v28  ;;  %v9550_v22 = vrot.slane %v12986_v35, 9  ;;  %v6094_v62 = vrot.slane %v13005_v44, 5  ;;  %v13025_v51 = vld [vmem:[#allocation2 + $0x5c] sm:$0x1]  ;;  %v6612_v36 = vor.u32 %v6611_v52, %v12954_v50  ;;  %7957 = vrot.lane.b32.xlu1 %v7714_v23, %s10416_s16  ;;  %v7732_v61 = vor.u32 %v7731_v5, %v13009_v57  ;;  %7207 = vrot.lane.b32.xlu0 %v7119_v40, %s10414_s29  ;;  %v7380_v15 = vpop.permute.xlu0 %7379 }
 0x2e4   : > { %v7735_v2 = vshll.u32 %v13011_v55, 16  ;;  %v13040_v12 = vld [vmem:[#allocation2 + $0x64] sm:$0xf]  ;;  %v13042_v34 = vrot.slane %v5628_v49, 4  ;;  %v5341_v50 = vld [vmem:[#allocation2 + $0x6c] sm:$0xf]  ;;  %v5626_v19 = vsel %vm10595_vm10, %v12992_v42, %v12994_v18  ;;  %v9826_v24 = vadd.f32 %v9825_v32, %v9824_v46  ;;  %v6166_v8 = vpop.permute.xlu1 %6165 }
 0x2e5   : > { %v10238_v29 = vld [vmem:[#allocation3 + $0xb0] ss:$12 sps:$4 sm:$0xff]   ;;  %v6613_v48 = vrot.slane %v6612_v36, 4  ;;  %v6617_v41 = vrot.slane %v6615_v47, 5  ;;  %5373 = vst.msk [vmem:[#allocation3 + $0xd8] sm:$0xf] %vm244_vm0, %v5341_v50  ;;  %v4717_v17 = vadd.f32 %v4716_v31, %v4556_v54  ;;  %v7122_v18 = vsel %vm10933_vm14, %v7120_v13, %v7121_v63 }
 0x2e6   : > { %v8337_v10 = vld [vmem:[#allocation3 + $0x24] sm:$0xff]  ;;  %v8083_v3 = vld [vmem:[#allocation2 + $0x78] sm:$0xe]  ;;  %v5633_v30 = vrot.slane %v5631_v14, 5  ;;  %7280 = vst.msk [vmem:[#allocation3 + $0x40] sm:$0xf] %vm1514_vm15, %v7190_v20  ;;  %10058 = vmatmul.mubr.msk.bf16.gmra.mxu0 %vm4392_vm1, %v10238_v29  ;;  %v4559_v49 = vadd.f32 %v12763_v60, %v9826_v24  ;;  %v6095_v53 = vsel %vm10933_vm14, %v9550_v22, %v6094_v62 }
 0x2e7   : > { %v10236_v26 = vld [vmem:[#allocation3 + $0x1c] ss:$12 sps:$4 sm:$0xff]   ;;  %6255 = vst.msk [vmem:[#allocation3 + $0x30] sm:$0xf] %vm1854_vm2, %v6164_v39  ;;  %v9595_v23 = vcombine.low %v8335_v6, %v8337_v10  ;;  %v6096_v9 = vrot.slane %v6094_v62, 4  ;;  %v6097_v25 = vrot.slane %v13025_v51, 5  ;;  %v6618_v42 = vsel %vm10595_vm10, %v6613_v48, %v6617_v41  ;;  %5849 = vrot.lane.b32.xlu1 %v5626_v19, %s10414_s29  ;;  %6183 = vrot.lane.b32.xlu0 %v6095_v53, %s10415_s11  ;;  %v6356_v50 = vpop.permute.xlu0 %6355 }
 0x2e8   : > { %v4783_v31 = vmax.f32 %v4717_v17, 0.0  ;;  %v13069_v45 = vrot.slane %v7722_v56, 4  ;;  %6946 = vst.msk [vmem:[#allocation3 + $0x58] sm:$0xf] %vm244_vm0, %v6618_v42  ;;  %8874 = vmatprep.mubr.bf16.mxu1 %v10236_v26  ;;  %v9583_v58 = vrot.slane %v8083_v3, 9  ;;  %v13072_v44 = vrot.slane %v7732_v61, 4 }
 0x2e9   : > { %v5637_v0 = vshll.u32 %v13040_v12, 16  ;;  %v5641_v21 = vshrl.u32 %v13040_v12, 16  ;;  %8875 = vmatmul.mubr.bf16.gmra.mxu1 %v9595_v23  ;;  %v4720_v63 = vadd.f32 %v4719_v11, %v4559_v49  ;;  %v8084_v5 = vld [vmem:[#allocation2 + $0x7c] sm:$0xf]  ;;  %v8085_v52 = vld [vmem:[#allocation2 + $0x80] sm:$0x1]  ;;  %v5634_v43 = vor.u32 %v5633_v30, %v13042_v34  ;;  %v7382_v34 = vpop.permute.xlu1 %7381 }
 0x2ea   : > { %v9732_v55 = vpack.c.bf16 %v4783_v31, %v4783_v31  ;;  %v13076_v47 = vrot.slane %v7735_v2, 5  ;;  %6256 = vst.msk [vmem:[#allocation3 + $0x3c] sm:$0xf] %vm1854_vm2, %v6166_v8  ;;  %7471 = vst.msk [vmem:[#allocation3 + $0x34] sm:$0xf] %vm1854_vm2, %v7380_v15  ;;  %v6098_v37 = vsel %vm10933_vm14, %v6096_v9, %v6097_v25  ;;  %v8213_v28 = vrot.slane %v8084_v5, 5  ;;  %v9827_v5 = vpop.f32.mrf.mxu0 }
 0x2eb   : > { %v8216_v1 = vrot.slane %v8085_v52, 5  ;;  %v6487_v14 = vld [vmem:[#allocation2 + $0x3c] sm:$0xf]  ;;  %7209 = vrot.lane.b32.xlu1 %v7122_v18, %s10414_s29  ;;  %v4784_v46 = vmax.f32 %v4720_v63, 0.0  ;;  %v7728_v35 = vsel %vm10595_vm10, %v13069_v45, %v13009_v57  ;;  %v13093_v36 = vld [vmem:[#allocation2 + $0x68] sm:$0x1] }
 0x2ec   : > { %v5062_v13 = vshrl.u32 %v9732_v55, 16  ;;  %v5065_v51 = vshll.u32 %v9732_v55, 16  ;;  %v5281_v22 = vld [vmem:[#allocation2 + $0x84] sm:$0xf]  ;;  %v8214_v62 = vsel %vm10933_vm14, %v9583_v58, %v8213_v28  ;;  %v8215_v6 = vrot.slane %v8213_v28, 4  ;;  %v7940_v58 = vpop.permute.xlu0 %7939 }
 0x2ed   : > { %v13097_v54 = vrot.slane %v5637_v0, 5  ;;  %v5643_v56 = vrot.slane %v5641_v21, 4  ;;  %v13099_v2 = vld [vmem:[#allocation2 + $0x6c] sm:$0xe]  ;;  %v13101_v12 = vld [vmem:[#allocation2 + $0x40] sm:$0xf]  ;;  %v9733_v32 = vpack.c.bf16 %v4784_v46, %v4784_v46  ;;  %v7738_v61 = vsel %vm10595_vm10, %v13072_v44, %v13076_v47  ;;  %v6358_v49 = vpop.permute.xlu1 %6357 }
 0x2ee   : > { %v7321_v40 = vld [vmem:[#allocation2 + $0x6c] sm:$0xf]  ;;  %v5064_v29 = vrot.slane %v5062_v13, 7  ;;  %8315 = vst.msk [vmem:[#allocation3 + $0xc8] sm:$0xf] %vm244_vm0, %v8214_v62  ;;  %v13108_v48 = vrot.slane %v5634_v43, 4  ;;  %v8217_v20 = vsel %vm10933_vm14, %v8215_v6, %v8216_v1  ;;  %v9828_v62 = vpop.f32.mrf.mxu0 }
 0x2ef   : > { %v13110_v41 = vld [vmem:[#allocation2 + $0x70] sm:$0xf]  ;;  %7472 = vst.msk [vmem:[#allocation3 + $0x40] sm:$0xf] %vm1854_vm2, %v7382_v34  ;;  %v5647_v39 = vshll.u32 %v13093_v36, 16  ;;  %v6620_v10 = vshrl.u32 %v6487_v14, 16  ;;  %6185 = vrot.lane.b32.xlu1 %v6098_v37, %s10415_s11  ;;  %7399 = vrot.lane.b32.xlu0 %v7321_v40, %s10415_s11  ;;  %v5644_v11 = vor.u32 %v5643_v56, %v13097_v54 }
 0x2f0   : > { %6447 = vst.msk [vmem:[#allocation3 + $0x30] sm:$0xf] %vm2047_vm4, %v6356_v50  ;;  %v13117_v19 = vld [vmem:[#allocation2 + $0x74] sm:$0x1]  ;;  %v6623_v26 = vshll.u32 %v6487_v14, 16  ;;  %v5067_v24 = vor.u32 %v5065_v51, %v5064_v29  ;;  %v5070_v17 = vshrl.u32 %v9733_v32, 16  ;;  %v5832_v40 = vpop.permute.xlu0 %5831 }
 0x2f1   : > { %v5073_v3 = vshll.u32 %v9733_v32, 16  ;;  %8316 = vst.msk [vmem:[#allocation3 + $0xd4] sm:$0xf] %vm244_vm0, %v8217_v20  ;;  %v9567_v30 = vrot.slane %v13099_v2, 9  ;;  %v7523_v23 = vld [vmem:[#allocation2 + $0x78] sm:$0xf]  ;;  %v7942_v50 = vpop.permute.xlu1 %7941 }
 0x2f2   : > { %v6297_v9 = vld [vmem:[#allocation2 + $0x60] sm:$0xf]  ;;  %v5285_v25 = vld [vmem:[#allocation2 + $0x8c] sm:$0x1]  ;;  %v7125_v42 = vrot.slane %v13110_v41, 5  ;;  %v6622_v18 = vrot.slane %v6620_v10, 4  ;;  %v5282_v21 = vsel %vm10622_vm11, %v5067_v24, %v5281_v22  ;;  %v9829_v41 = vadd.f32 %v9828_v62, %v9827_v5  ;;  %v9830_v24 = vpop.f32.mrf.mxu0 }
 0x2f3   : > { %v6625_v31 = vrot.slane %v6623_v26, 5  ;;  %v5068_v0 = vrot.slane %v5064_v29, 4  ;;  %v5072_v8 = vrot.slane %v5070_v17, 7  ;;  %v7524_v15 = vld [vmem:[#allocation2 + $0x7c] sm:$0xf]  ;;  %v6629_v55 = vshll.u32 %v13101_v12, 16  ;;  %6375 = vrot.lane.b32.xlu0 %v6297_v9, %s10416_s16 }
 0x2f4   : > { %6448 = vst.msk [vmem:[#allocation3 + $0x3c] sm:$0xf] %vm2047_vm4, %v6358_v49  ;;  %8031 = vst.msk [vmem:[#allocation3 + $0x34] sm:$0xf] %vm2047_vm4, %v7940_v58  ;;  %v7322_v63 = vld [vmem:[#allocation2 + $0x70] sm:$0xf]  ;;  %v5640_v26 = vsel %vm10595_vm10, %v13108_v48, %v13097_v54  ;;  %v4564_v9 = vadd.f32 %v12763_v60, %v9829_v41  ;;  %v7126_v48 = vsel %vm10933_vm14, %v9567_v30, %v7125_v42  ;;  %v7192_v36 = vpop.permute.xlu0 %7191 }
 0x2f5   : > { %5283 = vst [vmem:[#allocation2 + $0x84] sm:$0xf] %v5282_v21  ;;  %v7128_v52 = vrot.slane %v13117_v19, 5  ;;  %v7740_v43 = vshrl.u32 %v7523_v23, 16  ;;  %v7743_v53 = vshll.u32 %v7523_v23, 16  ;;  %v6626_v37 = vor.u32 %v6625_v31, %v6622_v18  ;;  %7401 = vrot.lane.b32.xlu1 %v7322_v63, %s10415_s11  ;;  %v9831_v18 = vpop.f32.mrf.mxu0  ;;  %v5834_v49 = vpop.permute.xlu1 %5833 }
 0x2f6   : > { %v5075_v28 = vor.u32 %v5073_v3, %v5072_v8  ;;  %v5077_v1 = vrot.slane %v5072_v8, 4  ;;  %v13133_v14 = vld [vmem:[#allocation2 + $0x60] sm:$0xe]  ;;  %v6631_v13 = vrot.slane %v6629_v55, 5  ;;  %v6633_v51 = vshrl.u32 %v13101_v12, 16 }
 0x2f7   : > { %v6489_v46 = vld [vmem:[#allocation2 + $0x44] sm:$0x1]  ;;  %v13136_v6 = vrot.slane %v5644_v11, 4  ;;  %v7127_v56 = vrot.slane %v7125_v42, 4  ;;  %v7749_v2 = vshll.u32 %v7524_v15, 16  ;;  %v6627_v34 = vrot.slane %v6626_v37, 4  ;;  %7959 = vrot.lane.b32.xlu0 %v7728_v35, %s10416_s16 }
 0x2f8   : > { %v6298_v22 = vld [vmem:[#allocation2 + $0x64] sm:$0xf]  ;;  %v5076_v29 = vsel %vm10587_vm9, %v5068_v0, %v5075_v28  ;;  %v5286_v32 = vsel %vm10578_vm8, %v5077_v1, %v5285_v25  ;;  %v7753_v19 = vshrl.u32 %v7524_v15, 16  ;;  %v5342_v12 = vld [vmem:[#allocation2 + $0x70] sm:$0xf]  ;;  %v7742_v17 = vrot.slane %v7740_v43, 4  ;;  %v6168_v44 = vpop.permute.xlu0 %6167 }
 0x2f9   : > { %v5972_v20 = vld [vmem:[#allocation2 + $0x64] sm:$0xf]  ;;  %8032 = vst.msk [vmem:[#allocation3 + $0x40] sm:$0xf] %vm2047_vm4, %v7942_v50  ;;  %5287 = vst [vmem:[#allocation2 + $0x8c] sm:$0x1] %v5286_v32  ;;  %v6632_v23 = vsel %vm10595_vm10, %v6627_v34, %v6631_v13  ;;  %6377 = vrot.lane.b32.xlu1 %v6298_v22, %s10416_s16  ;;  %v9832_v58 = vadd.f32 %v9831_v18, %v9830_v24  ;;  %v13179_v8 = vsel %vm10933_vm14, %v7127_v56, %v7128_v52  ;;  %v7194_v22 = vpop.permute.xlu1 %7193 }
 0x2fa   : > { %5921 = vst.msk [vmem:[#allocation3 + $0x48] sm:$0xf] %vm1514_vm15, %v5832_v40  ;;  %v10239_v10 = vld [vmem:[#allocation3 + $0xc8] ss:$12 sps:$4 sm:$0xff]   ;;  %v7745_v3 = vrot.slane %v7743_v53, 5  ;;  %v5649_v54 = vrot.slane %v5647_v39, 5  ;;  %v4725_v39 = vadd.f32 %v12966_v59, %v4564_v9 }
 0x2fb   : > { %5284 = vst.msk [vmem:[#allocation2 + $0x88] sm:$0xf] %vm244_vm0, %v5076_v29  ;;  %5374 = vst.msk [vmem:[#allocation3 + $0xe4] sm:$0xf] %vm244_vm0, %v5342_v12  ;;  %v13164_v25 = vld [vmem:[#allocation2 + $0x68] sm:$0x1]  ;;  %10061 = vmatprep.mubr.msk.bf16.mxu0 %vm4392_vm1, %v10239_v10  ;;  %5851 = vrot.lane.b32.xlu0 %v5640_v26, %s10414_s29  ;;  %v4567_v5 = vadd.f32 %v12763_v60, %v9832_v58 }
 0x2fc   : > { %6947 = vst.msk [vmem:[#allocation3 + $0x64] sm:$0xf] %vm244_vm0, %v6632_v23  ;;  %v6635_v11 = vrot.slane %v6633_v51, 4  ;;  %v9551_v31 = vrot.slane %v13133_v14, 9  ;;  %v6101_v57 = vrot.slane %v5972_v20, 5  ;;  %v13169_v45 = vrot.slane %v7749_v2, 5 }
 0x2fd   : > { %v6639_v35 = vshll.u32 %v6489_v46, 16  ;;  %v7755_v30 = vrot.slane %v7753_v19, 4  ;;  %v5414_v42 = vld [vmem:[#allocation2 + $0x6c] sm:$0xf]  ;;  %5922 = vst.msk [vmem:[#allocation3 + $0x54] sm:$0xf] %vm1514_vm15, %v5834_v49  ;;  %v5650_v21 = vsel %vm10595_vm10, %v13136_v6, %v5649_v54  ;;  %v7746_v55 = vor.u32 %v7745_v3, %v7742_v17  ;;  %7961 = vrot.lane.b32.xlu1 %v7738_v61, %s10416_s16  ;;  %v6170_v9 = vpop.permute.xlu1 %6169  ;;  %v7384_v54 = vpop.permute.xlu0 %7383 }
 0x2fe   : > { %v6636_v0 = vor.u32 %v6635_v11, %v6631_v13  ;;  %7281 = vst.msk [vmem:[#allocation3 + $0x4c] sm:$0xf] %vm1514_vm15, %v7192_v36  ;;  %v6104_v15 = vrot.slane %v13164_v25, 5  ;;  %v13182_v59 = vld [vmem:[#allocation2 + $0x70] sm:$0xf]  ;;  %v4785_v63 = vmax.f32 %v4725_v39, 0.0  ;;  %v6102_v28 = vsel %vm10933_vm14, %v9551_v31, %v6101_v57  ;;  %v13222_v49 = vpop.f32.mrf.mxu1 }
 0x2ff   : > { %v13192_v43 = vld [vmem:[#allocation2 + $0x80] sm:$0x1]  ;;  %v6641_v53 = vrot.slane %v6639_v35, 5  ;;  %v8339_v37 = vld [vmem:[#allocation3 + $0x30] sm:$0xff]  ;;  %v6103_v1 = vrot.slane %v6101_v57, 4  ;;  %v5652_v14 = vshrl.u32 %v5414_v42, 16  ;;  %v4728_v47 = vadd.f32 %v13027_v27, %v4567_v5  ;;  %7211 = vrot.lane.b32.xlu0 %v7126_v48, %s10414_s29 }
 0x300   : > { %v6637_v52 = vrot.slane %v6636_v0, 4  ;;  %v5655_v13 = vshll.u32 %v5414_v42, 16  ;;  %v8086_v51 = vld [vmem:[#allocation2 + $0x84] sm:$0xe]  ;;  %v9734_v46 = vpack.c.bf16 %v4785_v63, %v4785_v63  ;;  %v8341_v61 = vld [vmem:[#allocation3 + $0x3c] sm:$0xff]  ;;  %v7756_v60 = vor.u32 %v7755_v30, %v13169_v45 }
 0x301   : > { %v10240_v62 = vld [vmem:[#allocation3 + $0x34] ss:$12 sps:$4 sm:$0xff]   ;;  %7282 = vst.msk [vmem:[#allocation3 + $0x58] sm:$0xf] %vm1514_vm15, %v7194_v22  ;;  %v9598_v2 = vcombine.low %v8339_v37, %v8341_v61  ;;  %v13202_v34 = vrot.slane %v7746_v55, 4  ;;  %v7759_v50 = vshll.u32 %v13192_v43, 16  ;;  %5853 = vrot.lane.b32.xlu1 %v5650_v21, %s10414_s29  ;;  %v6105_v55 = vsel %vm10933_vm14, %v6103_v1, %v6104_v15  ;;  %v7386_v37 = vpop.permute.xlu1 %7385  ;;  %v6360_v25 = vpop.permute.xlu0 %6359 }
 0x302   : > { %v6642_v6 = vsel %vm10595_vm10, %v6637_v52, %v6641_v53  ;;  %v8087_v56 = vld [vmem:[#allocation2 + $0x88] sm:$0xf]  ;;  %6257 = vst.msk [vmem:[#allocation3 + $0x48] sm:$0xf] %vm1854_vm2, %v6168_v44  ;;  %v5661_v40 = vshll.u32 %v13182_v59, 16  ;;  %v5079_v29 = vshrl.u32 %v9734_v46, 16  ;;  %8882 = vmatprep.mubr.bf16.mxu1 %v10240_v62  ;;  %v9833_v22 = vpop.f32.mrf.mxu0  ;;  %v4732_v44 = vpop.f32.mrf.mxu1 }
 0x303   : > { %6948 = vst.msk [vmem:[#allocation3 + $0x70] sm:$0xf] %vm244_vm0, %v6642_v6  ;;  %v8088_v27 = vld [vmem:[#allocation2 + $0x8c] sm:$0x1]  ;;  %v5082_v32 = vshll.u32 %v9734_v46, 16  ;;  %v4786_v41 = vmax.f32 %v4728_v47, 0.0  ;;  %8883 = vmatmul.mubr.bf16.gmra.mxu1 %v9598_v2  ;;  %6187 = vrot.lane.b32.xlu0 %v6102_v28, %s10415_s11  ;;  %v7752_v15 = vsel %vm10595_vm10, %v13202_v34, %v13169_v45 }
 0x304   : > { %v5665_v20 = vshrl.u32 %v13182_v59, 16  ;;  %v5416_v19 = vld [vmem:[#allocation2 + $0x74] sm:$0x1]  ;;  %v13210_v12 = vrot.slane %v5652_v14, 4  ;;  %v5657_v10 = vrot.slane %v5655_v13, 5  ;;  %v9584_v26 = vrot.slane %v8086_v51, 9 }
 0x305   : > { %v8220_v24 = vrot.slane %v8087_v56, 5  ;;  %v13212_v17 = vrot.slane %v5079_v29, 7  ;;  %v5288_v3 = vld [vmem:[#allocation2 + $0x90] sm:$0xf]  ;;  %v9735_v23 = vpack.c.bf16 %v4786_v41, %v4786_v41  ;;  %v13214_v11 = vrot.slane %v7756_v60, 4  ;;  %7213 = vrot.lane.b32.xlu1 %v13179_v8, %s10414_s29 }
 0x306   : > { %v8223_v18 = vrot.slane %v8088_v27, 5  ;;  %6258 = vst.msk [vmem:[#allocation3 + $0x54] sm:$0xf] %vm1854_vm2, %v6170_v9  ;;  %7473 = vst.msk [vmem:[#allocation3 + $0x4c] sm:$0xf] %vm1854_vm2, %v7384_v54  ;;  %v13218_v48 = vrot.slane %v5661_v40, 5  ;;  %v5658_v63 = vor.u32 %v5657_v10, %v13210_v12 }
 0x307   : > { %v5671_v31 = vshll.u32 %v5416_v19, 16  ;;  %v8221_v57 = vsel %vm10933_vm14, %v9584_v26, %v8220_v24  ;;  %v8222_v35 = vrot.slane %v8220_v24, 4  ;;  %v6490_v36 = vld [vmem:[#allocation2 + $0x48] sm:$0xf]  ;;  %v5084_v39 = vor.u32 %v5082_v32, %v13212_v17  ;;  %v13230_v0 = vld [vmem:[#allocation2 + $0x78] sm:$0xe]  ;;  %v9834_v32 = vpop.f32.mrf.mxu0  ;;  %v6362_v26 = vpop.permute.xlu1 %6361 }
 0x308   : > { %v5087_v58 = vshrl.u32 %v9735_v23, 16  ;;  %v5090_v30 = vshll.u32 %v9735_v23, 16  ;;  %v13228_v42 = vrot.slane %v5665_v20, 4  ;;  %8317 = vst.msk [vmem:[#allocation3 + $0xe0] sm:$0xf] %vm244_vm0, %v8221_v57  ;;  %v13237_v59 = vrot.slane %v7759_v50, 5  ;;  %v7944_v24 = vpop.permute.xlu0 %7943  ;;  %v13286_v57 = vpop.f32.mrf.mxu1 }
 0x309   : > { %v5292_v21 = vld [vmem:[#allocation2 + $0x98] sm:$0x1]  ;;  %v8224_v8 = vsel %vm10933_vm14, %v8222_v35, %v8223_v18  ;;  %v13242_v5 = vld [vmem:[#allocation2 + $0x4c] sm:$0xf]  ;;  %v5085_v43 = vrot.slane %v13212_v17, 4  ;;  %v5289_v52 = vsel %vm10622_vm11, %v5084_v39, %v5288_v3  ;;  %v13262_v51 = vrot.slane %v5671_v31, 5  ;;  %6189 = vrot.lane.b32.xlu1 %v6105_v55, %s10415_s11  ;;  %v9836_v31 = vpop.f32.mrf.mxu0 }
 0x30a   : > { %v5089_v53 = vrot.slane %v5087_v58, 7  ;;  %v13251_v28 = vld [vmem:[#allocation2 + $0x7c] sm:$0xf]  ;;  %v13253_v1 = vld [vmem:[#allocation2 + $0x6c] sm:$0xe]  ;;  %v7762_v13 = vsel %vm10595_vm10, %v13214_v11, %v13237_v59  ;;  %v9568_v46 = vrot.slane %v13230_v0, 9  ;;  %v5668_v60 = vor.u32 %v13228_v42, %v13218_v48 }
 0x30b   : > { %8318 = vst.msk [vmem:[#allocation3 + $0xec] sm:$0xf] %vm244_vm0, %v8224_v8  ;;  %5290 = vst [vmem:[#allocation2 + $0x90] sm:$0xf] %v5289_v52  ;;  %v7323_v14 = vld [vmem:[#allocation2 + $0x78] sm:$0xf]  ;;  %v9835_v17 = vadd.f32 %v9834_v32, %v9833_v22  ;;  %v9837_v52 = vpop.f32.mrf.mxu0 }
 0x30c   : > { %7474 = vst.msk [vmem:[#allocation3 + $0x58] sm:$0xf] %vm1854_vm2, %v7386_v37  ;;  %v6644_v47 = vshrl.u32 %v6490_v36, 16  ;;  %v5092_v61 = vor.u32 %v5090_v30, %v5089_v53  ;;  %v5094_v62 = vrot.slane %v5089_v53, 4  ;;  %7403 = vrot.lane.b32.xlu0 %v7323_v14, %s10415_s11  ;;  %v13269_v6 = vld [vmem:[#allocation2 + $0x80] sm:$0x1]  ;;  %v9838_v14 = vadd.f32 %v9837_v52, %v9836_v31 }
 0x30d   : > { %6449 = vst.msk [vmem:[#allocation3 + $0x48] sm:$0xf] %vm2047_vm4, %v6360_v25  ;;  %v7526_v56 = vld [vmem:[#allocation2 + $0x84] sm:$0xf]  ;;  %v6647_v2 = vshll.u32 %v6490_v36, 16  ;;  %v13271_v27 = vrot.slane %v5658_v63, 4  ;;  %v7946_v25 = vpop.permute.xlu1 %7945 }
 0x30e   : > { %v7324_v50 = vld [vmem:[#allocation2 + $0x7c] sm:$0xf]  ;;  %v6299_v40 = vld [vmem:[#allocation2 + $0x6c] sm:$0xf]  ;;  %v7132_v29 = vrot.slane %v13251_v28, 5  ;;  %v6646_v20 = vrot.slane %v6644_v47, 4  ;;  %v5093_v12 = vsel %vm10587_vm9, %v5085_v43, %v5092_v61  ;;  %v5293_v10 = vsel %vm10578_vm8, %v5094_v62, %v5292_v21  ;;  %v5836_v28 = vpop.permute.xlu0 %5835 }
 0x30f   : > { %v13274_v41 = vld [vmem:[#allocation2 + $0x88] sm:$0xf]  ;;  %v6653_v19 = vshll.u32 %v13242_v5, 16  ;;  %v6649_v3 = vrot.slane %v6647_v2, 5  ;;  %v5343_v23 = vld [vmem:[#allocation2 + $0x78] sm:$0xf]  ;;  %7405 = vrot.lane.b32.xlu1 %v7324_v50, %s10415_s11  ;;  %v5664_v63 = vsel %vm10595_vm10, %v13271_v27, %v13218_v48 }
 0x310   : > { %v5344_v9 = vld [vmem:[#allocation2 + $0x7c] sm:$0xf]  ;;  %5291 = vst.msk [vmem:[#allocation2 + $0x94] sm:$0xf] %vm244_vm0, %v5093_v12  ;;  %5294 = vst [vmem:[#allocation2 + $0x98] sm:$0x1] %v5293_v10  ;;  %6379 = vrot.lane.b32.xlu0 %v6299_v40, %s10416_s16  ;;  %v13310_v8 = vsel %vm10933_vm14, %v9568_v46, %v7132_v29 }
 0x311   : > { %6450 = vst.msk [vmem:[#allocation3 + $0x54] sm:$0xf] %vm2047_vm4, %v6362_v26  ;;  %8033 = vst.msk [vmem:[#allocation3 + $0x4c] sm:$0xf] %vm2047_vm4, %v7944_v24  ;;  %v7135_v54 = vrot.slane %v13269_v6, 5  ;;  %v9552_v18 = vrot.slane %v13253_v1, 9  ;;  %v6650_v0 = vor.u32 %v6649_v3, %v6646_v20  ;;  %v5838_v10 = vpop.permute.xlu1 %5837 }
 0x312   : > { %v7764_v35 = vshrl.u32 %v7526_v56, 16  ;;  %v7767_v36 = vshll.u32 %v7526_v56, 16  ;;  %5375 = vst.msk [vmem:[#allocation3 + $0xf0] sm:$0xf] %vm244_vm0, %v5343_v23  ;;  %5376 = vst.msk [vmem:[#allocation3 + $0xfc] sm:$0xf] %vm244_vm0, %v5344_v9  ;;  %v7196_v45 = vpop.permute.xlu0 %7195 }
 0x313   : > { %v13292_v39 = vrot.slane %v5668_v60, 4  ;;  %v13294_v58 = vld [vmem:[#allocation2 + $0x70] sm:$0xf]  ;;  %v13299_v30 = vld [vmem:[%s14437_s2] ss:$0 sm:$0xff]  ;;  %v6655_v21 = vrot.slane %v6653_v19, 5 }
 0x314   : > { %v4572_v42 = vadd.f32 %v13299_v30, %v9835_v17  ;;  %v13302_v55 = vld [vmem:[#allocation2 + $0x78] sm:$0xf]  ;;  %v7773_v53 = vshll.u32 %v13274_v41, 16  ;;  %v6657_v37 = vshrl.u32 %v13242_v5, 16  ;;  %v8089_v47 = vld [vmem:[#allocation2 + $0x90] sm:$0xe]  ;;  %v4735_v5 = vpop.f32.mrf.mxu1  ;;  %7963 = vrot.lane.b32.xlu0 %v7752_v15, %s10416_s16  ;;  %v4575_v40 = vadd.f32 %v13299_v30, %v9838_v14 }
 0x315   : > { %v10244_v43 = vld [vmem:[#allocation3 + $0xe0] ss:$12 sps:$4 sm:$0xff]   ;;  %v7777_v61 = vshrl.u32 %v13274_v41, 16  ;;  %v6651_v62 = vrot.slane %v6650_v0, 4  ;;  %v6492_v60 = vld [vmem:[#allocation2 + $0x50] sm:$0x1]  ;;  %v5674_v11 = vsel %vm10595_vm10, %v13292_v39, %v13262_v51 }
 0x316   : > { %v4733_v22 = vadd.f32 %v4732_v44, %v4572_v42  ;;  %8034 = vst.msk [vmem:[#allocation3 + $0x58] sm:$0xf] %vm2047_vm4, %v7946_v25  ;;  %v6300_v48 = vld [vmem:[#allocation2 + $0x70] sm:$0xf]  ;;  %v13317_v46 = vrot.slane %v7132_v29, 4  ;;  %v6108_v56 = vrot.slane %v13294_v58, 5  ;;  %10062 = vmatmul.mubr.msk.bf16.gmra.mxu0 %vm4392_vm1, %v10244_v43  ;;  %v4736_v15 = vadd.f32 %v4735_v5, %v4575_v40  ;;  %v7198_v25 = vpop.permute.xlu1 %7197 }
 0x317   : > { %5923 = vst.msk [vmem:[#allocation3 + $0x60] sm:$0xf] %vm1514_vm15, %v5836_v28  ;;  %v13321_v2 = vrot.slane %v7764_v35, 4  ;;  %v13323_v44 = vrot.slane %v7767_v36, 5  ;;  %6381 = vrot.lane.b32.xlu1 %v6300_v48, %s10416_s16  ;;  %v6656_v27 = vsel %vm10595_vm10, %v6651_v62, %v6655_v21  ;;  %v13335_v29 = vld [vmem:[#allocation2 + $0x7c] sm:$0xf]  ;;  %v6172_v28 = vpop.permute.xlu0 %6171 }
 0x318   : > { %v4787_v50 = vmax.f32 %v4733_v22, 0.0  ;;  %v5676_v32 = vshrl.u32 %v13302_v55, 16  ;;  %v9585_v41 = vrot.slane %v8089_v47, 9  ;;  %v13338_v20 = vrot.slane %v7773_v53, 5  ;;  %6949 = vst.msk [vmem:[#allocation3 + $0x7c] sm:$0xf] %vm244_vm0, %v6656_v27  ;;  %5855 = vrot.lane.b32.xlu0 %v5664_v63, %s10414_s29 }
 0x319   : > { %v6659_v19 = vrot.slane %v6657_v37, 4  ;;  %v6663_v12 = vshll.u32 %v6492_v60, 16  ;;  %v8090_v26 = vld [vmem:[#allocation2 + $0x94] sm:$0xf]  ;;  %v8091_v24 = vld [vmem:[#allocation2 + $0x98] sm:$0x1]  ;;  %v7136_v5 = vsel %vm10933_vm14, %v13317_v46, %v7135_v54  ;;  %v7770_v46 = vor.u32 %v13323_v44, %v13321_v2 }
 0x31a   : > { %v9736_v34 = vpack.c.bf16 %v4787_v50, %v4787_v50  ;;  %v13341_v17 = vrot.slane %v7777_v61, 4  ;;  %v5679_v3 = vshll.u32 %v13302_v55, 16  ;;  %5924 = vst.msk [vmem:[#allocation3 + $0x6c] sm:$0xf] %vm1514_vm15, %v5838_v10  ;;  %7283 = vst.msk [vmem:[#allocation3 + $0x64] sm:$0xf] %vm1514_vm15, %v7196_v45 }
 0x31b   : > { %v8227_v23 = vrot.slane %v8090_v26, 5  ;;  %v8230_v9 = vrot.slane %v8091_v24, 5  ;;  %v5685_v31 = vshll.u32 %v13335_v29, 16  ;;  %v6660_v35 = vor.u32 %v6659_v19, %v6655_v21  ;;  %7965 = vrot.lane.b32.xlu1 %v7762_v13, %s10416_s16  ;;  %v13356_v43 = vld [vmem:[#allocation2 + $0x74] sm:$0x1]  ;;  %v8343_v59 = vld [vmem:[#allocation3 + $0x48] sm:$0xff] }
 0x31c   : > { %v5096_v36 = vshrl.u32 %v9736_v34, 16  ;;  %v5099_v42 = vshll.u32 %v9736_v34, 16  ;;  %v4788_v0 = vmax.f32 %v4736_v15, 0.0  ;;  %v13354_v55 = vrot.slane %v5676_v32, 4  ;;  %7284 = vst.msk [vmem:[#allocation3 + $0x70] sm:$0xf] %vm1514_vm15, %v7198_v25  ;;  %7215 = vrot.lane.b32.xlu0 %v13310_v8, %s10414_s29  ;;  %v7388_v32 = vpop.permute.xlu0 %7387 }
 0x31d   : > { %v8228_v52 = vsel %vm10933_vm14, %v9585_v41, %v8227_v23  ;;  %v8229_v21 = vrot.slane %v8227_v23, 4  ;;  %v6661_v53 = vrot.slane %v6660_v35, 4  ;;  %v6665_v37 = vrot.slane %v6663_v12, 5  ;;  %v8345_v13 = vld [vmem:[#allocation3 + $0x54] sm:$0xff]  ;;  %6259 = vst.msk [vmem:[#allocation3 + $0x60] sm:$0xf] %vm1854_vm2, %v6172_v28 }
 0x31e   : > { %v10242_v63 = vld [vmem:[#allocation3 + $0x4c] ss:$12 sps:$4 sm:$0xff]   ;;  %v5098_v14 = vrot.slane %v5096_v36, 7  ;;  %v9737_v22 = vpack.c.bf16 %v4788_v0, %v4788_v0  ;;  %8319 = vst.msk [vmem:[#allocation3 + $0xf8] sm:$0xf] %vm244_vm0, %v8228_v52  ;;  %v5681_v47 = vrot.slane %v5679_v3, 5  ;;  %v9601_v61 = vcombine.low %v8343_v59, %v8345_v13 }
 0x31f   : > { %v5295_v62 = vld [vmem:[#allocation2 + $0x9c] sm:$0xf]  ;;  %v8231_v60 = vsel %vm10933_vm14, %v8229_v21, %v8230_v9  ;;  %v7528_v48 = vld [vmem:[#allocation2 + $0x8c] sm:$0x1]  ;;  %v5689_v51 = vshrl.u32 %v13335_v29, 16  ;;  %v6666_v39 = vsel %vm10595_vm10, %v6661_v53, %v6665_v37  ;;  %5857 = vrot.lane.b32.xlu1 %v5674_v11, %s10414_s29  ;;  %8890 = vmatprep.mubr.bf16.mxu1 %v10242_v63  ;;  %v6109_v8 = vsel %vm10933_vm14, %v9552_v18, %v6108_v56  ;;  %v6174_v29 = vpop.permute.xlu1 %6173 }
 0x320   : > { %v5101_v50 = vor.u32 %v5099_v42, %v5098_v14  ;;  %v5104_v40 = vshrl.u32 %v9737_v22, 16  ;;  %v5107_v27 = vshll.u32 %v9737_v22, 16  ;;  %8320 = vst.msk [vmem:[#allocation3 + $0x104] sm:$0xf] %vm244_vm0, %v8231_v60  ;;  %6950 = vst.msk [vmem:[#allocation3 + $0x88] sm:$0xf] %vm244_vm0, %v6666_v39  ;;  %8891 = vmatmul.mubr.bf16.gmra.mxu1 %v9601_v61  ;;  %v7780_v58 = vor.u32 %v13341_v17, %v13338_v20  ;;  %v6364_v3 = vpop.permute.xlu0 %6363 }
 0x321   : > { %v6110_v6 = vrot.slane %v6108_v56, 4  ;;  %v6111_v54 = vrot.slane %v13356_v43, 5  ;;  %v5102_v41 = vrot.slane %v5098_v14, 4  ;;  %v7783_v1 = vshll.u32 %v7528_v48, 16  ;;  %6260 = vst.msk [vmem:[#allocation3 + $0x6c] sm:$0xf] %vm1854_vm2, %v6174_v29  ;;  %6191 = vrot.lane.b32.xlu0 %v6109_v8, %s10415_s11 }
 0x322   : > { %v5296_v19 = vsel %vm10622_vm11, %v5101_v50, %v5295_v62  ;;  %v5106_v12 = vrot.slane %v5104_v40, 7  ;;  %7475 = vst.msk [vmem:[#allocation3 + $0x64] sm:$0xf] %vm1854_vm2, %v7388_v32  ;;  %v5299_v18 = vld [vmem:[#allocation2 + $0xa4] sm:$0x1]  ;;  %v5682_v56 = vor.u32 %v5681_v47, %v13354_v55  ;;  %v13400_v2 = vrot.slane %v5685_v31, 5  ;;  %v9839_v55 = vpop.f32.mrf.mxu0 }
 0x323   : > { %5297 = vst [vmem:[#allocation2 + $0x9c] sm:$0xf] %v5296_v19  ;;  %v5691_v44 = vrot.slane %v5689_v51, 4  ;;  %7217 = vrot.lane.b32.xlu1 %v7136_v5, %s10414_s29  ;;  %v6493_v34 = vld [vmem:[#allocation2 + $0x54] sm:$0xf]  ;;  %v7390_v24 = vpop.permute.xlu1 %7389  ;;  %v13410_v31 = vrot.slane %v7770_v46, 4  ;;  %v6112_v42 = vsel %vm10933_vm14, %v6110_v6, %v6111_v54 }
 0x324   : > { %v5109_v10 = vor.u32 %v5107_v27, %v5106_v12  ;;  %v5111_v45 = vrot.slane %v5106_v12, 4  ;;  %v5419_v15 = vld [vmem:[#allocation2 + $0x80] sm:$0x1]  ;;  %v13404_v26 = vld [vmem:[#allocation2 + $0x58] sm:$0xf]  ;;  %v13412_v35 = vrot.slane %v7783_v1, 5  ;;  %v9840_v11 = vpop.f32.mrf.mxu0  ;;  %v7948_v47 = vpop.permute.xlu0 %7947 }
 0x325   : > { %v7325_v23 = vld [vmem:[#allocation2 + $0x84] sm:$0xf]  ;;  %7476 = vst.msk [vmem:[#allocation3 + $0x70] sm:$0xf] %vm1854_vm2, %v7390_v24  ;;  %v13419_v43 = vrot.slane %v7780_v58, 4  ;;  %v13421_v52 = vrot.slane %v5682_v56, 4  ;;  %v5692_v21 = vor.u32 %v5691_v44, %v13400_v2  ;;  %v7776_v61 = vsel %vm10595_vm10, %v13410_v31, %v13338_v20 }
 0x326   : > { %v5110_v17 = vsel %vm10587_vm9, %v5102_v41, %v5109_v10  ;;  %v5300_v9 = vsel %vm10578_vm8, %v5111_v45, %v5299_v18  ;;  %v5345_v36 = vld [vmem:[#allocation2 + $0x84] sm:$0xf]  ;;  %6451 = vst.msk [vmem:[#allocation3 + $0x60] sm:$0xf] %vm2047_vm4, %v6364_v3  ;;  %7407 = vrot.lane.b32.xlu0 %v7325_v23, %s10415_s11  ;;  %v6668_v53 = vshrl.u32 %v6493_v34, 16  ;;  %v6671_v37 = vshll.u32 %v6493_v34, 16  ;;  %v9842_v40 = vpop.f32.mrf.mxu0 }
 0x327   : > { %5298 = vst.msk [vmem:[#allocation2 + $0xa0] sm:$0xf] %vm244_vm0, %v5110_v17  ;;  %5301 = vst [vmem:[#allocation2 + $0xa4] sm:$0x1] %v5300_v9  ;;  %v10245_v0 = vld [vmem:[#allocation3 + $0xf8] ss:$12 sps:$4 sm:$0xff]   ;;  %6193 = vrot.lane.b32.xlu1 %v6112_v42, %s10415_s11  ;;  %v6366_v22 = vpop.permute.xlu1 %6365  ;;  %v9841_v62 = vadd.f32 %v9840_v11, %v9839_v55  ;;  %v7786_v50 = vsel %vm10595_vm10, %v13419_v43, %v13412_v35  ;;  %v5688_v20 = vsel %vm10595_vm10, %v13421_v52, %v13400_v2 }
 0x328   : > { %5377 = vst.msk [vmem:[#allocation3 + $0x108] sm:$0xf] %vm244_vm0, %v5345_v36  ;;  %v5346_v25 = vld [vmem:[#allocation2 + $0x88] sm:$0xf]  ;;  %v6301_v28 = vld [vmem:[#allocation2 + $0x78] sm:$0xf]  ;;  %10065 = vmatprep.mubr.msk.bf16.mxu0 %vm4392_vm1, %v10245_v0  ;;  %v9843_v12 = vpop.f32.mrf.mxu0  ;;  %v5840_v44 = vpop.permute.xlu0 %5839 }
 0x329   : > { %v5695_v59 = vshll.u32 %v5419_v15, 16  ;;  %v7001_v13 = vld [vmem:[#allocation2 + $0x84] sm:$0xe]  ;;  %v13428_v63 = vld [vmem:[#allocation2 + $0x88] sm:$0xf]  ;;  %v6677_v14 = vshll.u32 %v13404_v26, 16  ;;  %v4580_v54 = vadd.f32 %v13299_v30, %v9841_v62  ;;  %v9844_v34 = vadd.f32 %v9843_v12, %v9842_v40 }
 0x32a   : > { %5378 = vst.msk [vmem:[#allocation3 + $0x114] sm:$0xf] %vm244_vm0, %v5346_v25  ;;  %v13436_v60 = vld [vmem:[#allocation2 + $0x8c] sm:$0x1]  ;;  %v13438_v48 = vld [vmem:[#allocation2 + $0x78] sm:$0xe]  ;;  %6383 = vrot.lane.b32.xlu0 %v6301_v28, %s10416_s16 }
 0x32b   : > { %v6670_v51 = vrot.slane %v6668_v53, 4  ;;  %v6673_v39 = vrot.slane %v6671_v37, 5  ;;  %6452 = vst.msk [vmem:[#allocation3 + $0x6c] sm:$0xf] %vm2047_vm4, %v6366_v22  ;;  %8035 = vst.msk [vmem:[#allocation3 + $0x64] sm:$0xf] %vm2047_vm4, %v7948_v47  ;;  %v7950_v2 = vpop.permute.xlu1 %7949  ;;  %v4741_v45 = vadd.f32 %v13222_v49, %v4580_v54  ;;  %v4583_v35 = vadd.f32 %v13299_v30, %v9844_v34 }
 0x32c   : > { %v7326_v5 = vld [vmem:[#allocation2 + $0x88] sm:$0xf]  ;;  %v13450_v27 = vrot.slane %v5692_v21, 4  ;;  %v13452_v8 = vld [vmem:[#allocation2 + $0x7c] sm:$0xf]  ;;  %v6681_v6 = vshrl.u32 %v13404_v26, 16  ;;  %v7200_v37 = vpop.permute.xlu0 %7199 }
 0x32d   : > { %7409 = vrot.lane.b32.xlu1 %v7326_v5, %s10415_s11  ;;  %v9569_v46 = vrot.slane %v7001_v13, 9  ;;  %v7139_v29 = vrot.slane %v13428_v63, 5  ;;  %v7529_v32 = vld [vmem:[#allocation2 + $0x90] sm:$0xf]  ;;  %v6674_v41 = vor.u32 %v6673_v39, %v6670_v51  ;;  %v6495_v19 = vld [vmem:[#allocation2 + $0x5c] sm:$0x1]  ;;  %v4744_v28 = vadd.f32 %v13286_v57, %v4583_v35 }
 0x32e   : > { %v13459_v1 = vrot.slane %v5695_v59, 5  ;;  %v7142_v18 = vrot.slane %v13436_v60, 5  ;;  %v9553_v58 = vrot.slane %v13438_v48, 9  ;;  %v6679_v56 = vrot.slane %v6677_v14, 5  ;;  %v6302_v10 = vld [vmem:[#allocation2 + $0x7c] sm:$0xf]  ;;  %7967 = vrot.lane.b32.xlu0 %v7776_v61, %s10416_s16 }
 0x32f   : > { %v6115_v15 = vrot.slane %v13452_v8, 5  ;;  %v7530_v26 = vld [vmem:[#allocation2 + $0x94] sm:$0xf]  ;;  %v6675_v24 = vrot.slane %v6674_v41, 4  ;;  %8036 = vst.msk [vmem:[#allocation3 + $0x70] sm:$0xf] %vm2047_vm4, %v7950_v2  ;;  %v7140_v36 = vsel %vm10933_vm14, %v9569_v46, %v7139_v29  ;;  %v5842_v53 = vpop.permute.xlu1 %5841 }
 0x330   : > { %5925 = vst.msk [vmem:[#allocation3 + $0x78] sm:$0xf] %vm1514_vm15, %v5840_v44  ;;  %v5698_v3 = vsel %vm10595_vm10, %v13450_v27, %v13459_v1  ;;  %v13471_v23 = vld [vmem:[#allocation2 + $0x80] sm:$0x1]  ;;  %v7788_v17 = vshrl.u32 %v7529_v32, 16  ;;  %v6683_v9 = vrot.slane %v6681_v6, 4  ;;  %v6176_v41 = vpop.permute.xlu0 %6175 }
 0x331   : > { %v6687_v31 = vshll.u32 %v6495_v19, 16  ;;  %6385 = vrot.lane.b32.xlu1 %v6302_v10, %s10416_s16  ;;  %v4789_v49 = vmax.f32 %v4741_v45, 0.0  ;;  %v6680_v42 = vsel %vm10595_vm10, %v6675_v24, %v6679_v56  ;;  %v5420_v0 = vld [vmem:[#allocation2 + $0x84] sm:$0xf]  ;;  %v7791_v55 = vshll.u32 %v7529_v32, 16 }
 0x332   : > { %v7797_v43 = vshll.u32 %v7530_v26, 16  ;;  %6951 = vst.msk [vmem:[#allocation3 + $0x94] sm:$0xf] %vm244_vm0, %v6680_v42  ;;  %v6684_v52 = vor.u32 %v6683_v9, %v6679_v56  ;;  %v13482_v11 = vrot.slane %v7139_v29, 4  ;;  %v6118_v59 = vrot.slane %v13471_v23, 5  ;;  %5859 = vrot.lane.b32.xlu0 %v5688_v20, %s10414_s29  ;;  %v8347_v19 = vld [vmem:[#allocation3 + $0x60] sm:$0xff] }
 0x333   : > { %v6689_v21 = vrot.slane %v6687_v31, 5  ;;  %v9738_v25 = vpack.c.bf16 %v4789_v49, %v4789_v49  ;;  %v8092_v13 = vld [vmem:[#allocation2 + $0x9c] sm:$0xe]  ;;  %5926 = vst.msk [vmem:[#allocation3 + $0x84] sm:$0xf] %vm1514_vm15, %v5842_v53  ;;  %v13487_v63 = vrot.slane %v7788_v17, 4  ;;  %v7202_v32 = vpop.permute.xlu1 %7201  ;;  %v6116_v1 = vsel %vm10933_vm14, %v9553_v58, %v6115_v15 }
 0x334   : > { %7285 = vst.msk [vmem:[#allocation3 + $0x7c] sm:$0xf] %vm1514_vm15, %v7200_v37  ;;  %v7801_v14 = vshrl.u32 %v7530_v26, 16  ;;  %v5700_v22 = vshrl.u32 %v5420_v0, 16  ;;  %v6685_v47 = vrot.slane %v6684_v52, 4  ;;  %v4790_v57 = vmax.f32 %v4744_v28, 0.0 }
 0x335   : > { %v8093_v61 = vld [vmem:[#allocation2 + $0xa0] sm:$0xf]  ;;  %v5113_v62 = vshrl.u32 %v9738_v25, 16  ;;  %v5116_v51 = vshll.u32 %v9738_v25, 16  ;;  %7969 = vrot.lane.b32.xlu1 %v7786_v50, %s10416_s16  ;;  %v5703_v39 = vshll.u32 %v5420_v0, 16  ;;  %v13491_v40 = vrot.slane %v7791_v55, 5 }
 0x336   : > { %v8094_v5 = vld [vmem:[#allocation2 + $0xa4] sm:$0x1]  ;;  %v13493_v27 = vrot.slane %v7797_v43, 5  ;;  %v13495_v6 = vld [vmem:[#allocation2 + $0x88] sm:$0xf]  ;;  %v6690_v54 = vsel %vm10595_vm10, %v6685_v47, %v6689_v21  ;;  %v9586_v46 = vrot.slane %v8092_v13, 9  ;;  %v9739_v50 = vpack.c.bf16 %v4790_v57, %v4790_v57  ;;  %7219 = vrot.lane.b32.xlu0 %v7140_v36, %s10414_s29  ;;  %v7392_v36 = vpop.permute.xlu0 %7391 }
 0x337   : > { %v13499_v29 = vrot.slane %v5113_v62, 7  ;;  %v8349_v20 = vld [vmem:[#allocation3 + $0x6c] sm:$0xff]  ;;  %6952 = vst.msk [vmem:[#allocation3 + $0xa0] sm:$0xf] %vm244_vm0, %v6690_v54  ;;  %v8234_v56 = vrot.slane %v8093_v61, 5  ;;  %v13510_v10 = vrot.slane %v7801_v14, 4  ;;  %v6178_v43 = vpop.permute.xlu1 %6177  ;;  %v7143_v53 = vsel %vm10933_vm14, %v13482_v11, %v7142_v18 }
 0x338   : > { %v10246_v12 = vld [vmem:[#allocation3 + $0x64] ss:$12 sps:$4 sm:$0xff]   ;;  %7286 = vst.msk [vmem:[#allocation3 + $0x88] sm:$0xf] %vm1514_vm15, %v7202_v32  ;;  %v9604_v44 = vcombine.low %v8347_v19, %v8349_v20  ;;  %v13512_v45 = vrot.slane %v5700_v22, 4  ;;  %v8237_v34 = vrot.slane %v8094_v5, 5  ;;  %v7794_v37 = vor.u32 %v13491_v40, %v13487_v63  ;;  %v9845_v32 = vpop.f32.mrf.mxu0 }
 0x339   : > { %v5302_v2 = vld [vmem:[#allocation2 + $0xa8] sm:$0xf]  ;;  %6261 = vst.msk [vmem:[#allocation3 + $0x78] sm:$0xf] %vm1854_vm2, %v6176_v41  ;;  %v5118_v26 = vor.u32 %v5116_v51, %v13499_v29  ;;  %v5121_v48 = vshrl.u32 %v9739_v50, 16  ;;  %v5124_v24 = vshll.u32 %v9739_v50, 16  ;;  %5861 = vrot.lane.b32.xlu1 %v5698_v3, %s10414_s29  ;;  %8898 = vmatprep.mubr.bf16.mxu1 %v10246_v12  ;;  %v8235_v35 = vsel %vm10933_vm14, %v9586_v46, %v8234_v56 }
 0x33a   : > { %v7531_v58 = vld [vmem:[#allocation2 + $0x98] sm:$0x1]  ;;  %v5705_v17 = vrot.slane %v5703_v39, 5  ;;  %v5306_v9 = vld [vmem:[#allocation2 + $0xb0] sm:$0x1]  ;;  %v5709_v31 = vshll.u32 %v13495_v6, 16  ;;  %8899 = vmatmul.mubr.bf16.gmra.mxu1 %v9604_v44  ;;  %6195 = vrot.lane.b32.xlu0 %v6116_v1, %s10415_s11  ;;  %v7804_v60 = vor.u32 %v13510_v10, %v13493_v27  ;;  %v6368_v39 = vpop.permute.xlu0 %6367  ;;  %v9846_v44 = vpop.f32.mrf.mxu0 }
 0x33b   : > { %v5713_v49 = vshrl.u32 %v13495_v6, 16  ;;  %v8236_v42 = vrot.slane %v8234_v56, 4  ;;  %v5119_v0 = vrot.slane %v13499_v29, 4  ;;  %v5303_v55 = vsel %vm10622_vm11, %v5118_v26, %v5302_v2  ;;  %8321 = vst.msk [vmem:[#allocation3 + $0x110] sm:$0xf] %vm244_vm0, %v8235_v35  ;;  %v7394_v57 = vpop.permute.xlu1 %7393 }
 0x33c   : > { %v5123_v3 = vrot.slane %v5121_v48, 7  ;;  %v6117_v52 = vrot.slane %v6115_v15, 4  ;;  %v5347_v21 = vld [vmem:[#allocation2 + $0x90] sm:$0xf]  ;;  %5304 = vst [vmem:[#allocation2 + $0xa8] sm:$0xf] %v5303_v55  ;;  %v13538_v15 = vpop.f32.mrf.mxu1  ;;  %v5706_v18 = vor.u32 %v5705_v17, %v13512_v45  ;;  %v9848_v35 = vpop.f32.mrf.mxu0 }
 0x33d   : > { %6262 = vst.msk [vmem:[#allocation3 + $0x84] sm:$0xf] %vm1854_vm2, %v6178_v43  ;;  %7477 = vst.msk [vmem:[#allocation3 + $0x7c] sm:$0xf] %vm1854_vm2, %v7392_v36  ;;  %v7807_v25 = vshll.u32 %v7531_v58, 16  ;;  %v8238_v8 = vsel %vm10933_vm14, %v8236_v42, %v8237_v34  ;;  %7221 = vrot.lane.b32.xlu1 %v7143_v53, %s10414_s29  ;;  %v13550_v63 = vrot.slane %v5709_v31, 5 }
 0x33e   : > { %v6496_v28 = vld [vmem:[#allocation2 + $0x60] sm:$0xf]  ;;  %5379 = vst.msk [vmem:[#allocation3 + $0x120] sm:$0xf] %vm244_vm0, %v5347_v21  ;;  %v5348_v13 = vld [vmem:[#allocation2 + $0x94] sm:$0xf]  ;;  %v5126_v14 = vor.u32 %v5124_v24, %v5123_v3  ;;  %v6119_v5 = vsel %vm10933_vm14, %v6117_v52, %v6118_v59  ;;  %v4748_v23 = vpop.f32.mrf.mxu1  ;;  %v7952_v48 = vpop.permute.xlu0 %7951 }
 0x33f   : > { %v5128_v22 = vrot.slane %v5123_v3, 4  ;;  %8322 = vst.msk [vmem:[#allocation3 + $0x11c] sm:$0xf] %vm244_vm0, %v8238_v8  ;;  %v13547_v11 = vld [vmem:[#allocation2 + $0x64] sm:$0xf]  ;;  %v5715_v61 = vrot.slane %v5713_v49, 4  ;;  %v6370_v26 = vpop.permute.xlu1 %6369 }
 0x340   : > { %5380 = vst.msk [vmem:[#allocation3 + $0x12c] sm:$0xf] %vm244_vm0, %v5348_v13  ;;  %v5422_v47 = vld [vmem:[#allocation2 + $0x8c] sm:$0x1]  ;;  %v5127_v62 = vsel %vm10587_vm9, %v5119_v0, %v5126_v14  ;;  %v7327_v40 = vld [vmem:[#allocation2 + $0x90] sm:$0xf]  ;;  %v13584_v0 = vpop.f32.mrf.mxu1 }
 0x341   : > { %v5307_v51 = vsel %vm10578_vm8, %v5128_v22, %v5306_v9  ;;  %v7004_v6 = vld [vmem:[#allocation2 + $0x90] sm:$0xe]  ;;  %v6692_v54 = vshrl.u32 %v6496_v28, 16  ;;  %5305 = vst.msk [vmem:[#allocation2 + $0xac] sm:$0xf] %vm244_vm0, %v5127_v62  ;;  %v13563_v46 = vrot.slane %v7794_v37, 4  ;;  %6197 = vrot.lane.b32.xlu1 %v6119_v5, %s10415_s11  ;;  %7411 = vrot.lane.b32.xlu0 %v7327_v40, %s10415_s11  ;;  %v5716_v2 = vor.u32 %v5715_v61, %v13550_v63  ;;  %v9849_v37 = vpop.f32.mrf.mxu0 }
 0x342   : > { %5308 = vst [vmem:[#allocation2 + $0xb0] sm:$0x1] %v5307_v51  ;;  %7478 = vst.msk [vmem:[#allocation3 + $0x88] sm:$0xf] %vm1854_vm2, %v7394_v57  ;;  %v13565_v29 = vrot.slane %v7807_v25, 5  ;;  %v6695_v50 = vshll.u32 %v6496_v28, 16  ;;  %v9847_v9 = vadd.f32 %v9846_v44, %v9845_v32  ;;  %v5844_v22 = vpop.permute.xlu0 %5843  ;;  %v4751_v57 = vpop.f32.mrf.mxu1 }
 0x343   : > { %6453 = vst.msk [vmem:[#allocation3 + $0x78] sm:$0xf] %vm2047_vm4, %v6368_v39  ;;  %v7005_v41 = vld [vmem:[#allocation2 + $0x94] sm:$0xf]  ;;  %v6701_v59 = vshll.u32 %v13547_v11, 16  ;;  %v13570_v19 = vrot.slane %v7804_v60, 4  ;;  %v7800_v49 = vsel %vm10595_vm10, %v13563_v46, %v13493_v27  ;;  %v7954_v14 = vpop.permute.xlu1 %7953 }
 0x344   : > { %v13572_v20 = vrot.slane %v5706_v18, 4  ;;  %v5719_v12 = vshll.u32 %v5422_v47, 16  ;;  %v6694_v1 = vrot.slane %v6692_v54, 4  ;;  %v6303_v56 = vld [vmem:[#allocation2 + $0x84] sm:$0xf]  ;;  %v6697_v10 = vrot.slane %v6695_v50, 5 }
 0x345   : > { %v6705_v45 = vshrl.u32 %v13547_v11, 16  ;;  %v13576_v34 = vld [vmem:[#allocation2 + $0x68] sm:$0x1]  ;;  %v7328_v24 = vld [vmem:[#allocation2 + $0x94] sm:$0xf]  ;;  %v9570_v58 = vrot.slane %v7004_v6, 9  ;;  %6387 = vrot.lane.b32.xlu0 %v6303_v56, %s10416_s16  ;;  %v7810_v43 = vsel %vm10595_vm10, %v13570_v19, %v13565_v29  ;;  %v4588_v21 = vadd.f32 %v13299_v30, %v9847_v9 }
 0x346   : > { %v7146_v17 = vrot.slane %v7005_v41, 5  ;;  %v8095_v31 = vld [vmem:[#allocation2 + $0xa8] sm:$0xe]  ;;  %6454 = vst.msk [vmem:[#allocation3 + $0x84] sm:$0xf] %vm2047_vm4, %v6370_v26  ;;  %v6698_v55 = vor.u32 %v6697_v10, %v6694_v1  ;;  %v6703_v3 = vrot.slane %v6701_v59, 5  ;;  %7413 = vrot.lane.b32.xlu1 %v7328_v24, %s10415_s11  ;;  %v5712_v27 = vsel %vm10595_vm10, %v13572_v20, %v13550_v63 }
 0x347   : > { %8037 = vst.msk [vmem:[#allocation3 + $0x7c] sm:$0xf] %vm2047_vm4, %v7952_v48  ;;  %v10250_v42 = vld [vmem:[#allocation3 + $0x110] ss:$12 sps:$4 sm:$0xff]   ;;  %v13596_v36 = vrot.slane %v5719_v12, 5  ;;  %v13601_v53 = vrot.slane %v5716_v2, 4  ;;  %v9850_v18 = vadd.f32 %v9849_v37, %v9848_v35  ;;  %v4749_v11 = vadd.f32 %v4748_v23, %v4588_v21  ;;  %v5846_v20 = vpop.permute.xlu1 %5845  ;;  %v7204_v12 = vpop.permute.xlu0 %7203 }
 0x348   : > { %v13598_v52 = vld [vmem:[#allocation2 + $0x98] sm:$0x1]  ;;  %10066 = vmatmul.mubr.msk.bf16.gmra.mxu0 %vm4392_vm1, %v10250_v42  ;;  %v9587_v25 = vrot.slane %v8095_v31, 9  ;;  %v13604_v8 = vld [vmem:[#allocation2 + $0x9c] sm:$0xf]  ;;  %v6699_v28 = vrot.slane %v6698_v55, 4  ;;  %v13608_v60 = vsel %vm10933_vm14, %v9570_v58, %v7146_v17 }
 0x349   : > { %v6707_v13 = vrot.slane %v6705_v45, 4  ;;  %v8096_v63 = vld [vmem:[#allocation2 + $0xac] sm:$0xf]  ;;  %v8097_v47 = vld [vmem:[#allocation2 + $0xb0] sm:$0x1]  ;;  %v6711_v61 = vshll.u32 %v13576_v34, 16  ;;  %7971 = vrot.lane.b32.xlu0 %v7800_v49, %s10416_s16  ;;  %v4591_v29 = vadd.f32 %v13299_v30, %v9850_v18  ;;  %v5722_v21 = vsel %vm10595_vm10, %v13601_v53, %v13596_v36 }
 0x34a   : > { %8038 = vst.msk [vmem:[#allocation3 + $0x88] sm:$0xf] %vm2047_vm4, %v7954_v14  ;;  %v6304_v62 = vld [vmem:[#allocation2 + $0x88] sm:$0xf]  ;;  %v13613_v51 = vrot.slane %v7146_v17, 4  ;;  %v8241_v39 = vrot.slane %v8096_v63, 5  ;;  %v6704_v40 = vsel %vm10595_vm10, %v6699_v28, %v6703_v3 }
 0x34b   : > { %5927 = vst.msk [vmem:[#allocation3 + $0x90] sm:$0xf] %vm1514_vm15, %v5844_v22  ;;  %v8244_v5 = vrot.slane %v8097_v47, 5  ;;  %6389 = vrot.lane.b32.xlu1 %v6304_v62, %s10416_s16  ;;  %v7149_v6 = vrot.slane %v13598_v52, 5  ;;  %v13620_v54 = vld [vmem:[#allocation2 + $0x84] sm:$0xe]  ;;  %v6708_v41 = vor.u32 %v6707_v13, %v6703_v3  ;;  %v4752_v2 = vadd.f32 %v4751_v57, %v4591_v29 }
 0x34c   : > { %v4791_v46 = vmax.f32 %v4749_v11, 0.0  ;;  %v7533_v32 = vld [vmem:[#allocation2 + $0xa0] sm:$0xf]  ;;  %6953 = vst.msk [vmem:[#allocation3 + $0xac] sm:$0xf] %vm244_vm0, %v6704_v40  ;;  %v8242_v23 = vsel %vm10933_vm14, %v9587_v25, %v8241_v39  ;;  %v8243_v50 = vrot.slane %v8241_v39, 4 }
 0x34d   : > { %v7812_v59 = vshrl.u32 %v13604_v8, 16  ;;  %v7815_v19 = vshll.u32 %v13604_v8, 16  ;;  %v13628_v1 = vld [vmem:[#allocation2 + $0x88] sm:$0xf]  ;;  %8323 = vst.msk [vmem:[#allocation3 + $0x128] sm:$0xf] %vm244_vm0, %v8242_v23  ;;  %5863 = vrot.lane.b32.xlu0 %v5712_v27, %s10414_s29  ;;  %v6180_v27 = vpop.permute.xlu0 %6179  ;;  %v7150_v40 = vsel %vm10933_vm14, %v13613_v51, %v7149_v6 }
 0x34e   : > { %v9740_v56 = vpack.c.bf16 %v4791_v46, %v4791_v46  ;;  %v5423_v30 = vld [vmem:[#allocation2 + $0x90] sm:$0xf]  ;;  %v6709_v44 = vrot.slane %v6708_v41, 4  ;;  %v6713_v10 = vrot.slane %v6711_v61, 5  ;;  %5928 = vst.msk [vmem:[#allocation3 + $0x9c] sm:$0xf] %vm1514_vm15, %v5846_v20  ;;  %v8245_v34 = vsel %vm10933_vm14, %v8243_v50, %v8244_v5 }
 0x34f   : > { %7287 = vst.msk [vmem:[#allocation3 + $0x94] sm:$0xf] %vm1514_vm15, %v7204_v12  ;;  %v9554_v45 = vrot.slane %v13620_v54, 9  ;;  %v7821_v26 = vshll.u32 %v7533_v32, 16  ;;  %v7825_v48 = vshrl.u32 %v7533_v32, 16  ;;  %7973 = vrot.lane.b32.xlu1 %v7810_v43, %s10416_s16  ;;  %v4792_v17 = vmax.f32 %v4752_v2, 0.0  ;;  %v7206_v43 = vpop.permute.xlu1 %7205 }
 0x350   : > { %v5130_v24 = vshrl.u32 %v9740_v56, 16  ;;  %v5133_v58 = vshll.u32 %v9740_v56, 16  ;;  %8324 = vst.msk [vmem:[#allocation3 + $0x134] sm:$0xf] %vm244_vm0, %v8245_v34  ;;  %v5424_v9 = vld [vmem:[#allocation2 + $0x94] sm:$0xf]  ;;  %v6714_v31 = vsel %vm10595_vm10, %v6709_v44, %v6713_v10 }
 0x351   : > { %v6122_v49 = vrot.slane %v13628_v1, 5  ;;  %v13642_v35 = vld [vmem:[#allocation2 + $0x8c] sm:$0x1]  ;;  %v13644_v42 = vrot.slane %v7812_v59, 4  ;;  %v5724_v55 = vshrl.u32 %v5423_v30, 16  ;;  %v5727_v3 = vshll.u32 %v5423_v30, 16  ;;  %7223 = vrot.lane.b32.xlu0 %v13608_v60, %s10414_s29  ;;  %v7396_v41 = vpop.permute.xlu0 %7395 }
 0x352   : > { %6954 = vst.msk [vmem:[#allocation3 + $0xb8] sm:$0xf] %vm244_vm0, %v6714_v31  ;;  %v8351_v37 = vld [vmem:[#allocation3 + $0x78] sm:$0xff]  ;;  %v8353_v25 = vld [vmem:[#allocation3 + $0x84] sm:$0xff]  ;;  %v5132_v28 = vrot.slane %v5130_v24, 7  ;;  %v9741_v13 = vpack.c.bf16 %v4792_v17, %v4792_v17  ;;  %v13651_v14 = vrot.slane %v7815_v19, 5 }
 0x353   : > { %v10248_v8 = vld [vmem:[#allocation3 + $0x7c] ss:$12 sps:$4 sm:$0xff]   ;;  %7288 = vst.msk [vmem:[#allocation3 + $0xa0] sm:$0xf] %vm1514_vm15, %v7206_v43  ;;  %v9607_v22 = vcombine.low %v8351_v37, %v8353_v25  ;;  %v13655_v11 = vrot.slane %v7821_v26, 5  ;;  %v5733_v63 = vshll.u32 %v5424_v9, 16  ;;  %5865 = vrot.lane.b32.xlu1 %v5722_v21, %s10414_s29  ;;  %v6182_v32 = vpop.permute.xlu1 %6181  ;;  %v6123_v52 = vsel %vm10933_vm14, %v9554_v45, %v6122_v49 }
 0x354   : > { %6263 = vst.msk [vmem:[#allocation3 + $0x90] sm:$0xf] %vm1854_vm2, %v6180_v27  ;;  %v5309_v18 = vld [vmem:[#allocation2 + $0xb4] sm:$0xf]  ;;  %v5737_v47 = vshrl.u32 %v5424_v9, 16  ;;  %v5135_v36 = vor.u32 %v5133_v58, %v5132_v28  ;;  %v5138_v53 = vshrl.u32 %v9741_v13, 16  ;;  %8906 = vmatprep.mubr.bf16.mxu1 %v10248_v8  ;;  %v7818_v6 = vor.u32 %v13651_v14, %v13644_v42  ;;  %v9851_v42 = vpop.f32.mrf.mxu0 }
 0x355   : > { %v5141_v61 = vshll.u32 %v9741_v13, 16  ;;  %v7534_v62 = vld [vmem:[#allocation2 + $0xa4] sm:$0x1]  ;;  %v7827_v57 = vrot.slane %v7825_v48, 4  ;;  %v6499_v39 = vld [vmem:[#allocation2 + $0x6c] sm:$0xf]  ;;  %8907 = vmatmul.mubr.bf16.gmra.mxu1 %v9607_v22  ;;  %6199 = vrot.lane.b32.xlu0 %v6123_v52, %s10415_s11  ;;  %v6372_v24 = vpop.permute.xlu0 %6371 }
 0x356   : > { %v13660_v5 = vld [vmem:[#allocation2 + $0x70] sm:$0xf]  ;;  %v6125_v54 = vrot.slane %v13642_v35, 5  ;;  %v5313_v46 = vld [vmem:[#allocation2 + $0xbc] sm:$0x1]  ;;  %v5726_v29 = vrot.slane %v5724_v55, 4  ;;  %v5310_v59 = vsel %vm10622_vm11, %v5135_v36, %v5309_v18  ;;  %v9852_v14 = vpop.f32.mrf.mxu0 }
 0x357   : > { %v5729_v60 = vrot.slane %v5727_v3, 5  ;;  %v6124_v23 = vrot.slane %v6122_v49, 4  ;;  %v5136_v50 = vrot.slane %v5132_v28, 4  ;;  %v5140_v19 = vrot.slane %v5138_v53, 7  ;;  %v13670_v20 = vld [vmem:[#allocation2 + $0x98] sm:$0x1]  ;;  %7225 = vrot.lane.b32.xlu1 %v7150_v40, %s10414_s29  ;;  %v7398_v48 = vpop.permute.xlu1 %7397 }
 0x358   : > { %6264 = vst.msk [vmem:[#allocation3 + $0x9c] sm:$0xf] %vm1854_vm2, %v6182_v32  ;;  %7479 = vst.msk [vmem:[#allocation3 + $0x94] sm:$0xf] %vm1854_vm2, %v7396_v41  ;;  %v10251_v51 = vld [vmem:[#allocation3 + $0x128] ss:$12 sps:$4 sm:$0xff]   ;;  %v7828_v30 = vor.u32 %v7827_v57, %v13655_v11  ;;  %v9853_v53 = vadd.f32 %v9852_v14, %v9851_v42  ;;  %v9854_v40 = vpop.f32.mrf.mxu0 }
 0x359   : > { %5311 = vst [vmem:[#allocation2 + $0xb4] sm:$0xf] %v5310_v59  ;;  %v13678_v12 = vrot.slane %v5733_v63, 5  ;;  %v5739_v1 = vrot.slane %v5737_v47, 4  ;;  %v5143_v56 = vor.u32 %v5141_v61, %v5140_v19  ;;  %v5145_v2 = vrot.slane %v5140_v19, 4  ;;  %10069 = vmatprep.mubr.msk.bf16.mxu0 %vm4392_vm1, %v10251_v51 }
 0x35a   : > { %v7831_v44 = vshll.u32 %v7534_v62, 16  ;;  %v5730_v10 = vor.u32 %v5729_v60, %v5726_v29  ;;  %v6716_v45 = vshrl.u32 %v6499_v39, 16  ;;  %v6719_v34 = vshll.u32 %v6499_v39, 16  ;;  %v7329_v17 = vld [vmem:[#allocation2 + $0x9c] sm:$0xf]  ;;  %v7956_v62 = vpop.permute.xlu0 %7955  ;;  %v9855_v52 = vpop.f32.mrf.mxu0 }
 0x35b   : > { %v6725_v26 = vshll.u32 %v13660_v5, 16  ;;  %v6126_v58 = vsel %vm10933_vm14, %v6124_v23, %v6125_v54  ;;  %v5144_v9 = vsel %vm10587_vm9, %v5136_v50, %v5143_v56  ;;  %v5314_v31 = vsel %vm10578_vm8, %v5145_v2, %v5313_v46  ;;  %v13692_v35 = vld [vmem:[#allocation2 + $0xa0] sm:$0xf]  ;;  %7480 = vst.msk [vmem:[#allocation3 + $0xa0] sm:$0xf] %vm1854_vm2, %v7398_v48  ;;  %7415 = vrot.lane.b32.xlu0 %v7329_v17, %s10415_s11  ;;  %v6374_v61 = vpop.permute.xlu1 %6373 }
 0x35c   : > { %v5743_v49 = vshll.u32 %v13670_v20, 16  ;;  %6455 = vst.msk [vmem:[#allocation3 + $0x90] sm:$0xf] %vm2047_vm4, %v6372_v24  ;;  %5315 = vst [vmem:[#allocation2 + $0xbc] sm:$0x1] %v5314_v31  ;;  %v5740_v55 = vor.u32 %v5739_v1, %v13678_v12  ;;  %v6718_v43 = vrot.slane %v6716_v45, 4  ;;  %6201 = vrot.lane.b32.xlu1 %v6126_v58, %s10415_s11 }
 0x35d   : > { %5312 = vst.msk [vmem:[#allocation2 + $0xb8] sm:$0xf] %vm244_vm0, %v5144_v9  ;;  %v13698_v3 = vld [vmem:[#allocation2 + $0x9c] sm:$0xe]  ;;  %v6721_v27 = vrot.slane %v6719_v34, 5  ;;  %v6729_v21 = vshrl.u32 %v13660_v5, 16 }
 0x35e   : > { %v6501_v37 = vld [vmem:[#allocation2 + $0x74] sm:$0x1]  ;;  %v7819_v25 = vrot.slane %v7818_v6, 4  ;;  %v13703_v8 = vrot.slane %v7828_v30, 4  ;;  %v13705_v28 = vrot.slane %v7831_v44, 5  ;;  %v13707_v22 = vrot.slane %v5730_v10, 4  ;;  %v5848_v34 = vpop.permute.xlu0 %5847 }
 0x35f   : > { %v5349_v13 = vld [vmem:[#allocation2 + $0x9c] sm:$0xf]  ;;  %v7153_v18 = vrot.slane %v13692_v35, 5  ;;  %v6722_v63 = vor.u32 %v6721_v27, %v6718_v43  ;;  %v6727_v47 = vrot.slane %v6725_v26, 5  ;;  %v5350_v36 = vld [vmem:[#allocation2 + $0xa0] sm:$0xf]  ;;  %v9856_v10 = vadd.f32 %v9855_v52, %v9854_v40  ;;  %v7958_v45 = vpop.permute.xlu1 %7957 }
 0x360   : > { %5381 = vst.msk [vmem:[#allocation3 + $0x138] sm:$0xf] %vm244_vm0, %v5349_v13  ;;  %v7330_v57 = vld [vmem:[#allocation2 + $0xa0] sm:$0xf]  ;;  %v6305_v39 = vld [vmem:[#allocation2 + $0x90] sm:$0xf]  ;;  %v7824_v50 = vsel %vm10595_vm10, %v7819_v25, %v13655_v11  ;;  %v7834_v59 = vsel %vm10595_vm10, %v13703_v8, %v13705_v28  ;;  %v5736_v6 = vsel %vm10595_vm10, %v13707_v22, %v13678_v12 }
 0x361   : > { %v9571_v5 = vrot.slane %v13698_v3, 9  ;;  %5382 = vst.msk [vmem:[#allocation3 + $0x144] sm:$0xf] %vm244_vm0, %v5350_v36  ;;  %v13715_v54 = vrot.slane %v5740_v55, 4  ;;  %v13717_v46 = vrot.slane %v5743_v49, 5  ;;  %v6723_v60 = vrot.slane %v6722_v63, 4  ;;  %7417 = vrot.lane.b32.xlu1 %v7330_v57, %s10415_s11  ;;  %6391 = vrot.lane.b32.xlu0 %v6305_v39, %s10416_s16 }
 0x362   : > { %6456 = vst.msk [vmem:[#allocation3 + $0x9c] sm:$0xf] %vm2047_vm4, %v6374_v61  ;;  %8039 = vst.msk [vmem:[#allocation3 + $0x94] sm:$0xf] %vm2047_vm4, %v7956_v62  ;;  %v7009_v29 = vld [vmem:[#allocation2 + $0xa4] sm:$0x1]  ;;  %v7208_v14 = vpop.permute.xlu0 %7207 }
 0x363   : > { %v6731_v32 = vrot.slane %v6729_v21, 4  ;;  %v10282_v41 = vld [vmem:[%s14437_s2] ss:$0 sm:$0xff]  ;;  %v13731_v19 = vld [vmem:[#allocation2 + $0x90] sm:$0xe]  ;;  %v6735_v20 = vshll.u32 %v6501_v37, 16  ;;  %v6728_v11 = vsel %vm10595_vm10, %v6723_v60, %v6727_v47  ;;  %v5746_v12 = vsel %vm10595_vm10, %v13715_v54, %v13717_v46  ;;  %v5850_v13 = vpop.permute.xlu1 %5849 }
 0x364   : > { %v4596_v23 = vadd.f32 %v10282_v41, %v9853_v53  ;;  %v6306_v51 = vld [vmem:[#allocation2 + $0x94] sm:$0xf]  ;;  %v7155_v1 = vrot.slane %v7153_v18, 4  ;;  %v7535_v2 = vld [vmem:[#allocation2 + $0xa8] sm:$0xf]  ;;  %v7156_v26 = vrot.slane %v7009_v29, 5  ;;  %v4599_v42 = vadd.f32 %v10282_v41, %v9856_v10 }
 0x365   : > { %v13737_v56 = vld [vmem:[#allocation2 + $0x94] sm:$0xf]  ;;  %v6732_v30 = vor.u32 %v6731_v32, %v6727_v47  ;;  %6955 = vst.msk [vmem:[#allocation3 + $0xc4] sm:$0xf] %vm244_vm0, %v6728_v11  ;;  %v6737_v48 = vrot.slane %v6735_v20, 5  ;;  %v9555_v17 = vrot.slane %v13731_v19, 9  ;;  %6393 = vrot.lane.b32.xlu1 %v6306_v51, %s10416_s16  ;;  %7975 = vrot.lane.b32.xlu0 %v7824_v50, %s10416_s16 }
 0x366   : > { %v4757_v44 = vadd.f32 %v13538_v15, %v4596_v23  ;;  %v8098_v24 = vld [vmem:[#allocation2 + $0xb4] sm:$0xe]  ;;  %v8099_v58 = vld [vmem:[#allocation2 + $0xb8] sm:$0xf]  ;;  %8040 = vst.msk [vmem:[#allocation3 + $0xa0] sm:$0xf] %vm2047_vm4, %v7958_v45  ;;  %v13751_v15 = vsel %vm10933_vm14, %v9571_v5, %v7153_v18  ;;  %v4760_v28 = vadd.f32 %v13584_v0, %v4599_v42  ;;  %v13766_v22 = vsel %vm10933_vm14, %v7155_v1, %v7156_v26  ;;  %v6184_v20 = vpop.permute.xlu0 %6183 }
 0x367   : > { %5929 = vst.msk [vmem:[#allocation3 + $0xa8] sm:$0xf] %vm1514_vm15, %v5848_v34  ;;  %v13754_v9 = vld [vmem:[#allocation2 + $0x98] sm:$0x1]  ;;  %v13756_v31 = vld [vmem:[#allocation2 + $0xac] sm:$0xf]  ;;  %v7210_v19 = vpop.permute.xlu1 %7209 }
 0x368   : > { %v6733_v49 = vrot.slane %v6732_v30, 4  ;;  %v4793_v35 = vmax.f32 %v4757_v44, 0.0  ;;  %v6129_v55 = vrot.slane %v13737_v56, 5  ;;  %v7836_v3 = vshrl.u32 %v7535_v2, 16  ;;  %v8100_v43 = vld [vmem:[#allocation2 + $0xbc] sm:$0x1] }
 0x369   : > { %v7839_v27 = vshll.u32 %v7535_v2, 16  ;;  %v9588_v37 = vrot.slane %v8098_v24, 9  ;;  %v8248_v25 = vrot.slane %v8099_v58, 5  ;;  %v6132_v18 = vrot.slane %v13754_v9, 5  ;;  %v13769_v63 = vld [vmem:[#allocation2 + $0x9c] sm:$0xf]  ;;  %7977 = vrot.lane.b32.xlu1 %v7834_v59, %s10416_s16  ;;  %5867 = vrot.lane.b32.xlu0 %v5736_v6, %s10414_s29 }
 0x36a   : > { %v6738_v21 = vsel %vm10595_vm10, %v6733_v49, %v6737_v48  ;;  %v9742_v8 = vpack.c.bf16 %v4793_v35, %v4793_v35  ;;  %5930 = vst.msk [vmem:[#allocation3 + $0xb4] sm:$0xf] %vm1514_vm15, %v5850_v13  ;;  %7289 = vst.msk [vmem:[#allocation3 + $0xac] sm:$0xf] %vm1514_vm15, %v7208_v14  ;;  %v7845_v47 = vshll.u32 %v13756_v31, 16  ;;  %v8251_v53 = vrot.slane %v8100_v43, 5 }
 0x36b   : > { %6956 = vst.msk [vmem:[#allocation3 + $0xd0] sm:$0xf] %vm244_vm0, %v6738_v21  ;;  %v8249_v0 = vsel %vm10933_vm14, %v9588_v37, %v8248_v25  ;;  %v8250_v36 = vrot.slane %v8248_v25, 4  ;;  %v4794_v57 = vmax.f32 %v4760_v28, 0.0  ;;  %v13779_v39 = vrot.slane %v7836_v3, 4  ;;  %v8355_v52 = vld [vmem:[#allocation3 + $0x90] sm:$0xff] }
 0x36c   : > { %v5147_v61 = vshrl.u32 %v9742_v8, 16  ;;  %v5150_v62 = vshll.u32 %v9742_v8, 16  ;;  %v5427_v5 = vld [vmem:[#allocation2 + $0xa0] sm:$0xf]  ;;  %8325 = vst.msk [vmem:[#allocation3 + $0x140] sm:$0xf] %vm244_vm0, %v8249_v0  ;;  %v6130_v1 = vsel %vm10933_vm14, %v9555_v17, %v6129_v55 }
 0x36d   : > { %v5316_v40 = vld [vmem:[#allocation2 + $0xc0] sm:$0xf]  ;;  %v13782_v29 = vrot.slane %v7839_v27, 5  ;;  %v7849_v60 = vshrl.u32 %v13756_v31, 16  ;;  %v13785_v32 = vld [vmem:[#allocation2 + $0xb0] sm:$0x1]  ;;  %v8252_v23 = vsel %vm10933_vm14, %v8250_v36, %v8251_v53  ;;  %v9743_v59 = vpack.c.bf16 %v4794_v57, %v4794_v57  ;;  %5869 = vrot.lane.b32.xlu1 %v5746_v12, %s10414_s29  ;;  %7227 = vrot.lane.b32.xlu0 %v13751_v15, %s10414_s29  ;;  %v6186_v12 = vpop.permute.xlu1 %6185 }
 0x36e   : > { %v5748_v41 = vshrl.u32 %v13769_v63, 16  ;;  %v5149_v50 = vrot.slane %v5147_v61, 7  ;;  %v8357_v51 = vld [vmem:[#allocation3 + $0x9c] sm:$0xff]  ;;  %v6131_v56 = vrot.slane %v6129_v55, 4  ;;  %8326 = vst.msk [vmem:[#allocation3 + $0x14c] sm:$0xf] %vm244_vm0, %v8252_v23  ;;  %v7400_v55 = vpop.permute.xlu0 %7399 }
 0x36f   : > { %v10252_v6 = vld [vmem:[#allocation3 + $0x94] ss:$12 sps:$4 sm:$0xff]   ;;  %7290 = vst.msk [vmem:[#allocation3 + $0xb8] sm:$0xf] %vm1514_vm15, %v7210_v19  ;;  %v9610_v2 = vcombine.low %v8355_v52, %v8357_v51  ;;  %v13795_v11 = vrot.slane %v7845_v47, 5  ;;  %v5751_v30 = vshll.u32 %v13769_v63, 16  ;;  %v7842_v17 = vor.u32 %v13782_v29, %v13779_v39 }
 0x370   : > { %6265 = vst.msk [vmem:[#allocation3 + $0xa8] sm:$0xf] %vm1854_vm2, %v6184_v20  ;;  %v5757_v44 = vshll.u32 %v5427_v5, 16  ;;  %v6502_v10 = vld [vmem:[#allocation2 + $0x78] sm:$0xf]  ;;  %v5152_v45 = vor.u32 %v5150_v62, %v5149_v50  ;;  %v5155_v34 = vshrl.u32 %v9743_v59, 16  ;;  %8914 = vmatprep.mubr.bf16.mxu1 %v10252_v6  ;;  %v6133_v33 = vsel %vm10933_vm14, %v6131_v56, %v6132_v18 }
 0x371   : > { %v5158_v26 = vshll.u32 %v9743_v59, 16  ;;  %v5761_v48 = vshrl.u32 %v5427_v5, 16  ;;  %v6503_v24 = vld [vmem:[#allocation2 + $0x7c] sm:$0xf]  ;;  %v5320_v58 = vld [vmem:[#allocation2 + $0xc8] sm:$0x1]  ;;  %8915 = vmatmul.mubr.bf16.gmra.mxu1 %v9610_v2  ;;  %7229 = vrot.lane.b32.xlu1 %v13766_v22, %s10414_s29  ;;  %v7402_v61 = vpop.permute.xlu1 %7401 }
 0x372   : > { %v7851_v31 = vrot.slane %v7849_v60, 4  ;;  %v7855_v49 = vshll.u32 %v13785_v32, 16  ;;  %v13809_v35 = vrot.slane %v5748_v41, 4  ;;  %v5153_v42 = vrot.slane %v5149_v50, 4  ;;  %v5351_v3 = vld [vmem:[#allocation2 + $0xa8] sm:$0xf]  ;;  %6203 = vrot.lane.b32.xlu0 %v6130_v1, %s10415_s11  ;;  %v6376_v62 = vpop.permute.xlu0 %6375 }
 0x373   : > { %v5317_v54 = vsel %vm10622_vm11, %v5152_v45, %v5316_v40  ;;  %v5157_v46 = vrot.slane %v5155_v34, 7  ;;  %v6740_v15 = vshrl.u32 %v6502_v10, 16  ;;  %6266 = vst.msk [vmem:[#allocation3 + $0xb4] sm:$0xf] %vm1854_vm2, %v6186_v12  ;;  %7481 = vst.msk [vmem:[#allocation3 + $0xac] sm:$0xf] %vm1854_vm2, %v7400_v55 }
 0x374   : > { %5318 = vst [vmem:[#allocation2 + $0xc0] sm:$0xf] %v5317_v54  ;;  %v5753_v43 = vrot.slane %v5751_v30, 5  ;;  %v13815_v27 = vrot.slane %v5757_v44, 5  ;;  %v5428_v21 = vld [vmem:[#allocation2 + $0xa4] sm:$0x1]  ;;  %v7852_v22 = vor.u32 %v7851_v31, %v13795_v11 }
 0x375   : > { %v6743_v37 = vshll.u32 %v6502_v10, 16  ;;  %v6749_v25 = vshll.u32 %v6503_v24, 16  ;;  %5383 = vst.msk [vmem:[#allocation3 + $0x150] sm:$0xf] %vm244_vm0, %v5351_v3  ;;  %v5160_v4 = vor.u32 %v5158_v26, %v5157_v46  ;;  %v5162_v8 = vrot.slane %v5157_v46, 4  ;;  %6205 = vrot.lane.b32.xlu1 %v6133_v33, %s10415_s11  ;;  %v6378_v19 = vpop.permute.xlu1 %6377 }
 0x376   : > { %v5763_v28 = vrot.slane %v5761_v48, 4  ;;  %v6742_v13 = vrot.slane %v6740_v15, 4  ;;  %v5352_v14 = vld [vmem:[#allocation2 + $0xac] sm:$0xf]  ;;  %v10256_v63 = vld [vmem:[#allocation3 + $0x140] ss:$12 sps:$4 sm:$0xff]   ;;  %v5754_v16 = vor.u32 %v5753_v43, %v13809_v35  ;;  %v7960_v20 = vpop.permute.xlu0 %7959 }
 0x377   : > { %v6745_v47 = vrot.slane %v6743_v37, 5  ;;  %v6753_v0 = vshrl.u32 %v6503_v24, 16  ;;  %5384 = vst.msk [vmem:[#allocation3 + $0x15c] sm:$0xf] %vm244_vm0, %v5352_v14  ;;  %v5161_v36 = vsel %vm10587_vm9, %v5153_v42, %v5160_v4  ;;  %v5321_v53 = vsel %vm10578_vm8, %v5162_v8, %v5320_v58  ;;  %v6504_v57 = vld [vmem:[#allocation2 + $0x80] sm:$0x1]  ;;  %10070 = vmatmul.mubr.msk.bf16.gmra.mxu0 %vm4392_vm1, %v10256_v63 }
 0x378   : > { %5319 = vst.msk [vmem:[#allocation2 + $0xc4] sm:$0xf] %vm244_vm0, %v5161_v36  ;;  %5322 = vst [vmem:[#allocation2 + $0xc8] sm:$0x1] %v5321_v53  ;;  %v7331_v39 = vld [vmem:[#allocation2 + $0xa8] sm:$0xf]  ;;  %v5764_v9 = vor.u32 %v5763_v28, %v13815_v27 }
 0x379   : > { %7482 = vst.msk [vmem:[#allocation3 + $0xb8] sm:$0xf] %vm1854_vm2, %v7402_v61  ;;  %v7538_v5 = vld [vmem:[#allocation2 + $0xb4] sm:$0xf]  ;;  %v6746_v40 = vor.u32 %v6745_v47, %v6742_v13  ;;  %v6751_v29 = vrot.slane %v6749_v25, 5  ;;  %7419 = vrot.lane.b32.xlu0 %v7331_v39, %s10415_s11  ;;  %v7843_v60 = vrot.slane %v7842_v17, 4  ;;  %v7962_v55 = vpop.permute.xlu1 %7961 }
 0x37a   : > { %6457 = vst.msk [vmem:[#allocation3 + $0xa8] sm:$0xf] %vm2047_vm4, %v6376_v62  ;;  %v5767_v32 = vshll.u32 %v5428_v21, 16  ;;  %v6307_v41 = vld [vmem:[#allocation2 + $0x9c] sm:$0xf]  ;;  %v13838_v23 = vrot.slane %v7855_v49, 5 }
 0x37b   : > { %v7539_v18 = vld [vmem:[#allocation2 + $0xb8] sm:$0xf]  ;;  %v6747_v50 = vrot.slane %v6746_v40, 4  ;;  %v6755_v59 = vrot.slane %v6753_v0, 4  ;;  %v13841_v52 = vrot.slane %v7852_v22, 4  ;;  %v7860_v6 = vshrl.u32 %v7538_v5, 16 }
 0x37c   : > { %v13843_v51 = vld [vmem:[#allocation2 + $0xac] sm:$0xf]  ;;  %v7863_v1 = vshll.u32 %v7538_v5, 16  ;;  %v6759_v56 = vshll.u32 %v6504_v57, 16  ;;  %6458 = vst.msk [vmem:[#allocation3 + $0xb4] sm:$0xf] %vm2047_vm4, %v6378_v19  ;;  %v7848_v34 = vsel %vm10595_vm10, %v7843_v60, %v13795_v11  ;;  %v5852_v11 = vpop.permute.xlu0 %5851 }
 0x37d   : > { %8041 = vst.msk [vmem:[#allocation3 + $0xac] sm:$0xf] %vm2047_vm4, %v7960_v20  ;;  %v7332_v2 = vld [vmem:[#allocation2 + $0xac] sm:$0xf]  ;;  %v13847_v30 = vrot.slane %v5754_v16, 4  ;;  %v6752_v10 = vsel %vm10595_vm10, %v6747_v50, %v6751_v29  ;;  %v6756_v45 = vor.u32 %v6755_v59, %v6751_v29  ;;  %6395 = vrot.lane.b32.xlu0 %v6307_v41, %s10416_s16  ;;  %v13858_v26 = vrot.slane %v5767_v32, 5  ;;  %v5854_v33 = vpop.permute.xlu1 %5853 }
 0x37e   : > { %v13849_v44 = vld [vmem:[#allocation2 + $0xa8] sm:$0xe]  ;;  %7421 = vrot.lane.b32.xlu1 %v7332_v2, %s10415_s11  ;;  %v13860_v48 = vld [vmem:[#allocation2 + $0x9c] sm:$0xe]  ;;  %v7869_v24 = vshll.u32 %v7539_v18, 16  ;;  %v7873_v58 = vshrl.u32 %v7539_v18, 16  ;;  %v7858_v15 = vsel %vm10595_vm10, %v13841_v52, %v13838_v23 }
 0x37f   : > { %6957 = vst.msk [vmem:[#allocation3 + $0xdc] sm:$0xf] %vm244_vm0, %v6752_v10  ;;  %v5429_v17 = vld [vmem:[#allocation2 + $0xa8] sm:$0xf]  ;;  %v6308_v31 = vld [vmem:[#allocation2 + $0xa0] sm:$0xf]  ;;  %v5760_v25 = vsel %vm10595_vm10, %v13847_v30, %v13815_v27 }
 0x380   : > { %v13863_v49 = vrot.slane %v5764_v9, 4  ;;  %v7160_v35 = vrot.slane %v13843_v51, 5  ;;  %v5430_v42 = vld [vmem:[#allocation2 + $0xac] sm:$0xf]  ;;  %v6757_v54 = vrot.slane %v6756_v45, 4  ;;  %v6761_v46 = vrot.slane %v6759_v56, 5  ;;  %v7212_v39 = vpop.permute.xlu0 %7211 }
 0x381   : > { %v6505_v12 = vld [vmem:[#allocation2 + $0x84] sm:$0xf]  ;;  %v9572_v3 = vrot.slane %v13849_v44, 9  ;;  %v7012_v43 = vld [vmem:[#allocation2 + $0xb0] sm:$0x1]  ;;  %v13871_v21 = vrot.slane %v7860_v6, 4  ;;  %7979 = vrot.lane.b32.xlu0 %v7848_v34, %s10416_s16  ;;  %v7214_v10 = vpop.permute.xlu1 %7213 }
 0x382   : > { %v13873_v37 = vrot.slane %v7863_v1, 5  ;;  %8042 = vst.msk [vmem:[#allocation3 + $0xb8] sm:$0xf] %vm2047_vm4, %v7962_v55  ;;  %v5987_v4 = vld [vmem:[#allocation2 + $0xa0] sm:$0xf]  ;;  %v5772_v28 = vshrl.u32 %v5429_v17, 16  ;;  %v6762_v14 = vsel %vm10595_vm10, %v6757_v54, %v6761_v46  ;;  %6397 = vrot.lane.b32.xlu1 %v6308_v31, %s10416_s16  ;;  %v5770_v53 = vsel %vm10595_vm10, %v13863_v49, %v13858_v26 }
 0x383   : > { %5931 = vst.msk [vmem:[#allocation3 + $0xc0] sm:$0xf] %vm1514_vm15, %v5852_v11  ;;  %v13881_v8 = vld [vmem:[#allocation2 + $0xbc] sm:$0x1]  ;;  %v5775_v13 = vshll.u32 %v5429_v17, 16  ;;  %v13887_v63 = vrot.slane %v7869_v24, 5  ;;  %v7161_v6 = vsel %vm10933_vm14, %v9572_v3, %v7160_v35 }
 0x384   : > { %v7875_v47 = vrot.slane %v7873_v58, 4  ;;  %v5781_v0 = vshll.u32 %v5430_v42, 16  ;;  %v5785_v36 = vshrl.u32 %v5430_v42, 16  ;;  %6958 = vst.msk [vmem:[#allocation3 + $0xe8] sm:$0xf] %vm244_vm0, %v6762_v14  ;;  %v7162_v61 = vrot.slane %v7160_v35, 4  ;;  %v6188_v45 = vpop.permute.xlu0 %6187 }
 0x385   : > { %v13890_v27 = vld [vmem:[#allocation2 + $0x88] sm:$0xf]  ;;  %v7163_v62 = vrot.slane %v7012_v43, 5  ;;  %v9556_v22 = vrot.slane %v13860_v48, 9  ;;  %v13897_v57 = vld [vmem:[#allocation2 + $0xa4] sm:$0x1]  ;;  %v7866_v5 = vor.u32 %v13873_v37, %v13871_v21  ;;  %5871 = vrot.lane.b32.xlu0 %v5760_v25, %s10414_s29 }
 0x386   : > { %v6136_v16 = vrot.slane %v5987_v4, 5  ;;  %v7879_v40 = vshll.u32 %v13881_v8, 16  ;;  %v5431_v29 = vld [vmem:[#allocation2 + $0xb0] sm:$0x1]  ;;  %v6764_v60 = vshrl.u32 %v6505_v12, 16  ;;  %v5774_v32 = vrot.slane %v5772_v28, 4  ;;  %7981 = vrot.lane.b32.xlu1 %v7858_v15, %s10416_s16  ;;  %v6190_v28 = vpop.permute.xlu1 %6189 }
 0x387   : > { %5932 = vst.msk [vmem:[#allocation3 + $0xcc] sm:$0xf] %vm1514_vm15, %v5854_v33  ;;  %7291 = vst.msk [vmem:[#allocation3 + $0xc4] sm:$0xf] %vm1514_vm15, %v7212_v39  ;;  %v5777_v41 = vrot.slane %v5775_v13, 5  ;;  %v6767_v23 = vshll.u32 %v6505_v12, 16  ;;  %v7876_v50 = vor.u32 %v7875_v47, %v13887_v63  ;;  %v7164_v24 = vsel %vm10933_vm14, %v7162_v61, %v7163_v62 }
 0x388   : > { %v6773_v9 = vshll.u32 %v13890_v27, 16  ;;  %v5353_v18 = vld [vmem:[#allocation2 + $0xb4] sm:$0xf]  ;;  %v13908_v59 = vrot.slane %v5781_v0, 5  ;;  %v5787_v19 = vrot.slane %v5785_v36, 4  ;;  %v6766_v52 = vrot.slane %v6764_v60, 4  ;;  %v7404_v13 = vpop.permute.xlu0 %7403 }
 0x389   : > { %v13910_v20 = vld [vmem:[#allocation2 + $0xb4] sm:$0xe]  ;;  %5385 = vst.msk [vmem:[#allocation3 + $0x168] sm:$0xf] %vm244_vm0, %v5353_v18  ;;  %v5354_v51 = vld [vmem:[#allocation2 + $0xb8] sm:$0xf]  ;;  %v6137_v58 = vsel %vm10933_vm14, %v9556_v22, %v6136_v16  ;;  %v5778_v35 = vor.u32 %v5777_v41, %v5774_v32  ;;  %7231 = vrot.lane.b32.xlu0 %v7161_v6, %s10414_s29 }
 0x38a   : > { %v6139_v1 = vrot.slane %v13897_v57, 5  ;;  %v13916_v56 = vld [vmem:[#allocation2 + $0xb8] sm:$0xf]  ;;  %v6769_v2 = vrot.slane %v6767_v23, 5  ;;  %v6777_v30 = vshrl.u32 %v13890_v27, 16  ;;  %v8359_v34 = vld [vmem:[#allocation3 + $0xa8] sm:$0xff]  ;;  %5873 = vrot.lane.b32.xlu1 %v5770_v53, %s10414_s29  ;;  %v5788_v3 = vor.u32 %v5787_v19, %v13908_v59  ;;  %v7406_v23 = vpop.permute.xlu1 %7405 }
 0x38b   : > { %v6507_v44 = vld [vmem:[#allocation2 + $0x8c] sm:$0x1]  ;;  %5386 = vst.msk [vmem:[#allocation3 + $0x174] sm:$0xf] %vm244_vm0, %v5354_v51  ;;  %v10254_v48 = vld [vmem:[#allocation3 + $0xac] ss:$12 sps:$4 sm:$0xff]  }
 0x38c   : > { %v8361_v26 = vld [vmem:[#allocation3 + $0xb4] sm:$0xff]  ;;  %v6138_v17 = vrot.slane %v6136_v16, 4  ;;  %v5791_v31 = vshll.u32 %v5431_v29, 16  ;;  %7292 = vst.msk [vmem:[#allocation3 + $0xd0] sm:$0xf] %vm1514_vm15, %v7214_v10  ;;  %v6770_v46 = vor.u32 %v6769_v2, %v6766_v52  ;;  %v6775_v12 = vrot.slane %v6773_v9, 5  ;;  %8922 = vmatprep.mubr.bf16.mxu1 %v10254_v48  ;;  %v6380_v9 = vpop.permute.xlu0 %6379 }
 0x38d   : > { %6267 = vst.msk [vmem:[#allocation3 + $0xc0] sm:$0xf] %vm1854_vm2, %v6188_v45  ;;  %v9613_v49 = vcombine.low %v8359_v34, %v8361_v26  ;;  %v13926_v42 = vld [vmem:[#allocation2 + $0xa8] sm:$0xe]  ;;  %v7541_v54 = vld [vmem:[#allocation2 + $0xc0] sm:$0xf]  ;;  %6207 = vrot.lane.b32.xlu0 %v6137_v58, %s10415_s11 }
 0x38e   : > { %v13930_v55 = vrot.slane %v7866_v5, 4  ;;  %v13932_v11 = vrot.slane %v7876_v50, 4  ;;  %v13934_v15 = vrot.slane %v7879_v40, 5  ;;  %v5990_v43 = vld [vmem:[#allocation2 + $0xac] sm:$0xf]  ;;  %v9573_v21 = vrot.slane %v13910_v20, 9  ;;  %7233 = vrot.lane.b32.xlu1 %v7164_v24, %s10414_s29 }
 0x38f   : > { %v7167_v37 = vrot.slane %v13916_v56, 5  ;;  %v7015_v25 = vld [vmem:[#allocation2 + $0xbc] sm:$0x1]  ;;  %v6771_v4 = vrot.slane %v6770_v46, 4  ;;  %v6779_v8 = vrot.slane %v6777_v30, 4  ;;  %8923 = vmatmul.mubr.bf16.gmra.mxu1 %v9613_v49  ;;  %v13939_v14 = vrot.slane %v5791_v31, 5 }
 0x390   : > { %v7542_v47 = vld [vmem:[#allocation2 + $0xc4] sm:$0xf]  ;;  %v7884_v0 = vshrl.u32 %v7541_v54, 16  ;;  %v7887_v36 = vshll.u32 %v7541_v54, 16  ;;  %v6783_v27 = vshll.u32 %v6507_v44, 16  ;;  %v13943_v53 = vrot.slane %v5778_v35, 4  ;;  %v6382_v35 = vpop.permute.xlu1 %6381 }
 0x391   : > { %6268 = vst.msk [vmem:[#allocation3 + $0xcc] sm:$0xf] %vm1854_vm2, %v6190_v28  ;;  %7483 = vst.msk [vmem:[#allocation3 + $0xc4] sm:$0xf] %vm1854_vm2, %v7404_v13  ;;  %v6143_v61 = vrot.slane %v5990_v43, 5  ;;  %v6776_v62 = vsel %vm10595_vm10, %v6771_v4, %v6775_v12  ;;  %v6780_v22 = vor.u32 %v6779_v8, %v6775_v12  ;;  %v13949_v33 = vrot.slane %v5788_v3, 4 }
 0x392   : > { %v7170_v39 = vrot.slane %v7015_v25, 5  ;;  %v9557_v16 = vrot.slane %v13926_v42, 9  ;;  %v5991_v5 = vld [vmem:[#allocation2 + $0xb0] sm:$0x1]  ;;  %6959 = vst.msk [vmem:[#allocation3 + $0xf4] sm:$0xf] %vm244_vm0, %v6776_v62  ;;  %v6140_v18 = vsel %vm10933_vm14, %v6138_v17, %v6139_v1  ;;  %v7872_v50 = vsel %vm10595_vm10, %v13930_v55, %v13887_v63  ;;  %v7964_v42 = vpop.permute.xlu0 %7963 }
 0x393   : > { %v6785_v40 = vrot.slane %v6783_v27, 5  ;;  %v7169_v29 = vrot.slane %v7167_v37, 4  ;;  %v7893_v60 = vshll.u32 %v7542_v47, 16  ;;  %v7897_v32 = vshrl.u32 %v7542_v47, 16  ;;  %v6508_v52 = vld [vmem:[#allocation2 + $0x90] sm:$0xf]  ;;  %6209 = vrot.lane.b32.xlu1 %v6140_v18, %s10415_s11 }
 0x394   : > { %v6781_v41 = vrot.slane %v6780_v22, 4  ;;  %v7886_v19 = vrot.slane %v7884_v0, 4  ;;  %v7889_v20 = vrot.slane %v7887_v36, 5  ;;  %7484 = vst.msk [vmem:[#allocation3 + $0xd0] sm:$0xf] %vm1854_vm2, %v7406_v23  ;;  %v7882_v57 = vsel %vm10595_vm10, %v13932_v11, %v13934_v15 }
 0x395   : > { %6459 = vst.msk [vmem:[#allocation3 + $0xc0] sm:$0xf] %vm2047_vm4, %v6380_v9  ;;  %v7333_v51 = vld [vmem:[#allocation2 + $0xb4] sm:$0xf]  ;;  %v6145_v6 = vrot.slane %v6143_v61, 4  ;;  %v6146_v1 = vrot.slane %v5991_v5, 5  ;;  %v5784_v30 = vsel %vm10595_vm10, %v13943_v53, %v13908_v59  ;;  %v13977_v44 = vsel %vm10933_vm14, %v9573_v21, %v7167_v37 }
 0x396   : > { %v5432_v56 = vld [vmem:[#allocation2 + $0xb4] sm:$0xf]  ;;  %v6786_v2 = vsel %vm10595_vm10, %v6781_v41, %v6785_v40  ;;  %7423 = vrot.lane.b32.xlu0 %v7333_v51, %s10415_s11  ;;  %v13981_v10 = vsel %vm10933_vm14, %v9557_v16, %v6143_v61  ;;  %v6510_v34 = vld [vmem:[#allocation2 + $0x98] sm:$0x1]  ;;  %v6309_v26 = vld [vmem:[#allocation2 + $0xa8] sm:$0xf]  ;;  %v5794_v48 = vsel %vm10595_vm10, %v13949_v33, %v13939_v14  ;;  %v13990_v24 = vsel %vm10933_vm14, %v7169_v29, %v7170_v39  ;;  %v7966_v16 = vpop.permute.xlu1 %7965  ;;  %v5856_v5 = vpop.permute.xlu0 %5855 }
 0x397   : > { %6960 = vst.msk [vmem:[#allocation3 + $0x100] sm:$0xf] %vm244_vm0, %v6786_v2  ;;  %v6509_v45 = vld [vmem:[#allocation2 + $0x94] sm:$0xf]  ;;  %v13992_v58 = vrot.slane %v7893_v60, 5  ;;  %v13996_v31 = vrot.slane %v7897_v32, 4  ;;  %v7890_v54 = vor.u32 %v7889_v20, %v7886_v19  ;;  %v14004_v37 = vsel %vm10933_vm14, %v6145_v6, %v6146_v1  ;;  %v9891_v14 = vpop.f32.mrf.mxu1 }
 0x398   : > { %v13994_v17 = vld [vmem:[#allocation2 + $0xc8] sm:$0x1]  ;;  %v13998_v49 = vld [vmem:[#allocation2 + $0xb8] sm:$0xf]  ;;  %v5796_v46 = vshrl.u32 %v5432_v56, 16  ;;  %v6788_v12 = vshrl.u32 %v6508_v52, 16 }
 0x399   : > { %v6791_v3 = vshll.u32 %v6508_v52, 16  ;;  %v6511_v43 = vld [vmem:[#allocation2 + $0x9c] sm:$0xf]  ;;  %6460 = vst.msk [vmem:[#allocation3 + $0xcc] sm:$0xf] %vm2047_vm4, %v6382_v35  ;;  %v5799_v25 = vshll.u32 %v5432_v56, 16  ;;  %v7900_v27 = vor.u32 %v13996_v31, %v13992_v58 }
 0x39a   : > { %8043 = vst.msk [vmem:[#allocation3 + $0xc4] sm:$0xf] %vm2047_vm4, %v7964_v42  ;;  %v7334_v21 = vld [vmem:[#allocation2 + $0xb8] sm:$0xf]  ;;  %v6797_v4 = vshll.u32 %v6509_v45, 16  ;;  %v6801_v8 = vshrl.u32 %v6509_v45, 16  ;;  %6399 = vrot.lane.b32.xlu0 %v6309_v26, %s10416_s16  ;;  %v5858_v35 = vpop.permute.xlu1 %5857  ;;  %v7216_v42 = vpop.permute.xlu0 %7215 }
 0x39b   : > { %7425 = vrot.lane.b32.xlu1 %v7334_v21, %s10415_s11  ;;  %v7903_v28 = vshll.u32 %v13994_v17, 16  ;;  %v5805_v13 = vshll.u32 %v13998_v49, 16  ;;  %v6790_v47 = vrot.slane %v6788_v12, 4  ;;  %v6793_v0 = vrot.slane %v6791_v3, 5  ;;  %v6310_v36 = vld [vmem:[#allocation2 + $0xac] sm:$0xf] }
 0x39c   : > { %v6799_v61 = vrot.slane %v6797_v4, 5  ;;  %v6803_v62 = vrot.slane %v6801_v8, 4  ;;  %v6807_v22 = vshll.u32 %v6510_v34, 16  ;;  %v6512_v39 = vld [vmem:[#allocation2 + $0xa0] sm:$0xf]  ;;  %v14012_v40 = vrot.slane %v7890_v54, 4 }
 0x39d   : > { %v14014_v29 = vrot.slane %v5796_v46, 4  ;;  %v6794_v60 = vor.u32 %v6793_v0, %v6790_v47  ;;  %v6812_v32 = vshrl.u32 %v6511_v43, 16  ;;  %v6513_v41 = vld [vmem:[#allocation2 + $0xa4] sm:$0x1]  ;;  %8044 = vst.msk [vmem:[#allocation3 + $0xd0] sm:$0xf] %vm2047_vm4, %v7966_v16 }
 0x39e   : > { %5933 = vst.msk [vmem:[#allocation3 + $0xd8] sm:$0xf] %vm1514_vm15, %v5856_v5  ;;  %v14018_v23 = vrot.slane %v5799_v25, 5  ;;  %v6804_v9 = vor.u32 %v6803_v62, %v6799_v61  ;;  %v6809_v18 = vrot.slane %v6807_v22, 5  ;;  %v6815_v19 = vshll.u32 %v6511_v43, 16  ;;  %7983 = vrot.lane.b32.xlu0 %v7872_v50, %s10416_s16  ;;  %v7218_v15 = vpop.permute.xlu1 %7217 }
 0x39f   : > { %v6514_v20 = vld [vmem:[#allocation2 + $0xa8] sm:$0xf]  ;;  %6401 = vrot.lane.b32.xlu1 %v6310_v36, %s10416_s16  ;;  %v14027_v52 = vrot.slane %v5805_v13, 5  ;;  %v6795_v51 = vrot.slane %v6794_v60, 4  ;;  %v6814_v6 = vrot.slane %v6812_v32, 4  ;;  %v6821_v1 = vshll.u32 %v6512_v39, 16 }
 0x3a0   : > { %v5809_v56 = vshrl.u32 %v13998_v49, 16  ;;  %v6805_v2 = vrot.slane %v6804_v9, 4  ;;  %v6817_v45 = vrot.slane %v6815_v19, 5  ;;  %v6825_v34 = vshrl.u32 %v6512_v39, 16  ;;  %v6515_v26 = vld [vmem:[#allocation2 + $0xac] sm:$0xf] }
 0x3a1   : > { %v6800_v54 = vsel %vm10595_vm10, %v6795_v51, %v6799_v61  ;;  %v6823_v46 = vrot.slane %v6821_v1, 5  ;;  %v6831_v12 = vshll.u32 %v6513_v41, 16  ;;  %v6836_v63 = vshrl.u32 %v6514_v20, 16  ;;  %v6516_v55 = vld [vmem:[#allocation2 + $0xb0] sm:$0x1]  ;;  %v8363_v0 = vld [vmem:[#allocation3 + $0xc0] sm:$0xff] }
 0x3a2   : > { %5934 = vst.msk [vmem:[#allocation3 + $0xe4] sm:$0xf] %vm1514_vm15, %v5858_v35  ;;  %7293 = vst.msk [vmem:[#allocation3 + $0xdc] sm:$0xf] %vm1514_vm15, %v7216_v42  ;;  %v6810_v50 = vsel %vm10595_vm10, %v6805_v2, %v6809_v18  ;;  %v6818_v3 = vor.u32 %v6817_v45, %v6814_v6  ;;  %v6827_v43 = vrot.slane %v6825_v34, 4  ;;  %v6839_v21 = vshll.u32 %v6514_v20, 16  ;;  %5875 = vrot.lane.b32.xlu0 %v5784_v30, %s10414_s29  ;;  %v14056_v20 = vpop.f32.mrf.mxu0 }
 0x3a3   : > { %6961 = vst.msk [vmem:[#allocation3 + $0x10c] sm:$0xf] %vm244_vm0, %v6800_v54  ;;  %v6517_v25 = vld [vmem:[#allocation2 + $0xb4] sm:$0xf]  ;;  %7985 = vrot.lane.b32.xlu1 %v7882_v57, %s10416_s16  ;;  %6962 = vst.msk [vmem:[#allocation3 + $0x118] sm:$0xf] %vm244_vm0, %v6810_v50  ;;  %v6192_v57 = vpop.permute.xlu0 %6191  ;;  %v5802_v59 = vor.u32 %v14018_v23, %v14014_v29  ;;  %v6194_v54 = vpop.permute.xlu1 %6193 }
 0x3a4   : > { %v6833_v4 = vrot.slane %v6831_v12, 5  ;;  %v6838_v8 = vrot.slane %v6836_v63, 4  ;;  %v6845_v13 = vshll.u32 %v6515_v26, 16  ;;  %v6849_v47 = vshrl.u32 %v6515_v26, 16  ;;  %v6518_v11 = vld [vmem:[#allocation2 + $0xb8] sm:$0xf] }
 0x3a5   : > { %v6819_v36 = vrot.slane %v6818_v3, 4  ;;  %v6828_v61 = vor.u32 %v6827_v43, %v6823_v46  ;;  %v6841_v62 = vrot.slane %v6839_v21, 5  ;;  %v6855_v22 = vshll.u32 %v6516_v55, 16  ;;  %v8365_v39 = vld [vmem:[#allocation3 + $0xcc] sm:$0xff]  ;;  %7294 = vst.msk [vmem:[#allocation3 + $0xe8] sm:$0xf] %vm1514_vm15, %v7218_v15 }
 0x3a6   : > { %v10257_v16 = vld [vmem:[#allocation3 + $0xc4] ss:$12 sps:$4 sm:$0xff]   ;;  %v6847_v53 = vrot.slane %v6845_v13, 5  ;;  %v6851_v30 = vrot.slane %v6849_v47, 4  ;;  %v6860_v5 = vshrl.u32 %v6517_v25, 16  ;;  %v9616_v60 = vcombine.low %v8363_v0, %v8365_v39  ;;  %7235 = vrot.lane.b32.xlu0 %v13977_v44, %s10414_s29 }
 0x3a7   : > { %6269 = vst.msk [vmem:[#allocation3 + $0xd8] sm:$0xf] %vm1854_vm2, %v6192_v57  ;;  %v6824_v32 = vsel %vm10595_vm10, %v6819_v36, %v6823_v46  ;;  %v6829_v41 = vrot.slane %v6828_v61, 4  ;;  %v6842_v9 = vor.u32 %v6841_v62, %v6838_v8  ;;  %v6519_v18 = vld [vmem:[#allocation2 + $0xbc] sm:$0x1]  ;;  %5877 = vrot.lane.b32.xlu1 %v5794_v48, %s10414_s29  ;;  %v6857_v6 = vrot.slane %v6855_v22, 5  ;;  %8930 = vmatprep.mubr.bf16.mxu1 %v10257_v16  ;;  %v7408_v63 = vpop.permute.xlu0 %7407  ;;  %v9892_v8 = vpop.f32.mrf.mxu1 }
 0x3a8   : > { %v6520_v19 = vld [vmem:[#allocation2 + $0xc0] sm:$0xf]  ;;  %6963 = vst.msk [vmem:[#allocation3 + $0x124] sm:$0xf] %vm244_vm0, %v6824_v32  ;;  %v6852_v51 = vor.u32 %v6851_v30, %v6847_v53  ;;  %v6862_v1 = vrot.slane %v6860_v5, 4  ;;  %v6863_v2 = vshll.u32 %v6517_v25, 16  ;;  %8931 = vmatmul.mubr.bf16.gmra.mxu1 %v9616_v60  ;;  %v9029_v25 = vpop.f32.mrf.mxu0  ;;  %v9893_v61 = vadd.f32 %v9892_v8, %v9891_v14  ;;  %v7410_v15 = vpop.permute.xlu1 %7409 }
 0x3a9   : > { %v6834_v45 = vsel %vm10595_vm10, %v6829_v41, %v6833_v4  ;;  %v6843_v34 = vrot.slane %v6842_v9, 4  ;;  %v6869_v26 = vshll.u32 %v6518_v11, 16  ;;  %v6873_v35 = vshrl.u32 %v6518_v11, 16  ;;  %v6521_v42 = vld [vmem:[#allocation2 + $0xc4] sm:$0xf]  ;;  %v9894_v57 = vpop.f32.mrf.mxu1 }
 0x3aa   : > { %6964 = vst.msk [vmem:[#allocation3 + $0x130] sm:$0xf] %vm244_vm0, %v6834_v45  ;;  %v6853_v33 = vrot.slane %v6852_v51, 4  ;;  %v6865_v44 = vrot.slane %v6863_v2, 5  ;;  %v6879_v48 = vshll.u32 %v6519_v18, 16  ;;  %v6884_v46 = vshrl.u32 %v6520_v19, 16  ;;  %6211 = vrot.lane.b32.xlu0 %v13981_v10, %s10415_s11 }
 0x3ab   : > { %v8101_v12 = vld [vmem:[#allocation2 + $0xc0] sm:$0xe]  ;;  %6270 = vst.msk [vmem:[#allocation3 + $0xe4] sm:$0xf] %vm1854_vm2, %v6194_v54  ;;  %v6848_v55 = vsel %vm10595_vm10, %v6843_v34, %v6847_v53  ;;  %v6871_v50 = vrot.slane %v6869_v26, 5  ;;  %v6875_v3 = vrot.slane %v6873_v35, 4  ;;  %7237 = vrot.lane.b32.xlu1 %v13990_v24, %s10414_s29  ;;  %v6384_v5 = vpop.permute.xlu0 %6383  ;;  %v9895_v51 = vpop.f32.mrf.mxu1 }
 0x3ac   : > { %v6887_v43 = vshll.u32 %v6520_v19, 16  ;;  %v6522_v21 = vld [vmem:[#allocation2 + $0xc8] sm:$0x1]  ;;  %7485 = vst.msk [vmem:[#allocation3 + $0xdc] sm:$0xf] %vm1854_vm2, %v7408_v63  ;;  %v6858_v13 = vsel %vm10595_vm10, %v6853_v33, %v6857_v6  ;;  %v6866_v47 = vor.u32 %v6865_v44, %v6862_v1  ;;  %v6881_v0 = vrot.slane %v6879_v48, 5  ;;  %v14089_v19 = vpop.f32.mrf.mxu0  ;;  %v6386_v54 = vpop.permute.xlu1 %6385 }
 0x3ad   : > { %v14079_v4 = vld [vmem:[%s14439_s4] ss:$0 sm:$0xff]  ;;  %6965 = vst.msk [vmem:[#allocation3 + $0x13c] sm:$0xf] %vm244_vm0, %v6848_v55  ;;  %v6886_v36 = vrot.slane %v6884_v46, 4  ;;  %v6876_v24 = vor.u32 %v6875_v3, %v6871_v50  ;;  %v6893_v22 = vshll.u32 %v6521_v42, 16  ;;  %v9896_v26 = vadd.f32 %v9895_v51, %v9894_v57 }
 0x3ae   : > { %6966 = vst.msk [vmem:[#allocation3 + $0x148] sm:$0xf] %vm244_vm0, %v6858_v13  ;;  %v6889_v62 = vrot.slane %v6887_v43, 5  ;;  %v8102_v11 = vld [vmem:[#allocation2 + $0xc4] sm:$0xf]  ;;  %v6867_v39 = vrot.slane %v6866_v47, 4  ;;  %v8869_v30 = vadd.f32 %v9893_v61, %v14079_v4  ;;  %v9032_v43 = vpop.f32.mrf.mxu0 }
 0x3af   : > { %v6897_v16 = vshrl.u32 %v6521_v42, 16  ;;  %v6903_v10 = vshll.u32 %v6522_v21, 16  ;;  %v9589_v53 = vrot.slane %v8101_v12, 9  ;;  %7486 = vst.msk [vmem:[#allocation3 + $0xe8] sm:$0xf] %vm1854_vm2, %v7410_v15  ;;  %v6877_v32 = vrot.slane %v6876_v24, 4  ;;  %6213 = vrot.lane.b32.xlu1 %v14004_v37, %s10415_s11  ;;  %v7968_v63 = vpop.permute.xlu0 %7967 }
 0x3b0   : > { %v7335_v60 = vld [vmem:[#allocation2 + $0xc0] sm:$0xf]  ;;  %v6890_v41 = vor.u32 %v6889_v62, %v6886_v36  ;;  %v6895_v9 = vrot.slane %v6893_v22, 5  ;;  %v8103_v18 = vld [vmem:[#allocation2 + $0xc8] sm:$0x1]  ;;  %v6872_v6 = vsel %vm10595_vm10, %v6867_v39, %v6871_v50  ;;  %v8255_v45 = vrot.slane %v8102_v11, 5  ;;  %v7970_v47 = vpop.permute.xlu1 %7969  ;;  %v14204_v38 = vpop.f32.mrf.mxu0 }
 0x3b1   : > { %6461 = vst.msk [vmem:[#allocation3 + $0xd8] sm:$0xf] %vm2047_vm4, %v6384_v5  ;;  %7427 = vrot.lane.b32.xlu0 %v7335_v60, %s10415_s11  ;;  %v6899_v1 = vrot.slane %v6897_v16, 4  ;;  %v6905_v2 = vrot.slane %v6903_v10, 5  ;;  %v9030_v34 = vadd.f32 %v9029_v25, %v8869_v30  ;;  %v6882_v35 = vsel %vm10595_vm10, %v6877_v32, %v6881_v0  ;;  %v6311_v14 = vld [vmem:[#allocation2 + $0xb4] sm:$0xf] }
 0x3b2   : > { %6967 = vst.msk [vmem:[#allocation3 + $0x154] sm:$0xf] %vm244_vm0, %v6872_v6  ;;  %v6891_v42 = vrot.slane %v6890_v41, 4  ;;  %6968 = vst.msk [vmem:[#allocation3 + $0x160] sm:$0xf] %vm244_vm0, %v6882_v35  ;;  %v8256_v33 = vsel %vm10933_vm14, %v9589_v53, %v8255_v45  ;;  %v8257_v44 = vrot.slane %v8255_v45, 4  ;;  %v8872_v12 = vadd.f32 %v9896_v26, %v14079_v4 }
 0x3b3   : > { %v6900_v37 = vor.u32 %v6899_v1, %v6895_v9  ;;  %v8258_v48 = vrot.slane %v8103_v18, 5  ;;  %v9156_v46 = vmul.f32 0.1, %v9030_v34  ;;  %6462 = vst.msk [vmem:[#allocation3 + $0xe4] sm:$0xf] %vm2047_vm4, %v6386_v54  ;;  %v5811_v50 = vrot.slane %v5809_v56, 4 }
 0x3b4   : > { %v7336_v55 = vld [vmem:[#allocation2 + $0xc4] sm:$0xf]  ;;  %v6896_v3 = vsel %vm10595_vm10, %v6891_v42, %v6895_v9  ;;  %8327 = vst.msk [vmem:[#allocation3 + $0x158] sm:$0xf] %vm244_vm0, %v8256_v33  ;;  %v5434_v21 = vld [vmem:[#allocation2 + $0xbc] sm:$0x1]  ;;  %v9033_v13 = vadd.f32 %v9032_v43, %v8872_v12  ;;  %v7896_v36 = vsel %vm10595_vm10, %v14012_v40, %v13992_v58  ;;  %v5860_v58 = vpop.permute.xlu0 %5859  ;;  %v5862_v57 = vpop.permute.xlu1 %5861 }
 0x3b5   : > { %8045 = vst.msk [vmem:[#allocation3 + $0xdc] sm:$0xf] %vm2047_vm4, %v7968_v63  ;;  %7429 = vrot.lane.b32.xlu1 %v7336_v55, %s10415_s11  ;;  %6403 = vrot.lane.b32.xlu0 %v6311_v14, %s10416_s16  ;;  %v6901_v25 = vrot.slane %v6900_v37, 4  ;;  %v8259_v49 = vsel %vm10933_vm14, %v8257_v44, %v8258_v48  ;;  %v10283_v56 = vld [vmem:[%s10553_s28] sm:$0xff]  ;;  %v7901_v61 = vrot.slane %v7900_v27, 4  ;;  %v7905_v24 = vrot.slane %v7903_v28, 5  ;;  %v9897_v63 = vpop.f32.mrf.mxu1 }
 0x3b6   : > { %6969 = vst.msk [vmem:[#allocation3 + $0x16c] sm:$0xf] %vm244_vm0, %v6896_v3  ;;  %v9188_v8 = vadd.f32 %v10283_v56, %v9156_v46  ;;  %8328 = vst.msk [vmem:[#allocation3 + $0x164] sm:$0xf] %vm244_vm0, %v8259_v49  ;;  %v6312_v0 = vld [vmem:[#allocation2 + $0xb8] sm:$0xf]  ;;  %v5812_v31 = vor.u32 %v5811_v50, %v14027_v52 }
 0x3b7   : > { %v7016_v62 = vld [vmem:[#allocation2 + $0xc0] sm:$0xe]  ;;  %v6906_v22 = vsel %vm10595_vm10, %v6901_v25, %v6905_v2  ;;  %v9157_v11 = vmul.f32 0.1, %v9033_v13  ;;  %8046 = vst.msk [vmem:[#allocation3 + $0xe8] sm:$0xf] %vm2047_vm4, %v7970_v47  ;;  %v7906_v23 = vsel %vm10595_vm10, %v7901_v61, %v7905_v24  ;;  %v9898_v25 = vpop.f32.mrf.mxu1 }
 0x3b8   : > { %9220 = vst.msk [vmem:[%s14131_s9] sm:$0xff] %vm4392_vm1, %v9188_v8  ;;  %v5803_v17 = vrot.slane %v5802_v59, 4  ;;  %v5815_v28 = vshll.u32 %v5434_v21, 16  ;;  %v7017_v27 = vld [vmem:[#allocation2 + $0xc4] sm:$0xf]  ;;  %v9574_v39 = vrot.slane %v7016_v62, 9  ;;  %v7220_v29 = vpop.permute.xlu0 %7219  ;;  %v7222_v51 = vpop.permute.xlu1 %7221  ;;  %v9899_v49 = vadd.f32 %v9898_v25, %v9897_v63 }
 0x3b9   : > { %6970 = vst.msk [vmem:[#allocation3 + $0x178] sm:$0xf] %vm244_vm0, %v6906_v22  ;;  %6405 = vrot.lane.b32.xlu1 %v6312_v0, %s10416_s16  ;;  %7987 = vrot.lane.b32.xlu0 %v7896_v36, %s10416_s16  ;;  %v10284_v40 = vld [vmem:[%s10553_s28 + $0x8] sm:$0xff]  ;;  %v7174_v16 = vrot.slane %v7017_v27, 5  ;;  %v7544_v10 = vld [vmem:[#allocation2 + $0xcc] sm:$0xf]  ;;  %v9900_v61 = vpop.f32.mrf.mxu1 }
 0x3ba   : > { %5935 = vst.msk [vmem:[#allocation3 + $0xf0] sm:$0xf] %vm1514_vm15, %v5860_v58  ;;  %v9189_v15 = vadd.f32 %v10284_v40, %v9157_v11  ;;  %5936 = vst.msk [vmem:[#allocation3 + $0xfc] sm:$0xf] %vm1514_vm15, %v5862_v57  ;;  %v5808_v59 = vsel %vm10595_vm10, %v5803_v17, %v14027_v52  ;;  %v5813_v53 = vrot.slane %v5812_v31, 4  ;;  %v5817_v30 = vrot.slane %v5815_v28, 5 }
 0x3bb   : > { %v7018_v5 = vld [vmem:[#allocation2 + $0xc8] sm:$0x1]  ;;  %v5992_v60 = vld [vmem:[#allocation2 + $0xb4] sm:$0xe]  ;;  %7295 = vst.msk [vmem:[#allocation3 + $0xf4] sm:$0xf] %vm1514_vm15, %v7220_v29  ;;  %v7175_v6 = vsel %vm10933_vm14, %v9574_v39, %v7174_v16  ;;  %v8877_v24 = vadd.f32 %v9899_v49, %v14079_v4  ;;  %v9901_v11 = vpop.f32.mrf.mxu1 }
 0x3bc   : > { %9221 = vst.msk [vmem:[%s14131_s9 + $0x8] sm:$0xff] %vm4392_vm1, %v9189_v15  ;;  %v5993_v32 = vld [vmem:[#allocation2 + $0xb8] sm:$0xf]  ;;  %v7545_v41 = vld [vmem:[#allocation2 + $0xd0] sm:$0xf]  ;;  %v7908_v9 = vshrl.u32 %v7544_v10, 16  ;;  %v6196_v26 = vpop.permute.xlu0 %6195  ;;  %v5818_v35 = vsel %vm10595_vm10, %v5813_v53, %v5817_v30  ;;  %v6198_v12 = vpop.permute.xlu1 %6197  ;;  %v9902_v31 = vadd.f32 %v9901_v11, %v9900_v61 }
 0x3bd   : > { %7989 = vrot.lane.b32.xlu1 %v7906_v23, %s10416_s16  ;;  %5879 = vrot.lane.b32.xlu0 %v5808_v59, %s10414_s29  ;;  %v7911_v18 = vshll.u32 %v7544_v10, 16  ;;  %v8367_v1 = vld [vmem:[#allocation3 + $0xd8] sm:$0xff]  ;;  %v7177_v45 = vrot.slane %v7018_v5, 5  ;;  %v9558_v34 = vrot.slane %v5992_v60, 9  ;;  %7296 = vst.msk [vmem:[#allocation3 + $0x100] sm:$0xf] %vm1514_vm15, %v7222_v51  ;;  %v9038_v17 = vadd.f32 %v14056_v20, %v8877_v24 }
 0x3be   : > { %v8369_v52 = vld [vmem:[#allocation3 + $0xe4] sm:$0xff]  ;;  %v7176_v54 = vrot.slane %v7174_v16, 4  ;;  %v6150_v14 = vrot.slane %v5993_v32, 5  ;;  %6271 = vst.msk [vmem:[#allocation3 + $0xf0] sm:$0xf] %vm1854_vm2, %v6196_v26  ;;  %v7910_v33 = vrot.slane %v7908_v9, 4  ;;  %v8880_v7 = vadd.f32 %v9902_v31, %v14079_v4 }
 0x3bf   : > { %v10259_v2 = vld [vmem:[#allocation3 + $0xdc] ss:$12 sps:$4 sm:$0xff]   ;;  %v9619_v42 = vcombine.low %v8367_v1, %v8369_v52  ;;  %v5994_v37 = vld [vmem:[#allocation2 + $0xbc] sm:$0x1]  ;;  %v7913_v44 = vrot.slane %v7911_v18, 5  ;;  %v7917_v48 = vshll.u32 %v7545_v41, 16 }
 0x3c0   : > { %8938 = vmatprep.mubr.bf16.mxu1 %v10259_v2  ;;  %v7921_v46 = vshrl.u32 %v7545_v41, 16  ;;  %6272 = vst.msk [vmem:[#allocation3 + $0xfc] sm:$0xf] %vm1854_vm2, %v6198_v12  ;;  %v7412_v55 = vpop.permute.xlu0 %7411  ;;  %v7178_v50 = vsel %vm10933_vm14, %v7176_v54, %v7177_v45  ;;  %v6151_v3 = vsel %vm10933_vm14, %v9558_v34, %v6150_v14  ;;  %v6152_v43 = vrot.slane %v6150_v14, 4  ;;  %v7337_v56 = vld [vmem:[#allocation2 + $0xcc] sm:$0xf]  ;;  %v7414_v36 = vpop.permute.xlu1 %7413 }
 0x3c1   : > { %5881 = vrot.lane.b32.xlu1 %v5818_v35, %s10414_s29  ;;  %7239 = vrot.lane.b32.xlu0 %v7175_v6, %s10414_s29  ;;  %v6153_v21 = vrot.slane %v5994_v37, 5  ;;  %7487 = vst.msk [vmem:[#allocation3 + $0xf4] sm:$0xf] %vm1854_vm2, %v7412_v55  ;;  %v7914_v8 = vor.u32 %v7913_v44, %v7910_v33  ;;  %v7919_v13 = vrot.slane %v7917_v48, 5  ;;  %v7546_v47 = vld [vmem:[#allocation2 + $0xd4] sm:$0x1]  ;;  %v9041_v23 = vadd.f32 %v14089_v19, %v8880_v7  ;;  %v9045_v54 = vpop.f32.mrf.mxu0 }
 0x3c2   : > { %8939 = vmatmul.mubr.bf16.gmra.mxu1 %v9619_v42  ;;  %v7923_v0 = vrot.slane %v7921_v46, 4  ;;  %7488 = vst.msk [vmem:[#allocation3 + $0x100] sm:$0xf] %vm1854_vm2, %v7414_v36  ;;  %v7927_v58 = vshll.u32 %v7546_v47, 16  ;;  %v7338_v28 = vld [vmem:[#allocation2 + $0xd0] sm:$0xf] }
 0x3c3   : > { %v6154_v22 = vsel %vm10933_vm14, %v6152_v43, %v6153_v21  ;;  %v7915_v27 = vrot.slane %v7914_v8, 4  ;;  %v9158_v57 = vmul.f32 0.1, %v9038_v17  ;;  %v6313_v16 = vld [vmem:[#allocation2 + $0xc0] sm:$0xf]  ;;  %v10285_v10 = vld [vmem:[%s10553_s28 + $0x10] sm:$0xff]  ;;  %v9903_v35 = vpop.f32.mrf.mxu1  ;;  %v10052_v12 = vpop.f32.mrf.mxu0 }
 0x3c4   : > { %v6388_v62 = vpop.permute.xlu0 %6387  ;;  %v7924_v40 = vor.u32 %v7923_v0, %v7919_v13  ;;  %v6390_v15 = vpop.permute.xlu1 %6389  ;;  %v7929_v20 = vrot.slane %v7927_v58, 5  ;;  %v9159_v5 = vmul.f32 0.1, %v9041_v23  ;;  %v6314_v32 = vld [vmem:[#allocation2 + $0xc4] sm:$0xf]  ;;  %v10286_v19 = vld [vmem:[%s10553_s28 + $0x18] sm:$0xff] }
 0x3c5   : > { %7241 = vrot.lane.b32.xlu1 %v7178_v50, %s10414_s29  ;;  %6215 = vrot.lane.b32.xlu0 %v6151_v3, %s10415_s11  ;;  %6463 = vst.msk [vmem:[#allocation3 + $0xf0] sm:$0xf] %vm2047_vm4, %v6388_v62  ;;  %6464 = vst.msk [vmem:[#allocation3 + $0xfc] sm:$0xf] %vm2047_vm4, %v6390_v15  ;;  %v9190_v29 = vadd.f32 %v10285_v10, %v9158_v57  ;;  %v7920_v59 = vsel %vm10595_vm10, %v7915_v27, %v7919_v13  ;;  %v9904_v14 = vpop.f32.mrf.mxu1  ;;  %v9048_v49 = vpop.f32.mrf.mxu0  ;;  %v10288_v61 = vld [vmem:[%s10553_s28 + $0x28] sm:$0xff] }
 0x3c6   : > { %v7925_v53 = vrot.slane %v7924_v40, 4  ;;  %v9191_v41 = vadd.f32 %v10286_v19, %v9159_v5  ;;  %v9905_v37 = vadd.f32 %v9904_v14, %v9903_v35  ;;  %v10289_v19 = vld [vmem:[%s10553_s28 + $0x30] sm:$0xff] }
 0x3c7   : > { %9222 = vst.msk [vmem:[%s14131_s9 + $0x10] sm:$0xff] %vm4392_vm1, %v9190_v29  ;;  %v9906_v44 = vpop.f32.mrf.mxu1  ;;  %v14247_v14 = vpop.f32.mrf.mxu0 }
 0x3c8   : > { %v7972_v39 = vpop.permute.xlu0 %7971  ;;  %v7974_v30 = vpop.permute.xlu1 %7973  ;;  %v7930_v9 = vsel %vm10595_vm10, %v7925_v53, %v7929_v20  ;;  %9223 = vst.msk [vmem:[%s14131_s9 + $0x18] sm:$0xff] %vm4392_vm1, %v9191_v41  ;;  %v8885_v48 = vadd.f32 %v9905_v37, %v14079_v4 }
 0x3c9   : > { %6217 = vrot.lane.b32.xlu1 %v6154_v22, %s10415_s11  ;;  %7431 = vrot.lane.b32.xlu0 %v7337_v56, %s10415_s11  ;;  %8047 = vst.msk [vmem:[#allocation3 + $0xf4] sm:$0xf] %vm2047_vm4, %v7972_v39  ;;  %8048 = vst.msk [vmem:[#allocation3 + $0x100] sm:$0xf] %vm2047_vm4, %v7974_v30  ;;  %v9907_v63 = vpop.f32.mrf.mxu1  ;;  %v10287_v56 = vld [vmem:[%s10553_s28 + $0x20] sm:$0xff] }
 0x3ca   : > { %v9046_v55 = vadd.f32 %v9045_v54, %v8885_v48  ;;  %v9908_v50 = vadd.f32 %v9907_v63, %v9906_v44  ;;  %v9061_v48 = vpop.f32.mrf.mxu0 }
 0x3cc   : > { %v5864_v60 = vpop.permute.xlu0 %5863  ;;  %v5866_v18 = vpop.permute.xlu1 %5865  ;;  %v9160_v43 = vmul.f32 0.1, %v9046_v55  ;;  %v8888_v21 = vadd.f32 %v9908_v50, %v14079_v4 }
 0x3cd   : > { %7433 = vrot.lane.b32.xlu1 %v7338_v28, %s10415_s11  ;;  %6407 = vrot.lane.b32.xlu0 %v6313_v16, %s10416_s16  ;;  %5937 = vst.msk [vmem:[#allocation3 + $0x108] sm:$0xf] %vm1514_vm15, %v5864_v60  ;;  %5938 = vst.msk [vmem:[#allocation3 + $0x114] sm:$0xf] %vm1514_vm15, %v5866_v18  ;;  %s9744_s11 = sshll.u32 %s10471_s22, 12  ;;  %s9253_s22 = scalar_lea.sflag [#allocation6], %s10547_s23 }
 0x3ce   : > { %v9192_v8 = vadd.f32 %v10287_v56, %v9160_v43  ;;  %v9049_v13 = vadd.f32 %v9048_v49, %v8888_v21  ;;  %v10056_v43 = vpop.f32.mrf.mxu0  ;;  %s14385_s17 = scalar_lea.hbm %s14440_s5, %s9744_s11 }
 0x3d0   : > { %v7224_v51 = vpop.permute.xlu0 %7223  ;;  %v7226_v6 = vpop.permute.xlu1 %7225  ;;  %v8371_v1 = vld [vmem:[#allocation3 + $0xf0] sm:$0xff]  ;;  %v8373_v52 = vld [vmem:[#allocation3 + $0xfc] sm:$0xff]  ;;  %9224 = vst.msk [vmem:[%s14131_s9 + $0x20] sm:$0xff] %vm4392_vm1, %v9192_v8  ;;  %v9161_v0 = vmul.f32 0.1, %v9049_v13 }
 0x3d1   : > { %6409 = vrot.lane.b32.xlu1 %v6314_v32, %s10416_s16  ;;  %7991 = vrot.lane.b32.xlu0 %v7920_v59, %s10416_s16  ;;  %7297 = vst.msk [vmem:[#allocation3 + $0x10c] sm:$0xf] %vm1514_vm15, %v7224_v51  ;;  %v10261_v2 = vld [vmem:[#allocation3 + $0xf4] ss:$12 sps:$4 sm:$0xff]   ;;  %7298 = vst.msk [vmem:[#allocation3 + $0x118] sm:$0xf] %vm1514_vm15, %v7226_v6  ;;  %v9622_v34 = vcombine.low %v8371_v1, %v8373_v52 }
 0x3d2   : > { %8946 = vmatprep.mubr.bf16.mxu1 %v10261_v2  ;;  %v9193_v24 = vadd.f32 %v10288_v61, %v9161_v0  ;;  %v10290_v1 = vld [vmem:[%s10553_s28 + $0x38] sm:$0xff]  ;;  %v9064_v0 = vpop.f32.mrf.mxu0 }
 0x3d3   : > { %8947 = vmatmul.mubr.bf16.gmra.mxu1 %v9622_v34 }
 0x3d4   : > { %v6200_v45 = vpop.permute.xlu0 %6199  ;;  %v6202_v26 = vpop.permute.xlu1 %6201  ;;  %9225 = vst.msk [vmem:[%s14131_s9 + $0x28] sm:$0xff] %vm4392_vm1, %v9193_v24 }
 0x3d5   : > { %7993 = vrot.lane.b32.xlu1 %v7930_v9, %s10416_s16  ;;  %6273 = vst.msk [vmem:[#allocation3 + $0x108] sm:$0xf] %vm1854_vm2, %v6200_v45  ;;  %6274 = vst.msk [vmem:[#allocation3 + $0x114] sm:$0xf] %vm1854_vm2, %v6202_v26  ;;  %s9266_s16 = sshll.u32 %s14131_s9, 4  ;;  %s14387_s16 = int_to_ptr.vmem [resolvable:$true] %s9266_s16 }
 0x3d6   : > { %s10344_s26 = scalar_lea.vmem %s14387_s16, 4096  ;;  %p10351_p5 = scmp.lt.s32.totalorder %s14387_s16, %s10349_s14 }
 0x3d7   : > { %p10345_p11 = scmp.ne.s32.totalorder %s14387_s16, %s10344_s26  ;;  %p10352_p7 = scmp.lt.s32.totalorder %s10350_s15, %s10344_s26 }
 0x3d8   : > { %v7416_v42 = vpop.permute.xlu0 %7415  ;;  %v7418_v33 = vpop.permute.xlu1 %7417 }
 0x3d9   : > { %7489 = vst.msk [vmem:[#allocation3 + $0x10c] sm:$0xf] %vm1854_vm2, %v7416_v42  ;;  %7490 = vst.msk [vmem:[#allocation3 + $0x118] sm:$0xf] %vm1854_vm2, %v7418_v33  ;;  %p10346_p13 = pnand %p10345_p11, %p14461_p12  ;;  %p10353_p8 = por %p10352_p7, %p10351_p5 }
 0x3db   : > { %p10347_p4 = pneg %p10346_p13 }
 0x3dc   : > { %v6392_v46 = vpop.permute.xlu0 %6391  ;;  %v6394_v3 = vpop.permute.xlu1 %6393 }
 0x3dd   : > { %6465 = vst.msk [vmem:[#allocation3 + $0x108] sm:$0xf] %vm2047_vm4, %v6392_v46  ;;  %6466 = vst.msk [vmem:[#allocation3 + $0x114] sm:$0xf] %vm2047_vm4, %v6394_v3  ;;  %p10354_p10 = pnand %p10353_p8, %p10347_p4 }
 0x3e0   : > { %v7976_v25 = vpop.permute.xlu0 %7975  ;;  %v7978_v47 = vpop.permute.xlu1 %7977 }
 0x3e1   : > { %8049 = vst.msk [vmem:[#allocation3 + $0x10c] sm:$0xf] %vm2047_vm4, %v7976_v25  ;;  %8050 = vst.msk [vmem:[#allocation3 + $0x118] sm:$0xf] %vm2047_vm4, %v7978_v47  ;;  %v9909_v15 = vpop.f32.mrf.mxu1 }
 0x3e3   : > { %v9910_v7 = vpop.f32.mrf.mxu1 }
 0x3e4   : > { %v5868_v36 = vpop.permute.xlu0 %5867  ;;  %v5870_v62 = vpop.permute.xlu1 %5869  ;;  %v9911_v39 = vadd.f32 %v9910_v7, %v9909_v15 }
 0x3e5   : > { %5939 = vst.msk [vmem:[#allocation3 + $0x120] sm:$0xf] %vm1514_vm15, %v5868_v36  ;;  %5940 = vst.msk [vmem:[#allocation3 + $0x12c] sm:$0xf] %vm1514_vm15, %v5870_v62  ;;  %v9912_v20 = vpop.f32.mrf.mxu1  ;;  %v10291_v36 = vld [vmem:[%s10553_s28 + $0x40] sm:$0xff] }
 0x3e6   : > { %v8893_v10 = vadd.f32 %v9911_v39, %v14079_v4 }
 0x3e7   : > { %v9913_v23 = vpop.f32.mrf.mxu1 }
 0x3e8   : > { %v7228_v22 = vpop.permute.xlu0 %7227  ;;  %v7230_v11 = vpop.permute.xlu1 %7229  ;;  %v8375_v58 = vld [vmem:[#allocation3 + $0x108] sm:$0xff]  ;;  %v8377_v17 = vld [vmem:[#allocation3 + $0x114] sm:$0xff]  ;;  %v9054_v59 = vadd.f32 %v14204_v38, %v8893_v10  ;;  %v9914_v53 = vadd.f32 %v9913_v23, %v9912_v20 }
 0x3e9   : > { %7299 = vst.msk [vmem:[#allocation3 + $0x124] sm:$0xf] %vm1514_vm15, %v7228_v22  ;;  %v10263_v31 = vld [vmem:[#allocation3 + $0x10c] ss:$12 sps:$4 sm:$0xff]   ;;  %7300 = vst.msk [vmem:[#allocation3 + $0x130] sm:$0xf] %vm1514_vm15, %v7230_v11  ;;  %v9625_v27 = vcombine.low %v8375_v58, %v8377_v17 }
 0x3ea   : > { %8954 = vmatprep.mubr.bf16.mxu1 %v10263_v31  ;;  %v9162_v5 = vmul.f32 0.1, %v9054_v59  ;;  %v8896_v60 = vadd.f32 %v9914_v53, %v14079_v4  ;;  %v10292_v58 = vld [vmem:[%s10553_s28 + $0x48] sm:$0xff] }
 0x3eb   : > { %8955 = vmatmul.mubr.bf16.gmra.mxu1 %v9625_v27 }
 0x3ec   : > { %v6204_v28 = vpop.permute.xlu0 %6203  ;;  %v6206_v40 = vpop.permute.xlu1 %6205  ;;  %v9194_v41 = vadd.f32 %v10289_v19, %v9162_v5  ;;  %v9057_v9 = vadd.f32 %v10052_v12, %v8896_v60 }
 0x3ed   : > { %6275 = vst.msk [vmem:[#allocation3 + $0x120] sm:$0xf] %vm1854_vm2, %v6204_v28  ;;  %6276 = vst.msk [vmem:[#allocation3 + $0x12c] sm:$0xf] %vm1854_vm2, %v6206_v40 }
 0x3ee   : > { %9226 = vst.msk [vmem:[%s14131_s9 + $0x30] sm:$0xff] %vm4392_vm1, %v9194_v41  ;;  %v9163_v51 = vmul.f32 0.1, %v9057_v9 }
 0x3f0   : > { %v7420_v57 = vpop.permute.xlu0 %7419  ;;  %v7422_v16 = vpop.permute.xlu1 %7421  ;;  %v9195_v52 = vadd.f32 %v10290_v1, %v9163_v51 }
 0x3f1   : > { %7491 = vst.msk [vmem:[#allocation3 + $0x124] sm:$0xf] %vm1854_vm2, %v7420_v57  ;;  %7492 = vst.msk [vmem:[#allocation3 + $0x130] sm:$0xf] %vm1854_vm2, %v7422_v16 }
 0x3f2   : > { %9227 = vst.msk [vmem:[%s14131_s9 + $0x38] sm:$0xff] %vm4392_vm1, %v9195_v52 }
 0x3f4   : > { %v6396_v29 = vpop.permute.xlu0 %6395  ;;  %v6398_v30 = vpop.permute.xlu1 %6397 }
 0x3f5   : > { %6467 = vst.msk [vmem:[#allocation3 + $0x120] sm:$0xf] %vm2047_vm4, %v6396_v29  ;;  %6468 = vst.msk [vmem:[#allocation3 + $0x12c] sm:$0xf] %vm2047_vm4, %v6398_v30 }
 0x3f8   : > { %v7980_v32 = vpop.permute.xlu0 %7979  ;;  %v7982_v18 = vpop.permute.xlu1 %7981 }
 0x3f9   : > { %8051 = vst.msk [vmem:[#allocation3 + $0x124] sm:$0xf] %vm2047_vm4, %v7980_v32  ;;  %8052 = vst.msk [vmem:[#allocation3 + $0x130] sm:$0xf] %vm2047_vm4, %v7982_v18 }
 0x3fa   : > { %v9915_v33 = vpop.f32.mrf.mxu1 }
 0x3fc   : > { %v5872_v6 = vpop.permute.xlu0 %5871  ;;  %v5874_v2 = vpop.permute.xlu1 %5873 }
 0x3fd   : > { %5941 = vst.msk [vmem:[#allocation3 + $0x138] sm:$0xf] %vm1514_vm15, %v5872_v6  ;;  %5942 = vst.msk [vmem:[#allocation3 + $0x144] sm:$0xf] %vm1514_vm15, %v5874_v2  ;;  %v9916_v46 = vpop.f32.mrf.mxu1  ;;  %v10293_v6 = vld [vmem:[%s10553_s28 + $0x50] sm:$0xff] }
 0x3fe   : > { %v9917_v12 = vadd.f32 %v9916_v46, %v9915_v33  ;;  %v10059_v46 = vpop.f32.mrf.mxu0 }
 0x3ff   : > { %v9918_v55 = vpop.f32.mrf.mxu1 }
 0x400   : > { %v7232_v45 = vpop.permute.xlu0 %7231  ;;  %v7234_v34 = vpop.permute.xlu1 %7233  ;;  %v8379_v38 = vld [vmem:[#allocation3 + $0x120] sm:$0xff]  ;;  %v8381_v26 = vld [vmem:[#allocation3 + $0x12c] sm:$0xff]  ;;  %v8901_v50 = vadd.f32 %v9917_v12, %v14079_v4 }
 0x401   : > { %7301 = vst.msk [vmem:[#allocation3 + $0x13c] sm:$0xf] %vm1514_vm15, %v7232_v45  ;;  %v10265_v35 = vld [vmem:[#allocation3 + $0x124] ss:$12 sps:$4 sm:$0xff]   ;;  %7302 = vst.msk [vmem:[#allocation3 + $0x148] sm:$0xf] %vm1514_vm15, %v7234_v34  ;;  %v9628_v54 = vcombine.low %v8379_v38, %v8381_v26  ;;  %v9919_v21 = vpop.f32.mrf.mxu1 }
 0x402   : > { %8962 = vmatprep.mubr.bf16.mxu1 %v10265_v35  ;;  %v9062_v25 = vadd.f32 %v9061_v48, %v8901_v50  ;;  %v9920_v49 = vadd.f32 %v9919_v21, %v9918_v55  ;;  %v10294_v38 = vld [vmem:[%s10553_s28 + $0x58] sm:$0xff]  ;;  %v9077_v50 = vpop.f32.mrf.mxu0 }
 0x403   : > { %8963 = vmatmul.mubr.bf16.gmra.mxu1 %v9628_v54 }
 0x404   : > { %v6208_v42 = vpop.permute.xlu0 %6207  ;;  %v9164_v8 = vmul.f32 0.1, %v9062_v25  ;;  %v8904_v13 = vadd.f32 %v9920_v49, %v14079_v4 }
 0x405   : > { %6277 = vst.msk [vmem:[#allocation3 + $0x138] sm:$0xf] %vm1854_vm2, %v6208_v42  ;;  %v6210_v37 = vpop.permute.xlu1 %6209 }
 0x406   : > { %6278 = vst.msk [vmem:[#allocation3 + $0x144] sm:$0xf] %vm1854_vm2, %v6210_v37  ;;  %v9196_v61 = vadd.f32 %v10291_v36, %v9164_v8  ;;  %v9065_v24 = vadd.f32 %v9064_v0, %v8904_v13  ;;  %v10060_v8 = vpop.f32.mrf.mxu0 }
 0x408   : > { %v7424_v44 = vpop.permute.xlu0 %7423  ;;  %9228 = vst.msk [vmem:[%s14131_s9 + $0x40] sm:$0xff] %vm4392_vm1, %v9196_v61  ;;  %v9165_v22 = vmul.f32 0.1, %v9065_v24 }
 0x409   : > { %7493 = vst.msk [vmem:[#allocation3 + $0x13c] sm:$0xf] %vm1854_vm2, %v7424_v44 }
 0x40a   : > { %v9197_v17 = vadd.f32 %v10292_v58, %v9165_v22  ;;  %v9080_v22 = vpop.f32.mrf.mxu0 }
 0x40c   : > { %v6400_v3 = vpop.permute.xlu0 %6399  ;;  %9229 = vst.msk [vmem:[%s14131_s9 + $0x48] sm:$0xff] %vm4392_vm1, %v9197_v17 }
 0x40d   : > { %v7426_v63 = vpop.permute.xlu1 %7425  ;;  %6469 = vst.msk [vmem:[#allocation3 + $0x138] sm:$0xf] %vm2047_vm4, %v6400_v3 }
 0x40e   : > { %7494 = vst.msk [vmem:[#allocation3 + $0x148] sm:$0xf] %vm1854_vm2, %v7426_v63 }
 0x410   : > { %v7984_v47 = vpop.permute.xlu0 %7983 }
 0x411   : > { %v6402_v56 = vpop.permute.xlu1 %6401  ;;  %8053 = vst.msk [vmem:[#allocation3 + $0x13c] sm:$0xf] %vm2047_vm4, %v7984_v47 }
 0x412   : > { %6470 = vst.msk [vmem:[#allocation3 + $0x144] sm:$0xf] %vm2047_vm4, %v6402_v56 }
 0x414   : > { %v5876_v11 = vpop.permute.xlu0 %5875 }
 0x415   : > { %v7986_v62 = vpop.permute.xlu1 %7985  ;;  %5943 = vst.msk [vmem:[#allocation3 + $0x150] sm:$0xf] %vm1514_vm15, %v5876_v11  ;;  %v9921_v20 = vpop.f32.mrf.mxu1  ;;  %v10295_v11 = vld [vmem:[%s10553_s28 + $0x60] sm:$0xff] }
 0x416   : > { %8054 = vst.msk [vmem:[#allocation3 + $0x148] sm:$0xf] %vm2047_vm4, %v7986_v62 }
 0x417   : > { %v9922_v29 = vpop.f32.mrf.mxu1 }
 0x418   : > { %v7236_v28 = vpop.permute.xlu0 %7235  ;;  %v8383_v40 = vld [vmem:[#allocation3 + $0x138] sm:$0xff]  ;;  %v9923_v23 = vadd.f32 %v9922_v29, %v9921_v20 }
 0x419   : > { %v5878_v31 = vpop.permute.xlu1 %5877  ;;  %7303 = vst.msk [vmem:[#allocation3 + $0x154] sm:$0xf] %vm1514_vm15, %v7236_v28  ;;  %v9924_v53 = vpop.f32.mrf.mxu1 }
 0x41a   : > { %5944 = vst.msk [vmem:[#allocation3 + $0x15c] sm:$0xf] %vm1514_vm15, %v5878_v31  ;;  %v8909_v30 = vadd.f32 %v9923_v23, %v14079_v4 }
 0x41b   : > { %v9925_v60 = vpop.f32.mrf.mxu1 }
 0x41c   : > { %v6212_v7 = vpop.permute.xlu0 %6211  ;;  %v9070_v32 = vadd.f32 %v14247_v14, %v8909_v30  ;;  %v9926_v19 = vadd.f32 %v9925_v60, %v9924_v53 }
 0x41d   : > { %v7238_v27 = vpop.permute.xlu1 %7237  ;;  %v8385_v15 = vld [vmem:[#allocation3 + $0x144] sm:$0xff]  ;;  %6279 = vst.msk [vmem:[#allocation3 + $0x150] sm:$0xf] %vm1854_vm2, %v6212_v7 }
 0x41e   : > { %v10267_v57 = vld [vmem:[#allocation3 + $0x13c] ss:$12 sps:$4 sm:$0xff]   ;;  %7304 = vst.msk [vmem:[#allocation3 + $0x160] sm:$0xf] %vm1514_vm15, %v7238_v27  ;;  %v9631_v39 = vcombine.low %v8383_v40, %v8385_v15  ;;  %v9166_v9 = vmul.f32 0.1, %v9070_v32  ;;  %v8912_v18 = vadd.f32 %v9926_v19, %v14079_v4 }
 0x41f   : > { %8970 = vmatprep.mubr.bf16.mxu1 %v10267_v57  ;;  %v10296_v27 = vld [vmem:[%s10553_s28 + $0x68] sm:$0xff]  ;;  %v10274_v7 = vld [vmem:[#allocation3 + $0x158] ss:$12 sps:$4 sm:$0xff]   ;;  %v10297_v32 = vld [vmem:[%s10553_s28 + $0x70] sm:$0xff] }
 0x420   : > { %8971 = vmatmul.mubr.bf16.gmra.mxu1 %v9631_v39  ;;  %v9198_v1 = vadd.f32 %v10293_v6, %v9166_v9  ;;  %v9073_v52 = vadd.f32 %v10056_v43, %v8912_v18  ;;  %v10298_v18 = vld [vmem:[%s10553_s28 + $0x78] sm:$0xff]  ;;  %v10063_v6 = vpop.f32.mrf.mxu0 }
 0x421   : > { %v6214_v16 = vpop.permute.xlu1 %6213 }
 0x422   : > { %6280 = vst.msk [vmem:[#allocation3 + $0x15c] sm:$0xf] %vm1854_vm2, %v6214_v16  ;;  %v9167_v45 = vmul.f32 0.1, %v9073_v52  ;;  %v9093_v52 = vpop.f32.mrf.mxu0 }
 0x423   : > { %v7428_v10 = vpop.permute.xlu0 %7427  ;;  %9230 = vst.msk [vmem:[%s14131_s9 + $0x50] sm:$0xff] %vm4392_vm1, %v9198_v1 }
 0x424   : > { %7495 = vst.msk [vmem:[#allocation3 + $0x154] sm:$0xf] %vm1854_vm2, %v7428_v10  ;;  %v9199_v26 = vadd.f32 %v10294_v38, %v9167_v45  ;;  %v10275_v10 = vld [vmem:[#allocation3 + $0x170] ss:$12 sps:$4 sm:$0xff]  }
 0x426   : > { %9231 = vst.msk [vmem:[%s14131_s9 + $0x58] sm:$0xff] %vm4392_vm1, %v9199_v26  ;;  %v10064_v26 = vpop.f32.mrf.mxu0 }
 0x427   : > { %v7430_v59 = vpop.permute.xlu1 %7429  ;;  %v6404_v5 = vpop.permute.xlu0 %6403 }
 0x428   : > { %7496 = vst.msk [vmem:[#allocation3 + $0x160] sm:$0xf] %vm1854_vm2, %v7430_v59 }
 0x429   : > { %6471 = vst.msk [vmem:[#allocation3 + $0x150] sm:$0xf] %vm2047_vm4, %v6404_v5 }
 0x42b   : > { %v6406_v41 = vpop.permute.xlu1 %6405  ;;  %v7988_v51 = vpop.permute.xlu0 %7987 }
 0x42c   : > { %6472 = vst.msk [vmem:[#allocation3 + $0x15c] sm:$0xf] %vm2047_vm4, %v6406_v41  ;;  %8055 = vst.msk [vmem:[#allocation3 + $0x154] sm:$0xf] %vm2047_vm4, %v7988_v51 }
 0x42f   : > { %v7990_v2 = vpop.permute.xlu1 %7989  ;;  %v5880_v34 = vpop.permute.xlu0 %5879 }
 0x430   : > { %8056 = vst.msk [vmem:[#allocation3 + $0x160] sm:$0xf] %vm2047_vm4, %v7990_v2 }
 0x431   : > { %5945 = vst.msk [vmem:[#allocation3 + $0x168] sm:$0xf] %vm1514_vm15, %v5880_v34  ;;  %v9927_v63 = vpop.f32.mrf.mxu1 }
 0x433   : > { %v5882_v35 = vpop.permute.xlu1 %5881  ;;  %v7240_v42 = vpop.permute.xlu0 %7239  ;;  %v8387_v14 = vld [vmem:[#allocation3 + $0x150] sm:$0xff] }
 0x434   : > { %5946 = vst.msk [vmem:[#allocation3 + $0x174] sm:$0xf] %vm1514_vm15, %v5882_v35  ;;  %7305 = vst.msk [vmem:[#allocation3 + $0x16c] sm:$0xf] %vm1514_vm15, %v7240_v42  ;;  %v9928_v3 = vpop.f32.mrf.mxu1 }
 0x435   : > { %v9929_v43 = vadd.f32 %v9928_v3, %v9927_v63  ;;  %v10300_v63 = vld [vmem:[%s10553_s28 + $0x88] sm:$0xff] }
 0x436   : > { %v9930_v25 = vpop.f32.mrf.mxu1 }
 0x437   : > { %v7242_v54 = vpop.permute.xlu1 %7241  ;;  %v8389_v37 = vld [vmem:[#allocation3 + $0x15c] sm:$0xff]  ;;  %v6216_v44 = vpop.permute.xlu0 %6215  ;;  %v8917_v49 = vadd.f32 %v9929_v43, %v14079_v4 }
 0x438   : > { %v10269_v33 = vld [vmem:[#allocation3 + $0x154] ss:$12 sps:$4 sm:$0xff]   ;;  %7306 = vst.msk [vmem:[#allocation3 + $0x178] sm:$0xf] %vm1514_vm15, %v7242_v54  ;;  %v9634_v48 = vcombine.low %v8387_v14, %v8389_v37  ;;  %v9931_v13 = vpop.f32.mrf.mxu1 }
 0x439   : > { %6281 = vst.msk [vmem:[#allocation3 + $0x168] sm:$0xf] %vm1854_vm2, %v6216_v44  ;;  %8978 = vmatprep.mubr.bf16.mxu1 %v10269_v33  ;;  %v9078_v47 = vadd.f32 %v9077_v50, %v8917_v49  ;;  %v9932_v0 = vadd.f32 %v9931_v13, %v9930_v25  ;;  %v9096_v33 = vpop.f32.mrf.mxu0  ;;  %v10299_v44 = vld [vmem:[%s10553_s28 + $0x80] sm:$0xff] }
 0x43a   : > { %8979 = vmatmul.mubr.bf16.gmra.mxu1 %v9634_v48 }
 0x43b   : > { %v6218_v12 = vpop.permute.xlu1 %6217  ;;  %v7432_v55 = vpop.permute.xlu0 %7431  ;;  %v9168_v61 = vmul.f32 0.1, %v9078_v47  ;;  %v8920_v24 = vadd.f32 %v9932_v0, %v14079_v4  ;;  %v10301_v0 = vld [vmem:[%s10553_s28 + $0x90] sm:$0xff] }
 0x43c   : > { %6282 = vst.msk [vmem:[#allocation3 + $0x174] sm:$0xf] %vm1854_vm2, %v6218_v12  ;;  %7497 = vst.msk [vmem:[#allocation3 + $0x16c] sm:$0xf] %vm1854_vm2, %v7432_v55 }
 0x43d   : > { %v9200_v58 = vadd.f32 %v10295_v11, %v9168_v61  ;;  %v9081_v17 = vadd.f32 %v9080_v22, %v8920_v24  ;;  %v10067_v11 = vpop.f32.mrf.mxu0 }
 0x43f   : > { %v7434_v21 = vpop.permute.xlu1 %7433  ;;  %v6408_v56 = vpop.permute.xlu0 %6407  ;;  %9232 = vst.msk [vmem:[%s14131_s9 + $0x60] sm:$0xff] %vm4392_vm1, %v9200_v58  ;;  %v9169_v28 = vmul.f32 0.1, %v9081_v17 }
 0x440   : > { %7498 = vst.msk [vmem:[#allocation3 + $0x178] sm:$0xf] %vm1854_vm2, %v7434_v21  ;;  %v9109_v17 = vpop.f32.mrf.mxu0 }
 0x441   : > { %6473 = vst.msk [vmem:[#allocation3 + $0x168] sm:$0xf] %vm2047_vm4, %v6408_v56  ;;  %v9201_v40 = vadd.f32 %v10296_v27, %v9169_v28 }
 0x443   : > { %v6410_v36 = vpop.permute.xlu1 %6409  ;;  %v7992_v62 = vpop.permute.xlu0 %7991  ;;  %9233 = vst.msk [vmem:[%s14131_s9 + $0x68] sm:$0xff] %vm4392_vm1, %v9201_v40 }
 0x444   : > { %6474 = vst.msk [vmem:[#allocation3 + $0x174] sm:$0xf] %vm2047_vm4, %v6410_v36  ;;  %8057 = vst.msk [vmem:[#allocation3 + $0x16c] sm:$0xf] %vm2047_vm4, %v7992_v62  ;;  %v10302_v62 = vld [vmem:[%s10553_s28 + $0x98] sm:$0xff] }
 0x447   : > { %v7994_v31 = vpop.permute.xlu1 %7993 }
 0x448   : > { %8058 = vst.msk [vmem:[#allocation3 + $0x178] sm:$0xf] %vm2047_vm4, %v7994_v31 }
 0x44b   : > { %v10273_v57 = vld [vmem:[#allocation3 + $0x168] ss:$12 sps:$4 sm:$0xff]  }
 0x44f   : > { %v10271_v15 = vld [vmem:[#allocation3 + $0x16c] ss:$12 sps:$4 sm:$0xff]   ;;  %v9933_v39 = vpop.f32.mrf.mxu1 }
 0x450   : > { %8986 = vmatprep.mubr.bf16.mxu1 %v10271_v15  ;;  %v10068_v15 = vpop.f32.mrf.mxu0 }
 0x451   : > { %8987 = vmatmul.mubr.bf16.gmra.mxu1 %v10273_v57  ;;  %v9934_v16 = vpop.f32.mrf.mxu1 }
 0x452   : > { %10073 = vmatprep.mubr.msk.bf16.mxu1 %vm4392_vm1, %v10274_v7  ;;  %v9935_v20 = vadd.f32 %v9934_v16, %v9933_v39 }
 0x453   : > { %v9936_v29 = vpop.f32.mrf.mxu1 }
 0x454   : > { %v8925_v23 = vadd.f32 %v9935_v20, %v14079_v4 }
 0x455   : > { %v9937_v59 = vpop.f32.mrf.mxu1 }
 0x456   : > { %v9086_v53 = vadd.f32 %v10059_v46, %v8925_v23  ;;  %v9938_v30 = vadd.f32 %v9937_v59, %v9936_v29  ;;  %v10303_v29 = vld [vmem:[%s10553_s28 + $0xa0] sm:$0xff] }
 0x458   : > { %v9170_v5 = vmul.f32 0.1, %v9086_v53  ;;  %v8928_v60 = vadd.f32 %v9938_v30, %v14079_v4  ;;  %v10304_v30 = vld [vmem:[%s10553_s28 + $0xa8] sm:$0xff] }
 0x459   : > { %10074 = vmatmul.mubr.msk.bf16.vlgmr.msra.gmra.mxu1 %vm4392_vm1, %v10275_v10  ;;  %v9112_v10 = vpop.f32.mrf.mxu0 }
 0x45a   : > { %v9202_v19 = vadd.f32 %v10297_v32, %v9170_v5  ;;  %v9089_v41 = vadd.f32 %v10060_v8, %v8928_v60 }
 0x45c   : > { %9234 = vst.msk [vmem:[%s14131_s9 + $0x70] sm:$0xff] %vm4392_vm1, %v9202_v19  ;;  %v9171_v9 = vmul.f32 0.1, %v9089_v41 }
 0x45e   : > { %v9203_v51 = vadd.f32 %v10298_v18, %v9171_v9 }
 0x460   : > { %9235 = vst.msk [vmem:[%s14131_s9 + $0x78] sm:$0xff] %vm4392_vm1, %v9203_v51 }
 0x468   : > { %v9939_v1 = vpop.f32.mrf.mxu1 }
 0x46a   : > { %v9940_v2 = vpop.f32.mrf.mxu1 }
 0x46b   : > { %v9941_v45 = vadd.f32 %v9940_v2, %v9939_v1  ;;  %v10306_v2 = vld [vmem:[%s10553_s28 + $0xb0] sm:$0xff] }
 0x46c   : > { %v9942_v34 = vpop.f32.mrf.mxu1 }
 0x46d   : > { %v8933_v38 = vadd.f32 %v9941_v45, %v14079_v4 }
 0x46e   : > { %v9943_v35 = vpop.f32.mrf.mxu1 }
 0x46f   : > { %v9094_v42 = vadd.f32 %v9093_v52, %v8933_v38  ;;  %v9944_v54 = vadd.f32 %v9943_v35, %v9942_v34 }
 0x471   : > { %v9172_v14 = vmul.f32 0.1, %v9094_v42  ;;  %v8936_v37 = vadd.f32 %v9944_v54, %v14079_v4  ;;  %v10071_v42 = vpop.f32.mrf.mxu0 }
 0x473   : > { %v9204_v48 = vadd.f32 %v10299_v44, %v9172_v14  ;;  %v9097_v46 = vadd.f32 %v9096_v33, %v8936_v37  ;;  %v9125_v14 = vpop.f32.mrf.mxu0 }
 0x475   : > { %9236 = vst.msk [vmem:[%s14131_s9 + $0x80] sm:$0xff] %vm4392_vm1, %v9204_v48  ;;  %v9173_v12 = vmul.f32 0.1, %v9097_v46  ;;  %v10072_v46 = vpop.f32.mrf.mxu0 }
 0x477   : > { %v9205_v55 = vadd.f32 %v10300_v63, %v9173_v12 }
 0x479   : > { %9237 = vst.msk [vmem:[%s14131_s9 + $0x88] sm:$0xff] %vm4392_vm1, %v9205_v55 }
 0x482   : > { %v9945_v50 = vpop.f32.mrf.mxu1 }
 0x484   : > { %v9946_v3 = vpop.f32.mrf.mxu1 }
 0x485   : > { %v9947_v43 = vadd.f32 %v9946_v3, %v9945_v50 }
 0x486   : > { %v9948_v21 = vpop.f32.mrf.mxu1 }
 0x487   : > { %v8941_v25 = vadd.f32 %v9947_v43, %v14079_v4  ;;  %v9128_v43 = vpop.f32.mrf.mxu0 }
 0x488   : > { %v9949_v49 = vpop.f32.mrf.mxu1 }
 0x489   : > { %v9102_v56 = vadd.f32 %v10063_v6, %v8941_v25  ;;  %v9950_v8 = vadd.f32 %v9949_v49, %v9948_v21  ;;  %v10308_v21 = vld [vmem:[%s10553_s28 + $0xc0] sm:$0xff] }
 0x48b   : > { %v9174_v13 = vmul.f32 0.1, %v9102_v56  ;;  %v8944_v47 = vadd.f32 %v9950_v8, %v14079_v4  ;;  %v10309_v8 = vld [vmem:[%s10553_s28 + $0xc8] sm:$0xff] }
 0x48d   : > { %v9206_v36 = vadd.f32 %v10301_v0, %v9174_v13  ;;  %v9105_v61 = vadd.f32 %v10064_v26, %v8944_v47  ;;  %v10307_v26 = vld [vmem:[%s10553_s28 + $0xb8] sm:$0xff] }
 0x48f   : > { %9238 = vst.msk [vmem:[%s14131_s9 + $0x90] sm:$0xff] %vm4392_vm1, %v9206_v36  ;;  %v9175_v24 = vmul.f32 0.1, %v9105_v61 }
 0x491   : > { %v9207_v22 = vadd.f32 %v10302_v62, %v9175_v24 }
 0x493   : > { %9239 = vst.msk [vmem:[%s14131_s9 + $0x98] sm:$0xff] %vm4392_vm1, %v9207_v22  ;;  %v9951_v58 = vpop.f32.mrf.mxu1 }
 0x495   : > { %v9952_v31 = vpop.f32.mrf.mxu1 }
 0x496   : > { %v9953_v28 = vadd.f32 %v9952_v31, %v9951_v58  ;;  %v10310_v31 = vld [vmem:[%s10553_s28 + $0xd0] sm:$0xff] }
 0x497   : > { %v9954_v27 = vpop.f32.mrf.mxu1 }
 0x498   : > { %v8949_v40 = vadd.f32 %v9953_v28, %v14079_v4 }
 0x499   : > { %v9955_v57 = vpop.f32.mrf.mxu1 }
 0x49a   : > { %v9110_v7 = vadd.f32 %v9109_v17, %v8949_v40  ;;  %v9956_v39 = vadd.f32 %v9955_v57, %v9954_v27 }
 0x49c   : > { %v9176_v16 = vmul.f32 0.1, %v9110_v7  ;;  %v8952_v20 = vadd.f32 %v9956_v39, %v14079_v4  ;;  %v14343_v4 = vld [vmem:[%s14439_s4] ss:$0 sm:$0xff] }
 0x49e   : > { %v9208_v23 = vadd.f32 %v10303_v29, %v9176_v16  ;;  %v9113_v59 = vadd.f32 %v9112_v10, %v8952_v20 }
 0x4a0   : > { %9240 = vst.msk [vmem:[%s14131_s9 + $0xa0] sm:$0xff] %vm4392_vm1, %v9208_v23  ;;  %v9177_v53 = vmul.f32 0.1, %v9113_v59 }
 0x4a2   : > { %v9209_v5 = vadd.f32 %v10304_v30, %v9177_v53 }
 0x4a4   : > { %9241 = vst.msk [vmem:[%s14131_s9 + $0xa8] sm:$0xff] %vm4392_vm1, %v9209_v5 }
 0x4ab   : > { %v9957_v60 = vpop.f32.mrf.mxu1 }
 0x4ad   : > { %v9958_v32 = vpop.f32.mrf.mxu1 }
 0x4ae   : > { %v9959_v19 = vadd.f32 %v9958_v32, %v9957_v60 }
 0x4af   : > { %v9960_v41 = vpop.f32.mrf.mxu1 }
 0x4b0   : > { %v8957_v9 = vadd.f32 %v14343_v4, %v9959_v19 }
 0x4b1   : > { %v9961_v18 = vpop.f32.mrf.mxu1 }
 0x4b2   : > { %v9118_v51 = vadd.f32 %v10067_v11, %v8957_v9  ;;  %v9962_v6 = vadd.f32 %v9961_v18, %v9960_v41 }
 0x4b4   : > { %v9178_v1 = vmul.f32 0.1, %v9118_v51  ;;  %v8960_v52 = vadd.f32 %v14343_v4, %v9962_v6 }
 0x4b6   : > { %v9210_v45 = vadd.f32 %v10306_v2, %v9178_v1  ;;  %v9121_v34 = vadd.f32 %v10068_v15, %v8960_v52  ;;  %v10311_v15 = vld [vmem:[%s10553_s28 + $0xd8] sm:$0xff]  ;;  %v10312_v2 = vld [vmem:[%s10553_s28 + $0xf0] sm:$0xff] }
 0x4b8   : > { %9242 = vst.msk [vmem:[%s14131_s9 + $0xb0] sm:$0xff] %vm4392_vm1, %v9210_v45  ;;  %v9179_v38 = vmul.f32 0.1, %v9121_v34 }
 0x4ba   : > { %v9211_v35 = vadd.f32 %v10307_v26, %v9179_v38 }
 0x4bc   : > { %9243 = vst.msk [vmem:[%s14131_s9 + $0xb8] sm:$0xff] %vm4392_vm1, %v9211_v35 }
 0x4c3   : > { %v9963_v54 = vpop.f32.mrf.mxu1 }
 0x4c5   : > { %v9964_v37 = vpop.f32.mrf.mxu1 }
 0x4c6   : > { %v9965_v33 = vadd.f32 %v9964_v37, %v9963_v54 }
 0x4c7   : > { %v9966_v44 = vpop.f32.mrf.mxu1 }
 0x4c8   : > { %v8965_v48 = vadd.f32 %v14343_v4, %v9965_v33  ;;  %v10314_v33 = vld [vmem:[%s10553_s28 + $0xf8] sm:$0xff] }
 0x4c9   : > { %v9967_v12 = vpop.f32.mrf.mxu1 }
 0x4ca   : > { %v9126_v63 = vadd.f32 %v9125_v14, %v8965_v48  ;;  %v9968_v55 = vadd.f32 %v9967_v12, %v9966_v44 }
 0x4cc   : > { %v9180_v50 = vmul.f32 0.1, %v9126_v63  ;;  %v8968_v3 = vadd.f32 %v14343_v4, %v9968_v55 }
 0x4ce   : > { %v9212_v25 = vadd.f32 %v10308_v21, %v9180_v50  ;;  %v9129_v49 = vadd.f32 %v9128_v43, %v8968_v3 }
 0x4d0   : > { %9244 = vst.msk [vmem:[%s14131_s9 + $0xc0] sm:$0xff] %vm4392_vm1, %v9212_v25  ;;  %v9181_v56 = vmul.f32 0.1, %v9129_v49 }
 0x4d2   : > { %v9213_v13 = vadd.f32 %v10309_v8, %v9181_v56 }
 0x4d4   : > { %9245 = vst.msk [vmem:[%s14131_s9 + $0xc8] sm:$0xff] %vm4392_vm1, %v9213_v13 }
 0x4e0   : > { %v9969_v47 = vpop.f32.mrf.mxu1 }
 0x4e2   : > { %v9970_v0 = vpop.f32.mrf.mxu1 }
 0x4e3   : > { %v9971_v36 = vadd.f32 %v9970_v0, %v9969_v47 }
 0x4e4   : > { %v9972_v61 = vpop.f32.mrf.mxu1 }
 0x4e5   : > { %v8973_v24 = vadd.f32 %v14343_v4, %v9971_v36 }
 0x4e6   : > { %v9973_v62 = vpop.f32.mrf.mxu1 }
 0x4e7   : > { %v9134_v22 = vadd.f32 %v10071_v42, %v8973_v24  ;;  %v9974_v11 = vadd.f32 %v9973_v62, %v9972_v61  ;;  %v10313_v42 = vld [vmem:[%s10553_s28 + $0xe0] sm:$0xff] }
 0x4e9   : > { %v9182_v58 = vmul.f32 0.1, %v9134_v22  ;;  %v8976_v17 = vadd.f32 %v14343_v4, %v9974_v11 }
 0x4eb   : > { %v9214_v28 = vadd.f32 %v10310_v31, %v9182_v58  ;;  %v9137_v27 = vadd.f32 %v10072_v46, %v8976_v17 }
 0x4ed   : > { %9246 = vst.msk [vmem:[%s14131_s9 + $0xd0] sm:$0xff] %vm4392_vm1, %v9214_v28  ;;  %v9183_v40 = vmul.f32 0.1, %v9137_v27 }
 0x4ef   : > { %v9215_v57 = vadd.f32 %v10311_v15, %v9183_v40 }
 0x4f1   : > { %9247 = vst.msk [vmem:[%s14131_s9 + $0xd8] sm:$0xff] %vm4392_vm1, %v9215_v57 }
 0x4fa   : > { %v9975_v7 = vpop.f32.mrf.mxu1 }
 0x4fc   : > { %v9976_v39 = vpop.f32.mrf.mxu1 }
 0x4fd   : > { %v9977_v53 = vadd.f32 %v9976_v39, %v9975_v7 }
 0x4fe   : > { %v9978_v16 = vpop.f32.mrf.mxu1 }
 0x4ff   : > { %v8981_v9 = vadd.f32 %v14343_v4, %v9977_v53 }
 0x500   : > { %v9979_v20 = vpop.f32.mrf.mxu1 }
 0x501   : > { %v9980_v19 = vadd.f32 %v9979_v20, %v9978_v16 }
 0x503   : > { %v8984_v26 = vadd.f32 %v14343_v4, %v9980_v19 }
 0x511   : > { %v9981_v10 = vpop.f32.mrf.mxu1 }
 0x513   : > { %v9982_v29 = vpop.f32.mrf.mxu1 }
 0x514   : > { %v9983_v23 = vadd.f32 %v9982_v29, %v9981_v10 }
 0x515   : > { %v9984_v59 = vpop.f32.mrf.mxu1 }
 0x516   : > { %v8989_v60 = vadd.f32 %v14343_v4, %v9983_v23 }
 0x517   : > { %v9985_v30 = vpop.f32.mrf.mxu1 }
 0x518   : > { %v9986_v5 = vadd.f32 %v9985_v30, %v9984_v59 }
 0x519   : > { %v10075_v32 = vpop.f32.mrf.mxu1 }
 0x51a   : > { %v9150_v41 = vadd.f32 %v10075_v32, %v8989_v60  ;;  %v8992_v1 = vadd.f32 %v14343_v4, %v9986_v5  ;;  %v10315_v4 = vld [vmem:[%s10553_s28 + $0xe8] sm:$0xff] }
 0x51b   : > { %v9141_v18 = vpop.f32.mrf.mxu1 }
 0x51c   : > { %v9186_v51 = vmul.f32 0.1, %v9150_v41  ;;  %v9142_v6 = vadd.f32 %v9141_v18, %v8981_v9 }
 0x51d   : > { %v10076_v52 = vpop.f32.mrf.mxu1 }
 0x51e   : > { %v9218_v45 = vadd.f32 %v10312_v2, %v9186_v51  ;;  %v9184_v34 = vmul.f32 0.1, %v9142_v6  ;;  %v9153_v38 = vadd.f32 %v10076_v52, %v8992_v1 }
 0x51f   : > { %v9144_v35 = vpop.f32.mrf.mxu1 }
 0x520   : > { %9250 = vst.msk [vmem:[%s14131_s9 + $0xf0] sm:$0xff] %vm4392_vm1, %v9218_v45  ;;  %v9216_v54 = vadd.f32 %v10313_v42, %v9184_v34  ;;  %v9187_v14 = vmul.f32 0.1, %v9153_v38  ;;  %v9145_v37 = vadd.f32 %v9144_v35, %v8984_v26 }
 0x522   : > { %9248 = vst.msk [vmem:[%s14131_s9 + $0xe0] sm:$0xff] %vm4392_vm1, %v9216_v54  ;;  %v9219_v44 = vadd.f32 %v10314_v33, %v9187_v14  ;;  %v9185_v48 = vmul.f32 0.1, %v9145_v37 }
 0x524   : > { %9251 = vst.msk [vmem:[%s14131_s9 + $0xf8] sm:$0xff] %vm4392_vm1, %v9219_v44  ;;  %v9217_v46 = vadd.f32 %v10315_v4, %v9185_v48 }
 0x526   : > { %9249 = vst.msk [vmem:[%s14131_s9 + $0xe8] sm:$0xff] %vm4392_vm1, %v9217_v46 }
 0x527   : > { %10357 = shalt.err (!%p10354_p10)
}
 0x528   : > { %s10358_s28 = scalar_lea.hbm %s14385_s17, 4096  ;;  %s10362_s9 = scalar_lea.hbm %s14440_s5, 8192 }
 0x529   : > { %p10359_p0 = scmp.ne.s32.totalorder %s14385_s17, %s10358_s28  ;;  %p10363_p1 = scmp.lt.s32.totalorder %s14385_s17, %s14440_s5 }
 0x52a   : > { %p10364_p3 = scmp.lt.s32.totalorder %s10362_s9, %s10358_s28 }
 0x52b   : > { %p10360_p2 = pnand %p10359_p0, %p14461_p12 }
 0x52c   : > { %p10365_p6 = por %p10364_p3, %p10363_p1 }
 0x52d   : > { %p10361_p9 = pneg %p10360_p2 }
 0x52f   : > { %p10366_p11 = pnand %p10365_p6, %p10361_p9 }
 0x531   : > { %10369 = shalt.err (!%p10366_p11)
}
 0x532   : > { %s10418_s11 = smov 128   ;;  %s10419_s10 = smov 8  }
 0x533   : > { %10083 = dma.vmem_to_hbm [thread:$0]  (%p14461_p12), %s14387_s16, 4096, %s14385_s17, %s9253_s22, %s10418_s11, %s10418_s11, %s10419_s10  }
 0x534 PF: > { %s9281_s13 = sand.u32 1, %s10396_s18   ;;  %p14462_p13 = scmp.ne.s32.totalorder %s14446_s6, 0 }
 0x535   : > { %p14463_p4 = scmp.ge.s32.totalorder %s10408_s21, 2  ;;  %s9282_s26 = scalar_lea.sflag [#allocation6], %s9281_s13 }
 0x537   : > { %p10090_p5 = pnand %p14463_p4, %p14462_p13 }
 0x539   : > { %p10091_p7 = pneg %p10090_p5 }
 0x53b   : > { %10391 = dma.done.wait (%p10091_p7), %s9282_s26, 4096  }
 0x53c   : > { %10393 = vsyncadd (%p10091_p7), %s9282_s26, 4294963200  ;;  %p18_p8 = scmp.ge.s32.totalorder %s10475_s24, 4   ;;  %s14464_s18 = smov %s10400_s19 }
 0x53d   : > { %s14465_s19 = smov %s10404_s20  ;;  %s14466_s20 = smov %s10487_s27 }
 0x53e   : > { %s14467_s21 = smov %s10475_s24  ;;  %20 = sbr.rel (!%p18_p8) target bundleno = 5 (0x5), region = 88 }
 0x543   :  { %9287 = vsyncpa [#allocation5], 1 }
 0x544   :  { %9289 = vsyncpa [#allocation5 + $0x1], 1 }
 0x545   :  { %9290 = vsyncpa [#allocation6], 1 }
 0x546   :  { %9292 = vsyncpa [#allocation6 + $0x1], 1 }

</bundles_post_ra>
